<compile_context>
chip_gen: v6e
topology: v6e:2x2x1
jax: 0.10.0
libtpu: 0.0.40
codegen_flags: <defaults>
</compile_context>

<pallas_src>
import math

import jax
import jax.numpy as jnp
from jax.experimental import pallas as pl
from jax.experimental.pallas import tpu as pltpu

D_MODEL = 64
N_HEADS = 8
D_HEAD = D_MODEL // N_HEADS
D_FF = 256


# ----------------------------------------------------------------------------
# Kernel
# ----------------------------------------------------------------------------
def soh_kernel(x_ref, coef_ref, w1g_ref, b1_ref, w2_ref, b2_ref, o_ref):
    """x_ref: (L, bt) f32 with batch on lanes.  coef_ref: (4, H) f32 in SMEM.
    w1g_ref: (D_FF, H).  b1_ref / w2_ref: (D_FF, 1).  b2_ref: (1, 1).
    o_ref: (1, bt) lane-dense output block."""
    x = x_ref[...]                               # (L, bt)
    seq = x.shape[0]
    inv_l = 1.0 / seq

    xm = x[:, None, :]                           # (L_m, 1,   bt)  key-position term
    xl = x[None, :, :]                           # (1,   L_l, bt)  query-position term
    xx = xm * xl                                 # (L_m, L_l, bt)  shared by all heads

    # Rank-1 attention core.  Per head h (static 8-way unroll; scalar*vector VPU
    # ops, exp on the EUP, reductions over the non-layout m axis are plain VPU
    # adds):
    #   s[m,l,b] = A_h*x_m*x_l + C_h*x_l + D_h*x_m + E_h
    #   g_h[b]   = mean_l ( sum_m e^{s}*x_m / sum_m e^{s} )
    # Because softmax rows sum to 1, the V projection drops out of the kernel
    # entirely (folded into w1g on the host).
    gs = []
    for h in range(N_HEADS):
        a = coef_ref[0, h]
        c = coef_ref[1, h]
        d = coef_ref[2, h]
        e = coef_ref[3, h]
        s = a * xx + c * xl + d * xm + e                    # (L_m, L_l, bt)
        s = s - jnp.max(s, axis=0, keepdims=True)
        es = jnp.exp(s)
        num = jnp.sum(es * xm, axis=0)                      # (L_l, bt)
        den = jnp.sum(es, axis=0)                           # (L_l, bt)
        t = num / den                                       # exact softmax normalization
        gs.append(jnp.sum(t, axis=0, keepdims=True) * inv_l)   # (1, bt)
    g = jnp.concatenate(gs, axis=0)                         # (H, bt)

    # FFN layer 1 with out_proj + V projection + head-regroup + b_o folded in:
    #   h1[f, b] = relu( sum_h w1g[f, h] * g[h, b] + b1_total[f] )
    h1 = jnp.dot(w1g_ref[...], g, preferred_element_type=jnp.float32) + b1_ref[...]
    h1 = jnp.maximum(h1, 0.0)                               # (D_FF, bt), lane-dense

    # Final Linear(256, 1): single output column -> VPU multiply + sublane
    # reduction, stored lane-dense as (1, bt).
    y = jnp.sum(h1 * w2_ref[...], axis=0, keepdims=True) + b2_ref[...]
    o_ref[...] = y.astype(o_ref.dtype)

    # TODO(synk): attention dropout (p=0.1) and nn.MultiheadAttention's
    # attn_weights side-output are omitted -- inference path, weights unused.


# ----------------------------------------------------------------------------
# Parameter folding (exact algebra, done once on the host-side weights)
# ----------------------------------------------------------------------------
def fold_params(p):
    scale = 1.0 / math.sqrt(D_HEAD)

    # input_proj (Linear(1,64)) folded into the packed QKV in_proj (Linear(64,192)).
    w_eff = p['w_in'] @ p['w_qkv']                     # (1, 192)
    b_eff = p['b_in'] @ p['w_qkv'] + p['b_qkv']        # (1, 192)

    def head_major(vec):                               # (64,) -> (H, dh), e = h*dh + d
        return vec.reshape(N_HEADS, D_HEAD)

    wq = head_major(w_eff[0, :D_MODEL]) * scale        # 1/sqrt(dh) folded into Q
    bq = head_major(b_eff[0, :D_MODEL]) * scale
    wk = head_major(w_eff[0, D_MODEL:2 * D_MODEL])
    bk = head_major(b_eff[0, D_MODEL:2 * D_MODEL])
    wv = head_major(w_eff[0, 2 * D_MODEL:])
    bv = head_major(b_eff[0, 2 * D_MODEL:])

    # Rank-1 score coefficients:  q.k = A*x_l*x_m + C*x_l + D*x_m + E  per head.
    coef = jnp.stack([jnp.sum(wq * wk, axis=-1),       # A
                      jnp.sum(wq * bk, axis=-1),       # C  (coefficient of x_l)
                      jnp.sum(bq * wk, axis=-1),       # D  (coefficient of x_m)
                      jnp.sum(bq * bk, axis=-1)],      # E
                     axis=0).astype(jnp.float32)       # (4, H)

    # out_proj folded into FFN layer 1 (no nonlinearity in between), then V and
    # the head-regroup folded in as well:
    #   pooled[b, h*dh+d] = g[b,h]*wv[h,d] + bv[h,d]
    #   h1 = pooled @ (w_o @ w1) + (b_o @ w1 + b1)  ==  g @ W1g + b1_total
    w1f = p['w_o'] @ p['w1']                           # (64, 256)
    b1f = p['b_o'] @ p['w1'] + p['b1']                 # (1, 256)
    w1f_h = w1f.reshape(N_HEADS, D_HEAD, D_FF)
    w1g_t = jnp.einsum('hd,hdf->fh', wv, w1f_h)        # (256, H)
    b1_total = (b1f + jnp.einsum('hd,hdf->f', bv, w1f_h)[None, :]).T   # (256, 1)

    return coef, w1g_t, b1_total, p['w2'], p['b2']


# ----------------------------------------------------------------------------
# Wrapper
# ----------------------------------------------------------------------------
def _default_batch_tile(batch):
    # Batch rides the lane axis, so multi-block tiles must be multiples of 128.
    # Small batches run as one full-array block; larger ones split into >=2
    # "parallel" steps (both v7x TensorCores get work) with lane tiles capped at
    # 512 (~3 MB of f32 intermediates/step -- inside v5e's 16 MiB and v7x's
    # 32 MiB scoped-VMEM defaults with plenty of headroom).
    if batch <= 128:
        return batch
    return min(512, 128 * pl.cdiv(batch, 256))


def soh_predictor(x, params, *, batch_tile=None):
    batch, seq = x.shape
    bt = _default_batch_tile(batch) if batch_tile is None else batch_tile
    grid = (pl.cdiv(batch, bt),)

    coef, w1g_t, b1_total, w2, b2 = fold_params(params)
    x_t = x.T                                          # (L, B): batch on lanes

    def full_vmem(arr):                                # small parameter, same block every step
        return pl.BlockSpec(arr.shape, lambda i, _n=arr.ndim: (0,) * _n)

    out = pl.pallas_call(
        soh_kernel,
        out_shape=jax.ShapeDtypeStruct((1, batch), jnp.float32),   # lane-dense output
        grid=grid,
        in_specs=[
            pl.BlockSpec((seq, bt), lambda i: (0, i)),
            pl.BlockSpec(memory_space=pltpu.MemorySpace.SMEM),     # (4, H) per-head scalars
            full_vmem(w1g_t),
            full_vmem(b1_total),
            full_vmem(w2),
            full_vmem(b2),
        ],
        out_specs=pl.BlockSpec((1, bt), lambda i: (0, i)),
        compiler_params=pltpu.CompilerParams(
            dimension_semantics=("parallel",),
            vmem_limit_bytes=32 * 1024 * 1024),
    )(x_t, coef, w1g_t, b1_total, w2, b2)
    return out.T                                       # (B, 1)


# ----------------------------------------------------------------------------
# Parameters + pure-JAX reference (mirrors the PyTorch forward, eval mode)
# ----------------------------------------------------------------------------
def make_params(key):
    ks = jax.random.split(key, 11)
    n = jax.random.normal
    return {
        'w_in':  n(ks[0], (1, D_MODEL), jnp.float32),
        'b_in':  n(ks[1], (1, D_MODEL), jnp.float32) * 0.1,
        'w_qkv': n(ks[2], (D_MODEL, 3 * D_MODEL), jnp.float32) / math.sqrt(D_MODEL),
        'b_qkv': n(ks[3], (1, 3 * D_MODEL), jnp.float32) * 0.1,
        'w_o':   n(ks[4], (D_MODEL, D_MODEL), jnp.float32) / math.sqrt(D_MODEL),
        'b_o':   n(ks[5], (1, D_MODEL), jnp.float32) * 0.1,
        'w1':    n(ks[6], (D_MODEL, D_FF), jnp.float32) / math.sqrt(D_MODEL),
        'b1':    n(ks[7], (1, D_FF), jnp.float32) * 0.1,
        'w2':    n(ks[8], (D_FF, 1), jnp.float32) / math.sqrt(D_FF),
        'b2':    n(ks[9], (1, 1), jnp.float32) * 0.1,
    }


def soh_reference(x, p):
    B, L = x.shape
    xp = x[:, :, None] * p['w_in'][None, :, :] + p['b_in'][None, :, :]
    qkv = jnp.einsum('bld,de->ble', xp, p['w_qkv']) + p['b_qkv'][None, :, :]
    q, k, v = jnp.split(qkv, 3, axis=-1)
    q = q.reshape(B, L, N_HEADS, D_HEAD) / math.sqrt(D_HEAD)
    k = k.reshape(B, L, N_HEADS, D_HEAD)
    v = v.reshape(B, L, N_HEADS, D_HEAD)
    s = jnp.einsum('blhd,bmhd->bhlm', q, k)
    a = jax.nn.softmax(s, axis=-1)
    ctx = jnp.einsum('bhlm,bmhd->blhd', a, v).reshape(B, L, D_MODEL)
    out = jnp.einsum('bld,de->ble', ctx, p['w_o']) + p['b_o'][None, :, :]
    pooled = out.mean(axis=1)
    h1 = jax.nn.relu(pooled @ p['w1'] + p['b1'])
    return h1 @ p['w2'] + p['b2']


# ----------------------------------------------------------------------------
if __name__ == "__main__":
    key = jax.random.PRNGKey(0)
    k_x, k_x2, k_p = jax.random.split(key, 3)

    B, L = 2, 16                        # batch=2, seq_len=16, feature_dim=1
    params = make_params(k_p)

    x = jax.random.normal(k_x, (B, L), jnp.float32)
    out = jax.block_until_ready(soh_predictor(x, params))
    ref = soh_reference(x, params)
    assert out.shape == (B, 1)
    # Exact softmax normalization (no approx reciprocal) -> tight tolerance;
    # remaining deltas are f32 rounding from the algebraic weight folds.
    assert jnp.allclose(out, ref, rtol=1e-3, atol=1e-3), (out, ref)

    # Larger batch: exercises the multi-step lane-tiled "parallel" grid
    # (2 programs of 128 lanes, second one partially padded).
    B2 = 160
    x2 = jax.random.normal(k_x2, (B2, L), jnp.float32)
    out2 = jax.block_until_ready(soh_predictor(x2, params))
    ref2 = soh_reference(x2, params)
    assert out2.shape == (B2, 1)
    assert jnp.allclose(out2, ref2, rtol=1e-3, atol=1e-3), (out2, ref2)

    print("KERNEL_OK")
</pallas_src>

<mosaic_0001>
module attributes {stable_mosaic.version = 11 : i64} {
  func.func @soh_kernel(%arg0: i32, %arg1: memref<16x2xf32, #tpu.memory_space<vmem>>, %arg2: memref<4x8xf32, #tpu.memory_space<smem>>, %arg3: memref<256x8xf32, #tpu.memory_space<vmem>>, %arg4: memref<256x1xf32, #tpu.memory_space<vmem>>, %arg5: memref<256x1xf32, #tpu.memory_space<vmem>>, %arg6: memref<1x1xf32, #tpu.memory_space<vmem>>, %arg7: memref<1x2xf32, #tpu.memory_space<vmem>>) attributes {dimension_semantics = [#tpu.dimension_semantics<parallel>], iteration_bounds = array<i64: 1>, scalar_prefetch = 0 : i64, scratch_operands = 0 : i64, tpu.core_type = #tpu.core_type<tc>, window_params = [{transform_indices = @transform_0, window_bounds = array<i64: 16, 2>}, {transform_indices = @transform_1, window_bounds = array<i64: 4, 8>}, {pipeline_mode = #tpu.pipeline_mode<synchronous>, transform_indices = @transform_2, window_bounds = array<i64: 256, 8>}, {pipeline_mode = #tpu.pipeline_mode<synchronous>, transform_indices = @transform_3, window_bounds = array<i64: 256, 1>}, {pipeline_mode = #tpu.pipeline_mode<synchronous>, transform_indices = @transform_4, window_bounds = array<i64: 256, 1>}, {pipeline_mode = #tpu.pipeline_mode<synchronous>, transform_indices = @transform_5, window_bounds = array<i64: 1, 1>}, {transform_indices = @transform_6, window_bounds = array<i64: 1, 2>}]} {
    %c0 = arith.constant 0 : index
    %c0_0 = arith.constant 0 : index
    %0 = vector.load %arg1[%c0, %c0_0] : memref<16x2xf32, #tpu.memory_space<vmem>>, vector<16x2xf32>
    %1 = vector.shape_cast %0 : vector<16x2xf32> to vector<16x1x2xf32>
    %2 = vector.shape_cast %0 : vector<16x2xf32> to vector<1x16x2xf32>
    %3 = vector.broadcast %1 : vector<16x1x2xf32> to vector<16x16x2xf32>
    %4 = vector.broadcast %2 : vector<1x16x2xf32> to vector<16x16x2xf32>
    %5 = arith.mulf %3, %4 : vector<16x16x2xf32>
    %c0_1 = arith.constant 0 : index
    %c0_2 = arith.constant 0 : index
    %6 = memref.load %arg2[%c0_1, %c0_2] : memref<4x8xf32, #tpu.memory_space<smem>>
    %c1 = arith.constant 1 : index
    %c0_3 = arith.constant 0 : index
    %7 = memref.load %arg2[%c1, %c0_3] : memref<4x8xf32, #tpu.memory_space<smem>>
    %c2 = arith.constant 2 : index
    %c0_4 = arith.constant 0 : index
    %8 = memref.load %arg2[%c2, %c0_4] : memref<4x8xf32, #tpu.memory_space<smem>>
    %c3 = arith.constant 3 : index
    %c0_5 = arith.constant 0 : index
    %9 = memref.load %arg2[%c3, %c0_5] : memref<4x8xf32, #tpu.memory_space<smem>>
    %10 = vector.broadcast %6 : f32 to vector<16x16x2xf32>
    %11 = arith.mulf %10, %5 : vector<16x16x2xf32>
    %12 = vector.broadcast %7 : f32 to vector<1x16x2xf32>
    %13 = arith.mulf %12, %2 : vector<1x16x2xf32>
    %14 = vector.broadcast %13 : vector<1x16x2xf32> to vector<16x16x2xf32>
    %15 = arith.addf %11, %14 : vector<16x16x2xf32>
    %16 = vector.broadcast %8 : f32 to vector<16x1x2xf32>
    %17 = arith.mulf %16, %1 : vector<16x1x2xf32>
    %18 = vector.broadcast %17 : vector<16x1x2xf32> to vector<16x16x2xf32>
    %19 = arith.addf %15, %18 : vector<16x16x2xf32>
    %20 = vector.broadcast %9 : f32 to vector<16x16x2xf32>
    %21 = arith.addf %19, %20 : vector<16x16x2xf32>
    %cst = arith.constant dense<0xFF800000> : vector<16x2xf32>
    %22 = vector.multi_reduction <maximumf>, %21, %cst [0] : vector<16x16x2xf32> to vector<16x2xf32>
    %23 = vector.shape_cast %22 : vector<16x2xf32> to vector<1x16x2xf32>
    %24 = vector.broadcast %23 : vector<1x16x2xf32> to vector<16x16x2xf32>
    %25 = arith.subf %21, %24 : vector<16x16x2xf32>
    %26 = math.exp %25 : vector<16x16x2xf32>
    %27 = vector.broadcast %1 : vector<16x1x2xf32> to vector<16x16x2xf32>
    %28 = arith.mulf %26, %27 : vector<16x16x2xf32>
    %cst_6 = arith.constant dense<0.000000e+00> : vector<16x2xf32>
    %29 = vector.multi_reduction <add>, %28, %cst_6 [0] : vector<16x16x2xf32> to vector<16x2xf32>
    %cst_7 = arith.constant dense<0.000000e+00> : vector<16x2xf32>
    %30 = vector.multi_reduction <add>, %26, %cst_7 [0] : vector<16x16x2xf32> to vector<16x2xf32>
    %31 = arith.divf %29, %30 : vector<16x2xf32>
    %cst_8 = arith.constant dense<0.000000e+00> : vector<2xf32>
    %32 = vector.multi_reduction <add>, %31, %cst_8 [0] : vector<16x2xf32> to vector<2xf32>
    %33 = vector.shape_cast %32 : vector<2xf32> to vector<1x2xf32>
    %cst_9 = arith.constant 6.250000e-02 : f32
    %34 = vector.broadcast %cst_9 : f32 to vector<1x2xf32>
    %35 = arith.mulf %33, %34 : vector<1x2xf32>
    %c0_10 = arith.constant 0 : index
    %c1_11 = arith.constant 1 : index
    %36 = memref.load %arg2[%c0_10, %c1_11] : memref<4x8xf32, #tpu.memory_space<smem>>
    %c1_12 = arith.constant 1 : index
    %c1_13 = arith.constant 1 : index
    %37 = memref.load %arg2[%c1_12, %c1_13] : memref<4x8xf32, #tpu.memory_space<smem>>
    %c2_14 = arith.constant 2 : index
    %c1_15 = arith.constant 1 : index
    %38 = memref.load %arg2[%c2_14, %c1_15] : memref<4x8xf32, #tpu.memory_space<smem>>
    %c3_16 = arith.constant 3 : index
    %c1_17 = arith.constant 1 : index
    %39 = memref.load %arg2[%c3_16, %c1_17] : memref<4x8xf32, #tpu.memory_space<smem>>
    %40 = vector.broadcast %36 : f32 to vector<16x16x2xf32>
    %41 = arith.mulf %40, %5 : vector<16x16x2xf32>
    %42 = vector.broadcast %37 : f32 to vector<1x16x2xf32>
    %43 = arith.mulf %42, %2 : vector<1x16x2xf32>
    %44 = vector.broadcast %43 : vector<1x16x2xf32> to vector<16x16x2xf32>
    %45 = arith.addf %41, %44 : vector<16x16x2xf32>
    %46 = vector.broadcast %38 : f32 to vector<16x1x2xf32>
    %47 = arith.mulf %46, %1 : vector<16x1x2xf32>
    %48 = vector.broadcast %47 : vector<16x1x2xf32> to vector<16x16x2xf32>
    %49 = arith.addf %45, %48 : vector<16x16x2xf32>
    %50 = vector.broadcast %39 : f32 to vector<16x16x2xf32>
    %51 = arith.addf %49, %50 : vector<16x16x2xf32>
    %cst_18 = arith.constant dense<0xFF800000> : vector<16x2xf32>
    %52 = vector.multi_reduction <maximumf>, %51, %cst_18 [0] : vector<16x16x2xf32> to vector<16x2xf32>
    %53 = vector.shape_cast %52 : vector<16x2xf32> to vector<1x16x2xf32>
    %54 = vector.broadcast %53 : vector<1x16x2xf32> to vector<16x16x2xf32>
    %55 = arith.subf %51, %54 : vector<16x16x2xf32>
    %56 = math.exp %55 : vector<16x16x2xf32>
    %57 = vector.broadcast %1 : vector<16x1x2xf32> to vector<16x16x2xf32>
    %58 = arith.mulf %56, %57 : vector<16x16x2xf32>
    %cst_19 = arith.constant dense<0.000000e+00> : vector<16x2xf32>
    %59 = vector.multi_reduction <add>, %58, %cst_19 [0] : vector<16x16x2xf32> to vector<16x2xf32>
    %cst_20 = arith.constant dense<0.000000e+00> : vector<16x2xf32>
    %60 = vector.multi_reduction <add>, %56, %cst_20 [0] : vector<16x16x2xf32> to vector<16x2xf32>
    %61 = arith.divf %59, %60 : vector<16x2xf32>
    %cst_21 = arith.constant dense<0.000000e+00> : vector<2xf32>
    %62 = vector.multi_reduction <add>, %61, %cst_21 [0] : vector<16x2xf32> to vector<2xf32>
    %63 = vector.shape_cast %62 : vector<2xf32> to vector<1x2xf32>
    %cst_22 = arith.constant 6.250000e-02 : f32
    %64 = vector.broadcast %cst_22 : f32 to vector<1x2xf32>
    %65 = arith.mulf %63, %64 : vector<1x2xf32>
    %c0_23 = arith.constant 0 : index
    %c2_24 = arith.constant 2 : index
    %66 = memref.load %arg2[%c0_23, %c2_24] : memref<4x8xf32, #tpu.memory_space<smem>>
    %c1_25 = arith.constant 1 : index
    %c2_26 = arith.constant 2 : index
    %67 = memref.load %arg2[%c1_25, %c2_26] : memref<4x8xf32, #tpu.memory_space<smem>>
    %c2_27 = arith.constant 2 : index
    %c2_28 = arith.constant 2 : index
    %68 = memref.load %arg2[%c2_27, %c2_28] : memref<4x8xf32, #tpu.memory_space<smem>>
    %c3_29 = arith.constant 3 : index
    %c2_30 = arith.constant 2 : index
    %69 = memref.load %arg2[%c3_29, %c2_30] : memref<4x8xf32, #tpu.memory_space<smem>>
    %70 = vector.broadcast %66 : f32 to vector<16x16x2xf32>
    %71 = arith.mulf %70, %5 : vector<16x16x2xf32>
    %72 = vector.broadcast %67 : f32 to vector<1x16x2xf32>
    %73 = arith.mulf %72, %2 : vector<1x16x2xf32>
    %74 = vector.broadcast %73 : vector<1x16x2xf32> to vector<16x16x2xf32>
    %75 = arith.addf %71, %74 : vector<16x16x2xf32>
    %76 = vector.broadcast %68 : f32 to vector<16x1x2xf32>
    %77 = arith.mulf %76, %1 : vector<16x1x2xf32>
    %78 = vector.broadcast %77 : vector<16x1x2xf32> to vector<16x16x2xf32>
    %79 = arith.addf %75, %78 : vector<16x16x2xf32>
    %80 = vector.broadcast %69 : f32 to vector<16x16x2xf32>
    %81 = arith.addf %79, %80 : vector<16x16x2xf32>
    %cst_31 = arith.constant dense<0xFF800000> : vector<16x2xf32>
    %82 = vector.multi_reduction <maximumf>, %81, %cst_31 [0] : vector<16x16x2xf32> to vector<16x2xf32>
    %83 = vector.shape_cast %82 : vector<16x2xf32> to vector<1x16x2xf32>
    %84 = vector.broadcast %83 : vector<1x16x2xf32> to vector<16x16x2xf32>
    %85 = arith.subf %81, %84 : vector<16x16x2xf32>
    %86 = math.exp %85 : vector<16x16x2xf32>
    %87 = vector.broadcast %1 : vector<16x1x2xf32> to vector<16x16x2xf32>
    %88 = arith.mulf %86, %87 : vector<16x16x2xf32>
    %cst_32 = arith.constant dense<0.000000e+00> : vector<16x2xf32>
    %89 = vector.multi_reduction <add>, %88, %cst_32 [0] : vector<16x16x2xf32> to vector<16x2xf32>
    %cst_33 = arith.constant dense<0.000000e+00> : vector<16x2xf32>
    %90 = vector.multi_reduction <add>, %86, %cst_33 [0] : vector<16x16x2xf32> to vector<16x2xf32>
    %91 = arith.divf %89, %90 : vector<16x2xf32>
    %cst_34 = arith.constant dense<0.000000e+00> : vector<2xf32>
    %92 = vector.multi_reduction <add>, %91, %cst_34 [0] : vector<16x2xf32> to vector<2xf32>
    %93 = vector.shape_cast %92 : vector<2xf32> to vector<1x2xf32>
    %cst_35 = arith.constant 6.250000e-02 : f32
    %94 = vector.broadcast %cst_35 : f32 to vector<1x2xf32>
    %95 = arith.mulf %93, %94 : vector<1x2xf32>
    %c0_36 = arith.constant 0 : index
    %c3_37 = arith.constant 3 : index
    %96 = memref.load %arg2[%c0_36, %c3_37] : memref<4x8xf32, #tpu.memory_space<smem>>
    %c1_38 = arith.constant 1 : index
    %c3_39 = arith.constant 3 : index
    %97 = memref.load %arg2[%c1_38, %c3_39] : memref<4x8xf32, #tpu.memory_space<smem>>
    %c2_40 = arith.constant 2 : index
    %c3_41 = arith.constant 3 : index
    %98 = memref.load %arg2[%c2_40, %c3_41] : memref<4x8xf32, #tpu.memory_space<smem>>
    %c3_42 = arith.constant 3 : index
    %c3_43 = arith.constant 3 : index
    %99 = memref.load %arg2[%c3_42, %c3_43] : memref<4x8xf32, #tpu.memory_space<smem>>
    %100 = vector.broadcast %96 : f32 to vector<16x16x2xf32>
    %101 = arith.mulf %100, %5 : vector<16x16x2xf32>
    %102 = vector.broadcast %97 : f32 to vector<1x16x2xf32>
    %103 = arith.mulf %102, %2 : vector<1x16x2xf32>
    %104 = vector.broadcast %103 : vector<1x16x2xf32> to vector<16x16x2xf32>
    %105 = arith.addf %101, %104 : vector<16x16x2xf32>
    %106 = vector.broadcast %98 : f32 to vector<16x1x2xf32>
    %107 = arith.mulf %106, %1 : vector<16x1x2xf32>
    %108 = vector.broadcast %107 : vector<16x1x2xf32> to vector<16x16x2xf32>
    %109 = arith.addf %105, %108 : vector<16x16x2xf32>
    %110 = vector.broadcast %99 : f32 to vector<16x16x2xf32>
    %111 = arith.addf %109, %110 : vector<16x16x2xf32>
    %cst_44 = arith.constant dense<0xFF800000> : vector<16x2xf32>
    %112 = vector.multi_reduction <maximumf>, %111, %cst_44 [0] : vector<16x16x2xf32> to vector<16x2xf32>
    %113 = vector.shape_cast %112 : vector<16x2xf32> to vector<1x16x2xf32>
    %114 = vector.broadcast %113 : vector<1x16x2xf32> to vector<16x16x2xf32>
    %115 = arith.subf %111, %114 : vector<16x16x2xf32>
    %116 = math.exp %115 : vector<16x16x2xf32>
    %117 = vector.broadcast %1 : vector<16x1x2xf32> to vector<16x16x2xf32>
    %118 = arith.mulf %116, %117 : vector<16x16x2xf32>
    %cst_45 = arith.constant dense<0.000000e+00> : vector<16x2xf32>
    %119 = vector.multi_reduction <add>, %118, %cst_45 [0] : vector<16x16x2xf32> to vector<16x2xf32>
    %cst_46 = arith.constant dense<0.000000e+00> : vector<16x2xf32>
    %120 = vector.multi_reduction <add>, %116, %cst_46 [0] : vector<16x16x2xf32> to vector<16x2xf32>
    %121 = arith.divf %119, %120 : vector<16x2xf32>
    %cst_47 = arith.constant dense<0.000000e+00> : vector<2xf32>
    %122 = vector.multi_reduction <add>, %121, %cst_47 [0] : vector<16x2xf32> to vector<2xf32>
    %123 = vector.shape_cast %122 : vector<2xf32> to vector<1x2xf32>
    %cst_48 = arith.constant 6.250000e-02 : f32
    %124 = vector.broadcast %cst_48 : f32 to vector<1x2xf32>
    %125 = arith.mulf %123, %124 : vector<1x2xf32>
    %c0_49 = arith.constant 0 : index
    %c4 = arith.constant 4 : index
    %126 = memref.load %arg2[%c0_49, %c4] : memref<4x8xf32, #tpu.memory_space<smem>>
    %c1_50 = arith.constant 1 : index
    %c4_51 = arith.constant 4 : index
    %127 = memref.load %arg2[%c1_50, %c4_51] : memref<4x8xf32, #tpu.memory_space<smem>>
    %c2_52 = arith.constant 2 : index
    %c4_53 = arith.constant 4 : index
    %128 = memref.load %arg2[%c2_52, %c4_53] : memref<4x8xf32, #tpu.memory_space<smem>>
    %c3_54 = arith.constant 3 : index
    %c4_55 = arith.constant 4 : index
    %129 = memref.load %arg2[%c3_54, %c4_55] : memref<4x8xf32, #tpu.memory_space<smem>>
    %130 = vector.broadcast %126 : f32 to vector<16x16x2xf32>
    %131 = arith.mulf %130, %5 : vector<16x16x2xf32>
    %132 = vector.broadcast %127 : f32 to vector<1x16x2xf32>
    %133 = arith.mulf %132, %2 : vector<1x16x2xf32>
    %134 = vector.broadcast %133 : vector<1x16x2xf32> to vector<16x16x2xf32>
    %135 = arith.addf %131, %134 : vector<16x16x2xf32>
    %136 = vector.broadcast %128 : f32 to vector<16x1x2xf32>
    %137 = arith.mulf %136, %1 : vector<16x1x2xf32>
    %138 = vector.broadcast %137 : vector<16x1x2xf32> to vector<16x16x2xf32>
    %139 = arith.addf %135, %138 : vector<16x16x2xf32>
    %140 = vector.broadcast %129 : f32 to vector<16x16x2xf32>
    %141 = arith.addf %139, %140 : vector<16x16x2xf32>
    %cst_56 = arith.constant dense<0xFF800000> : vector<16x2xf32>
    %142 = vector.multi_reduction <maximumf>, %141, %cst_56 [0] : vector<16x16x2xf32> to vector<16x2xf32>
    %143 = vector.shape_cast %142 : vector<16x2xf32> to vector<1x16x2xf32>
    %144 = vector.broadcast %143 : vector<1x16x2xf32> to vector<16x16x2xf32>
    %145 = arith.subf %141, %144 : vector<16x16x2xf32>
    %146 = math.exp %145 : vector<16x16x2xf32>
    %147 = vector.broadcast %1 : vector<16x1x2xf32> to vector<16x16x2xf32>
    %148 = arith.mulf %146, %147 : vector<16x16x2xf32>
    %cst_57 = arith.constant dense<0.000000e+00> : vector<16x2xf32>
    %149 = vector.multi_reduction <add>, %148, %cst_57 [0] : vector<16x16x2xf32> to vector<16x2xf32>
    %cst_58 = arith.constant dense<0.000000e+00> : vector<16x2xf32>
    %150 = vector.multi_reduction <add>, %146, %cst_58 [0] : vector<16x16x2xf32> to vector<16x2xf32>
    %151 = arith.divf %149, %150 : vector<16x2xf32>
    %cst_59 = arith.constant dense<0.000000e+00> : vector<2xf32>
    %152 = vector.multi_reduction <add>, %151, %cst_59 [0] : vector<16x2xf32> to vector<2xf32>
    %153 = vector.shape_cast %152 : vector<2xf32> to vector<1x2xf32>
    %cst_60 = arith.constant 6.250000e-02 : f32
    %154 = vector.broadcast %cst_60 : f32 to vector<1x2xf32>
    %155 = arith.mulf %153, %154 : vector<1x2xf32>
    %c0_61 = arith.constant 0 : index
    %c5 = arith.constant 5 : index
    %156 = memref.load %arg2[%c0_61, %c5] : memref<4x8xf32, #tpu.memory_space<smem>>
    %c1_62 = arith.constant 1 : index
    %c5_63 = arith.constant 5 : index
    %157 = memref.load %arg2[%c1_62, %c5_63] : memref<4x8xf32, #tpu.memory_space<smem>>
    %c2_64 = arith.constant 2 : index
    %c5_65 = arith.constant 5 : index
    %158 = memref.load %arg2[%c2_64, %c5_65] : memref<4x8xf32, #tpu.memory_space<smem>>
    %c3_66 = arith.constant 3 : index
    %c5_67 = arith.constant 5 : index
    %159 = memref.load %arg2[%c3_66, %c5_67] : memref<4x8xf32, #tpu.memory_space<smem>>
    %160 = vector.broadcast %156 : f32 to vector<16x16x2xf32>
    %161 = arith.mulf %160, %5 : vector<16x16x2xf32>
    %162 = vector.broadcast %157 : f32 to vector<1x16x2xf32>
    %163 = arith.mulf %162, %2 : vector<1x16x2xf32>
    %164 = vector.broadcast %163 : vector<1x16x2xf32> to vector<16x16x2xf32>
    %165 = arith.addf %161, %164 : vector<16x16x2xf32>
    %166 = vector.broadcast %158 : f32 to vector<16x1x2xf32>
    %167 = arith.mulf %166, %1 : vector<16x1x2xf32>
    %168 = vector.broadcast %167 : vector<16x1x2xf32> to vector<16x16x2xf32>
    %169 = arith.addf %165, %168 : vector<16x16x2xf32>
    %170 = vector.broadcast %159 : f32 to vector<16x16x2xf32>
    %171 = arith.addf %169, %170 : vector<16x16x2xf32>
    %cst_68 = arith.constant dense<0xFF800000> : vector<16x2xf32>
    %172 = vector.multi_reduction <maximumf>, %171, %cst_68 [0] : vector<16x16x2xf32> to vector<16x2xf32>
    %173 = vector.shape_cast %172 : vector<16x2xf32> to vector<1x16x2xf32>
    %174 = vector.broadcast %173 : vector<1x16x2xf32> to vector<16x16x2xf32>
    %175 = arith.subf %171, %174 : vector<16x16x2xf32>
    %176 = math.exp %175 : vector<16x16x2xf32>
    %177 = vector.broadcast %1 : vector<16x1x2xf32> to vector<16x16x2xf32>
    %178 = arith.mulf %176, %177 : vector<16x16x2xf32>
    %cst_69 = arith.constant dense<0.000000e+00> : vector<16x2xf32>
    %179 = vector.multi_reduction <add>, %178, %cst_69 [0] : vector<16x16x2xf32> to vector<16x2xf32>
    %cst_70 = arith.constant dense<0.000000e+00> : vector<16x2xf32>
    %180 = vector.multi_reduction <add>, %176, %cst_70 [0] : vector<16x16x2xf32> to vector<16x2xf32>
    %181 = arith.divf %179, %180 : vector<16x2xf32>
    %cst_71 = arith.constant dense<0.000000e+00> : vector<2xf32>
    %182 = vector.multi_reduction <add>, %181, %cst_71 [0] : vector<16x2xf32> to vector<2xf32>
    %183 = vector.shape_cast %182 : vector<2xf32> to vector<1x2xf32>
    %cst_72 = arith.constant 6.250000e-02 : f32
    %184 = vector.broadcast %cst_72 : f32 to vector<1x2xf32>
    %185 = arith.mulf %183, %184 : vector<1x2xf32>
    %c0_73 = arith.constant 0 : index
    %c6 = arith.constant 6 : index
    %186 = memref.load %arg2[%c0_73, %c6] : memref<4x8xf32, #tpu.memory_space<smem>>
    %c1_74 = arith.constant 1 : index
    %c6_75 = arith.constant 6 : index
    %187 = memref.load %arg2[%c1_74, %c6_75] : memref<4x8xf32, #tpu.memory_space<smem>>
    %c2_76 = arith.constant 2 : index
    %c6_77 = arith.constant 6 : index
    %188 = memref.load %arg2[%c2_76, %c6_77] : memref<4x8xf32, #tpu.memory_space<smem>>
    %c3_78 = arith.constant 3 : index
    %c6_79 = arith.constant 6 : index
    %189 = memref.load %arg2[%c3_78, %c6_79] : memref<4x8xf32, #tpu.memory_space<smem>>
    %190 = vector.broadcast %186 : f32 to vector<16x16x2xf32>
    %191 = arith.mulf %190, %5 : vector<16x16x2xf32>
    %192 = vector.broadcast %187 : f32 to vector<1x16x2xf32>
    %193 = arith.mulf %192, %2 : vector<1x16x2xf32>
    %194 = vector.broadcast %193 : vector<1x16x2xf32> to vector<16x16x2xf32>
    %195 = arith.addf %191, %194 : vector<16x16x2xf32>
    %196 = vector.broadcast %188 : f32 to vector<16x1x2xf32>
    %197 = arith.mulf %196, %1 : vector<16x1x2xf32>
    %198 = vector.broadcast %197 : vector<16x1x2xf32> to vector<16x16x2xf32>
    %199 = arith.addf %195, %198 : vector<16x16x2xf32>
    %200 = vector.broadcast %189 : f32 to vector<16x16x2xf32>
    %201 = arith.addf %199, %200 : vector<16x16x2xf32>
    %cst_80 = arith.constant dense<0xFF800000> : vector<16x2xf32>
    %202 = vector.multi_reduction <maximumf>, %201, %cst_80 [0] : vector<16x16x2xf32> to vector<16x2xf32>
    %203 = vector.shape_cast %202 : vector<16x2xf32> to vector<1x16x2xf32>
    %204 = vector.broadcast %203 : vector<1x16x2xf32> to vector<16x16x2xf32>
    %205 = arith.subf %201, %204 : vector<16x16x2xf32>
    %206 = math.exp %205 : vector<16x16x2xf32>
    %207 = vector.broadcast %1 : vector<16x1x2xf32> to vector<16x16x2xf32>
    %208 = arith.mulf %206, %207 : vector<16x16x2xf32>
    %cst_81 = arith.constant dense<0.000000e+00> : vector<16x2xf32>
    %209 = vector.multi_reduction <add>, %208, %cst_81 [0] : vector<16x16x2xf32> to vector<16x2xf32>
    %cst_82 = arith.constant dense<0.000000e+00> : vector<16x2xf32>
    %210 = vector.multi_reduction <add>, %206, %cst_82 [0] : vector<16x16x2xf32> to vector<16x2xf32>
    %211 = arith.divf %209, %210 : vector<16x2xf32>
    %cst_83 = arith.constant dense<0.000000e+00> : vector<2xf32>
    %212 = vector.multi_reduction <add>, %211, %cst_83 [0] : vector<16x2xf32> to vector<2xf32>
    %213 = vector.shape_cast %212 : vector<2xf32> to vector<1x2xf32>
    %cst_84 = arith.constant 6.250000e-02 : f32
    %214 = vector.broadcast %cst_84 : f32 to vector<1x2xf32>
    %215 = arith.mulf %213, %214 : vector<1x2xf32>
    %c0_85 = arith.constant 0 : index
    %c7 = arith.constant 7 : index
    %216 = memref.load %arg2[%c0_85, %c7] : memref<4x8xf32, #tpu.memory_space<smem>>
    %c1_86 = arith.constant 1 : index
    %c7_87 = arith.constant 7 : index
    %217 = memref.load %arg2[%c1_86, %c7_87] : memref<4x8xf32, #tpu.memory_space<smem>>
    %c2_88 = arith.constant 2 : index
    %c7_89 = arith.constant 7 : index
    %218 = memref.load %arg2[%c2_88, %c7_89] : memref<4x8xf32, #tpu.memory_space<smem>>
    %c3_90 = arith.constant 3 : index
    %c7_91 = arith.constant 7 : index
    %219 = memref.load %arg2[%c3_90, %c7_91] : memref<4x8xf32, #tpu.memory_space<smem>>
    %220 = vector.broadcast %216 : f32 to vector<16x16x2xf32>
    %221 = arith.mulf %220, %5 : vector<16x16x2xf32>
    %222 = vector.broadcast %217 : f32 to vector<1x16x2xf32>
    %223 = arith.mulf %222, %2 : vector<1x16x2xf32>
    %224 = vector.broadcast %223 : vector<1x16x2xf32> to vector<16x16x2xf32>
    %225 = arith.addf %221, %224 : vector<16x16x2xf32>
    %226 = vector.broadcast %218 : f32 to vector<16x1x2xf32>
    %227 = arith.mulf %226, %1 : vector<16x1x2xf32>
    %228 = vector.broadcast %227 : vector<16x1x2xf32> to vector<16x16x2xf32>
    %229 = arith.addf %225, %228 : vector<16x16x2xf32>
    %230 = vector.broadcast %219 : f32 to vector<16x16x2xf32>
    %231 = arith.addf %229, %230 : vector<16x16x2xf32>
    %cst_92 = arith.constant dense<0xFF800000> : vector<16x2xf32>
    %232 = vector.multi_reduction <maximumf>, %231, %cst_92 [0] : vector<16x16x2xf32> to vector<16x2xf32>
    %233 = vector.shape_cast %232 : vector<16x2xf32> to vector<1x16x2xf32>
    %234 = vector.broadcast %233 : vector<1x16x2xf32> to vector<16x16x2xf32>
    %235 = arith.subf %231, %234 : vector<16x16x2xf32>
    %236 = math.exp %235 : vector<16x16x2xf32>
    %237 = vector.broadcast %1 : vector<16x1x2xf32> to vector<16x16x2xf32>
    %238 = arith.mulf %236, %237 : vector<16x16x2xf32>
    %cst_93 = arith.constant dense<0.000000e+00> : vector<16x2xf32>
    %239 = vector.multi_reduction <add>, %238, %cst_93 [0] : vector<16x16x2xf32> to vector<16x2xf32>
    %cst_94 = arith.constant dense<0.000000e+00> : vector<16x2xf32>
    %240 = vector.multi_reduction <add>, %236, %cst_94 [0] : vector<16x16x2xf32> to vector<16x2xf32>
    %241 = arith.divf %239, %240 : vector<16x2xf32>
    %cst_95 = arith.constant dense<0.000000e+00> : vector<2xf32>
    %242 = vector.multi_reduction <add>, %241, %cst_95 [0] : vector<16x2xf32> to vector<2xf32>
    %243 = vector.shape_cast %242 : vector<2xf32> to vector<1x2xf32>
    %cst_96 = arith.constant 6.250000e-02 : f32
    %244 = vector.broadcast %cst_96 : f32 to vector<1x2xf32>
    %245 = arith.mulf %243, %244 : vector<1x2xf32>
    %246 = tpu.concatenate %35, %65, %95, %125, %155, %185, %215, %245 in 0 : vector<1x2xf32>, vector<1x2xf32>, vector<1x2xf32>, vector<1x2xf32>, vector<1x2xf32>, vector<1x2xf32>, vector<1x2xf32>, vector<1x2xf32> -> vector<8x2xf32>
    %c0_97 = arith.constant 0 : index
    %c0_98 = arith.constant 0 : index
    %247 = vector.load %arg3[%c0_97, %c0_98] : memref<256x8xf32, #tpu.memory_space<vmem>>, vector<256x8xf32>
    %cst_99 = arith.constant dense<0.000000e+00> : vector<256x2xf32>
    %248 = tpu.matmul %247, %246, %cst_99 {dimension_numbers = #tpu.dot_dimension_numbers<[1], [0], [0], [1], [0, 0, 1, 1], [], []>} : vector<256x8xf32>, vector<8x2xf32>, vector<256x2xf32> -> vector<256x2xf32>
    %c0_100 = arith.constant 0 : index
    %c0_101 = arith.constant 0 : index
    %249 = vector.load %arg4[%c0_100, %c0_101] : memref<256x1xf32, #tpu.memory_space<vmem>>, vector<256x1xf32>
    %250 = vector.broadcast %249 : vector<256x1xf32> to vector<256x2xf32>
    %251 = arith.addf %248, %250 : vector<256x2xf32>
    %cst_102 = arith.constant 0.000000e+00 : f32
    %252 = vector.broadcast %cst_102 : f32 to vector<256x2xf32>
    %253 = arith.maximumf %251, %252 : vector<256x2xf32>
    %c0_103 = arith.constant 0 : index
    %c0_104 = arith.constant 0 : index
    %254 = vector.load %arg5[%c0_103, %c0_104] : memref<256x1xf32, #tpu.memory_space<vmem>>, vector<256x1xf32>
    %255 = vector.broadcast %254 : vector<256x1xf32> to vector<256x2xf32>
    %256 = arith.mulf %253, %255 : vector<256x2xf32>
    %cst_105 = arith.constant dense<0.000000e+00> : vector<2xf32>
    %257 = vector.multi_reduction <add>, %256, %cst_105 [0] : vector<256x2xf32> to vector<2xf32>
    %258 = vector.shape_cast %257 : vector<2xf32> to vector<1x2xf32>
    %c0_106 = arith.constant 0 : index
    %c0_107 = arith.constant 0 : index
    %259 = vector.load %arg6[%c0_106, %c0_107] : memref<1x1xf32, #tpu.memory_space<vmem>>, vector<1x1xf32>
    %260 = vector.broadcast %259 : vector<1x1xf32> to vector<1x2xf32>
    %261 = arith.addf %258, %260 : vector<1x2xf32>
    %c0_108 = arith.constant 0 : index
    %c0_109 = arith.constant 0 : index
    %262 = vector.load %arg7[%c0_108, %c0_109] : memref<1x2xf32, #tpu.memory_space<vmem>>, vector<1x2xf32>
    tpu.vector_store %arg7[%c0_108, %c0_109], %261 {strides = array<i32>} : memref<1x2xf32, #tpu.memory_space<vmem>>, vector<1x2xf32>,
    return
  }
  func.func @transform_0(%arg0: i32) -> (i32, i32) {
    %c0_i32 = arith.constant 0 : i32
    %c0_i32_0 = arith.constant 0 : i32
    return %c0_i32, %arg0 : i32, i32
  }
  func.func @transform_1(%arg0: i32) -> (i32, i32) {
    %c0_i32 = arith.constant 0 : i32
    %c0_i32_0 = arith.constant 0 : i32
    %c0_i32_1 = arith.constant 0 : i32
    return %c0_i32, %c0_i32_0 : i32, i32
  }
  func.func @transform_2(%arg0: i32) -> (i32, i32) {
    %c0_i32 = arith.constant 0 : i32
    %c0_i32_0 = arith.constant 0 : i32
    %c0_i32_1 = arith.constant 0 : i32
    return %c0_i32, %c0_i32_0 : i32, i32
  }
  func.func @transform_3(%arg0: i32) -> (i32, i32) {
    %c0_i32 = arith.constant 0 : i32
    %c0_i32_0 = arith.constant 0 : i32
    %c0_i32_1 = arith.constant 0 : i32
    return %c0_i32, %c0_i32_0 : i32, i32
  }
  func.func @transform_4(%arg0: i32) -> (i32, i32) {
    %c0_i32 = arith.constant 0 : i32
    %c0_i32_0 = arith.constant 0 : i32
    %c0_i32_1 = arith.constant 0 : i32
    return %c0_i32, %c0_i32_0 : i32, i32
  }
  func.func @transform_5(%arg0: i32) -> (i32, i32) {
    %c0_i32 = arith.constant 0 : i32
    %c0_i32_0 = arith.constant 0 : i32
    %c0_i32_1 = arith.constant 0 : i32
    return %c0_i32, %c0_i32_0 : i32, i32
  }
  func.func @transform_6(%arg0: i32) -> (i32, i32) {
    %c0_i32 = arith.constant 0 : i32
    %c0_i32_0 = arith.constant 0 : i32
    return %c0_i32, %arg0 : i32, i32
  }
}

</mosaic_0001>

<bundles_post_ra>
// kernel: tpu_custom_call.1
= control target key start
LH: loop header
LB: loop body
LE: loop exit
PB: predicated region body
PF: predicated region fallthrough
CT: control target
= control target key end

     0   :  { %s13528_s0 = inlined_call_operand.vmem [shape: f32[16,2], index: 0, kind: input, shape index: {}]   ;;  %s13529_s1 = inlined_call_operand.vmem [shape: f32[4,8], index: 1, kind: input, shape index: {}]   ;;  %s13530_s2 = inlined_call_operand.vmem [shape: f32[256,8], index: 2, kind: input, shape index: {}]   ;;  %s13531_s3 = inlined_call_operand.vmem [shape: f32[256,1], index: 3, kind: input, shape index: {}]   ;;  %s13532_s4 = inlined_call_operand.vmem [shape: f32[256,1], index: 4, kind: input, shape index: {}]   ;;  %s13533_s5 = inlined_call_operand.<no memory space> [shape: f32[1,1], index: 5, kind: input, shape index: {}]   ;;  %s13534_s6 = inlined_call_operand.hbm [shape: f32[1,2], index: 6, kind: output, shape index: {}]  }
   0x1   :  { %v11_v0 = vstv %s13533_s5 }
   0x2   :  { %12 = vst [vmem:[#allocation2] sm:$0x1] %v11_v0 }
   0x3   :  { %13 = vsyncpa [#allocation5], 0 }
   0x4   :  { %14 = vsyncpa [#allocation4], 0  ;;  %s23_s25 = sshll.u32 %s13529_s1, 4  ;;  %s24_s25 = int_to_ptr.vmem [resolvable:$true] %s23_s25 }
   0x5   :  { %s6515_s26 = scalar_lea.vmem %s24_s25, 64  ;;  %p6520_p1 = scmp.lt.s32.totalorder %s24_s25, %s24_s25 }
   0x6   :  { %p6516_p0 = scmp.ne.s32.totalorder %s24_s25, %s6515_s26  ;;  %p6521_p2 = scmp.lt.s32.totalorder %s6515_s26, %s6515_s26 }
   0x8   :  { %p6522_p3 = por %p6521_p2, %p6520_p1 }
   0xa   :  { %p6523_p4 = pnand %p6522_p3, %p6516_p0 }
   0xc   :  { %6526 = shalt.err (!%p6523_p4)
}
   0xd   :  { %s6551_s27 = smov [#allocation3]  }
   0xe   :  { %26 = dma.vmem_to_smem %s24_s25, 64, %s6551_s27, [#allocation5]  }
   0xf   :  { %6547 = dma.done.wait [#allocation5], 64  }
  0x10   :  { %6548 = vsyncadd [#allocation5], 4294967232 }
  0x11   :  { %38 = sfence }
  0x12   :  { %v4940_v1 = vld [vmem:[%s13531_s3] sm:$0xff]  ;;  %v4942_v2 = vld [vmem:[%s13531_s3 + $0x10] sm:$0xff]  ;;  %v6552_v3 = vmov 0   ;;  %v4941_v4 = vld [vmem:[%s13531_s3 + $0x8] sm:$0xff]  ;;  %v6553_v8 = vmov 1966171168   ;;  %v47_v10 = vlaneseq }
  0x13   :  { %5959 = vset.pattern.permute.xlu0 %v6552_v3  ;;  %5960 = vset.pattern.permute.xlu1 %v6552_v3  ;;  %v4943_v5 = vld [vmem:[%s13531_s3 + $0x18] sm:$0xff]  ;;  %v4944_v6 = vld [vmem:[%s13531_s3 + $0x20] sm:$0xff]  ;;  %v4945_v7 = vld [vmem:[%s13531_s3 + $0x28] sm:$0xff]  ;;  %v45_v9 = vunpack.c.l.s4 %v6553_v8  ;;  %s6654_s8 = sld [smem:[#allocation3 + $0x80]]  ;;  %vm519_vm0 = vcmask 15360   ;;  %vm5132_vm1 = vcmask 64512  }
  0x14   :  { %4974 = vperm.xlu0 %5959, %v4940_v1   ;;  %4984 = vperm.xlu1 %5960, %v4942_v2   ;;  %v4946_v11 = vld [vmem:[%s13531_s3 + $0x30] sm:$0xff]  ;;  %v4947_v12 = vld [vmem:[%s13531_s3 + $0x38] sm:$0xff]  ;;  %v48_v14 = vshrl.u32 %v47_v10, 7  ;;  %v4948_v15 = vld [vmem:[%s13531_s3 + $0x40] sm:$0xff]  ;;  %s6755_s21 = sld [smem:[#allocation3]]  ;;  %vm4894_vm2 = vcmask 1040384  }
  0x15   :  { %v46_v13 = vunpack.c.0.s8 %v45_v9  ;;  %v4949_v16 = vld [vmem:[%s13531_s3 + $0x48] sm:$0xff]  ;;  %v4950_v18 = vld [vmem:[%s13531_s3 + $0x50] sm:$0xff]  ;;  %v4951_v19 = vld [vmem:[%s13531_s3 + $0x58] sm:$0xff]  ;;  %s6965_s12 = sld [smem:[#allocation3 + $0x100]]  ;;  %vm4896_vm3 = vcmask 1041408   ;;  %vm4898_vm4 = vcmask 1042432  }
  0x16   :  { %v6635_v20 = vld [vmem:[%s13528_s0] sm:$0xff]  ;;  %v6640_v21 = vld [vmem:[%s13528_s0 + $0x8] sm:$0xff]  ;;  %v4954_v31 = vld [vmem:[%s13531_s3 + $0x70] sm:$0xff]  ;;  %v6689_v48 = vsub.s32 0, %v48_v14  ;;  %s7087_s25 = sld [smem:[#allocation3 + $0x180]]  ;;  %vm4900_vm5 = vcmask 1043456  }
  0x17   :  { %v49_v17 = vsub.s32 %v46_v13, %v48_v14  ;;  %v43_v22 = vcombine.high %v6635_v20, %v6635_v20  ;;  %v92_v23 = vcombine.high %v6640_v21, %v6640_v21  ;;  %v4952_v25 = vld [vmem:[%s13531_s3 + $0x60] sm:$0xff]  ;;  %v4953_v26 = vld [vmem:[%s13531_s3 + $0x68] sm:$0xff]  ;;  %v4955_v32 = vld [vmem:[%s13531_s3 + $0x78] sm:$0xff]  ;;  %s5810_s20 = sld [smem:[#allocation3 + $0x1]]  ;;  %vm4902_vm6 = vcmask 1044480  }
  0x18   :  { %4979 = vperm.xlu0 %5959, %v4941_v4   ;;  %4989 = vperm.xlu1 %5960, %v4943_v5   ;;  %v4956_v38 = vld [vmem:[%s13531_s3 + $0x80] sm:$0xff]  ;;  %v4957_v39 = vld [vmem:[%s13531_s3 + $0x88] sm:$0xff]  ;;  %13911 = vst [vmem:[#allocation18_spill] sm:$0xff] %v6689_v48  ;;  %v4958_v50 = vld [vmem:[%s13531_s3 + $0x90] sm:$0xff]  ;;  %s5812_s22 = sld [smem:[#allocation3 + $0x101]]  ;;  %vm4904_vm7 = vcmask 1045504  }
  0x19   :  { %v50_v24 = vrot.slane %v6635_v20, %v49_v17  ;;  %v57_v27 = vrot.slane %v43_v22, %v49_v17  ;;  %v99_v28 = vrot.slane %v6640_v21, %v49_v17  ;;  %v106_v29 = vrot.slane %v92_v23, %v49_v17  ;;  %v4959_v51 = vld [vmem:[%s13531_s3 + $0x98] sm:$0xff]  ;;  %v4960_v2 = vld [vmem:[%s13531_s3 + $0xa0] sm:$0xff]  ;;  %v4961_v3 = vld [vmem:[%s13531_s3 + $0xa8] sm:$0xff]  ;;  %s5813_s23 = sld [smem:[#allocation3 + $0x181]] }
  0x1a   :  { %v306_v45 = vstv %s6654_s8  ;;  %v4963_v22 = vld [vmem:[%s13531_s3 + $0xb8] sm:$0xff]  ;;  %s5814_s5 = sld [smem:[#allocation3 + $0x2]]  ;;  %vm4906_vm8 = vcmask 1046528   ;;  %vm5790_vm9 = vcmask 8192  }
  0x1b   :  { %v58_v30 = vcombine.high %v50_v24, %v50_v24  ;;  %v59_v33 = vcombine.high %v57_v27, %v57_v27  ;;  %v107_v34 = vcombine.high %v99_v28, %v99_v28  ;;  %v6662_v35 = vrot.slane %v50_v24, %v49_v17  ;;  %s8463_s28 = sld [smem:[#allocation3 + $0x82]] }
  0x1c   :  { %4994 = vperm.xlu0 %5959, %v4944_v6   ;;  %4999 = vperm.xlu1 %5960, %v4945_v7   ;;  %v108_v36 = vcombine.high %v106_v29, %v106_v29  ;;  %v6672_v40 = vrot.slane %v57_v27, %v49_v17  ;;  %v6676_v42 = vrot.slane %v99_v28, %v49_v17  ;;  %s8476_s29 = sld [smem:[#allocation3 + $0x102]] }
  0x1d   :  { %13902 = vst [vmem:[#allocation9_spill] sm:$0xff] %v6662_v35  ;;  %v6664_v37 = vrot.slane %v58_v30, %v49_v17  ;;  %v6674_v41 = vrot.slane %v59_v33, %v49_v17  ;;  %v6678_v43 = vrot.slane %v106_v29, %v49_v17  ;;  %v6680_v44 = vrot.slane %v107_v34, %v49_v17  ;;  %s8668_s30 = sld [smem:[#allocation3 + $0x182]] }
  0x1e   :  { %13904 = vst [vmem:[#allocation11_spill] sm:$0xff] %v6672_v40  ;;  %13906 = vst [vmem:[#allocation13_spill] sm:$0xff] %v6676_v42  ;;  %v6685_v46 = vcombine.high %v6662_v35, %v6662_v35  ;;  %v6687_v47 = vrot.slane %v108_v36, %v49_v17  ;;  %v6703_v52 = vcombine.high %v6672_v40, %v6672_v40  ;;  %s8993_s1 = sld [smem:[#allocation3 + $0x3]] }
  0x1f   :  { %13903 = vst [vmem:[#allocation10_spill] sm:$0xff] %v6664_v37  ;;  %13905 = vst [vmem:[#allocation12_spill] sm:$0xff] %v6674_v41  ;;  %v6693_v49 = vcombine.high %v6664_v37, %v6664_v37  ;;  %v6707_v53 = vcombine.high %v6674_v41, %v6674_v41  ;;  %v6710_v54 = vmul.f32 %v306_v45, %v6635_v20  ;;  %s8995_s7 = sld [smem:[#allocation3 + $0x83]] }
  0x20   :  { %5004 = vperm.xlu0 %5959, %v4946_v11   ;;  %5009 = vperm.xlu1 %5960, %v4947_v12   ;;  %13907 = vst [vmem:[#allocation14_spill] sm:$0xff] %v6678_v43  ;;  %13908 = vst [vmem:[#allocation15_spill] sm:$0xff] %v6680_v44  ;;  %v6714_v55 = vcombine.high %v6676_v42, %v6676_v42  ;;  %v6718_v56 = vcombine.high %v6678_v43, %v6678_v43  ;;  %s9000_s8 = sld [smem:[#allocation3 + $0x103]] }
  0x21   :  { %13909 = vst [vmem:[#allocation16_spill] sm:$0xff] %v6685_v46  ;;  %13910 = vst [vmem:[#allocation17_spill] sm:$0xff] %v6687_v47  ;;  %v6722_v57 = vcombine.high %v6680_v44, %v6680_v44  ;;  %v6725_v58 = vmul.f32 %v306_v45, %v6640_v21  ;;  %v6729_v59 = vcombine.high %v6687_v47, %v6687_v47  ;;  %v273_v45 = vstv %s6755_s21  ;;  %s7438_s21 = sld [smem:[#allocation3 + $0x81]] }
  0x22   :  { %13912 = vst [vmem:[#allocation19_spill] sm:$0xff] %v6693_v49  ;;  %13913 = vst [vmem:[#allocation20_spill] sm:$0xff] %v6703_v52  ;;  %v6733_v60 = vrot.slane %v6662_v35, %v6689_v48  ;;  %v6737_v61 = vrot.slane %v6664_v37, %v6689_v48  ;;  %v6741_v62 = vrot.slane %v6685_v46, %v6689_v48  ;;  %s9423_s13 = sld [smem:[#allocation3 + $0x183]] }
  0x23   :  { %13914 = vst [vmem:[#allocation21_spill] sm:$0xff] %v6707_v53  ;;  %13915 = vst [vmem:[#allocation22_spill] sm:$0xff] %v6714_v55  ;;  %v6745_v63 = vrot.slane %v6693_v49, %v6689_v48  ;;  %v6749_v0 = vrot.slane %v6672_v40, %v6689_v48  ;;  %v6753_v1 = vrot.slane %v6674_v41, %v6689_v48  ;;  %s5822_s14 = sld [smem:[#allocation3 + $0x4]] }
  0x24   :  { %5014 = vperm.xlu0 %5959, %v4948_v15   ;;  %5019 = vperm.xlu1 %5960, %v4949_v16   ;;  %13916 = vst [vmem:[#allocation23_spill] sm:$0xff] %v6718_v56  ;;  %13917 = vst [vmem:[#allocation24_spill] sm:$0xff] %v6722_v57  ;;  %v6765_v4 = vrot.slane %v6703_v52, %v6689_v48  ;;  %v6769_v5 = vrot.slane %v6707_v53, %v6689_v48  ;;  %s10032_s15 = sld [smem:[#allocation3 + $0x84]] }
  0x25   :  { %13918 = vst [vmem:[#allocation25_spill] sm:$0xff] %v6729_v59  ;;  %13919 = vst [vmem:[#allocation26_spill] sm:$0xff] %v6733_v60  ;;  %v6773_v6 = vrot.slane %v6676_v42, %v6689_v48  ;;  %v6777_v7 = vrot.slane %v6680_v44, %v6689_v48  ;;  %v6781_v8 = vrot.slane %v6714_v55, %v6689_v48  ;;  %s10042_s16 = sld [smem:[#allocation3 + $0x104]] }
  0x26   :  { %13920 = vst [vmem:[#allocation27_spill] sm:$0xff] %v6737_v61  ;;  %13921 = vst [vmem:[#allocation28_spill] sm:$0xff] %v6741_v62  ;;  %v6785_v9 = vrot.slane %v6722_v57, %v6689_v48  ;;  %v6789_v10 = vrot.slane %v6678_v43, %v6689_v48  ;;  %v6793_v11 = vrot.slane %v6687_v47, %v6689_v48  ;;  %s10572_s24 = sld [smem:[#allocation3 + $0x105]] }
  0x27   :  { %13922 = vst [vmem:[#allocation29_spill] sm:$0xff] %v6745_v63  ;;  %13923 = vst [vmem:[#allocation30_spill] sm:$0xff] %v6749_v0  ;;  %v6797_v12 = vrot.slane %v6718_v56, %v6689_v48  ;;  %v6801_v13 = vrot.slane %v6729_v59, %v6689_v48  ;;  %v6805_v14 = vmul.f32 %v6733_v60, %v6635_v20  ;;  %s11366_s26 = sld [smem:[#allocation3 + $0x6]] }
  0x28   :  { %5024 = vperm.xlu0 %5959, %v4950_v18   ;;  %5029 = vperm.xlu1 %5960, %v4951_v19   ;;  %13924 = vst [vmem:[#allocation31_spill] sm:$0xff] %v6753_v1  ;;  %13925 = vst [vmem:[#allocation32_spill] sm:$0xff] %v6765_v4  ;;  %v6809_v15 = vmul.f32 %v6733_v60, %v6640_v21  ;;  %v6813_v16 = vmul.f32 %v6737_v61, %v6635_v20  ;;  %v4962_v19 = vld [vmem:[%s13531_s3 + $0xb0] sm:$0xff]  ;;  %s11613_s27 = sld [smem:[#allocation3 + $0x86]] }
  0x29   :  { %13926 = vst [vmem:[#allocation33_spill] sm:$0xff] %v6769_v5  ;;  %13927 = vst [vmem:[#allocation34_spill] sm:$0xff] %v6773_v6  ;;  %v6817_v17 = vmul.f32 %v6737_v61, %v6640_v21  ;;  %v6821_v18 = vmul.f32 %v6741_v62, %v6635_v20  ;;  %v6831_v23 = vmul.f32 %v6741_v62, %v6640_v21  ;;  %s12186_s9 = sld [smem:[#allocation3 + $0x107]] }
  0x2a   :  { %13928 = vst [vmem:[#allocation35_spill] sm:$0xff] %v6777_v7  ;;  %13929 = vst [vmem:[#allocation36_spill] sm:$0xff] %v6781_v8  ;;  %v6835_v24 = vmul.f32 %v6745_v63, %v6635_v20  ;;  %v6847_v27 = vmul.f32 %v6749_v0, %v6640_v21  ;;  %v6851_v28 = vmul.f32 %v6753_v1, %v6635_v20  ;;  %s12622_s10 = sld [smem:[#allocation3 + $0x187]] }
  0x2b   :  { %13930 = vst [vmem:[#allocation37_spill] sm:$0xff] %v6785_v9  ;;  %13931 = vst [vmem:[#allocation38_spill] sm:$0xff] %v6789_v10  ;;  %v6855_v29 = vmul.f32 %v6753_v1, %v6640_v21  ;;  %v6859_v30 = vmul.f32 %v6765_v4, %v6635_v20  ;;  %v6871_v33 = vmul.f32 %v6769_v5, %v6640_v21 }
  0x2c   :  { %5034 = vperm.xlu0 %5959, %v4952_v25   ;;  %5039 = vperm.xlu1 %5960, %v4953_v26   ;;  %13932 = vst [vmem:[#allocation39_spill] sm:$0xff] %v6793_v11  ;;  %13933 = vst [vmem:[#allocation40_spill] sm:$0xff] %v6797_v12  ;;  %v6839_v25 = vmul.f32 %v6745_v63, %v6640_v21  ;;  %v6843_v26 = vmul.f32 %v6749_v0, %v6635_v20 }
  0x2d   :  { %13934 = vst [vmem:[#allocation41_spill] sm:$0xff] %v6801_v13  ;;  %13935 = vst [vmem:[#allocation42_spill] sm:$0xff] %v6805_v14  ;;  %v6875_v34 = vmul.f32 %v6773_v6, %v6635_v20  ;;  %v6879_v36 = vmul.f32 %v6773_v6, %v6640_v21  ;;  %v6918_v6 = vmul.f32 %v6789_v10, %v6640_v21 }
  0x2e   :  { %13936 = vst [vmem:[#allocation43_spill] sm:$0xff] %v6809_v15  ;;  %13937 = vst [vmem:[#allocation44_spill] sm:$0xff] %v6813_v16  ;;  %v6942_v1 = vmul.f32 %v6801_v13, %v6640_v21  ;;  %v275_v0 = vmul.f32 %v273_v45, %v6809_v15  ;;  %v276_v63 = vmul.f32 %v273_v45, %v6813_v16 }
  0x2f   :  { %13938 = vst [vmem:[#allocation45_spill] sm:$0xff] %v6817_v17  ;;  %13939 = vst [vmem:[#allocation46_spill] sm:$0xff] %v6821_v18  ;;  %v277_v62 = vmul.f32 %v273_v45, %v6817_v17  ;;  %v282_v61 = vmul.f32 %v273_v45, %v6843_v26  ;;  %v283_v60 = vmul.f32 %v273_v45, %v6847_v27 }
  0x30   :  { %5044 = vperm.xlu0 %5959, %v4954_v31   ;;  %5049 = vperm.xlu1 %5960, %v4955_v32   ;;  %13940 = vst [vmem:[#allocation47_spill] sm:$0xff] %v6831_v23  ;;  %13941 = vst [vmem:[#allocation48_spill] sm:$0xff] %v6835_v24  ;;  %v6863_v31 = vmul.f32 %v6765_v4, %v6640_v21  ;;  %v6867_v32 = vmul.f32 %v6769_v5, %v6635_v20 }
  0x31   :  { %13942 = vst [vmem:[#allocation49_spill] sm:$0xff] %v6839_v25  ;;  %13943 = vst [vmem:[#allocation50_spill] sm:$0xff] %v6843_v26  ;;  %v6926_v5 = vmul.f32 %v6793_v11, %v6640_v21  ;;  %v6934_v4 = vmul.f32 %v6797_v12, %v6640_v21  ;;  %v284_v16 = vmul.f32 %v273_v45, %v6851_v28 }
  0x32   :  { %13944 = vst [vmem:[#allocation51_spill] sm:$0xff] %v6847_v27  ;;  %13945 = vst [vmem:[#allocation52_spill] sm:$0xff] %v6851_v28  ;;  %v285_v15 = vmul.f32 %v273_v45, %v6855_v29  ;;  %v287_v17 = vmul.f32 %v273_v45, %v6863_v31  ;;  %v290_v26 = vmul.f32 %v273_v45, %v6875_v34 }
  0x33   :  { %13946 = vst [vmem:[#allocation53_spill] sm:$0xff] %v6855_v29  ;;  %13947 = vst [vmem:[#allocation54_spill] sm:$0xff] %v6859_v30  ;;  %v291_v27 = vmul.f32 %v273_v45, %v6879_v36  ;;  %v4968_v29 = vld [vmem:[%s13531_s3 + $0xe0] sm:$0xff]  ;;  %v299_v28 = vmul.f32 %v273_v45, %v6918_v6 }
  0x34   :  { %5054 = vperm.xlu0 %5959, %v4956_v38   ;;  %5059 = vperm.xlu1 %5960, %v4957_v39   ;;  %13948 = vst [vmem:[#allocation55_spill] sm:$0xff] %v6863_v31  ;;  %13949 = vst [vmem:[#allocation56_spill] sm:$0xff] %v6867_v32  ;;  %v6883_v38 = vmul.f32 %v6777_v7, %v6635_v20  ;;  %v6887_v39 = vmul.f32 %v6777_v7, %v6640_v21  ;;  %v4969_v31 = vld [vmem:[%s13531_s3 + $0xe8] sm:$0xff] }
  0x35   :  { %13950 = vst [vmem:[#allocation57_spill] sm:$0xff] %v6871_v33  ;;  %13951 = vst [vmem:[#allocation58_spill] sm:$0xff] %v6875_v34  ;;  %v6914_v7 = vmul.f32 %v6789_v10, %v6635_v20  ;;  %v6938_v10 = vmul.f32 %v6801_v13, %v6635_v20  ;;  %v281_v13 = vmul.f32 %v273_v45, %v6839_v25 }
  0x36   :  { %13952 = vst [vmem:[#allocation59_spill] sm:$0xff] %v6879_v36  ;;  %13953 = vst [vmem:[#allocation60_spill] sm:$0xff] %v6883_v38  ;;  %v289_v25 = vmul.f32 %v273_v45, %v6871_v33 }
  0x37   :  { %13954 = vst [vmem:[#allocation61_spill] sm:$0xff] %v6887_v39  ;;  %13959 = vst [vmem:[#allocation66_spill] sm:$0xff] %v6914_v7 }
  0x38   :  { %5064 = vperm.xlu0 %5959, %v4958_v50   ;;  %5069 = vperm.xlu1 %5960, %v4959_v51   ;;  %v4964_v50 = vld [vmem:[%s13531_s3 + $0xc0] sm:$0xff]  ;;  %v4965_v51 = vld [vmem:[%s13531_s3 + $0xc8] sm:$0xff]  ;;  %13960 = vst [vmem:[#allocation67_spill] sm:$0xff] %v6918_v6  ;;  %13962 = vst [vmem:[#allocation69_spill] sm:$0xff] %v6926_v5 }
  0x39   :  { %13964 = vst [vmem:[#allocation71_spill] sm:$0xff] %v6934_v4  ;;  %13965 = vst [vmem:[#allocation72_spill] sm:$0xff] %v6938_v10  ;;  %v5486_v6 = vld [vmem:[%s13532_s4] sm:$0xff] }
  0x3a   :  { %13966 = vst [vmem:[#allocation73_spill] sm:$0xff] %v6942_v1 }
  0x3c   :  { %5074 = vperm.xlu0 %5959, %v4960_v2   ;;  %5079 = vperm.xlu1 %5960, %v4961_v3   ;;  %v6898_v2 = vmul.f32 %v6781_v8, %v6635_v20  ;;  %v6902_v3 = vmul.f32 %v6781_v8, %v6640_v21  ;;  %v6922_v8 = vmul.f32 %v6793_v11, %v6635_v20 }
  0x3d   :  { %v274_v11 = vmul.f32 %v273_v45, %v6805_v14  ;;  %v286_v14 = vmul.f32 %v273_v45, %v6859_v30  ;;  %v298_v30 = vmul.f32 %v273_v45, %v6914_v7 }
  0x3e   :  { %13955 = vst [vmem:[#allocation62_spill] sm:$0xff] %v6898_v2  ;;  %13956 = vst [vmem:[#allocation63_spill] sm:$0xff] %v6902_v3  ;;  %v295_v33 = vmul.f32 %v273_v45, %v6902_v3  ;;  %v304_v3 = vmul.f32 %v273_v45, %v6938_v10  ;;  %v7018_v10 = vadd.f32 %v6725_v58, %v281_v13 }
  0x3f   :  { %13961 = vst [vmem:[#allocation68_spill] sm:$0xff] %v6922_v8  ;;  %v7036_v13 = vadd.f32 %v6725_v58, %v287_v17 }
  0x40   :  { %5084 = vperm.xlu0 %5959, %v4962_v19   ;;  %5089 = vperm.xlu1 %5960, %v4963_v22   ;;  %v6906_v19 = vmul.f32 %v6785_v9, %v6635_v20  ;;  %v6910_v22 = vmul.f32 %v6785_v9, %v6640_v21  ;;  %v6930_v9 = vmul.f32 %v6797_v12, %v6635_v20  ;;  %v4966_v12 = vld [vmem:[%s13531_s3 + $0xd0] sm:$0xff]  ;;  %v4967_v20 = vld [vmem:[%s13531_s3 + $0xd8] sm:$0xff] }
  0x41   :  { %v278_v21 = vmul.f32 %v273_v45, %v6821_v18  ;;  %v288_v18 = vmul.f32 %v273_v45, %v6867_v32  ;;  %v292_v32 = vmul.f32 %v273_v45, %v6883_v38 }
  0x42   :  { %13957 = vst [vmem:[#allocation64_spill] sm:$0xff] %v6906_v19  ;;  %13958 = vst [vmem:[#allocation65_spill] sm:$0xff] %v6910_v22  ;;  %v296_v34 = vmul.f32 %v273_v45, %v6906_v19  ;;  %v297_v36 = vmul.f32 %v273_v45, %v6910_v22  ;;  %v302_v38 = vmul.f32 %v273_v45, %v6930_v9 }
  0x43   :  { %13963 = vst [vmem:[#allocation70_spill] sm:$0xff] %v6930_v9  ;;  %v305_v19 = vmul.f32 %v273_v45, %v6942_v1  ;;  %v6991_v22 = vadd.f32 %v6710_v54, %v274_v11  ;;  %v7000_v9 = vadd.f32 %v6725_v58, %v275_v0  ;;  %v7009_v11 = vadd.f32 %v6710_v54, %v278_v21 }
  0x44   :  { %5094 = vperm.xlu0 %5959, %v4964_v50   ;;  %5099 = vperm.xlu1 %5960, %v4965_v51   ;;  %v279_v50 = vmul.f32 %v273_v45, %v6831_v23  ;;  %v280_v51 = vmul.f32 %v273_v45, %v6835_v24  ;;  %v300_v24 = vmul.f32 %v273_v45, %v6922_v8 }
  0x45   :  { %v301_v23 = vmul.f32 %v273_v45, %v6926_v5  ;;  %v5487_v5 = vld [vmem:[%s13532_s4 + $0x8] sm:$0xff]  ;;  %v7021_v0 = vadd.f32 %v6710_v54, %v282_v61  ;;  %v7030_v21 = vadd.f32 %v6725_v58, %v285_v15  ;;  %v7039_v61 = vadd.f32 %v6710_v54, %v288_v18  ;;  %v5488_v15 = vld [vmem:[%s13532_s4 + $0x10] sm:$0xff] }
  0x46   :  { %v7015_v1 = vadd.f32 %v6710_v54, %v280_v51  ;;  %v341_v51 = vstv %s6965_s12 }
  0x47   :  { %v349_v8 = vmul.f32 %v341_v51, %v6707_v53  ;;  %v350_v7 = vmul.f32 %v341_v51, %v6676_v42  ;;  %v5493_v42 = vld [vmem:[%s13532_s4 + $0x38] sm:$0xff] }
  0x48   :  { %5104 = vperm.xlu0 %5959, %v4966_v12   ;;  %5109 = vperm.xlu1 %5960, %v4967_v20   ;;  %v293_v12 = vmul.f32 %v273_v45, %v6887_v39  ;;  %v294_v20 = vmul.f32 %v273_v45, %v6898_v2  ;;  %v303_v39 = vmul.f32 %v273_v45, %v6934_v4 }
  0x49   :  { %v7012_v45 = vadd.f32 %v6725_v58, %v279_v50  ;;  %v7033_v50 = vadd.f32 %v6710_v54, %v286_v14  ;;  %v5489_v14 = vld [vmem:[%s13532_s4 + $0x18] sm:$0xff]  ;;  %v7070_v4 = vadd.f32 %v6710_v54, %v296_v34 }
  0x4a   :  { %v7061_v17 = vadd.f32 %v6725_v58, %v293_v12  ;;  %v7064_v18 = vadd.f32 %v6710_v54, %v294_v20  ;;  %v7082_v12 = vadd.f32 %v6710_v54, %v300_v24  ;;  %v7085_v20 = vadd.f32 %v6725_v58, %v301_v23  ;;  %v5490_v24 = vld [vmem:[%s13532_s4 + $0x20] sm:$0xff]  ;;  %v5491_v23 = vld [vmem:[%s13532_s4 + $0x28] sm:$0xff] }
  0x4b   :  { %v7093_v34 = vadd.f32 %v6725_v58, %v303_v39  ;;  %v344_v39 = vmul.f32 %v341_v51, %v6685_v46  ;;  %v353_v46 = vmul.f32 %v341_v51, %v6722_v57 }
  0x4c   :  { %5114 = vperm.xlu0 %5959, %v4968_v29   ;;  %5119 = vperm.xlu1 %5960, %v4969_v31   ;;  %v7003_v29 = vadd.f32 %v6710_v54, %v276_v63  ;;  %v7006_v31 = vadd.f32 %v6725_v58, %v277_v62  ;;  %v7024_v63 = vadd.f32 %v6725_v58, %v283_v60 }
  0x4d   :  { %v7027_v62 = vadd.f32 %v6710_v54, %v284_v16  ;;  %v7042_v60 = vadd.f32 %v6725_v58, %v289_v25  ;;  %v7058_v16 = vadd.f32 %v6710_v54, %v292_v32  ;;  %v7067_v25 = vadd.f32 %v6725_v58, %v295_v33 }
  0x4e   :  { %v7079_v32 = vadd.f32 %v6725_v58, %v299_v28  ;;  %v7090_v33 = vadd.f32 %v6710_v54, %v302_v38  ;;  %v7105_v28 = vadd.f32 %v6725_v58, %v305_v19  ;;  %v343_v38 = vmul.f32 %v341_v51, %v6664_v37 }
  0x4f   :  { %v352_v19 = vmul.f32 %v341_v51, %v6714_v55  ;;  %v357_v55 = vmul.f32 %v341_v51, %v6729_v59  ;;  %v405_v37 = vrot.slane %v349_v8, %v6689_v48 }
  0x50   :  { %5520 = vperm.xlu0 %5959, %v5486_v6   ;;  %5525 = vperm.xlu1 %5960, %v5487_v5   ;;  %v7052_v5 = vadd.f32 %v6710_v54, %v290_v26  ;;  %v7055_v6 = vadd.f32 %v6725_v58, %v291_v27  ;;  %v7073_v26 = vadd.f32 %v6725_v58, %v297_v36 }
  0x51   :  { %v7076_v27 = vadd.f32 %v6710_v54, %v298_v30  ;;  %v7096_v30 = vadd.f32 %v6710_v54, %v304_v3  ;;  %v342_v36 = vmul.f32 %v341_v51, %v6662_v35  ;;  %v345_v54 = vmul.f32 %v341_v51, %v6693_v49 }
  0x52   :  { %v346_v3 = vmul.f32 %v341_v51, %v6672_v40  ;;  %v351_v58 = vmul.f32 %v341_v51, %v6680_v44  ;;  %v354_v49 = vmul.f32 %v341_v51, %v6678_v43  ;;  %v355_v40 = vmul.f32 %v341_v51, %v6687_v47 }
  0x53   :  { %v356_v44 = vmul.f32 %v341_v51, %v6718_v56  ;;  %v385_v43 = vrot.slane %v344_v39, %v6689_v48  ;;  %v389_v47 = vrot.slane %v345_v54, %v6689_v48  ;;  %v409_v56 = vrot.slane %v350_v7, %v6689_v48  ;;  %v5495_v7 = vld [vmem:[%s13532_s4 + $0x48] sm:$0xff] }
  0x54   :  { %5530 = vperm.xlu0 %5959, %v5488_v15   ;;  %5535 = vperm.xlu1 %5960, %v5489_v14   ;;  %v347_v15 = vmul.f32 %v341_v51, %v6674_v41  ;;  %v348_v14 = vmul.f32 %v341_v51, %v6703_v52  ;;  %v5492_v52 = vld [vmem:[%s13532_s4 + $0x30] sm:$0xff]  ;;  %v393_v57 = vrot.slane %v346_v3, %v6689_v48  ;;  %v7145_v54 = vstv %s7087_s25  ;;  %v5494_v3 = vld [vmem:[%s13532_s4 + $0x40] sm:$0xff]  ;;  %s11028_s25 = sld [smem:[#allocation3 + $0x185]] }
  0x55   :  { %v413_v51 = vrot.slane %v351_v58, %v6689_v48  ;;  %v7142_v39 = vrot.slane %v354_v49, %v6689_v48  ;;  %v460_v58 = vadd.f32 %v389_v47, %v7015_v1  ;;  %v5496_v1 = vld [vmem:[%s13532_s4 + $0x50] sm:$0xff] }
  0x56   :  { %v397_v53 = vrot.slane %v347_v15, %v6689_v48  ;;  %v401_v41 = vrot.slane %v348_v14, %v6689_v48  ;;  %v458_v14 = vadd.f32 %v385_v43, %v7009_v11  ;;  %v462_v59 = vadd.f32 %v393_v57, %v7021_v0 }
  0x57   :  { %v470_v0 = vadd.f32 %v409_v56, %v7052_v5 }
  0x58   :  { %5540 = vperm.xlu0 %5959, %v5490_v24   ;;  %5545 = vperm.xlu1 %5960, %v5491_v23   ;;  %v377_v24 = vrot.slane %v342_v36, %v6689_v48  ;;  %v381_v23 = vrot.slane %v343_v38, %v6689_v48  ;;  %v417_v36 = vrot.slane %v352_v19, %v6689_v48 }
  0x59   :  { %v421_v38 = vrot.slane %v353_v46, %v6689_v48  ;;  %v7160_v46 = vrot.slane %v357_v55, %v6689_v48  ;;  %v463_v55 = vadd.f32 %v393_v57, %v7024_v63  ;;  %v469_v57 = vadd.f32 %v405_v37, %v7042_v60 }
  0x5a   :  { %v454_v49 = vadd.f32 %v377_v24, %v6991_v22  ;;  %v455_v8 = vadd.f32 %v377_v24, %v7000_v9  ;;  %v456_v15 = vadd.f32 %v381_v23, %v7003_v29  ;;  %v457_v19 = vadd.f32 %v381_v23, %v7006_v31 }
  0x5b   :  { %v464_v9 = vadd.f32 %v397_v53, %v7027_v62  ;;  %v465_v22 = vadd.f32 %v397_v53, %v7030_v21  ;;  %v468_v29 = vadd.f32 %v405_v37, %v7039_v61  ;;  %v7191_v11 = vadd.f32 %v7145_v54, %v458_v14 }
  0x5c   :  { %5550 = vperm.xlu0 %5959, %v5492_v52   ;;  %5555 = vperm.xlu1 %5960, %v5493_v42   ;;  %v7154_v52 = vrot.slane %v355_v40, %v6689_v48  ;;  %v7157_v42 = vrot.slane %v356_v44, %v6689_v48  ;;  %v459_v40 = vadd.f32 %v385_v43, %v7012_v45  ;;  %v5497_v43 = vld [vmem:[%s13532_s4 + $0x58] sm:$0xff] }
  0x5d   :  { %v461_v44 = vadd.f32 %v389_v47, %v7018_v10  ;;  %v466_v47 = vadd.f32 %v401_v41, %v7033_v50  ;;  %v467_v10 = vadd.f32 %v401_v41, %v7036_v13  ;;  %v7185_v31 = vadd.f32 %v7145_v54, %v454_v49  ;;  %v5498_v13 = vld [vmem:[%s13532_s4 + $0x60] sm:$0xff] }
  0x5e   :  { %v7188_v53 = vadd.f32 %v7145_v54, %v456_v15  ;;  %v7194_v45 = vadd.f32 %v7145_v54, %v460_v58  ;;  %v471_v41 = vadd.f32 %v409_v56, %v7055_v6  ;;  %v472_v63 = vadd.f32 %v413_v51, %v7058_v16  ;;  %v5499_v56 = vld [vmem:[%s13532_s4 + $0x68] sm:$0xff] }
  0x5f   :  { %v473_v37 = vadd.f32 %v413_v51, %v7061_v17  ;;  %v7201_v62 = vadd.f32 %v417_v36, %v7064_v18  ;;  %v7204_v21 = vadd.f32 %v417_v36, %v7067_v25  ;;  %v476_v50 = vadd.f32 %v421_v38, %v7070_v4 }
  0x60   :  { %5560 = vperm.xlu0 %5959, %v5494_v3   ;;  %5565 = vperm.xlu1 %5960, %v5495_v7   ;;  %v7214_v61 = vadd.f32 %v7145_v54, %v455_v8  ;;  %v7217_v60 = vadd.f32 %v7145_v54, %v457_v19  ;;  %v7220_v5 = vadd.f32 %v7145_v54, %v462_v59  ;;  %v520_v4 = vsel %vm519_vm0, %v7185_v31, -inf  ;;  %v5501_v3 = vld [vmem:[%s13532_s4 + $0x78] sm:$0xff] }
  0x61   :  { %v7223_v6 = vadd.f32 %v7145_v54, %v464_v9  ;;  %v521_v16 = vsel %vm519_vm0, %v7188_v53, -inf  ;;  %v522_v17 = vsel %vm519_vm0, %v7191_v11, -inf  ;;  %v524_v18 = vsel %vm519_vm0, %v7194_v45, -inf }
  0x62   :  { %v477_v25 = vadd.f32 %v421_v38, %v7073_v26  ;;  %v7235_v59 = vadd.f32 %v7145_v54, %v459_v40  ;;  %v7238_v24 = vadd.f32 %v7145_v54, %v461_v44  ;;  %v7241_v23 = vadd.f32 %v7145_v54, %v463_v55  ;;  %v5500_v38 = vld [vmem:[%s13532_s4 + $0x70] sm:$0xff] }
  0x63   :  { %v7245_v51 = vadd.f32 %v7142_v39, %v7076_v27  ;;  %v7248_v36 = vadd.f32 %v7145_v54, %v465_v22  ;;  %v7251_v26 = vadd.f32 %v7145_v54, %v466_v47  ;;  %v7260_v7 = vadd.f32 %v7145_v54, %v467_v10  ;;  %v5502_v10 = vld [vmem:[%s13532_s4 + $0x80] sm:$0xff] }
  0x64   :  { %5570 = vperm.xlu0 %5959, %v5496_v1   ;;  %5575 = vperm.xlu1 %5960, %v5497_v43   ;;  %v7263_v27 = vadd.f32 %v7145_v54, %v468_v29  ;;  %v523_v49 = vmax.f32 %v520_v4, %v522_v17  ;;  %v525_v8 = vmax.f32 %v521_v16, %v524_v18  ;;  %v526_v15 = vsel %vm519_vm0, %v7220_v5, -inf  ;;  %v5503_v29 = vld [vmem:[%s13532_s4 + $0x88] sm:$0xff] }
  0x65   :  { %v528_v14 = vsel %vm519_vm0, %v7223_v6, -inf  ;;  %v551_v58 = vsel %vm519_vm0, %v7214_v61, -inf  ;;  %v552_v19 = vsel %vm519_vm0, %v7217_v60, -inf  ;;  %v7274_v40 = vadd.f32 %v7145_v54, %v469_v57 }
  0x66   :  { %v553_v44 = vsel %vm519_vm0, %v7235_v59, -inf  ;;  %v555_v55 = vsel %vm519_vm0, %v7238_v24, -inf  ;;  %v557_v9 = vsel %vm519_vm0, %v7241_v23, -inf  ;;  %v479_v22 = vadd.f32 %v7142_v39, %v7079_v32 }
  0x67   :  { %v554_v1 = vmax.f32 %v551_v58, %v553_v44  ;;  %v556_v43 = vmax.f32 %v552_v19, %v555_v55  ;;  %v559_v47 = vsel %vm519_vm0, %v7248_v36, -inf  ;;  %v7293_v57 = vadd.f32 %v7145_v54, %v470_v0 }
  0x68   :  { %5580 = vperm.xlu0 %5959, %v5498_v13   ;;  %5585 = vperm.xlu1 %5960, %v5499_v56   ;;  %v7296_v13 = vadd.f32 %v7145_v54, %v472_v63  ;;  %v527_v32 = vmax.f32 %v523_v49, %v526_v15  ;;  %v529_v39 = vmax.f32 %v525_v8, %v528_v14  ;;  %v530_v56 = vsel %vm519_vm0, %v7251_v26, -inf  ;;  %v5505_v8 = vld [vmem:[%s13532_s4 + $0x98] sm:$0xff] }
  0x69   :  { %v532_v4 = vsel %vm519_vm0, %v7263_v27, -inf  ;;  %v558_v16 = vmax.f32 %v554_v1, %v557_v9  ;;  %v560_v17 = vmax.f32 %v556_v43, %v559_v47  ;;  %v7303_v18 = vadd.f32 %v7145_v54, %v471_v41  ;;  %v5507_v43 = vld [vmem:[%s13532_s4 + $0xa8] sm:$0xff] }
  0x6a   :  { %v561_v0 = vsel %vm519_vm0, %v7260_v7, -inf  ;;  %v563_v63 = vsel %vm519_vm0, %v7274_v40, -inf  ;;  %v481_v49 = vadd.f32 %v7154_v52, %v7085_v20  ;;  %v482_v41 = vadd.f32 %v7157_v42, %v7090_v33 }
  0x6b   :  { %v7326_v15 = vadd.f32 %v7145_v54, %v7201_v62  ;;  %v531_v14 = vmax.f32 %v527_v32, %v530_v56  ;;  %v533_v20 = vmax.f32 %v529_v39, %v532_v4  ;;  %v534_v33 = vsel %vm519_vm0, %v7293_v57, -inf  ;;  %v5508_v4 = vld [vmem:[%s13532_s4 + $0xb0] sm:$0xff] }
  0x6c   :  { %5590 = vperm.xlu0 %5959, %v5500_v38   ;;  %5595 = vperm.xlu1 %5960, %v5501_v3   ;;  %v7306_v38 = vadd.f32 %v7145_v54, %v473_v37  ;;  %v480_v3 = vadd.f32 %v7154_v52, %v7082_v12  ;;  %v5504_v37 = vld [vmem:[%s13532_s4 + $0x90] sm:$0xff]  ;;  %v7329_v12 = vadd.f32 %v7145_v54, %v476_v50  ;;  %v536_v52 = vsel %vm519_vm0, %v7296_v13, -inf }
  0x6d   :  { %v562_v58 = vmax.f32 %v558_v16, %v561_v0  ;;  %v564_v19 = vmax.f32 %v560_v17, %v563_v63  ;;  %v7337_v44 = vadd.f32 %v7145_v54, %v7204_v21  ;;  %v7340_v62 = vadd.f32 %v7145_v54, %v477_v25  ;;  %v5506_v25 = vld [vmem:[%s13532_s4 + $0xa0] sm:$0xff] }
  0x6e   :  { %v565_v50 = vsel %vm519_vm0, %v7303_v18, -inf  ;;  %v567_v55 = vsel %vm519_vm0, %v7306_v38, -inf  ;;  %v483_v9 = vadd.f32 %v7157_v42, %v7093_v34  ;;  %v484_v1 = vadd.f32 %v7160_v46, %v7096_v30 }
  0x6f   :  { %v485_v21 = vadd.f32 %v7160_v46, %v7105_v28  ;;  %v7360_v47 = vadd.f32 %v7145_v54, %v7245_v51  ;;  %v7363_v34 = vadd.f32 %v7145_v54, %v480_v3  ;;  %v535_v42 = vmax.f32 %v531_v14, %v534_v33 }
  0x70   :  { %5600 = vperm.xlu0 %5959, %v5502_v10   ;;  %5605 = vperm.xlu1 %5960, %v5503_v29   ;;  %v537_v30 = vmax.f32 %v533_v20, %v536_v52  ;;  %v538_v28 = vsel %vm519_vm0, %v7326_v15, -inf  ;;  %v540_v46 = vsel %vm519_vm0, %v7329_v12, -inf  ;;  %v566_v10 = vmax.f32 %v562_v58, %v565_v50  ;;  %v5510_v52 = vld [vmem:[%s13532_s4 + $0xc0] sm:$0xff]  ;;  %v5511_v58 = vld [vmem:[%s13532_s4 + $0xc8] sm:$0xff] }
  0x71   :  { %v568_v29 = vmax.f32 %v564_v19, %v567_v55  ;;  %v7370_v32 = vadd.f32 %v7145_v54, %v479_v22  ;;  %v7373_v39 = vadd.f32 %v7145_v54, %v481_v49  ;;  %v569_v51 = vsel %vm519_vm0, %v7337_v44, -inf  ;;  %v5509_v22 = vld [vmem:[%s13532_s4 + $0xb8] sm:$0xff] }
  0x72   :  { %v571_v56 = vsel %vm519_vm0, %v7340_v62, -inf  ;;  %v7386_v16 = vadd.f32 %v7145_v54, %v482_v41  ;;  %v7389_v17 = vadd.f32 %v7145_v54, %v484_v1  ;;  %v539_v0 = vmax.f32 %v535_v42, %v538_v28 }
  0x73   :  { %v541_v63 = vmax.f32 %v537_v30, %v540_v46  ;;  %v542_v3 = vsel %vm519_vm0, %v7360_v47, -inf  ;;  %v544_v49 = vsel %vm519_vm0, %v7363_v34, -inf  ;;  %v7396_v14 = vadd.f32 %v7145_v54, %v483_v9 }
  0x74   :  { %5610 = vperm.xlu0 %5959, %v5504_v37   ;;  %5615 = vperm.xlu1 %5960, %v5505_v8   ;;  %v570_v37 = vmax.f32 %v566_v10, %v569_v51  ;;  %v572_v8 = vmax.f32 %v568_v29, %v571_v56  ;;  %v7399_v20 = vadd.f32 %v7145_v54, %v485_v21  ;;  %v573_v41 = vsel %vm519_vm0, %v7370_v32, -inf }
  0x75   :  { %v575_v33 = vsel %vm519_vm0, %v7373_v39, -inf  ;;  %v543_v19 = vmax.f32 %v539_v0, %v542_v3  ;;  %v545_v50 = vmax.f32 %v541_v63, %v544_v49  ;;  %v546_v54 = vsel %vm519_vm0, %v7386_v16, -inf }
  0x76   :  { %v548_v55 = vsel %vm519_vm0, %v7389_v17, -inf  ;;  %v574_v9 = vmax.f32 %v570_v37, %v573_v41  ;;  %v576_v1 = vmax.f32 %v572_v8, %v575_v33  ;;  %v577_v21 = vsel %vm519_vm0, %v7396_v14, -inf }
  0x77   :  { %v547_v42 = vmax.f32 %v543_v19, %v546_v54  ;;  %v549_v30 = vmax.f32 %v545_v50, %v548_v55  ;;  %v7453_v19 = vstv %s5812_s22  ;;  %v7457_v54 = vstv %s5813_s23  ;;  %s10557_s22 = sld [smem:[#allocation3 + $0x5]] }
  0x78   :  { %5620 = vperm.xlu0 %5959, %v5506_v25   ;;  %5625 = vperm.xlu1 %5960, %v5507_v43   ;;  %v579_v25 = vsel %vm519_vm0, %v7399_v20, -inf  ;;  %v5512_v43 = vld [vmem:[%s13532_s4 + $0xd0] sm:$0xff]  ;;  %v578_v28 = vmax.f32 %v574_v9, %v577_v21  ;;  %s10567_s23 = sld [smem:[#allocation3 + $0x85]] }
  0x79   :  { %v580_v46 = vmax.f32 %v576_v1, %v579_v25  ;;  %v7422_v10 = vmax.f32 %v547_v42, %v549_v30  ;;  %v13968_v9 = vld [vmem:[#allocation43_spill] sm:$0xff]  ;;  %v13970_v25 = vld [vmem:[#allocation45_spill] sm:$0xff]  ;;  %v13971_v42 = vld [vmem:[#allocation46_spill] sm:$0xff] }
  0x7b   :  { %v7424_v29 = vmax.f32 %v578_v28, %v580_v46  ;;  %v582_v51 = vsub.f32 %v7185_v31, %v7422_v10  ;;  %v586_v3 = vsub.f32 %v7191_v11, %v7422_v10  ;;  %v588_v31 = vsub.f32 %v7194_v45, %v7422_v10  ;;  %v13972_v28 = vld [vmem:[#allocation47_spill] sm:$0xff] }
  0x7c   :  { %5630 = vperm.xlu0 %5959, %v5508_v4   ;;  %5635 = vperm.xlu1 %5960, %v5509_v22   ;;  %v584_v4 = vsub.f32 %v7188_v53, %v7422_v10  ;;  %v7448_v45 = vstv %s5810_s20 }
  0x7d   :  { %v583_v56 = vsub.f32 %v7214_v61, %v7424_v29  ;;  %v585_v22 = vsub.f32 %v7217_v60, %v7424_v29  ;;  %v614_v0 = vmul.f32 1.442695, %v582_v51  ;;  %v587_v37 = vsub.f32 %v7235_v59, %v7424_v29  ;;  %v13973_v51 = vld [vmem:[#allocation48_spill] sm:$0xff] }
  0x7e   :  { %v618_v49 = vmul.f32 1.442695, %v584_v4  ;;  %v622_v53 = vmul.f32 1.442695, %v586_v3  ;;  %v589_v11 = vsub.f32 %v7238_v24, %v7424_v29  ;;  %v590_v60 = vsub.f32 %v7220_v5, %v7422_v10  ;;  %v13974_v4 = vld [vmem:[#allocation49_spill] sm:$0xff] }
  0x7f   :  { %v616_v63 = vmul.f32 1.442695, %v583_v56  ;;  %v620_v8 = vmul.f32 1.442695, %v585_v22  ;;  %5963 = vpow2.f32 %v614_v0  ;;  %v624_v61 = vmul.f32 1.442695, %v587_v37 }
  0x80   :  { %5640 = vperm.xlu0 %5959, %v5510_v52   ;;  %5645 = vperm.xlu1 %5960, %v5511_v58   ;;  %v626_v59 = vmul.f32 1.442695, %v588_v31  ;;  %v591_v41 = vsub.f32 %v7241_v23, %v7424_v29  ;;  %v628_v33 = vmul.f32 1.442695, %v589_v11  ;;  %v592_v58 = vsub.f32 %v7223_v6, %v7422_v10  ;;  %v13967_v23 = vld [vmem:[#allocation42_spill] sm:$0xff]  ;;  %v13969_v6 = vld [vmem:[#allocation44_spill] sm:$0xff] }
  0x81   :  { %5965 = vpow2.f32 %v616_v63  ;;  %v630_v24 = vmul.f32 1.442695, %v590_v60  ;;  %v593_v5 = vsub.f32 %v7248_v36, %v7424_v29  ;;  %v7461_v55 = vmul.f32 %v7448_v45, %v13967_v23  ;;  %v13976_v11 = vld [vmem:[#allocation51_spill] sm:$0xff] }
  0x82   :  { %5967 = vpow2.f32 %v618_v49  ;;  %v632_v50 = vmul.f32 1.442695, %v591_v41  ;;  %v7465_v1 = vmul.f32 %v7448_v45, %v13968_v9  ;;  %v7469_v21 = vmul.f32 %v7448_v45, %v13969_v6  ;;  %v13975_v49 = vld [vmem:[#allocation50_spill] sm:$0xff]  ;;  %v13983_v9 = vld [vmem:[#allocation53_spill] sm:$0xff] }
  0x83   :  { %5969 = vpow2.f32 %v620_v8  ;;  %v7479_v30 = vmul.f32 %v7448_v45, %v13971_v42  ;;  %v7483_v46 = vmul.f32 %v7448_v45, %v13972_v28  ;;  %v7487_v56 = vmul.f32 %v7448_v45, %v13973_v51  ;;  %v13980_v42 = vld [vmem:[#allocation28_spill] sm:$0xff] }
  0x84   :  { %5650 = vperm.xlu0 %5959, %v5512_v43   ;;  %5971 = vpow2.f32 %v622_v53  ;;  %v7473_v43 = vmul.f32 %v7448_v45, %v13970_v25  ;;  %v7491_v22 = vmul.f32 %v7448_v45, %v13974_v4  ;;  %v594_v63 = vsub.f32 %v7251_v26, %v7422_v10 }
  0x85   :  { %5973 = vpow2.f32 %v624_v61  ;;  %v634_v3 = vmul.f32 1.442695, %v592_v58  ;;  %v7499_v37 = vmul.f32 %v7448_v45, %v13975_v49  ;;  %v595_v31 = vsub.f32 %v7260_v7, %v7424_v29 }
  0x86   :  { %5975 = vpow2.f32 %v626_v59  ;;  %v636_v53 = vmul.f32 1.442695, %v593_v5  ;;  %v7507_v61 = vmul.f32 %v7448_v45, %v13976_v11  ;;  %v596_v26 = vsub.f32 %v7263_v27, %v7422_v10  ;;  %v13977_v59 = vld [vmem:[#allocation26_spill] sm:$0xff] }
  0x87   :  { %5977 = vpow2.f32 %v628_v33  ;;  %v13978_v33 = vld [vmem:[#allocation27_spill] sm:$0xff]  ;;  %v598_v5 = vsub.f32 %v7293_v57, %v7422_v10  ;;  %v602_v11 = vsub.f32 %v7326_v15, %v7422_v10  ;;  %v604_v49 = vsub.f32 %v7329_v12, %v7422_v10 }
  0x88   :  { %5979 = vpow2.f32 %v630_v24  ;;  %v13979_v24 = vld [vmem:[#allocation52_spill] sm:$0xff]  ;;  %v597_v57 = vsub.f32 %v7274_v40, %v7424_v29  ;;  %v640_v51 = vmul.f32 1.442695, %v595_v31  ;;  %v599_v15 = vsub.f32 %v7303_v18, %v7424_v29 }
  0x89   :  { %5981 = vpow2.f32 %v632_v50  ;;  %v7519_v7 = vmul.f32 %v7448_v45, %v13979_v24  ;;  %v600_v50 = vsub.f32 %v7296_v13, %v7422_v10  ;;  %v638_v24 = vmul.f32 1.442695, %v594_v63 }
  0x8a   :  { %5983 = vpow2.f32 %v634_v3  ;;  %v606_v13 = vsub.f32 %v7360_v47, %v7422_v10  ;;  %v644_v40 = vmul.f32 1.442695, %v597_v57 }
  0x8b   :  { %5985 = vpow2.f32 %v636_v53 }
  0x8c   :  { %v7475_v36 = vpop.eup %5963  ;;  %5987 = vpow2.f32 %v638_v24 }
  0x8d   :  { %v678_v41 = vmul.f32 %v7475_v36, %v13977_v59  ;;  %5989 = vpow2.f32 %v640_v51 }
  0x8e   :  { %v7493_v0 = vpop.eup %5965 }
  0x8f   :  { %v7501_v8 = vpop.eup %5967  ;;  %v679_v52 = vmul.f32 %v7493_v0, %v13977_v59  ;;  %v710_v63 = vsel %vm519_vm0, %v678_v41, 0.0  ;;  %v642_v41 = vmul.f32 1.442695, %v596_v26  ;;  %v605_v26 = vsub.f32 %v7340_v62, %v7424_v29 }
  0x90   :  { %v7509_v60 = vpop.eup %5969  ;;  %v680_v58 = vmul.f32 %v7501_v8, %v13978_v33  ;;  %v613_v62 = vsub.f32 %v7399_v20, %v7424_v29 }
  0x91   :  { %v681_v27 = vmul.f32 %v7509_v60, %v13978_v33  ;;  %v7533_v4 = vpop.eup %5971  ;;  %v741_v31 = vsel %vm519_vm0, %v679_v52, 0.0  ;;  %v603_v52 = vsub.f32 %v7337_v44, %v7424_v29  ;;  %v609_v44 = vsub.f32 %v7373_v39, %v7424_v29 }
  0x92   :  { %v7539_v28 = vpop.eup %5973  ;;  %v682_v12 = vmul.f32 %v7533_v4, %v13980_v42  ;;  %v711_v3 = vsel %vm519_vm0, %v680_v58, 0.0  ;;  %v601_v58 = vsub.f32 %v7306_v38, %v7424_v29  ;;  %v607_v38 = vsub.f32 %v7370_v32, %v7424_v29 }
  0x93   :  { %v683_v47 = vmul.f32 %v7539_v28, %v13980_v42  ;;  %v742_v53 = vsel %vm519_vm0, %v681_v27, 0.0  ;;  %v7557_v6 = vpop.eup %5975  ;;  %v712_v42 = vadd.f32 %v711_v3, %v710_v63  ;;  %v13981_v27 = vld [vmem:[#allocation29_spill] sm:$0xff]  ;;  %v611_v63 = vsub.f32 %v7396_v14, %v7424_v29 }
  0x94   :  { %v7561_v33 = vpop.eup %5977  ;;  %v684_v18 = vmul.f32 %v7557_v6, %v13981_v27  ;;  %v713_v25 = vsel %vm519_vm0, %v682_v12, 0.0  ;;  %v743_v24 = vadd.f32 %v742_v53, %v741_v31  ;;  %5991 = vpow2.f32 %v642_v41 }
  0x95   :  { %v685_v51 = vmul.f32 %v7561_v33, %v13981_v27  ;;  %v744_v57 = vsel %vm519_vm0, %v683_v47, 0.0  ;;  %v646_v12 = vmul.f32 1.442695, %v598_v5  ;;  %v7579_v3 = vpop.eup %5979  ;;  %5993 = vpow2.f32 %v644_v40  ;;  %v13982_v27 = vld [vmem:[#allocation30_spill] sm:$0xff] }
  0x96   :  { %v648_v32 = vmul.f32 1.442695, %v599_v15  ;;  %v714_v31 = vadd.f32 %v713_v25, %v712_v42  ;;  %v7583_v53 = vpop.eup %5981  ;;  %v686_v47 = vmul.f32 %v7579_v3, %v13982_v27  ;;  %v715_v39 = vsel %vm519_vm0, %v684_v18, 0.0 }
  0x97   :  { %v745_v59 = vadd.f32 %v744_v57, %v743_v24  ;;  %v7590_v14 = vmul.f32 %v7448_v45, %v13983_v9  ;;  %v650_v5 = vmul.f32 1.442695, %v600_v50  ;;  %v652_v41 = vmul.f32 1.442695, %v601_v58  ;;  %v7599_v40 = vpop.eup %5983  ;;  %v13984_v9 = vld [vmem:[#allocation31_spill] sm:$0xff] }
  0x98   :  { %v687_v20 = vmul.f32 %v7583_v53, %v13982_v27  ;;  %v746_v29 = vsel %vm519_vm0, %v685_v51, 0.0  ;;  %5995 = vpow2.f32 %v646_v12  ;;  %v654_v25 = vmul.f32 1.442695, %v602_v11  ;;  %v7601_v58 = vpop.eup %5985 }
  0x99   :  { %v772_v42 = vsel %vm519_vm0, %v7475_v36, 0.0  ;;  %v773_v15 = vsel %vm519_vm0, %v7501_v8, 0.0  ;;  %5997 = vpow2.f32 %v648_v32  ;;  %v656_v18 = vmul.f32 1.442695, %v603_v52 }
  0x9a   :  { %v658_v24 = vmul.f32 1.442695, %v604_v49  ;;  %v716_v50 = vadd.f32 %v715_v39, %v714_v31  ;;  %v660_v57 = vmul.f32 1.442695, %v605_v26  ;;  %v688_v51 = vmul.f32 %v7599_v40, %v13984_v9  ;;  %v7616_v31 = vpop.eup %5987 }
  0x9b   :  { %v717_v11 = vsel %vm519_vm0, %v686_v47, 0.0  ;;  %v747_v12 = vadd.f32 %v746_v29, %v745_v59  ;;  %v662_v27 = vmul.f32 1.442695, %v606_v13  ;;  %v689_v36 = vmul.f32 %v7601_v58, %v13984_v9 }
  0x9c   :  { %v748_v8 = vsel %vm519_vm0, %v687_v20, 0.0  ;;  %v774_v23 = vadd.f32 %v773_v15, %v772_v42  ;;  %5999 = vpow2.f32 %v650_v5  ;;  %v664_v52 = vmul.f32 1.442695, %v607_v38  ;;  %v7625_v38 = vpop.eup %5989 }
  0x9d   :  { %v13985_v49 = vsub.f32 %v7363_v34, %v7422_v10  ;;  %v775_v26 = vsel %vm519_vm0, %v7533_v4, 0.0  ;;  %6001 = vpow2.f32 %v652_v41  ;;  %v7618_v59 = vmul.f32 1.442695, %v609_v44  ;;  %v13987_v34 = vld [vmem:[#allocation32_spill] sm:$0xff] }
  0x9e   :  { %v13986_v13 = vsub.f32 %v7386_v16, %v7422_v10  ;;  %v718_v39 = vadd.f32 %v717_v11, %v716_v50  ;;  %v7627_v5 = vmul.f32 1.442695, %v611_v63  ;;  %v690_v20 = vmul.f32 %v7616_v31, %v13987_v34  ;;  %v13989_v11 = vld [vmem:[#allocation54_spill] sm:$0xff] }
  0x9f   :  { %v7612_v32 = vmul.f32 1.442695, %v13985_v49  ;;  %v719_v4 = vsel %vm519_vm0, %v688_v51, 0.0  ;;  %v749_v29 = vadd.f32 %v748_v8, %v747_v12  ;;  %6003 = vpow2.f32 %v654_v25 }
  0xa0   :  { %v7623_v47 = vmul.f32 1.442695, %v13986_v13  ;;  %v691_v44 = vmul.f32 %v7625_v38, %v13987_v34  ;;  %v750_v41 = vsel %vm519_vm0, %v689_v36, 0.0  ;;  %v776_v16 = vadd.f32 %v775_v26, %v774_v23  ;;  %v13990_v36 = vld [vmem:[#allocation55_spill] sm:$0xff]  ;;  %v13994_v26 = vld [vmem:[#allocation57_spill] sm:$0xff] }
  0xa1   :  { %6005 = vpow2.f32 %v656_v18  ;;  %v13988_v42 = vsub.f32 %v7389_v17, %v7422_v10  ;;  %v7640_v63 = vmul.f32 1.442695, %v613_v62  ;;  %v777_v50 = vsel %vm519_vm0, %v7557_v6, 0.0  ;;  %v7644_v51 = vpop.eup %5991  ;;  %v13991_v18 = vld [vmem:[#allocation56_spill] sm:$0xff]  ;;  %v13993_v62 = vld [vmem:[#allocation33_spill] sm:$0xff] }
  0xa2   :  { %v720_v25 = vadd.f32 %v719_v4, %v718_v39  ;;  %v7648_v12 = vmul.f32 %v7448_v45, %v13989_v11  ;;  %v7652_v23 = vmul.f32 %v7448_v45, %v13990_v36  ;;  %v7656_v17 = vmul.f32 %v7448_v45, %v13991_v18  ;;  %v7658_v10 = vpop.eup %5993 }
  0xa3   :  { %v7638_v15 = vmul.f32 1.442695, %v13988_v42  ;;  %13992 = vst [vmem:[#allocation74_spill] sm:$0xff] %v7658_v10  ;;  %v692_v6 = vmul.f32 %v7644_v51, %v13993_v62  ;;  %v721_v8 = vsel %vm519_vm0, %v690_v20, 0.0  ;;  %v751_v49 = vadd.f32 %v750_v41, %v749_v29 }
  0xa4   :  { %v7665_v13 = vmul.f32 %v7448_v45, %v13994_v26  ;;  %6007 = vpow2.f32 %v658_v24  ;;  %v693_v39 = vmul.f32 %v7658_v10, %v13993_v62  ;;  %v752_v4 = vsel %vm519_vm0, %v691_v44, 0.0  ;;  %v13995_v24 = vld [vmem:[#allocation58_spill] sm:$0xff]  ;;  %v13996_v62 = vld [vmem:[#allocation59_spill] sm:$0xff] }
  0xa5   :  { %v778_v42 = vadd.f32 %v777_v50, %v776_v16  ;;  %6009 = vpow2.f32 %v660_v57  ;;  %v779_v34 = vsel %vm519_vm0, %v7579_v3, 0.0  ;;  %v803_v18 = vsel %vm519_vm0, %v7493_v0, 0.0  ;;  %v7676_v29 = vpop.eup %5995  ;;  %v13997_v57 = vld [vmem:[#allocation60_spill] sm:$0xff]  ;;  %v13999_v0 = vld [vmem:[#allocation34_spill] sm:$0xff] }
  0xa6   :  { %v804_v20 = vsel %vm519_vm0, %v7509_v60, 0.0  ;;  %v722_v41 = vadd.f32 %v721_v8, %v720_v25  ;;  %v7680_v26 = vmul.f32 %v7448_v45, %v13995_v24  ;;  %v7684_v44 = vmul.f32 %v7448_v45, %v13996_v62  ;;  %v7690_v16 = vpop.eup %5997  ;;  %v14000_v8 = vld [vmem:[#allocation61_spill] sm:$0xff] }
  0xa7   :  { %v7688_v3 = vmul.f32 %v7448_v45, %v13997_v57  ;;  %13998 = vst [vmem:[#allocation75_spill] sm:$0xff] %v7690_v16  ;;  %v694_v60 = vmul.f32 %v7676_v29, %v13999_v0  ;;  %v723_v50 = vsel %vm519_vm0, %v692_v6, 0.0  ;;  %v753_v25 = vadd.f32 %v752_v4, %v751_v49  ;;  %v14001_v49 = vld [vmem:[#allocation63_spill] sm:$0xff] }
  0xa8   :  { %v7697_v24 = vmul.f32 %v7448_v45, %v14000_v8  ;;  %v695_v62 = vmul.f32 %v7690_v16, %v13999_v0  ;;  %v754_v9 = vsel %vm519_vm0, %v693_v39, 0.0  ;;  %v780_v36 = vadd.f32 %v779_v34, %v778_v42  ;;  %v14003_v34 = vld [vmem:[#allocation64_spill] sm:$0xff] }
  0xa9   :  { %v805_v57 = vadd.f32 %v804_v20, %v803_v18  ;;  %v781_v11 = vsel %vm519_vm0, %v7599_v40, 0.0  ;;  %v806_v10 = vsel %vm519_vm0, %v7539_v28, 0.0  ;;  %v7708_v6 = vmul.f32 %v7448_v45, %v6898_v2  ;;  %v7714_v8 = vpop.eup %5999  ;;  %v14004_v40 = vld [vmem:[#allocation65_spill] sm:$0xff]  ;;  %v14006_v20 = vld [vmem:[#allocation35_spill] sm:$0xff] }
  0xaa   :  { %v7712_v4 = vmul.f32 %v7448_v45, %v14001_v49  ;;  %14002 = vst [vmem:[#allocation76_spill] sm:$0xff] %v7714_v8  ;;  %6011 = vpow2.f32 %v662_v27  ;;  %v724_v39 = vadd.f32 %v723_v50, %v722_v41  ;;  %v7718_v18 = vmul.f32 %v7448_v45, %v14003_v34  ;;  %v7724_v28 = vpop.eup %6001 }
  0xab   :  { %v7722_v42 = vmul.f32 %v7448_v45, %v14004_v40  ;;  %14005 = vst [vmem:[#allocation77_spill] sm:$0xff] %v7724_v28  ;;  %6013 = vpow2.f32 %v664_v52  ;;  %v696_v0 = vmul.f32 %v7714_v8, %v14006_v20  ;;  %v725_v49 = vsel %vm519_vm0, %v694_v60, 0.0  ;;  %v14008_v8 = vld [vmem:[#allocation66_spill] sm:$0xff] }
  0xac   :  { %v755_v2 = vadd.f32 %v754_v9, %v753_v25  ;;  %v697_v27 = vmul.f32 %v7724_v28, %v14006_v20  ;;  %v756_v41 = vsel %vm519_vm0, %v695_v62, 0.0  ;;  %v782_v50 = vadd.f32 %v781_v11, %v780_v36  ;;  %v7732_v16 = vpop.eup %6003  ;;  %v14010_v11 = vld [vmem:[#allocation36_spill] sm:$0xff]  ;;  %v14011_v62 = vld [vmem:[#allocation67_spill] sm:$0xff]  ;;  %v14051_v28 = vld [vmem:[#allocation22_spill] sm:$0xff] }
  0xad   :  { %v807_v34 = vadd.f32 %v806_v10, %v805_v57  ;;  %14007 = vst [vmem:[#allocation78_spill] sm:$0xff] %v7732_v16  ;;  %6015 = vpow2.f32 %v7612_v32  ;;  %v783_v52 = vsel %vm519_vm0, %v7616_v31, 0.0  ;;  %v808_v40 = vsel %vm519_vm0, %v7561_v33, 0.0 }
  0xae   :  { %v7741_v9 = vmul.f32 %v7448_v45, %v14008_v8  ;;  %v7743_v60 = vpop.eup %6005  ;;  %6017 = vpow2.f32 %v7618_v59  ;;  %v698_v36 = vmul.f32 %v7732_v16, %v14010_v11  ;;  %v726_v10 = vadd.f32 %v725_v49, %v724_v39  ;;  %v14052_v16 = vld [vmem:[#allocation24_spill] sm:$0xff] }
  0xaf   :  { %14009 = vst [vmem:[#allocation79_spill] sm:$0xff] %v7743_v60  ;;  %v7750_v32 = vmul.f32 %v7448_v45, %v14011_v62  ;;  %6019 = vpow2.f32 %v7623_v47  ;;  %v699_v33 = vmul.f32 %v7743_v60, %v14010_v11  ;;  %v727_v31 = vsel %vm519_vm0, %v696_v0, 0.0  ;;  %v14013_v11 = vld [vmem:[#allocation68_spill] sm:$0xff]  ;;  %v14015_v0 = vld [vmem:[#allocation37_spill] sm:$0xff]  ;;  %v14040_v60 = vld [vmem:[#allocation19_spill] sm:$0xff] }
  0xb0   :  { %v757_v57 = vadd.f32 %v756_v41, %v755_v2  ;;  %6021 = vpow2.f32 %v7627_v5  ;;  %v758_v59 = vsel %vm519_vm0, %v697_v27, 0.0  ;;  %v784_v25 = vadd.f32 %v783_v52, %v782_v50 }
  0xb1   :  { %v809_v20 = vadd.f32 %v808_v40, %v807_v34  ;;  %v7758_v49 = vpop.eup %6007  ;;  %6023 = vpow2.f32 %v7638_v15  ;;  %v785_v47 = vsel %vm519_vm0, %v7644_v51, 0.0  ;;  %v810_v39 = vsel %vm519_vm0, %v7583_v53, 0.0 }
  0xb2   :  { %14012 = vst [vmem:[#allocation80_spill] sm:$0xff] %v7758_v49  ;;  %v879_v2 = vmul.f32 %v7448_v45, %v14013_v11  ;;  %v7767_v5 = vpop.eup %6009  ;;  %6025 = vpow2.f32 %v7640_v63  ;;  %v7772_v34 = vmul.f32 %v7758_v49, %v14015_v0  ;;  %v7774_v40 = vadd.f32 %v727_v31, %v726_v10  ;;  %v7791_v63 = vld [vmem:[%s13528_s0] sm:$0xff] }
  0xb3   :  { %14014 = vst [vmem:[#allocation81_spill] sm:$0xff] %v7767_v5  ;;  %v7777_v15 = vsel %vm519_vm0, %v698_v36, 0.0  ;;  %v7781_v53 = vmul.f32 %v7767_v5, %v14015_v0  ;;  %v7783_v51 = vadd.f32 %v758_v59, %v757_v57  ;;  %v7786_v27 = vsel %vm519_vm0, %v699_v33, 0.0  ;;  %14022 = vst [vmem:[#allocation88_spill] sm:$0xff] %v7791_v63  ;;  %v7805_v33 = vld [vmem:[%s13528_s0 + $0x8] sm:$0xff]  ;;  %v14031_v11 = vld [vmem:[#allocation72_spill] sm:$0xff] }
  0xb4   :  { %14016 = vst [vmem:[#allocation82_spill] sm:$0xff] %v7772_v34  ;;  %14017 = vst [vmem:[#allocation83_spill] sm:$0xff] %v7774_v40  ;;  %v14023_v41 = vstv %s7438_s21  ;;  %v7796_v52 = vadd.f32 %v785_v47, %v784_v25  ;;  %v7800_v36 = vsel %vm519_vm0, %v7676_v29, 0.0  ;;  %v811_v10 = vadd.f32 %v810_v39, %v809_v20  ;;  %v14028_v47 = vld [vmem:[#allocation69_spill] sm:$0xff]  ;;  %v14030_v39 = vld [vmem:[#allocation71_spill] sm:$0xff]  ;;  %s10219_s21 = sld [smem:[#allocation3 + $0x184]] }
  0xb5   :  { %14018 = vst [vmem:[#allocation84_spill] sm:$0xff] %v7777_v15  ;;  %14019 = vst [vmem:[#allocation85_spill] sm:$0xff] %v7781_v53  ;;  %v886_v50 = vmul.f32 %v7791_v63, %v14023_v41  ;;  %v14027_v31 = vmov %v14023_v41  ;;  %v812_v59 = vsel %vm519_vm0, %v7601_v58, 0.0  ;;  %v7814_v25 = vsel %vm519_vm0, %v7625_v38, 0.0  ;;  %v14029_v41 = vld [vmem:[#allocation70_spill] sm:$0xff]  ;;  %v14055_v34 = vld [vmem:[#allocation23_spill] sm:$0xff] }
  0xb6   :  { %14020 = vst [vmem:[#allocation86_spill] sm:$0xff] %v7783_v51  ;;  %14021 = vst [vmem:[#allocation87_spill] sm:$0xff] %v7786_v27  ;;  %v887_v57 = vmul.f32 %v7805_v33, %v14027_v31  ;;  %v880_v29 = vmul.f32 %v7448_v45, %v14028_v47  ;;  %v881_v20 = vmul.f32 %v7448_v45, %v14029_v41  ;;  %v14032_v31 = vld [vmem:[#allocation73_spill] sm:$0xff]  ;;  %v14053_v27 = vld [vmem:[#allocation14_spill] sm:$0xff] }
  0xb7   :  { %14024 = vst [vmem:[#allocation89_spill] sm:$0xff] %v7796_v52  ;;  %14025 = vst [vmem:[#allocation90_spill] sm:$0xff] %v7800_v36  ;;  %v882_v0 = vmul.f32 %v7448_v45, %v14030_v39  ;;  %v883_v62 = vmul.f32 %v7448_v45, %v14031_v11  ;;  %v884_v8 = vmul.f32 %v7448_v45, %v14032_v31  ;;  %v7828_v38 = vpop.eup %6011  ;;  %v14054_v51 = vld [vmem:[#allocation17_spill] sm:$0xff] }
  0xb8   :  { %14026 = vst [vmem:[#allocation91_spill] sm:$0xff] %v7805_v33  ;;  %v921_v58 = vmul.f32 %v7453_v19, %v6662_v35  ;;  %14033 = vst [vmem:[#allocation92_spill] sm:$0xff] %v7828_v38  ;;  %v888_v33 = vadd.f32 %v886_v50, %v7461_v55  ;;  %v890_v47 = vadd.f32 %v886_v50, %v7469_v21  ;;  %v7834_v39 = vpop.eup %6013  ;;  %v14056_v15 = vld [vmem:[#allocation25_spill] sm:$0xff] }
  0xb9   :  { %v892_v41 = vadd.f32 %v886_v50, %v7479_v30  ;;  %v894_v63 = vadd.f32 %v886_v50, %v7487_v56  ;;  %14034 = vst [vmem:[#allocation93_spill] sm:$0xff] %v7834_v39  ;;  %v7836_v5 = vadd.f32 %v812_v59, %v811_v10  ;;  %v7839_v11 = vadd.f32 %v887_v57, %v7465_v1 }
  0xba   :  { %v7842_v45 = vadd.f32 %v887_v57, %v7473_v43  ;;  %v7845_v35 = vadd.f32 %v887_v57, %v7483_v46  ;;  %v7848_v55 = vadd.f32 %v887_v57, %v7491_v22  ;;  %v7851_v21 = vadd.f32 %v886_v50, %v7499_v37  ;;  %v7859_v1 = vpop.eup %6015 }
  0xbb   :  { %v7854_v30 = vadd.f32 %v887_v57, %v7507_v61  ;;  %v7857_v56 = vadd.f32 %v886_v50, %v7519_v7  ;;  %14035 = vst [vmem:[#allocation94_spill] sm:$0xff] %v7859_v1  ;;  %v7862_v43 = vadd.f32 %v887_v57, %v7590_v14  ;;  %v7865_v46 = vadd.f32 %v886_v50, %v7648_v12  ;;  %v7873_v10 = vpop.eup %6017 }
  0xbc   :  { %v7868_v22 = vadd.f32 %v887_v57, %v7652_v23  ;;  %v7871_v37 = vadd.f32 %v886_v50, %v7656_v17  ;;  %14036 = vst [vmem:[#allocation95_spill] sm:$0xff] %v7873_v10  ;;  %v7876_v61 = vadd.f32 %v887_v57, %v7665_v13  ;;  %v7879_v7 = vadd.f32 %v886_v50, %v7680_v26  ;;  %v7887_v59 = vpop.eup %6019  ;;  %v14038_v17 = vld [vmem:[#allocation10_spill] sm:$0xff]  ;;  %v14039_v10 = vld [vmem:[#allocation16_spill] sm:$0xff] }
  0xbd   :  { %v7882_v14 = vadd.f32 %v887_v57, %v7684_v44  ;;  %v7885_v12 = vadd.f32 %v886_v50, %v7688_v3  ;;  %14037 = vst [vmem:[#allocation96_spill] sm:$0xff] %v7887_v59  ;;  %v7890_v23 = vadd.f32 %v887_v57, %v7697_v24  ;;  %v922_v31 = vmul.f32 %v7453_v19, %v14038_v17  ;;  %v7898_v49 = vpop.eup %6021 }
  0xbe   :  { %v923_v13 = vmul.f32 %v7453_v19, %v14039_v10  ;;  %v924_v26 = vmul.f32 %v7453_v19, %v14040_v60  ;;  %14041 = vst [vmem:[#allocation97_spill] sm:$0xff] %v7898_v49  ;;  %v7901_v44 = vadd.f32 %v886_v50, %v7708_v6  ;;  %v7904_v3 = vadd.f32 %v887_v57, %v7712_v4  ;;  %v7912_v17 = vpop.eup %6023 }
  0xbf   :  { %v7907_v24 = vadd.f32 %v886_v50, %v7718_v18  ;;  %v7910_v59 = vadd.f32 %v887_v57, %v7722_v42  ;;  %14042 = vst [vmem:[#allocation98_spill] sm:$0xff] %v7912_v17  ;;  %v7915_v10 = vadd.f32 %v886_v50, %v7741_v9  ;;  %v7918_v60 = vadd.f32 %v887_v57, %v7750_v32  ;;  %v7924_v4 = vpop.eup %6025 }
  0xc0   :  { %v7920_v49 = vadd.f32 %v886_v50, %v879_v2  ;;  %v7922_v6 = vadd.f32 %v887_v57, %v880_v29  ;;  %14043 = vst [vmem:[#allocation99_spill] sm:$0xff] %v7924_v4  ;;  %v7926_v1 = vadd.f32 %v886_v50, %v881_v20  ;;  %v7928_v18 = vadd.f32 %v887_v57, %v882_v0  ;;  %v14045_v29 = vld [vmem:[#allocation11_spill] sm:$0xff]  ;;  %v14046_v4 = vld [vmem:[#allocation12_spill] sm:$0xff] }
  0xc1   :  { %v7930_v42 = vadd.f32 %v886_v50, %v883_v62  ;;  %v7932_v53 = vadd.f32 %v887_v57, %v884_v8  ;;  %v956_v9 = vrot.slane %v921_v58, %v6689_v48  ;;  %v960_v17 = vrot.slane %v922_v31, %v6689_v48  ;;  %v14047_v0 = vld [vmem:[#allocation20_spill] sm:$0xff]  ;;  %v14048_v50 = vld [vmem:[#allocation21_spill] sm:$0xff]  ;;  %v14050_v31 = vld [vmem:[#allocation15_spill] sm:$0xff] }
  0xc2   :  { %v964_v32 = vrot.slane %v923_v13, %v6689_v48  ;;  %v968_v2 = vrot.slane %v924_v26, %v6689_v48  ;;  %v925_v39 = vmul.f32 %v7453_v19, %v14045_v29  ;;  %v926_v20 = vmul.f32 %v7453_v19, %v14046_v4  ;;  %v14049_v57 = vld [vmem:[#allocation13_spill] sm:$0xff] }
  0xc3   :  { %14044 = vst [vmem:[#allocation100_spill] sm:$0xff] %v7932_v53  ;;  %v927_v62 = vmul.f32 %v7453_v19, %v14047_v0  ;;  %v928_v8 = vmul.f32 %v7453_v19, %v14048_v50  ;;  %v929_v58 = vmul.f32 %v7453_v19, %v14049_v57  ;;  %v930_v13 = vmul.f32 %v7453_v19, %v14050_v31 }
  0xc4   :  { %v931_v26 = vmul.f32 %v7453_v19, %v14051_v28  ;;  %v932_v29 = vmul.f32 %v7453_v19, %v14052_v16  ;;  %v933_v4 = vmul.f32 %v7453_v19, %v14053_v27  ;;  %v934_v0 = vmul.f32 %v7453_v19, %v14054_v51 }
  0xc5   :  { %v935_v50 = vmul.f32 %v7453_v19, %v14055_v34  ;;  %v936_v57 = vmul.f32 %v7453_v19, %v14056_v15  ;;  %v1033_v40 = vadd.f32 %v956_v9, %v888_v33  ;;  %v1035_v31 = vadd.f32 %v960_v17, %v890_v47 }
  0xc6   :  { %v1037_v38 = vadd.f32 %v964_v32, %v892_v41  ;;  %v1039_v36 = vadd.f32 %v968_v2, %v894_v63  ;;  %v972_v28 = vrot.slane %v925_v39, %v6689_v48  ;;  %v976_v16 = vrot.slane %v926_v20, %v6689_v48 }
  0xc7   :  { %v980_v52 = vrot.slane %v927_v62, %v6689_v48  ;;  %v984_v27 = vrot.slane %v928_v8, %v6689_v48  ;;  %v988_v51 = vrot.slane %v929_v58, %v6689_v48  ;;  %v992_v53 = vrot.slane %v930_v13, %v6689_v48 }
  0xc8   :  { %v996_v34 = vrot.slane %v931_v26, %v6689_v48  ;;  %v1000_v19 = vrot.slane %v932_v29, %v6689_v48  ;;  %v1034_v33 = vadd.f32 %v956_v9, %v7839_v11  ;;  %v1036_v63 = vadd.f32 %v960_v17, %v7842_v45 }
  0xc9   :  { %v1038_v47 = vadd.f32 %v964_v32, %v7845_v35  ;;  %v1040_v41 = vadd.f32 %v968_v2, %v7848_v55  ;;  %v7975_v39 = vadd.f32 %v7457_v54, %v1033_v40  ;;  %v7978_v20 = vadd.f32 %v7457_v54, %v1035_v31 }
  0xca   :  { %v7981_v62 = vadd.f32 %v7457_v54, %v1037_v38  ;;  %v7984_v8 = vadd.f32 %v7457_v54, %v1039_v36  ;;  %v7987_v11 = vrot.slane %v933_v4, %v6689_v48  ;;  %v7990_v45 = vrot.slane %v934_v0, %v6689_v48 }
  0xcb   :  { %v1041_v35 = vadd.f32 %v972_v28, %v7851_v21  ;;  %v1043_v40 = vadd.f32 %v976_v16, %v7857_v56  ;;  %v7995_v55 = vrot.slane %v935_v50, %v6689_v48  ;;  %v7998_v17 = vrot.slane %v936_v57, %v6689_v48 }
  0xcc   :  { %v1042_v38 = vadd.f32 %v972_v28, %v7854_v30  ;;  %v1044_v36 = vadd.f32 %v976_v16, %v7862_v43  ;;  %v8003_v4 = vadd.f32 %v7457_v54, %v1034_v33  ;;  %v8006_v9 = vadd.f32 %v7457_v54, %v1036_v63 }
  0xcd   :  { %v8009_v21 = vadd.f32 %v7457_v54, %v1038_v47  ;;  %v8012_v56 = vadd.f32 %v7457_v54, %v1040_v41  ;;  %v1098_v32 = vsel %vm519_vm0, %v7975_v39, -inf  ;;  %v1099_v28 = vsel %vm519_vm0, %v7978_v20, -inf }
  0xce   :  { %v1100_v16 = vsel %vm519_vm0, %v7981_v62, -inf  ;;  %v1102_v30 = vsel %vm519_vm0, %v7984_v8, -inf  ;;  %v1045_v43 = vadd.f32 %v980_v52, %v7865_v46  ;;  %v1047_v2 = vadd.f32 %v984_v27, %v7871_v37 }
  0xcf   :  { %v8025_v29 = vadd.f32 %v7457_v54, %v1041_v35  ;;  %v8028_v0 = vadd.f32 %v7457_v54, %v1043_v40  ;;  %v1046_v50 = vadd.f32 %v980_v52, %v7868_v22  ;;  %v1048_v57 = vadd.f32 %v984_v27, %v7876_v61 }
  0xd0   :  { %v1049_v58 = vadd.f32 %v988_v51, %v7879_v7  ;;  %v1051_v31 = vadd.f32 %v992_v53, %v7885_v12  ;;  %v8035_v13 = vadd.f32 %v7457_v54, %v1042_v38  ;;  %v8038_v46 = vadd.f32 %v7457_v54, %v1044_v36 }
  0xd1   :  { %v1101_v37 = vmax.f32 %v1098_v32, %v1100_v16  ;;  %v1103_v26 = vmax.f32 %v1099_v28, %v1102_v30  ;;  %v1129_v33 = vsel %vm519_vm0, %v8003_v4, -inf  ;;  %v1130_v52 = vsel %vm519_vm0, %v8006_v9, -inf }
  0xd2   :  { %v1131_v27 = vsel %vm519_vm0, %v8009_v21, -inf  ;;  %v1133_v22 = vsel %vm519_vm0, %v8012_v56, -inf  ;;  %v8049_v61 = vadd.f32 %v7457_v54, %v1045_v43  ;;  %v8052_v7 = vadd.f32 %v7457_v54, %v1047_v2 }
  0xd3   :  { %v1104_v12 = vsel %vm519_vm0, %v8025_v29, -inf  ;;  %v1106_v63 = vsel %vm519_vm0, %v8028_v0, -inf  ;;  %v1050_v47 = vadd.f32 %v988_v51, %v7882_v14  ;;  %v1052_v41 = vadd.f32 %v992_v53, %v7890_v23 }
  0xd4   :  { %v1053_v35 = vadd.f32 %v996_v34, %v7901_v44  ;;  %v1055_v40 = vadd.f32 %v1000_v19, %v7907_v24  ;;  %v8063_v38 = vadd.f32 %v7457_v54, %v1046_v50  ;;  %v8066_v36 = vadd.f32 %v7457_v54, %v1048_v57 }
  0xd5   :  { %v1132_v32 = vmax.f32 %v1129_v33, %v1131_v27  ;;  %v1134_v28 = vmax.f32 %v1130_v52, %v1133_v22  ;;  %v1105_v16 = vmax.f32 %v1101_v37, %v1104_v12  ;;  %v1107_v30 = vmax.f32 %v1103_v26, %v1106_v63 }
  0xd6   :  { %v1135_v43 = vsel %vm519_vm0, %v8035_v13, -inf  ;;  %v1137_v53 = vsel %vm519_vm0, %v8038_v46, -inf  ;;  %v8073_v51 = vadd.f32 %v7457_v54, %v1049_v58  ;;  %v8076_v14 = vadd.f32 %v7457_v54, %v1051_v31 }
  0xd7   :  { %v1108_v23 = vsel %vm519_vm0, %v8049_v61, -inf  ;;  %v1110_v44 = vsel %vm519_vm0, %v8052_v7, -inf  ;;  %v1054_v24 = vadd.f32 %v996_v34, %v7904_v3  ;;  %v1056_v2 = vadd.f32 %v1000_v19, %v7910_v59 }
  0xd8   :  { %v1057_v50 = vadd.f32 %v7987_v11, %v7915_v10  ;;  %v1059_v57 = vadd.f32 %v7990_v45, %v7920_v49  ;;  %v8089_v58 = vadd.f32 %v7457_v54, %v1050_v47  ;;  %v8092_v31 = vadd.f32 %v7457_v54, %v1052_v41 }
  0xd9   :  { %v1136_v37 = vmax.f32 %v1132_v32, %v1135_v43  ;;  %v1138_v26 = vmax.f32 %v1134_v28, %v1137_v53  ;;  %v1109_v33 = vmax.f32 %v1105_v16, %v1108_v23  ;;  %v1111_v52 = vmax.f32 %v1107_v30, %v1110_v44  ;;  %v14057_v30 = vld [vmem:[#allocation74_spill] sm:$0xff]  ;;  %v14058_v23 = vld [vmem:[#allocation100_spill] sm:$0xff] }
  0xda   :  { %v1139_v34 = vsel %vm519_vm0, %v8063_v38, -inf  ;;  %v1141_v59 = vsel %vm519_vm0, %v8066_v36, -inf  ;;  %v8099_v10 = vadd.f32 %v7457_v54, %v1053_v35  ;;  %v8102_v49 = vadd.f32 %v7457_v54, %v1055_v40 }
  0xdb   :  { %v1112_v3 = vsel %vm519_vm0, %v8073_v51, -inf  ;;  %v1114_v19 = vsel %vm519_vm0, %v8076_v14, -inf  ;;  %v1058_v27 = vadd.f32 %v7987_v11, %v7918_v60  ;;  %v1060_v22 = vadd.f32 %v7990_v45, %v7922_v6 }
  0xdc   :  { %v1061_v12 = vadd.f32 %v7995_v55, %v7926_v1  ;;  %v1063_v63 = vadd.f32 %v7998_v17, %v7930_v42  ;;  %v8117_v47 = vadd.f32 %v7457_v54, %v1054_v24  ;;  %v8120_v41 = vadd.f32 %v7457_v54, %v1056_v2 }
  0xdd   :  { %v1140_v35 = vmax.f32 %v1136_v37, %v1139_v34  ;;  %v1142_v40 = vmax.f32 %v1138_v26, %v1141_v59  ;;  %v1113_v32 = vmax.f32 %v1109_v33, %v1112_v3  ;;  %v1115_v28 = vmax.f32 %v1111_v52, %v1114_v19  ;;  %v14060_v52 = vld [vmem:[#allocation89_spill] sm:$0xff]  ;;  %v14061_v34 = vld [vmem:[#allocation90_spill] sm:$0xff]  ;;  %v14062_v3 = vld [vmem:[#allocation76_spill] sm:$0xff] }
  0xde   :  { %v1143_v60 = vsel %vm519_vm0, %v8089_v58, -inf  ;;  %v1145_v6 = vsel %vm519_vm0, %v8092_v31, -inf  ;;  %v8127_v1 = vadd.f32 %v7457_v54, %v1057_v50  ;;  %v8130_v42 = vadd.f32 %v7457_v54, %v1059_v57 }
  0xdf   :  { %v1116_v11 = vsel %vm519_vm0, %v8099_v10, -inf  ;;  %v1118_v45 = vsel %vm519_vm0, %v8102_v49, -inf  ;;  %v815_v16 = vadd.f32 %v7814_v25, %v7836_v5  ;;  %v816_v43 = vsel %vm519_vm0, %v14057_v30, 0.0 }
  0xe0   :  { %v1062_v53 = vadd.f32 %v7995_v55, %v7928_v18  ;;  %v1064_v44 = vadd.f32 %v7998_v17, %v14058_v23  ;;  %v8145_v24 = vadd.f32 %v7457_v54, %v1058_v27  ;;  %v8148_v2 = vadd.f32 %v7457_v54, %v1060_v22  ;;  %v14063_v22 = vld [vmem:[#allocation75_spill] sm:$0xff]  ;;  %v14069_v23 = vld [vmem:[#allocation84_spill] sm:$0xff] }
  0xe1   :  { %v1144_v50 = vmax.f32 %v1140_v35, %v1143_v60  ;;  %v1146_v57 = vmax.f32 %v1142_v40, %v1145_v6  ;;  %v1117_v37 = vmax.f32 %v1113_v32, %v1116_v11  ;;  %v1119_v26 = vmax.f32 %v1115_v28, %v1118_v45  ;;  %v14066_v45 = vld [vmem:[#allocation38_spill] sm:$0xff] }
  0xe2   :  { %14059 = vst [vmem:[#allocation74_spill] sm:$0xff] %v8148_v2  ;;  %v1147_v5 = vsel %vm519_vm0, %v8117_v47, -inf  ;;  %v1149_v25 = vsel %vm519_vm0, %v8120_v41, -inf  ;;  %v8155_v18 = vadd.f32 %v7457_v54, %v1061_v12  ;;  %v8158_v55 = vadd.f32 %v7457_v54, %v1063_v63 }
  0xe3   :  { %v1120_v17 = vsel %vm519_vm0, %v8127_v1, -inf  ;;  %v1122_v33 = vsel %vm519_vm0, %v8130_v42, -inf  ;;  %v788_v59 = vadd.f32 %v14061_v34, %v14060_v52  ;;  %v789_v19 = vsel %vm519_vm0, %v14062_v3, 0.0  ;;  %v14074_v34 = vld [vmem:[#allocation77_spill] sm:$0xff] }
  0xe4   :  { %v817_v27 = vadd.f32 %v816_v43, %v815_v16  ;;  %v818_v12 = vsel %vm519_vm0, %v14063_v22, 0.0  ;;  %v8171_v35 = vadd.f32 %v7457_v54, %v1062_v53  ;;  %v8174_v63 = vadd.f32 %v7457_v54, %v1064_v44  ;;  %v14067_v16 = vld [vmem:[#allocation92_spill] sm:$0xff]  ;;  %v14068_v43 = vld [vmem:[#allocation83_spill] sm:$0xff] }
  0xe5   :  { %v1148_v40 = vmax.f32 %v1144_v50, %v1147_v5  ;;  %v1150_v32 = vmax.f32 %v1146_v57, %v1149_v25  ;;  %v1121_v28 = vmax.f32 %v1117_v37, %v1120_v17  ;;  %v1123_v60 = vmax.f32 %v1119_v26, %v1122_v33  ;;  %v14070_v50 = vld [vmem:[#allocation82_spill] sm:$0xff]  ;;  %v14072_v26 = vld [vmem:[#allocation87_spill] sm:$0xff] }
  0xe6   :  { %14064 = vst [vmem:[#allocation100_spill] sm:$0xff] %v8171_v35  ;;  %14065 = vst [vmem:[#allocation89_spill] sm:$0xff] %v8174_v63  ;;  %v1151_v6 = vsel %vm519_vm0, %v8145_v24, -inf  ;;  %v1153_v11 = vsel %vm519_vm0, %v8148_v2, -inf  ;;  %v702_v30 = vmul.f32 %v14067_v16, %v14066_v45  ;;  %v730_v53 = vadd.f32 %v14069_v23, %v14068_v43  ;;  %v14071_v37 = vld [vmem:[#allocation86_spill] sm:$0xff]  ;;  %v14082_v2 = vld [vmem:[#allocation40_spill] sm:$0xff] }
  0xe7   :  { %v1124_v54 = vsel %vm519_vm0, %v8155_v18, -inf  ;;  %v1126_v44 = vsel %vm519_vm0, %v8158_v55, -inf  ;;  %v731_v57 = vsel %vm519_vm0, %v14070_v50, 0.0  ;;  %v761_v5 = vadd.f32 %v14072_v26, %v14071_v37  ;;  %v14073_v33 = vld [vmem:[#allocation78_spill] sm:$0xff]  ;;  %v14075_v37 = vld [vmem:[#allocation93_spill] sm:$0xff]  ;;  %v14077_v26 = vld [vmem:[#allocation39_spill] sm:$0xff] }
  0xe8   :  { %v790_v25 = vadd.f32 %v789_v19, %v788_v59  ;;  %v819_v17 = vadd.f32 %v818_v12, %v817_v27  ;;  %v791_v52 = vsel %vm519_vm0, %v14073_v33, 0.0  ;;  %v820_v3 = vsel %vm519_vm0, %v14074_v34, 0.0  ;;  %v14076_v27 = vld [vmem:[#allocation85_spill] sm:$0xff]  ;;  %v14078_v33 = vld [vmem:[#allocation94_spill] sm:$0xff] }
  0xe9   :  { %v1152_v22 = vmax.f32 %v1148_v40, %v1151_v6  ;;  %v1154_v43 = vmax.f32 %v1150_v32, %v1153_v11  ;;  %v1125_v23 = vmax.f32 %v1121_v28, %v1124_v54  ;;  %v1127_v48 = vmax.f32 %v1123_v60, %v1126_v44  ;;  %v14079_v60 = vld [vmem:[#allocation80_spill] sm:$0xff]  ;;  %v14080_v11 = vld [vmem:[#allocation79_spill] sm:$0xff] }
  0xea   :  { %v1155_v15 = vsel %vm519_vm0, %v8171_v35, -inf  ;;  %v1157_v50 = vsel %vm519_vm0, %v8174_v63, -inf  ;;  %v703_v59 = vmul.f32 %v14075_v37, %v14066_v45  ;;  %v732_v19 = vadd.f32 %v731_v57, %v730_v53  ;;  %v14081_v57 = vld [vmem:[#allocation95_spill] sm:$0xff] }
  0xeb   :  { %v762_v12 = vsel %vm519_vm0, %v14076_v27, 0.0  ;;  %v704_v34 = vmul.f32 %v14078_v33, %v14077_v26  ;;  %v733_v40 = vsel %vm519_vm0, %v702_v30, 0.0  ;;  %v792_v32 = vadd.f32 %v791_v52, %v790_v25  ;;  %v14083_v30 = vld [vmem:[#allocation96_spill] sm:$0xff] }
  0xec   :  { %v821_v28 = vadd.f32 %v820_v3, %v819_v17  ;;  %v793_v6 = vsel %vm519_vm0, %v14079_v60, 0.0  ;;  %v822_v54 = vsel %vm519_vm0, %v14080_v11, 0.0  ;;  %v1156_v44 = vmax.f32 %v1152_v22, %v1155_v15  ;;  %v14084_v22 = vld [vmem:[#allocation81_spill] sm:$0xff] }
  0xed   :  { %v1158_v63 = vmax.f32 %v1154_v43, %v1157_v50  ;;  %v763_v45 = vadd.f32 %v762_v12, %v761_v5  ;;  %v8211_v53 = vmax.f32 %v1125_v23, %v1127_v48  ;;  %v705_v27 = vmul.f32 %v14081_v57, %v14077_v26  ;;  %v14085_v50 = vld [vmem:[#allocation97_spill] sm:$0xff] }
  0xee   :  { %v764_v35 = vsel %vm519_vm0, %v703_v59, 0.0  ;;  %v706_v25 = vmul.f32 %v14083_v30, %v14082_v2  ;;  %v734_v17 = vadd.f32 %v733_v40, %v732_v19  ;;  %v794_v52 = vadd.f32 %v793_v6, %v792_v32 }
  0xef   :  { %v823_v3 = vadd.f32 %v822_v54, %v821_v28  ;;  %v735_v60 = vsel %vm519_vm0, %v704_v34, 0.0  ;;  %v795_v15 = vsel %vm519_vm0, %v14067_v16, 0.0  ;;  %v824_v48 = vsel %vm519_vm0, %v14084_v22, 0.0  ;;  %v14086_v34 = vld [vmem:[#allocation41_spill] sm:$0xff]  ;;  %v14087_v16 = vld [vmem:[#allocation98_spill] sm:$0xff] }
  0xf0   :  { %v8223_v5 = vmax.f32 %v1156_v44, %v1158_v63  ;;  %v765_v43 = vadd.f32 %v764_v35, %v763_v45  ;;  %v1160_v23 = vsub.f32 %v7975_v39, %v8211_v53  ;;  %v707_v59 = vmul.f32 %v14085_v50, %v14082_v2  ;;  %v14088_v44 = vld [vmem:[#allocation99_spill] sm:$0xff]  ;;  %v14149_v2 = vld [vmem:[#allocation69_spill] sm:$0xff] }
  0xf1   :  { %v766_v19 = vsel %vm519_vm0, %v705_v27, 0.0  ;;  %v1162_v12 = vsub.f32 %v7978_v20, %v8211_v53  ;;  %v708_v40 = vmul.f32 %v14087_v16, %v14086_v34  ;;  %v736_v32 = vadd.f32 %v735_v60, %v734_v17 }
  0xf2   :  { %v796_v28 = vadd.f32 %v795_v15, %v794_v52  ;;  %v825_v63 = vadd.f32 %v824_v48, %v823_v3  ;;  %v737_v6 = vsel %vm519_vm0, %v706_v25, 0.0  ;;  %v797_v35 = vsel %vm519_vm0, %v14078_v33, 0.0 }
  0xf3   :  { %v826_v39 = vsel %vm519_vm0, %v14075_v37, 0.0  ;;  %v1161_v45 = vsub.f32 %v8003_v4, %v8223_v5  ;;  %v767_v11 = vadd.f32 %v766_v19, %v765_v43  ;;  %v1163_v20 = vsub.f32 %v8006_v9, %v8223_v5 }
  0xf4   :  { %v1192_v54 = vmul.f32 1.442695, %v1160_v23  ;;  %v8245_v27 = vmul.f32 %v14088_v44, %v14086_v34  ;;  %v768_v25 = vsel %vm519_vm0, %v707_v59, 0.0  ;;  %v1164_v33 = vsub.f32 %v7981_v62, %v8211_v53  ;;  %v14153_v44 = vld [vmem:[#allocation72_spill] sm:$0xff] }
  0xf5   :  { %v1196_v17 = vmul.f32 1.442695, %v1162_v12  ;;  %v8250_v52 = vadd.f32 %v737_v6, %v736_v32  ;;  %v8253_v37 = vsel %vm519_vm0, %v708_v40, 0.0  ;;  %v798_v4 = vadd.f32 %v797_v35, %v796_v28  ;;  %v14098_v32 = vld [vmem:[#allocation43_spill] sm:$0xff] }
  0xf6   :  { %14089 = vst [vmem:[#allocation90_spill] sm:$0xff] %v8245_v27  ;;  %14091 = vst [vmem:[#allocation75_spill] sm:$0xff] %v8253_v37  ;;  %v827_v3 = vadd.f32 %v826_v39, %v825_v63  ;;  %v799_v9 = vsel %vm519_vm0, %v14083_v30, 0.0  ;;  %v828_v60 = vsel %vm519_vm0, %v14081_v57, 0.0  ;;  %v1194_v15 = vmul.f32 1.442695, %v1161_v45 }
  0xf7   :  { %14090 = vst [vmem:[#allocation76_spill] sm:$0xff] %v8250_v52  ;;  %v8259_v22 = vstv %s5814_s5  ;;  %v8261_v48 = vadd.f32 %v768_v25, %v767_v11  ;;  %v1165_v62 = vsub.f32 %v8009_v21, %v8223_v5  ;;  %6027 = vpow2.f32 %v1192_v54  ;;  %v14097_v21 = vld [vmem:[#allocation42_spill] sm:$0xff]  ;;  %s11628_s5 = sld [smem:[#allocation3 + $0x106]] }
  0xf8   :  { %v1198_v43 = vmul.f32 1.442695, %v1163_v20  ;;  %v8267_v23 = vsel %vm519_vm0, %v14087_v16, 0.0  ;;  %v1166_v30 = vsub.f32 %v7984_v8, %v8211_v53  ;;  %6029 = vpow2.f32 %v1196_v17 }
  0xf9   :  { %14092 = vst [vmem:[#allocation92_spill] sm:$0xff] %v8261_v48  ;;  %14093 = vst [vmem:[#allocation83_spill] sm:$0xff] %v8267_v23  ;;  %v1200_v59 = vmul.f32 1.442695, %v1164_v33  ;;  %v8271_v57 = vadd.f32 %v799_v9, %v798_v4  ;;  %v8273_v19 = vadd.f32 %v828_v60, %v827_v3  ;;  %v8277_v12 = vsel %vm519_vm0, %v14085_v50, 0.0  ;;  %v14113_v48 = vld [vmem:[#allocation29_spill] sm:$0xff] }
  0xfa   :  { %14096 = vst [vmem:[#allocation86_spill] sm:$0xff] %v8277_v12  ;;  %v8281_v40 = vmul.f32 %v8259_v22, %v14097_v21  ;;  %v1168_v16 = vsub.f32 %v8025_v29, %v8211_v53  ;;  %v1170_v8 = vsub.f32 %v8028_v0, %v8211_v53  ;;  %6031 = vpow2.f32 %v1194_v15  ;;  %v14158_v23 = vld [vmem:[#allocation10_spill] sm:$0xff] }
  0xfb   :  { %14094 = vst [vmem:[#allocation84_spill] sm:$0xff] %v8271_v57  ;;  %14095 = vst [vmem:[#allocation82_spill] sm:$0xff] %v8273_v19  ;;  %v8289_v28 = vmul.f32 %v8259_v22, %v14098_v32  ;;  %v1167_v63 = vsub.f32 %v8012_v56, %v8223_v5  ;;  %v1172_v50 = vsub.f32 %v8049_v61, %v8211_v53  ;;  %6033 = vpow2.f32 %v1198_v43  ;;  %v14157_v19 = vld [vmem:[#allocation9_spill] sm:$0xff] }
  0xfc   :  { %v1202_v6 = vmul.f32 1.442695, %v1165_v62  ;;  %v1174_v35 = vsub.f32 %v8052_v7, %v8211_v53  ;;  %v1176_v29 = vsub.f32 %v8073_v51, %v8211_v53  ;;  %6035 = vpow2.f32 %v1200_v59 }
  0xfd   :  { %v1204_v0 = vmul.f32 1.442695, %v1166_v30  ;;  %v1178_v39 = vsub.f32 %v8076_v14, %v8211_v53  ;;  %v1180_v45 = vsub.f32 %v8099_v10, %v8211_v53  ;;  %v1182_v56 = vsub.f32 %v8102_v49, %v8211_v53  ;;  %v14101_v30 = vld [vmem:[#allocation89_spill] sm:$0xff] }
  0xfe   :  { %v1184_v61 = vsub.f32 %v8127_v1, %v8211_v53  ;;  %v1169_v7 = vsub.f32 %v8035_v13, %v8223_v5  ;;  %v1171_v51 = vsub.f32 %v8038_v46, %v8223_v5  ;;  %v1186_v11 = vsub.f32 %v8130_v42, %v8211_v53 }
  0xff   :  { %v1188_v14 = vsub.f32 %v8155_v18, %v8211_v53  ;;  %v1173_v10 = vsub.f32 %v8063_v38, %v8223_v5  ;;  %v1190_v49 = vsub.f32 %v8158_v55, %v8211_v53  ;;  %6037 = vpow2.f32 %v1202_v6  ;;  %v14099_v53 = vld [vmem:[#allocation74_spill] sm:$0xff] }
 0x100   :  { %v1206_v1 = vmul.f32 1.442695, %v1167_v63  ;;  %v1175_v13 = vsub.f32 %v8066_v36, %v8223_v5  ;;  %v1177_v46 = vsub.f32 %v8089_v58, %v8223_v5  ;;  %6039 = vpow2.f32 %v1204_v0  ;;  %v14103_v0 = vld [vmem:[#allocation27_spill] sm:$0xff] }
 0x101   :  { %v1208_v20 = vmul.f32 1.442695, %v1168_v16  ;;  %v1179_v42 = vsub.f32 %v8092_v31, %v8223_v5  ;;  %v1181_v18 = vsub.f32 %v8117_v47, %v8223_v5  ;;  %v1183_v38 = vsub.f32 %v8120_v41, %v8223_v5 }
 0x102   :  { %v1185_v55 = vsub.f32 %v8145_v24, %v8223_v5  ;;  %v1187_v36 = vsub.f32 %v14099_v53, %v8223_v5  ;;  %v1210_v54 = vmul.f32 1.442695, %v1169_v7  ;;  %v1212_v25 = vmul.f32 1.442695, %v1170_v8  ;;  %v14100_v24 = vld [vmem:[#allocation100_spill] sm:$0xff] }
 0x103   :  { %v1214_v58 = vmul.f32 1.442695, %v1171_v51  ;;  %6041 = vpow2.f32 %v1206_v1  ;;  %v1216_v33 = vmul.f32 1.442695, %v1172_v50  ;;  %v1218_v17 = vmul.f32 1.442695, %v1173_v10 }
 0x104   :  { %v1220_v4 = vmul.f32 1.442695, %v1174_v35  ;;  %v6028_v31 = vpop.eup %6027  ;;  %6043 = vpow2.f32 %v1208_v20  ;;  %v1222_v3 = vmul.f32 1.442695, %v1175_v13  ;;  %v8333_v47 = vmul.f32 1.442695, %v1176_v29 }
 0x105   :  { %v8335_v9 = vmul.f32 1.442695, %v1177_v46  ;;  %v6030_v41 = vpop.eup %6029  ;;  %v1189_v60 = vsub.f32 %v14100_v24, %v8223_v5  ;;  %v8339_v15 = vmul.f32 1.442695, %v1178_v39  ;;  %v8341_v62 = vmul.f32 1.442695, %v1179_v42 }
 0x106   :  { %v8343_v43 = vmul.f32 1.442695, %v1180_v45  ;;  %v1191_v59 = vsub.f32 %v14101_v30, %v8223_v5  ;;  %v8347_v16 = vmul.f32 1.442695, %v1181_v18  ;;  %v8349_v8 = vmul.f32 1.442695, %v1182_v56 }
 0x107   :  { %v8351_v63 = vmul.f32 1.442695, %v1183_v38  ;;  %v6032_v50 = vpop.eup %6031  ;;  %6045 = vpow2.f32 %v1210_v54  ;;  %v8353_v6 = vmul.f32 1.442695, %v1184_v61  ;;  %v14102_v35 = vld [vmem:[#allocation26_spill] sm:$0xff]  ;;  %v1258_v39 = vmul.f32 %v6030_v41, %v14103_v0  ;;  %v14104_v61 = vld [vmem:[#allocation44_spill] sm:$0xff] }
 0x108   :  { %v1256_v29 = vmul.f32 %v6028_v31, %v14102_v35  ;;  %v6034_v7 = vpop.eup %6033  ;;  %6047 = vpow2.f32 %v1212_v25  ;;  %v8357_v45 = vmul.f32 1.442695, %v1185_v55  ;;  %v1350_v5 = vsel %vm519_vm0, %v6028_v31, 0.0  ;;  %v14106_v38 = vld [vmem:[#allocation28_spill] sm:$0xff] }
 0x109   :  { %v1351_v51 = vsel %vm519_vm0, %v6030_v41, 0.0  ;;  %v6036_v56 = vpop.eup %6035  ;;  %v8361_v10 = vmul.f32 1.442695, %v1186_v11  ;;  %v8363_v1 = vmul.f32 1.442695, %v1187_v36  ;;  %v8369_v46 = vmul.f32 %v8259_v22, %v14104_v61  ;;  %v14109_v41 = vld [vmem:[#allocation45_spill] sm:$0xff] }
 0x10a   :  { %v8365_v13 = vmul.f32 1.442695, %v1188_v14  ;;  %6049 = vpow2.f32 %v1214_v58  ;;  %v8371_v20 = vmul.f32 1.442695, %v1189_v60  ;;  %v1257_v42 = vmul.f32 %v6032_v50, %v14102_v35  ;;  %v14110_v60 = vld [vmem:[#allocation46_spill] sm:$0xff]  ;;  %v14114_v35 = vld [vmem:[#allocation49_spill] sm:$0xff] }
 0x10b   :  { %v1259_v18 = vmul.f32 %v6034_v7, %v14103_v0  ;;  %v1260_v55 = vmul.f32 %v6036_v56, %v14106_v38  ;;  %v1288_v11 = vsel %vm519_vm0, %v1256_v29, 0.0  ;;  %v1289_v53 = vsel %vm519_vm0, %v1258_v39, 0.0  ;;  %v14111_v29 = vld [vmem:[#allocation47_spill] sm:$0xff] }
 0x10c   :  { %14105 = vst [vmem:[#allocation87_spill] sm:$0xff] %v8371_v20  ;;  %v1352_v36 = vadd.f32 %v1351_v51, %v1350_v5  ;;  %v6038_v14 = vpop.eup %6037  ;;  %6051 = vpow2.f32 %v1216_v33  ;;  %v8378_v54 = vmul.f32 1.442695, %v1190_v49  ;;  %v8380_v25 = vmul.f32 1.442695, %v1191_v59  ;;  %v14112_v33 = vld [vmem:[#allocation48_spill] sm:$0xff] }
 0x10d   :  { %v1353_v58 = vsel %vm519_vm0, %v6036_v56, 0.0  ;;  %v6040_v31 = vpop.eup %6039  ;;  %v8385_v24 = vmul.f32 %v8259_v22, %v14109_v41  ;;  %v8389_v30 = vmul.f32 %v8259_v22, %v14110_v60  ;;  %v8393_v39 = vmul.f32 %v8259_v22, %v14111_v29  ;;  %v14119_v41 = vld [vmem:[#allocation53_spill] sm:$0xff] }
 0x10e   :  { %14107 = vst [vmem:[#allocation78_spill] sm:$0xff] %v8378_v54  ;;  %14108 = vst [vmem:[#allocation77_spill] sm:$0xff] %v8380_v25  ;;  %v8397_v49 = vmul.f32 %v8259_v22, %v14112_v33  ;;  %v1261_v59 = vmul.f32 %v6038_v14, %v14106_v38  ;;  %v1290_v5 = vadd.f32 %v1289_v53, %v1288_v11  ;;  %v1319_v51 = vsel %vm519_vm0, %v1257_v42, 0.0  ;;  %v14115_v38 = vld [vmem:[#allocation50_spill] sm:$0xff]  ;;  %v14154_v25 = vld [vmem:[#allocation73_spill] sm:$0xff] }
 0x10f   :  { %v1320_v56 = vsel %vm519_vm0, %v1259_v18, 0.0  ;;  %6053 = vpow2.f32 %v1218_v17  ;;  %v1262_v37 = vmul.f32 %v6040_v31, %v14113_v48  ;;  %v1291_v52 = vsel %vm519_vm0, %v1260_v55, 0.0  ;;  %v14116_v18 = vld [vmem:[#allocation51_spill] sm:$0xff]  ;;  %v14117_v55 = vld [vmem:[#allocation52_spill] sm:$0xff] }
 0x110   :  { %v1354_v34 = vadd.f32 %v1353_v58, %v1352_v36  ;;  %v6042_v0 = vpop.eup %6041  ;;  %6055 = vpow2.f32 %v1220_v4  ;;  %v1355_v29 = vsel %vm519_vm0, %v6040_v31, 0.0  ;;  %v8407_v33 = vmul.f32 %v8259_v22, %v14114_v35 }
 0x111   :  { %v8411_v11 = vmul.f32 %v8259_v22, %v14115_v38  ;;  %v6044_v42 = vpop.eup %6043  ;;  %6057 = vpow2.f32 %v1222_v3  ;;  %v1321_v17 = vadd.f32 %v1320_v56, %v1319_v51  ;;  %v8415_v53 = vmul.f32 %v8259_v22, %v14116_v18  ;;  %v14118_v38 = vld [vmem:[#allocation30_spill] sm:$0xff] }
 0x112   :  { %v8419_v4 = vmul.f32 %v8259_v22, %v14117_v55  ;;  %v1263_v36 = vmul.f32 %v6042_v0, %v14113_v48  ;;  %v1292_v58 = vadd.f32 %v1291_v52, %v1290_v5  ;;  %v1322_v31 = vsel %vm519_vm0, %v1261_v59, 0.0  ;;  %v14120_v52 = vld [vmem:[#allocation54_spill] sm:$0xff] }
 0x113   :  { %v1381_v35 = vsel %vm519_vm0, %v6032_v50, 0.0  ;;  %6059 = vpow2.f32 %v8333_v47  ;;  %v1264_v3 = vmul.f32 %v6044_v42, %v14118_v38  ;;  %v1293_v51 = vsel %vm519_vm0, %v1262_v37, 0.0  ;;  %v14121_v37 = vld [vmem:[#allocation55_spill] sm:$0xff] }
 0x114   :  { %v1356_v56 = vadd.f32 %v1355_v29, %v1354_v34  ;;  %v6046_v18 = vpop.eup %6045  ;;  %v1357_v60 = vsel %vm519_vm0, %v6044_v42, 0.0  ;;  %v1382_v55 = vsel %vm519_vm0, %v6034_v7, 0.0  ;;  %v8431_v48 = vmul.f32 %v8259_v22, %v14119_v41 }
 0x115   :  { %v8435_v59 = vmul.f32 %v8259_v22, %v14120_v52  ;;  %v6048_v50 = vpop.eup %6047  ;;  %v1323_v47 = vadd.f32 %v1322_v31, %v1321_v17  ;;  %v1383_v5 = vadd.f32 %v1382_v55, %v1381_v35  ;;  %v1384_v61 = vsel %vm519_vm0, %v6038_v14, 0.0  ;;  %v14122_v52 = vld [vmem:[#allocation31_spill] sm:$0xff]  ;;  %v14123_v31 = vld [vmem:[#allocation56_spill] sm:$0xff] }
 0x116   :  { %v8440_v34 = vmul.f32 %v8259_v22, %v14121_v37  ;;  %6061 = vpow2.f32 %v8335_v9  ;;  %v1265_v7 = vmul.f32 %v6046_v18, %v14118_v38  ;;  %v1294_v29 = vadd.f32 %v1293_v51, %v1292_v58  ;;  %v14124_v51 = vld [vmem:[#allocation57_spill] sm:$0xff] }
 0x117   :  { %v1324_v42 = vsel %vm519_vm0, %v1263_v36, 0.0  ;;  %v6050_v41 = vpop.eup %6049  ;;  %6063 = vpow2.f32 %v8339_v15  ;;  %v1266_v32 = vmul.f32 %v6048_v50, %v14122_v52  ;;  %v1295_v35 = vsel %vm519_vm0, %v1264_v3, 0.0  ;;  %v14125_v3 = vld [vmem:[#allocation32_spill] sm:$0xff] }
 0x118   :  { %v1358_v17 = vadd.f32 %v1357_v60, %v1356_v56  ;;  %6065 = vpow2.f32 %v8341_v62  ;;  %v1359_v14 = vsel %vm519_vm0, %v6048_v50, 0.0  ;;  %v1385_v55 = vadd.f32 %v1384_v61, %v1383_v5  ;;  %v14126_v5 = vld [vmem:[#allocation58_spill] sm:$0xff] }
 0x119   :  { %v8452_v9 = vmul.f32 %v8259_v22, %v14123_v31  ;;  %v6052_v58 = vpop.eup %6051  ;;  %6067 = vpow2.f32 %v8343_v43  ;;  %v1325_v36 = vadd.f32 %v1324_v42, %v1323_v47  ;;  %v1386_v15 = vsel %vm519_vm0, %v6042_v0, 0.0  ;;  %v14143_v31 = vld [vmem:[#allocation88_spill] sm:$0xff] }
 0x11a   :  { %v8458_v37 = vmul.f32 %v8259_v22, %v14124_v51  ;;  %6069 = vpow2.f32 %v8347_v16  ;;  %v1267_v62 = vmul.f32 %v6050_v41, %v14122_v52  ;;  %v1296_v60 = vadd.f32 %v1295_v35, %v1294_v29  ;;  %v14142_v51 = vld [vmem:[#allocation65_spill] sm:$0xff] }
 0x11b   :  { %v1326_v61 = vsel %vm519_vm0, %v1265_v7, 0.0  ;;  %6071 = vpow2.f32 %v8349_v8  ;;  %v1268_v43 = vmul.f32 %v6052_v58, %v14125_v3  ;;  %v1297_v56 = vsel %vm519_vm0, %v1266_v32, 0.0  ;;  %v14127_v32 = vld [vmem:[#allocation59_spill] sm:$0xff] }
 0x11c   :  { %v1360_v0 = vadd.f32 %v1359_v14, %v1358_v17  ;;  %v6054_v50 = vpop.eup %6053  ;;  %6073 = vpow2.f32 %v8351_v63  ;;  %v1361_v47 = vsel %vm519_vm0, %v6052_v58, 0.0  ;;  %v1387_v16 = vadd.f32 %v1386_v15, %v1385_v55  ;;  %v14128_v58 = vld [vmem:[#allocation60_spill] sm:$0xff] }
 0x11d   :  { %v8472_v29 = vmul.f32 %v8259_v22, %v14126_v5  ;;  %v6056_v7 = vpop.eup %6055  ;;  %6075 = vpow2.f32 %v8353_v6  ;;  %v1327_v42 = vadd.f32 %v1326_v61, %v1325_v36  ;;  %v1388_v8 = vsel %vm519_vm0, %v6046_v18, 0.0 }
 0x11e   :  { %v8480_v35 = vmul.f32 %v8259_v22, %v14127_v32  ;;  %v6058_v63 = vpop.eup %6057  ;;  %6077 = vpow2.f32 %v8357_v45  ;;  %v1269_v17 = vmul.f32 %v6054_v50, %v14125_v3  ;;  %v1298_v14 = vadd.f32 %v1297_v56, %v1296_v60  ;;  %v14129_v60 = vld [vmem:[#allocation61_spill] sm:$0xff] }
 0x11f   :  { %v1328_v55 = vsel %vm519_vm0, %v1267_v62, 0.0  ;;  %6079 = vpow2.f32 %v8361_v10  ;;  %v1299_v6 = vsel %vm519_vm0, %v1268_v43, 0.0  ;;  %v1362_v18 = vadd.f32 %v1361_v47, %v1360_v0  ;;  %v14130_v10 = vld [vmem:[#allocation33_spill] sm:$0xff] }
 0x120   :  { %v8489_v36 = vmul.f32 %v8259_v22, %v14128_v58  ;;  %v8491_v15 = vpop.eup %6059  ;;  %6081 = vpow2.f32 %v8363_v1  ;;  %v1363_v45 = vsel %vm519_vm0, %v6056_v7, 0.0  ;;  %v1389_v61 = vadd.f32 %v1388_v8, %v1387_v16  ;;  %v14139_v58 = vld [vmem:[#allocation63_spill] sm:$0xff] }
 0x121   :  { %v8497_v62 = vmul.f32 %v8259_v22, %v14129_v60  ;;  %6083 = vpow2.f32 %v8365_v13  ;;  %v8501_v43 = vmul.f32 %v6056_v7, %v14130_v10  ;;  %v8503_v56 = vadd.f32 %v1328_v55, %v1327_v42 }
 0x122   :  { %v1390_v0 = vsel %vm519_vm0, %v6050_v41, 0.0  ;;  %v8507_v47 = vmul.f32 %v6058_v63, %v14130_v10  ;;  %v8509_v1 = vadd.f32 %v1299_v6, %v1298_v14  ;;  %v8512_v16 = vsel %vm519_vm0, %v1269_v17, 0.0  ;;  %v14138_v17 = vld [vmem:[#allocation62_spill] sm:$0xff]  ;;  %v14144_v10 = vld [vmem:[#allocation91_spill] sm:$0xff] }
 0x123   :  { %14131 = vst [vmem:[#allocation93_spill] sm:$0xff] %v8501_v43  ;;  %14132 = vst [vmem:[#allocation85_spill] sm:$0xff] %v8503_v56  ;;  %v1463_v8 = vstv %s8463_s28  ;;  %v8515_v60 = vpop.eup %6061  ;;  %v8517_v13 = vadd.f32 %v1363_v45, %v1362_v18  ;;  %v8521_v7 = vsel %vm519_vm0, %v8491_v15, 0.0  ;;  %v1392_v41 = vsel %vm519_vm0, %v6054_v50, 0.0  ;;  %v14140_v18 = vld [vmem:[#allocation64_spill] sm:$0xff]  ;;  %v14179_v56 = vld [vmem:[#allocation18_spill] sm:$0xff] }
 0x124   :  { %14133 = vst [vmem:[#allocation94_spill] sm:$0xff] %v8507_v47  ;;  %14134 = vst [vmem:[#allocation80_spill] sm:$0xff] %v8509_v1  ;;  %v8525_v42 = vsel %vm519_vm0, %v6058_v63, 0.0  ;;  %v8527_v14 = vpop.eup %6063  ;;  %v1391_v55 = vadd.f32 %v1390_v0, %v1389_v61  ;;  %v1451_v6 = vmul.f32 %v8259_v22, %v14138_v17  ;;  %v1452_v32 = vmul.f32 %v8259_v22, %v14139_v58  ;;  %v14146_v0 = vld [vmem:[#allocation66_spill] sm:$0xff]  ;;  %v14147_v58 = vld [vmem:[#allocation67_spill] sm:$0xff] }
 0x125   :  { %14135 = vst [vmem:[#allocation79_spill] sm:$0xff] %v8512_v16  ;;  %14136 = vst [vmem:[#allocation95_spill] sm:$0xff] %v8515_v60  ;;  %v1453_v45 = vmul.f32 %v8259_v22, %v14140_v18  ;;  %v8535_v5 = vpop.eup %6065  ;;  %v1454_v50 = vmul.f32 %v8259_v22, %v14142_v51  ;;  %v1464_v63 = vmul.f32 %v14143_v31, %v1463_v8  ;;  %v8542_v52 = vstv %s8476_s29  ;;  %v14148_v18 = vld [vmem:[#allocation68_spill] sm:$0xff]  ;;  %v14151_v31 = vld [vmem:[#allocation70_spill] sm:$0xff] }
 0x126   :  { %14137 = vst [vmem:[#allocation96_spill] sm:$0xff] %v8525_v42  ;;  %14141 = vst [vmem:[#allocation81_spill] sm:$0xff] %v8535_v5  ;;  %v1465_v3 = vmul.f32 %v14144_v10, %v1463_v8  ;;  %v8544_v61 = vpop.eup %6067  ;;  %v1455_v17 = vmul.f32 %v8259_v22, %v14146_v0  ;;  %v1456_v38 = vmul.f32 %v8259_v22, %v14147_v58  ;;  %v14152_v8 = vld [vmem:[#allocation71_spill] sm:$0xff]  ;;  %v14168_v16 = vld [vmem:[#allocation12_spill] sm:$0xff] }
 0x127   :  { %14145 = vst [vmem:[#allocation97_spill] sm:$0xff] %v8544_v61  ;;  %v1457_v21 = vmul.f32 %v8259_v22, %v14148_v18  ;;  %v1458_v51 = vmul.f32 %v8259_v22, %v14149_v2  ;;  %v8554_v27 = vpop.eup %6069  ;;  %v1459_v10 = vmul.f32 %v8259_v22, %v14151_v31  ;;  %v1460_v26 = vmul.f32 %v8259_v22, %v14152_v8  ;;  %v14159_v31 = vld [vmem:[#allocation16_spill] sm:$0xff] }
 0x128   :  { %14150 = vst [vmem:[#allocation98_spill] sm:$0xff] %v8554_v27  ;;  %v1461_v0 = vmul.f32 %v8259_v22, %v14153_v44  ;;  %v1462_v58 = vmul.f32 %v8259_v22, %v14154_v25  ;;  %v8564_v12 = vpop.eup %6071  ;;  %v8566_v18 = vadd.f32 %v1392_v41, %v1391_v55  ;;  %v1499_v2 = vmul.f32 %v8542_v52, %v14157_v19  ;;  %v14161_v55 = vld [vmem:[#allocation19_spill] sm:$0xff] }
 0x129   :  { %14155 = vst [vmem:[#allocation74_spill] sm:$0xff] %v8564_v12  ;;  %v1500_v57 = vmul.f32 %v8542_v52, %v14158_v23  ;;  %v1501_v27 = vmul.f32 %v8542_v52, %v14159_v31  ;;  %v8574_v8 = vpop.eup %6073  ;;  %v8577_v44 = vadd.f32 %v1464_v63, %v8281_v40  ;;  %v8580_v22 = vadd.f32 %v1465_v3, %v8289_v28 }
 0x12a   :  { %14156 = vst [vmem:[#allocation100_spill] sm:$0xff] %v8566_v18  ;;  %14160 = vst [vmem:[#allocation89_spill] sm:$0xff] %v8574_v8  ;;  %v8583_v41 = vadd.f32 %v1464_v63, %v8369_v46  ;;  %v1502_v19 = vmul.f32 %v8542_v52, %v14161_v55  ;;  %v8587_v25 = vpop.eup %6075  ;;  %v8590_v23 = vadd.f32 %v1465_v3, %v8385_v24 }
 0x12b   :  { %14162 = vst [vmem:[#allocation88_spill] sm:$0xff] %v8587_v25  ;;  %v8593_v31 = vadd.f32 %v1464_v63, %v8389_v30  ;;  %v8596_v40 = vadd.f32 %v1465_v3, %v8393_v39  ;;  %v8599_v28 = vadd.f32 %v1464_v63, %v8397_v49  ;;  %v8601_v8 = vpop.eup %6077  ;;  %v8604_v46 = vadd.f32 %v1465_v3, %v8407_v33 }
 0x12c   :  { %14163 = vst [vmem:[#allocation91_spill] sm:$0xff] %v8601_v8  ;;  %v8607_v55 = vadd.f32 %v1464_v63, %v8411_v11  ;;  %v8610_v24 = vadd.f32 %v1465_v3, %v8415_v53  ;;  %v8613_v30 = vadd.f32 %v1464_v63, %v8419_v4  ;;  %v8615_v25 = vpop.eup %6079  ;;  %v8618_v39 = vadd.f32 %v1465_v3, %v8431_v48 }
 0x12d   :  { %14164 = vst [vmem:[#allocation101_spill] sm:$0xff] %v8615_v25  ;;  %v8621_v49 = vadd.f32 %v1464_v63, %v8435_v59  ;;  %v8624_v33 = vadd.f32 %v1465_v3, %v8440_v34  ;;  %v8627_v11 = vadd.f32 %v1464_v63, %v8452_v9  ;;  %v8629_v8 = vpop.eup %6081  ;;  %v1481_v53 = vadd.f32 %v1465_v3, %v8458_v37 }
 0x12e   :  { %14165 = vst [vmem:[#allocation102_spill] sm:$0xff] %v8629_v8  ;;  %v1482_v4 = vadd.f32 %v1464_v63, %v8472_v29  ;;  %v1483_v25 = vadd.f32 %v1465_v3, %v8480_v35  ;;  %v8635_v48 = vadd.f32 %v1464_v63, %v8489_v36  ;;  %v8637_v20 = vpop.eup %6083  ;;  %v1485_v59 = vadd.f32 %v1465_v3, %v8497_v62  ;;  %v14167_v36 = vld [vmem:[#allocation11_spill] sm:$0xff] }
 0x12f   :  { %14166 = vst [vmem:[#allocation103_spill] sm:$0xff] %v8637_v20  ;;  %v1486_v34 = vadd.f32 %v1464_v63, %v1451_v6  ;;  %v1487_v12 = vadd.f32 %v1465_v3, %v1452_v32  ;;  %v1488_v1 = vadd.f32 %v1464_v63, %v1453_v45  ;;  %v1489_v9 = vadd.f32 %v1465_v3, %v1454_v50  ;;  %v14169_v32 = vld [vmem:[#allocation20_spill] sm:$0xff] }
 0x130   :  { %v1490_v5 = vadd.f32 %v1464_v63, %v1455_v17  ;;  %v1491_v54 = vadd.f32 %v1465_v3, %v1456_v38  ;;  %v1492_v8 = vadd.f32 %v1464_v63, %v1457_v21  ;;  %v8640_v61 = vadd.f32 %v1465_v3, %v1458_v51  ;;  %v14170_v17 = vld [vmem:[#allocation21_spill] sm:$0xff]  ;;  %v14174_v50 = vld [vmem:[#allocation24_spill] sm:$0xff] }
 0x131   :  { %v1494_v37 = vadd.f32 %v1464_v63, %v1459_v10  ;;  %v8642_v29 = vadd.f32 %v1465_v3, %v1460_v26  ;;  %v1496_v35 = vadd.f32 %v1464_v63, %v1461_v0  ;;  %v8644_v47 = vadd.f32 %v1465_v3, %v1462_v58  ;;  %v14171_v38 = vld [vmem:[#allocation13_spill] sm:$0xff]  ;;  %v14172_v26 = vld [vmem:[#allocation15_spill] sm:$0xff]  ;;  %v14173_v3 = vld [vmem:[#allocation22_spill] sm:$0xff] }
 0x132   :  { %v1503_v20 = vmul.f32 %v8542_v52, %v14167_v36  ;;  %v1504_v62 = vmul.f32 %v8542_v52, %v14168_v16  ;;  %v1505_v6 = vmul.f32 %v8542_v52, %v14169_v32  ;;  %v1506_v21 = vmul.f32 %v8542_v52, %v14170_v17  ;;  %v14175_v0 = vld [vmem:[#allocation14_spill] sm:$0xff]  ;;  %v14176_v16 = vld [vmem:[#allocation17_spill] sm:$0xff]  ;;  %v14177_v36 = vld [vmem:[#allocation23_spill] sm:$0xff] }
 0x133   :  { %v1507_v51 = vmul.f32 %v8542_v52, %v14171_v38  ;;  %v1508_v45 = vmul.f32 %v8542_v52, %v14172_v26  ;;  %v1509_v58 = vmul.f32 %v8542_v52, %v14173_v3  ;;  %v1510_v63 = vmul.f32 %v8542_v52, %v14174_v50  ;;  %v14178_v38 = vld [vmem:[#allocation25_spill] sm:$0xff] }
 0x134   :  { %v1511_v10 = vmul.f32 %v8542_v52, %v14175_v0  ;;  %v1512_v32 = vmul.f32 %v8542_v52, %v14176_v16  ;;  %v1513_v17 = vmul.f32 %v8542_v52, %v14177_v36  ;;  %v1514_v26 = vmul.f32 %v8542_v52, %v14178_v38  ;;  %v14191_v38 = vld [vmem:[#allocation81_spill] sm:$0xff] }
 0x135   :  { %v1534_v60 = vrot.slane %v1499_v2, %v14179_v56  ;;  %v1538_v3 = vrot.slane %v1500_v57, %v14179_v56  ;;  %v1542_v50 = vrot.slane %v1501_v27, %v14179_v56  ;;  %v1546_v43 = vrot.slane %v1502_v19, %v14179_v56 }
 0x136   :  { %v1550_v0 = vrot.slane %v1503_v20, %v14179_v56  ;;  %v1554_v16 = vrot.slane %v1504_v62, %v14179_v56  ;;  %v1558_v42 = vrot.slane %v1505_v6, %v14179_v56  ;;  %v1562_v36 = vrot.slane %v1506_v21, %v14179_v56 }
 0x137   :  { %v1566_v18 = vrot.slane %v1507_v51, %v14179_v56  ;;  %v1570_v52 = vrot.slane %v1508_v45, %v14179_v56  ;;  %v1574_v2 = vrot.slane %v1509_v58, %v14179_v56  ;;  %v1578_v57 = vrot.slane %v1510_v63, %v14179_v56 }
 0x138   :  { %v1582_v27 = vrot.slane %v1511_v10, %v14179_v56  ;;  %v8686_v19 = vrot.slane %v1512_v32, %v14179_v56  ;;  %v8689_v20 = vrot.slane %v1513_v17, %v14179_v56  ;;  %v8692_v62 = vrot.slane %v1514_v26, %v14179_v56 }
 0x139   :  { %v1611_v6 = vadd.f32 %v1534_v60, %v8577_v44  ;;  %v1612_v21 = vadd.f32 %v1534_v60, %v8580_v22  ;;  %v1613_v51 = vadd.f32 %v1538_v3, %v8583_v41  ;;  %v1614_v45 = vadd.f32 %v1538_v3, %v8590_v23 }
 0x13a   :  { %v1615_v58 = vadd.f32 %v1542_v50, %v8593_v31  ;;  %v1616_v32 = vadd.f32 %v1542_v50, %v8596_v40  ;;  %v1617_v63 = vadd.f32 %v1546_v43, %v8599_v28  ;;  %v1618_v17 = vadd.f32 %v1546_v43, %v8604_v46 }
 0x13b   :  { %v1619_v26 = vadd.f32 %v1550_v0, %v8607_v55  ;;  %v1620_v10 = vadd.f32 %v1550_v0, %v8610_v24  ;;  %v1621_v44 = vadd.f32 %v1554_v16, %v8613_v30  ;;  %v1622_v60 = vadd.f32 %v1554_v16, %v8618_v39 }
 0x13c   :  { %v1623_v22 = vadd.f32 %v1558_v42, %v8621_v49  ;;  %v1624_v23 = vadd.f32 %v1558_v42, %v8624_v33  ;;  %v1625_v31 = vadd.f32 %v1562_v36, %v8627_v11  ;;  %v1626_v41 = vadd.f32 %v1562_v36, %v1481_v53 }
 0x13d   :  { %v1627_v40 = vadd.f32 %v1566_v18, %v1482_v4  ;;  %v1628_v3 = vadd.f32 %v1566_v18, %v1483_v25  ;;  %v8710_v28 = vstv %s8668_s30  ;;  %v1629_v43 = vadd.f32 %v1570_v52, %v8635_v48 }
 0x13e   :  { %v1630_v55 = vadd.f32 %v1570_v52, %v1485_v59  ;;  %v1631_v46 = vadd.f32 %v1574_v2, %v1486_v34  ;;  %v1632_v24 = vadd.f32 %v1574_v2, %v1487_v12  ;;  %v1633_v50 = vadd.f32 %v1578_v57, %v1488_v1 }
 0x13f   :  { %v8713_v30 = vadd.f32 %v1578_v57, %v1489_v9  ;;  %v1635_v16 = vadd.f32 %v1582_v27, %v1490_v5  ;;  %v8715_v39 = vadd.f32 %v1582_v27, %v1491_v54  ;;  %v1637_v42 = vadd.f32 %v8686_v19, %v1492_v8 }
 0x140   :  { %v8719_v49 = vadd.f32 %v8689_v20, %v1494_v37  ;;  %v8722_v25 = vadd.f32 %v8710_v28, %v1611_v6  ;;  %v8725_v18 = vadd.f32 %v8710_v28, %v1613_v51  ;;  %v8728_v33 = vadd.f32 %v8692_v62, %v1496_v35 }
 0x141   :  { %v8731_v12 = vadd.f32 %v8710_v28, %v1615_v58  ;;  %v8734_v54 = vadd.f32 %v8710_v28, %v1617_v63  ;;  %v8737_v5 = vadd.f32 %v8710_v28, %v1619_v26  ;;  %v8740_v1 = vadd.f32 %v8710_v28, %v1612_v21 }
 0x142   :  { %v8743_v8 = vadd.f32 %v8710_v28, %v1614_v45  ;;  %v8746_v11 = vadd.f32 %v8710_v28, %v1616_v32  ;;  %v8749_v53 = vadd.f32 %v8710_v28, %v1621_v44  ;;  %v8752_v4 = vadd.f32 %v8710_v28, %v1618_v17 }
 0x143   :  { %v8755_v48 = vadd.f32 %v8710_v28, %v1620_v10  ;;  %v8758_v59 = vadd.f32 %v8710_v28, %v1623_v22  ;;  %v8761_v34 = vadd.f32 %v8710_v28, %v1625_v31  ;;  %v8764_v9 = vadd.f32 %v8710_v28, %v1622_v60 }
 0x144   :  { %v8767_v37 = vadd.f32 %v8710_v28, %v1627_v40  ;;  %v1676_v35 = vsel %vm519_vm0, %v8722_v25, -inf  ;;  %v1677_v36 = vsel %vm519_vm0, %v8725_v18, -inf  ;;  %v8774_v0 = vadd.f32 %v8710_v28, %v1629_v43 }
 0x145   :  { %v1678_v52 = vsel %vm519_vm0, %v8731_v12, -inf  ;;  %v1680_v2 = vsel %vm519_vm0, %v8734_v54, -inf  ;;  %v1682_v57 = vsel %vm519_vm0, %v8737_v5, -inf  ;;  %v8783_v27 = vadd.f32 %v8710_v28, %v1624_v23 }
 0x146   :  { %v1679_v6 = vmax.f32 %v1676_v35, %v1678_v52  ;;  %v1681_v21 = vmax.f32 %v1677_v36, %v1680_v2  ;;  %v1684_v51 = vsel %vm519_vm0, %v8749_v53, -inf  ;;  %v8788_v45 = vadd.f32 %v8710_v28, %v1626_v41 }
 0x147   :  { %v8791_v58 = vadd.f32 %v8710_v28, %v1631_v46  ;;  %v1686_v32 = vsel %vm519_vm0, %v8758_v59, -inf  ;;  %v1688_v63 = vsel %vm519_vm0, %v8761_v34, -inf  ;;  %v8798_v17 = vadd.f32 %v8710_v28, %v1628_v3 }
 0x148   :  { %v8801_v26 = vadd.f32 %v8710_v28, %v1630_v55  ;;  %v1683_v10 = vmax.f32 %v1679_v6, %v1682_v57  ;;  %v1685_v44 = vmax.f32 %v1681_v21, %v1684_v51  ;;  %v8804_v60 = vadd.f32 %v8710_v28, %v1633_v50 }
 0x149   :  { %v8807_v22 = vadd.f32 %v8710_v28, %v1635_v16  ;;  %v1690_v23 = vsel %vm519_vm0, %v8767_v37, -inf  ;;  %v1692_v31 = vsel %vm519_vm0, %v8774_v0, -inf  ;;  %v8814_v41 = vadd.f32 %v8710_v28, %v1637_v42 }
 0x14a   :  { %v1687_v40 = vmax.f32 %v1683_v10, %v1686_v32  ;;  %v1689_v3 = vmax.f32 %v1685_v44, %v1688_v63  ;;  %v1707_v43 = vsel %vm519_vm0, %v8740_v1, -inf  ;;  %v1694_v55 = vsel %vm519_vm0, %v8791_v58, -inf }
 0x14b   :  { %v1708_v46 = vsel %vm519_vm0, %v8743_v8, -inf  ;;  %v1709_v50 = vsel %vm519_vm0, %v8746_v11, -inf  ;;  %v1711_v16 = vsel %vm519_vm0, %v8752_v4, -inf  ;;  %v1696_v2 = vsel %vm519_vm0, %v8804_v60, -inf }
 0x14c   :  { %v1691_v35 = vmax.f32 %v1687_v40, %v1690_v23  ;;  %v1693_v42 = vmax.f32 %v1689_v3, %v1692_v31  ;;  %v1710_v36 = vmax.f32 %v1707_v43, %v1709_v50  ;;  %v1712_v52 = vmax.f32 %v1708_v46, %v1711_v16 }
 0x14d   :  { %v1713_v57 = vsel %vm519_vm0, %v8755_v48, -inf  ;;  %v1715_v6 = vsel %vm519_vm0, %v8764_v9, -inf  ;;  %v1717_v21 = vsel %vm519_vm0, %v8783_v27, -inf  ;;  %v1638_v51 = vadd.f32 %v8686_v19, %v8640_v61 }
 0x14e   :  { %v8837_v32 = vadd.f32 %v8710_v28, %v1632_v24  ;;  %v1714_v63 = vmax.f32 %v1710_v36, %v1713_v57  ;;  %v1716_v10 = vmax.f32 %v1712_v52, %v1715_v6  ;;  %v8841_v44 = vadd.f32 %v8710_v28, %v8713_v30  ;;  %v14182_v57 = vld [vmem:[#allocation100_spill] sm:$0xff] }
 0x14f   :  { %v1719_v23 = vsel %vm519_vm0, %v8788_v45, -inf  ;;  %v1721_v31 = vsel %vm519_vm0, %v8798_v17, -inf  ;;  %v1723_v40 = vsel %vm519_vm0, %v8801_v26, -inf  ;;  %v1695_v3 = vmax.f32 %v1691_v35, %v1694_v55  ;;  %v14183_v6 = vld [vmem:[#allocation96_spill] sm:$0xff] }
 0x150   :  { %v1697_v61 = vmax.f32 %v1693_v42, %v1696_v2  ;;  %v1718_v19 = vmax.f32 %v1714_v63, %v1717_v21  ;;  %v1720_v24 = vmax.f32 %v1716_v10, %v1719_v23  ;;  %v8851_v43 = vadd.f32 %v8710_v28, %v8719_v49  ;;  %v14181_v2 = vld [vmem:[#allocation34_spill] sm:$0xff]  ;;  %v14184_v10 = vld [vmem:[#allocation93_spill] sm:$0xff]  ;;  %v14185_v23 = vld [vmem:[#allocation95_spill] sm:$0xff] }
 0x151   :  { %v8855_v30 = vadd.f32 %v8710_v28, %v8728_v33  ;;  %v1698_v46 = vsel %vm519_vm0, %v8807_v22, -inf  ;;  %v1700_v50 = vsel %vm519_vm0, %v8814_v41, -inf  ;;  %v1640_v55 = vadd.f32 %v8689_v20, %v8642_v29 }
 0x152   :  { %v1642_v16 = vadd.f32 %v8692_v62, %v8644_v47  ;;  %v1722_v35 = vmax.f32 %v1718_v19, %v1721_v31  ;;  %v1724_v42 = vmax.f32 %v1720_v24, %v1723_v40  ;;  %v8867_v49 = vadd.f32 %v8710_v28, %v8715_v39  ;;  %v14186_v24 = vld [vmem:[#allocation85_spill] sm:$0xff] }
 0x153   :  { %v8870_v33 = vadd.f32 %v8710_v28, %v1638_v51  ;;  %v1725_v36 = vsel %vm519_vm0, %v8837_v32, -inf  ;;  %v1727_v52 = vsel %vm519_vm0, %v8841_v44, -inf  ;;  %v1272_v29 = vmul.f32 %v8491_v15, %v14181_v2 }
 0x154   :  { %v1366_v47 = vadd.f32 %v8521_v7, %v8517_v13  ;;  %v1699_v20 = vmax.f32 %v1695_v3, %v1698_v46  ;;  %v1701_v62 = vmax.f32 %v1697_v61, %v1700_v50  ;;  %v1367_v39 = vsel %vm519_vm0, %v8527_v14, 0.0  ;;  %v14187_v46 = vld [vmem:[#allocation79_spill] sm:$0xff] }
 0x155   :  { %14180 = vst [vmem:[#allocation104_spill] sm:$0xff] %v8870_v33  ;;  %v1395_v21 = vadd.f32 %v14183_v6, %v14182_v57  ;;  %v1702_v51 = vsel %vm519_vm0, %v8851_v43, -inf  ;;  %v1704_v63 = vsel %vm519_vm0, %v8855_v30, -inf  ;;  %v1301_v15 = vsel %vm519_vm0, %v14184_v10, 0.0 }
 0x156   :  { %v1396_v13 = vsel %vm519_vm0, %v14185_v23, 0.0  ;;  %v1726_v7 = vmax.f32 %v1722_v35, %v1725_v36  ;;  %v1728_v31 = vmax.f32 %v1724_v42, %v1727_v52  ;;  %v8893_v40 = vadd.f32 %v8710_v28, %v1640_v55  ;;  %v14188_v55 = vld [vmem:[#allocation94_spill] sm:$0xff] }
 0x157   :  { %v8896_v3 = vadd.f32 %v8710_v28, %v1642_v16  ;;  %v1729_v61 = vsel %vm519_vm0, %v8867_v49, -inf  ;;  %v1731_v19 = vsel %vm519_vm0, %v8870_v33, -inf  ;;  %v1331_v50 = vadd.f32 %v14187_v46, %v14186_v24  ;;  %v14189_v28 = vld [vmem:[#allocation97_spill] sm:$0xff]  ;;  %v14190_v52 = vld [vmem:[#allocation78_spill] sm:$0xff] }
 0x158   :  { %v1368_v57 = vadd.f32 %v1367_v39, %v1366_v47  ;;  %v1703_v6 = vmax.f32 %v1699_v20, %v1702_v51  ;;  %v1705_v10 = vmax.f32 %v1701_v62, %v1704_v63  ;;  %v1273_v35 = vmul.f32 %v14185_v23, %v14181_v2  ;;  %v14192_v47 = vld [vmem:[#allocation35_spill] sm:$0xff]  ;;  %v14193_v62 = vld [vmem:[#allocation80_spill] sm:$0xff] }
 0x159   :  { %v1332_v42 = vsel %vm519_vm0, %v14188_v55, 0.0  ;;  %v1369_v16 = vsel %vm519_vm0, %v14189_v28, 0.0  ;;  %v1397_v36 = vadd.f32 %v1396_v13, %v1395_v21  ;;  %6085 = vpow2.f32 %v14190_v52  ;;  %v14196_v55 = vld [vmem:[#allocation98_spill] sm:$0xff]  ;;  %v14208_v2 = vld [vmem:[#allocation91_spill] sm:$0xff] }
 0x15a   :  { %v1398_v56 = vsel %vm519_vm0, %v14191_v38, 0.0  ;;  %v1730_v33 = vmax.f32 %v1726_v7, %v1729_v61  ;;  %v1732_v24 = vmax.f32 %v1728_v31, %v1731_v19  ;;  %v1274_v20 = vmul.f32 %v8527_v14, %v14192_v47  ;;  %v14194_v14 = vld [vmem:[#allocation74_spill] sm:$0xff]  ;;  %v14195_v19 = vld [vmem:[#allocation87_spill] sm:$0xff] }
 0x15b   :  { %v1302_v39 = vadd.f32 %v1301_v15, %v14193_v62  ;;  %v1733_v51 = vsel %vm519_vm0, %v8893_v40, -inf  ;;  %v1735_v63 = vsel %vm519_vm0, %v8896_v3, -inf  ;;  %v1303_v21 = vsel %vm519_vm0, %v1272_v29, 0.0 }
 0x15c   :  { %v1333_v23 = vadd.f32 %v1332_v42, %v1331_v50  ;;  %v1370_v13 = vadd.f32 %v1369_v16, %v1368_v57  ;;  %v8921_v46 = vmax.f32 %v1703_v6, %v1705_v10  ;;  %v1275_v7 = vmul.f32 %v14191_v38, %v14192_v47  ;;  %v14197_v50 = vld [vmem:[#allocation84_spill] sm:$0xff]  ;;  %v14198_v57 = vld [vmem:[#allocation83_spill] sm:$0xff] }
 0x15d   :  { %v1334_v31 = vsel %vm519_vm0, %v1273_v35, 0.0  ;;  %v1371_v15 = vsel %vm519_vm0, %v14194_v14, 0.0  ;;  %v1399_v61 = vadd.f32 %v1398_v56, %v1397_v36  ;;  %6087 = vpow2.f32 %v14195_v19  ;;  %v14199_v10 = vld [vmem:[#allocation36_spill] sm:$0xff] }
 0x15e   :  { %v1400_v52 = vsel %vm519_vm0, %v14196_v55, 0.0  ;;  %v1734_v62 = vmax.f32 %v1730_v33, %v1733_v51  ;;  %v1736_v29 = vmax.f32 %v1732_v24, %v1735_v63  ;;  %v802_v6 = vadd.f32 %v14198_v57, %v14197_v50  ;;  %v14200_v24 = vld [vmem:[#allocation88_spill] sm:$0xff]  ;;  %v14203_v50 = vld [vmem:[#allocation77_spill] sm:$0xff] }
 0x15f   :  { %v1276_v42 = vmul.f32 %v14189_v28, %v14199_v10  ;;  %v1304_v38 = vadd.f32 %v1303_v21, %v1302_v39  ;;  %v1305_v35 = vsel %vm519_vm0, %v1274_v20, 0.0  ;;  %v1277_v16 = vmul.f32 %v14196_v55, %v14199_v10  ;;  %v14201_v39 = vld [vmem:[#allocation82_spill] sm:$0xff]  ;;  %v14204_v55 = vld [vmem:[#allocation89_spill] sm:$0xff] }
 0x160   :  { %v1335_v56 = vadd.f32 %v1334_v31, %v1333_v23  ;;  %v1372_v36 = vadd.f32 %v1371_v15, %v1370_v13  ;;  %v1738_v19 = vsub.f32 %v8722_v25, %v8921_v46  ;;  %v1336_v33 = vsel %vm519_vm0, %v1275_v7, 0.0  ;;  %v14202_v21 = vld [vmem:[#allocation86_spill] sm:$0xff]  ;;  %v14205_v25 = vld [vmem:[#allocation99_spill] sm:$0xff]  ;;  %v14206_v31 = vld [vmem:[#allocation37_spill] sm:$0xff] }
 0x161   :  { %v1373_v51 = vsel %vm519_vm0, %v14200_v24, 0.0  ;;  %v1401_v63 = vadd.f32 %v1400_v52, %v1399_v61  ;;  %v1740_v28 = vsub.f32 %v8725_v18, %v8921_v46  ;;  %v831_v20 = vadd.f32 %v14202_v21, %v14201_v39 }
 0x162   :  { %6089 = vpow2.f32 %v14203_v50  ;;  %v1402_v23 = vsel %vm519_vm0, %v14204_v55, 0.0  ;;  %v8950_v13 = vmax.f32 %v1734_v62, %v1736_v29  ;;  %v832_v7 = vsel %vm519_vm0, %v14205_v25, 0.0  ;;  %v14207_v50 = vld [vmem:[#allocation101_spill] sm:$0xff] }
 0x163   :  { %v1278_v15 = vmul.f32 %v14194_v14, %v14206_v31  ;;  %v1306_v61 = vadd.f32 %v1305_v35, %v1304_v38  ;;  %v1307_v52 = vsel %vm519_vm0, %v1276_v42, 0.0  ;;  %v1337_v18 = vadd.f32 %v1336_v33, %v1335_v56 }
 0x164   :  { %v1338_v57 = vsel %vm519_vm0, %v1277_v16, 0.0  ;;  %v1374_v39 = vadd.f32 %v1373_v51, %v1372_v36  ;;  %v1770_v21 = vmul.f32 1.442695, %v1738_v19  ;;  %v1375_v10 = vsel %vm519_vm0, %v14207_v50, 0.0  ;;  %v14210_v16 = vld [vmem:[#allocation38_spill] sm:$0xff] }
 0x165   :  { %v1403_v47 = vadd.f32 %v1402_v23, %v1401_v63  ;;  %v1742_v62 = vsub.f32 %v8731_v12, %v8921_v46  ;;  %v1774_v29 = vmul.f32 1.442695, %v1740_v28  ;;  %v833_v25 = vadd.f32 %v832_v7, %v831_v20  ;;  %v14211_v28 = vld [vmem:[#allocation103_spill] sm:$0xff] }
 0x166   :  { %6091 = vrcp.f32 %v802_v6  ;;  %v1404_v14 = vsel %vm519_vm0, %v14208_v2, 0.0  ;;  %v1739_v42 = vsub.f32 %v8740_v1, %v8950_v13  ;;  %v8966_v38 = vpop.eup %6085  ;;  %v1279_v35 = vmul.f32 %v14204_v55, %v14206_v31  ;;  %v14212_v55 = vld [vmem:[#allocation102_spill] sm:$0xff] }
 0x167   :  { %14209 = vst [vmem:[#allocation100_spill] sm:$0xff] %v8966_v38  ;;  %v1280_v56 = vmul.f32 %v14200_v24, %v14210_v16  ;;  %v1308_v36 = vadd.f32 %v1307_v52, %v1306_v61  ;;  %v1741_v12 = vsub.f32 %v8743_v8, %v8950_v13  ;;  %v1309_v6 = vsel %vm519_vm0, %v1278_v15, 0.0  ;;  %v14213_v61 = vld [vmem:[#allocation39_spill] sm:$0xff] }
 0x168   :  { %v1339_v19 = vadd.f32 %v1338_v57, %v1337_v18  ;;  %v1376_v33 = vadd.f32 %v1375_v10, %v1374_v39  ;;  %6093 = vpow2.f32 %v1770_v21  ;;  %v1405_v51 = vadd.f32 %v1404_v14, %v1403_v47  ;;  %v14215_v14 = vld [vmem:[#allocation90_spill] sm:$0xff] }
 0x169   :  { %v1744_v1 = vsub.f32 %v8734_v54, %v8921_v46  ;;  %6095 = vpow2.f32 %v1774_v29  ;;  %v1778_v63 = vmul.f32 1.442695, %v1742_v62  ;;  %v1377_v20 = vsel %vm519_vm0, %v14211_v28, 0.0 }
 0x16a   :  { %v1406_v24 = vsel %vm519_vm0, %v14212_v55, 0.0  ;;  %v1743_v8 = vsub.f32 %v8746_v11, %v8950_v13  ;;  %v1772_v23 = vmul.f32 1.442695, %v1739_v42  ;;  %v6088_v7 = vpop.eup %6087  ;;  %v1281_v10 = vmul.f32 %v14208_v2, %v14210_v16  ;;  %v14309_v16 = vld [vmem:[#allocation17_spill] sm:$0xff] }
 0x16b   :  { %v1310_v47 = vadd.f32 %v1309_v6, %v1308_v36  ;;  %v1746_v54 = vsub.f32 %v8737_v5, %v8921_v46  ;;  %v1776_v15 = vmul.f32 1.442695, %v1741_v12  ;;  %v1282_v52 = vmul.f32 %v14207_v50, %v14213_v61 }
 0x16c   :  { %v1311_v18 = vsel %vm519_vm0, %v1280_v56, 0.0  ;;  %v1340_v57 = vsel %vm519_vm0, %v1279_v35, 0.0  ;;  %v1379_v11 = vsel %vm519_vm0, %v8966_v38, 0.0  ;;  %v1378_v39 = vadd.f32 %v1377_v20, %v1376_v33  ;;  %v14288_v38 = vld [vmem:[#allocation72_spill] sm:$0xff] }
 0x16d   :  { %v1407_v21 = vadd.f32 %v1406_v24, %v1405_v51  ;;  %6097 = vpow2.f32 %v1778_v63  ;;  %v1782_v2 = vmul.f32 1.442695, %v1744_v1  ;;  %v1408_v5 = vsel %vm519_vm0, %v6088_v7, 0.0 }
 0x16e   :  { %v1745_v50 = vsub.f32 %v8752_v4, %v8950_v13  ;;  %6099 = vpow2.f32 %v1772_v23  ;;  %v1780_v62 = vmul.f32 1.442695, %v1743_v8  ;;  %v9006_v42 = vsel %vm519_vm0, %v14215_v14, 0.0  ;;  %v14219_v8 = vld [vmem:[#allocation40_spill] sm:$0xff] }
 0x16f   :  { %v9002_v29 = vpop.eup %6089  ;;  %14216 = vst [vmem:[#allocation93_spill] sm:$0xff] %v9006_v42  ;;  %v1748_v35 = vsub.f32 %v8749_v53, %v8921_v46  ;;  %6101 = vpow2.f32 %v1776_v15  ;;  %v1786_v56 = vmul.f32 1.442695, %v1746_v54  ;;  %v1312_v36 = vadd.f32 %v1311_v18, %v1310_v47  ;;  %v14282_v42 = vld [vmem:[#allocation66_spill] sm:$0xff] }
 0x170   :  { %14214 = vst [vmem:[#allocation96_spill] sm:$0xff] %v9002_v29  ;;  %6103 = vrcp.f32 %v833_v25  ;;  %v1341_v12 = vadd.f32 %v1340_v57, %v1339_v19  ;;  %v1342_v4 = vsel %vm519_vm0, %v1281_v10, 0.0  ;;  %v1313_v6 = vsel %vm519_vm0, %v1282_v52, 0.0 }
 0x171   :  { %v1380_v33 = vadd.f32 %v1379_v11, %v1378_v39  ;;  %v1409_v51 = vadd.f32 %v1408_v5, %v1407_v21  ;;  %6105 = vpow2.f32 %v1782_v2  ;;  %v1410_v1 = vsel %vm519_vm0, %v9002_v29, 0.0  ;;  %v14225_v39 = vld [vmem:[#allocation42_spill] sm:$0xff]  ;;  %v14226_v2 = vld [vmem:[#allocation43_spill] sm:$0xff] }
 0x172   :  { %v1747_v63 = vsub.f32 %v8755_v48, %v8950_v13  ;;  %6107 = vpow2.f32 %v1780_v62  ;;  %v1784_v53 = vmul.f32 1.442695, %v1745_v50  ;;  %v9020_v19 = vmul.f32 %v14212_v55, %v14213_v61  ;;  %v14227_v50 = vld [vmem:[#allocation44_spill] sm:$0xff]  ;;  %v14228_v62 = vld [vmem:[#allocation45_spill] sm:$0xff] }
 0x173   :  { %v9016_v25 = vpop.eup %6091  ;;  %v1750_v20 = vsub.f32 %v8758_v59, %v8921_v46  ;;  %6109 = vpow2.f32 %v1786_v56  ;;  %v1790_v24 = vmul.f32 1.442695, %v1748_v35  ;;  %v9026_v23 = vmul.f32 %v14211_v28, %v14219_v8  ;;  %v14229_v35 = vld [vmem:[#allocation46_spill] sm:$0xff] }
 0x174   :  { %14217 = vst [vmem:[#allocation95_spill] sm:$0xff] %v9016_v25  ;;  %14218 = vst [vmem:[#allocation85_spill] sm:$0xff] %v9020_v19  ;;  %v9029_v48 = vmul.f32 %v6088_v7, %v14219_v8  ;;  %v9031_v10 = vadd.f32 %v1342_v4, %v1341_v12  ;;  %v9034_v47 = vstv %s8993_s1  ;;  %v9036_v55 = vadd.f32 %v1313_v6, %v1312_v36  ;;  %v14230_v56 = vld [vmem:[#allocation26_spill] sm:$0xff]  ;;  %v14231_v12 = vld [vmem:[#allocation27_spill] sm:$0xff] }
 0x175   :  { %14220 = vst [vmem:[#allocation79_spill] sm:$0xff] %v9026_v23  ;;  %v6094_v54 = vpop.eup %6093  ;;  %v9038_v15 = vadd.f32 %v1410_v1, %v1409_v51  ;;  %6111 = vrcp.f32 %v1380_v33  ;;  %v1749_v18 = vsub.f32 %v8764_v9, %v8950_v13  ;;  %v1788_v28 = vmul.f32 1.442695, %v1747_v63  ;;  %v14284_v8 = vld [vmem:[#allocation68_spill] sm:$0xff] }
 0x176   :  { %14221 = vst [vmem:[#allocation94_spill] sm:$0xff] %v9029_v48  ;;  %14222 = vst [vmem:[#allocation97_spill] sm:$0xff] %v9031_v10  ;;  %v6096_v52 = vpop.eup %6095  ;;  %6113 = vpow2.f32 %v1784_v53  ;;  %v9044_v57 = vstv %s9000_s8  ;;  %v1752_v7 = vsub.f32 %v8761_v34, %v8921_v46  ;;  %v1794_v11 = vmul.f32 1.442695, %v1750_v20  ;;  %v14285_v48 = vld [vmem:[#allocation69_spill] sm:$0xff]  ;;  %v14286_v10 = vld [vmem:[#allocation70_spill] sm:$0xff] }
 0x177   :  { %14223 = vst [vmem:[#allocation78_spill] sm:$0xff] %v9036_v55  ;;  %14224 = vst [vmem:[#allocation81_spill] sm:$0xff] %v9038_v15  ;;  %6115 = vpow2.f32 %v1790_v24  ;;  %v9050_v21 = vmul.f32 %v9034_v47, %v14225_v39  ;;  %v9054_v5 = vmul.f32 %v9034_v47, %v14226_v2  ;;  %v9058_v9 = vmul.f32 %v9034_v47, %v14227_v50  ;;  %v14233_v50 = vld [vmem:[#allocation28_spill] sm:$0xff]  ;;  %s12183_s8 = sld [smem:[#allocation3 + $0x87]] }
 0x178   :  { %v9062_v14 = vmul.f32 %v9034_v47, %v14228_v62  ;;  %v9066_v34 = vmul.f32 %v9034_v47, %v14229_v35  ;;  %v1834_v36 = vmul.f32 %v6094_v54, %v14230_v56  ;;  %v1836_v4 = vmul.f32 %v6096_v52, %v14231_v12  ;;  %v14299_v15 = vld [vmem:[#allocation12_spill] sm:$0xff] }
 0x179   :  { %v1928_v6 = vsel %vm519_vm0, %v6094_v54, 0.0  ;;  %v1929_v33 = vsel %vm519_vm0, %v6096_v52, 0.0  ;;  %v1751_v1 = vsub.f32 %v8783_v27, %v8950_v13  ;;  %v1754_v63 = vsub.f32 %v8767_v37, %v8921_v46 }
 0x17a   :  { %v6098_v51 = vpop.eup %6097  ;;  %6117 = vpow2.f32 %v1788_v28  ;;  %v1792_v53 = vmul.f32 1.442695, %v1749_v18  ;;  %v1756_v24 = vsub.f32 %v8774_v0, %v8921_v46  ;;  %v1758_v59 = vsub.f32 %v8791_v58, %v8921_v46 }
 0x17b   :  { %v9076_v20 = vpop.eup %6099  ;;  %6119 = vpow2.f32 %v1794_v11  ;;  %v1798_v54 = vmul.f32 1.442695, %v1752_v7  ;;  %v1753_v27 = vsub.f32 %v8788_v45, %v8950_v13  ;;  %v1930_v28 = vadd.f32 %v1929_v33, %v1928_v6 }
 0x17c   :  { %v9082_v52 = vpop.eup %6101  ;;  %v1835_v18 = vmul.f32 %v9076_v20, %v14230_v56  ;;  %v1866_v58 = vsel %vm519_vm0, %v1834_v36, 0.0  ;;  %v1867_v7 = vsel %vm519_vm0, %v1836_v4, 0.0  ;;  %v1931_v11 = vsel %vm519_vm0, %v6098_v51, 0.0 }
 0x17d   :  { %v9090_v35 = vpop.eup %6103  ;;  %v1837_v0 = vmul.f32 %v9082_v52, %v14231_v12  ;;  %6121 = vpow2.f32 %v1792_v53  ;;  %v1796_v37 = vmul.f32 1.442695, %v1751_v1  ;;  %v1838_v56 = vmul.f32 %v6098_v51, %v14233_v50 }
 0x17e   :  { %14232 = vst [vmem:[#allocation80_spill] sm:$0xff] %v9090_v35  ;;  %v6106_v62 = vpop.eup %6105  ;;  %6123 = vpow2.f32 %v1798_v54  ;;  %v1802_v4 = vmul.f32 1.442695, %v1754_v63  ;;  %v1755_v2 = vsub.f32 %v8798_v17, %v8950_v13  ;;  %v1800_v39 = vmul.f32 1.442695, %v1753_v27  ;;  %v14235_v63 = vld [vmem:[#allocation29_spill] sm:$0xff] }
 0x17f   :  { %v9100_v6 = vpop.eup %6107  ;;  %v1868_v45 = vadd.f32 %v1867_v7, %v1866_v58  ;;  %v1932_v53 = vadd.f32 %v1931_v11, %v1930_v28  ;;  %v1897_v1 = vsel %vm519_vm0, %v1835_v18, 0.0  ;;  %v1898_v35 = vsel %vm519_vm0, %v1837_v0, 0.0 }
 0x180   :  { %v6110_v12 = vpop.eup %6109  ;;  %v1839_v51 = vmul.f32 %v9100_v6, %v14233_v50  ;;  %v1933_v33 = vsel %vm519_vm0, %v6106_v62, 0.0  ;;  %6125 = vpow2.f32 %v1796_v37  ;;  %v1840_v54 = vmul.f32 %v6106_v62, %v14235_v63 }
 0x181   :  { %v1869_v36 = vsel %vm519_vm0, %v1838_v56, 0.0  ;;  %v1934_v17 = vadd.f32 %v1933_v33, %v1932_v53  ;;  %6127 = vpow2.f32 %v1802_v4  ;;  %v1806_v58 = vmul.f32 1.442695, %v1756_v24  ;;  %v14236_v4 = vld [vmem:[#allocation30_spill] sm:$0xff] }
 0x182   :  { %v9113_v25 = vpop.eup %6111  ;;  %v1935_v18 = vsel %vm519_vm0, %v6110_v12, 0.0  ;;  %v1757_v7 = vsub.f32 %v8801_v26, %v8950_v13  ;;  %v1759_v37 = vsub.f32 %v8837_v32, %v8950_v13  ;;  %v1761_v62 = vsub.f32 %v8841_v44, %v8950_v13 }
 0x183   :  { %14234 = vst [vmem:[#allocation74_spill] sm:$0xff] %v9113_v25  ;;  %v9117_v27 = vpop.eup %6113  ;;  %v1899_v56 = vadd.f32 %v1898_v35, %v1897_v1  ;;  %v1804_v11 = vmul.f32 1.442695, %v1755_v2  ;;  %v1870_v53 = vadd.f32 %v1869_v36, %v1868_v45  ;;  %v1900_v24 = vsel %vm519_vm0, %v1839_v51, 0.0  ;;  %v14237_v45 = vld [vmem:[#allocation104_spill] sm:$0xff] }
 0x184   :  { %v6116_v0 = vpop.eup %6115  ;;  %v1841_v33 = vmul.f32 %v9117_v27, %v14235_v63  ;;  %6129 = vpow2.f32 %v1800_v39  ;;  %v1842_v28 = vmul.f32 %v6110_v12, %v14236_v4  ;;  %v1871_v50 = vsel %vm519_vm0, %v1840_v54, 0.0 }
 0x185   :  { %v1936_v26 = vadd.f32 %v1935_v18, %v1934_v17  ;;  %v1763_v32 = vsub.f32 %v8867_v49, %v8950_v13  ;;  %6131 = vpow2.f32 %v1806_v58  ;;  %v1810_v44 = vmul.f32 1.442695, %v1758_v59  ;;  %v14238_v17 = vld [vmem:[#allocation31_spill] sm:$0xff] }
 0x186   :  { %v1937_v2 = vsel %vm519_vm0, %v6116_v0, 0.0  ;;  %v1765_v36 = vsub.f32 %v14237_v45, %v8950_v13  ;;  %v1767_v39 = vsub.f32 %v8893_v40, %v8950_v13  ;;  %v1901_v51 = vadd.f32 %v1900_v24, %v1899_v56 }
 0x187   :  { %v9133_v25 = vpop.eup %6117  ;;  %v1808_v1 = vmul.f32 1.442695, %v1757_v7  ;;  %v1872_v49 = vadd.f32 %v1871_v50, %v1870_v53  ;;  %v1902_v59 = vsel %vm519_vm0, %v1841_v33, 0.0  ;;  %6133 = vpow2.f32 %v1804_v11 }
 0x188   :  { %v6120_v35 = vpop.eup %6119  ;;  %v1843_v54 = vmul.f32 %v9133_v25, %v14236_v4  ;;  %v1844_v58 = vmul.f32 %v6116_v0, %v14238_v17  ;;  %v1873_v18 = vsel %vm519_vm0, %v1842_v28, 0.0  ;;  %v1938_v45 = vadd.f32 %v1937_v2, %v1936_v26  ;;  %v14242_v2 = vld [vmem:[#allocation32_spill] sm:$0xff] }
 0x189   :  { %6135 = vpow2.f32 %v1810_v44  ;;  %v1812_v40 = vmul.f32 1.442695, %v1759_v37  ;;  %v14239_v56 = vsub.f32 %v8804_v60, %v8921_v46  ;;  %v1939_v24 = vsel %vm519_vm0, %v6120_v35, 0.0 }
 0x18a   :  { %v9149_v63 = vpop.eup %6121  ;;  %v1816_v50 = vmul.f32 1.442695, %v1761_v62  ;;  %v14240_v11 = vsub.f32 %v8807_v22, %v8921_v46  ;;  %v1820_v0 = vmul.f32 1.442695, %v1763_v32  ;;  %v1903_v53 = vadd.f32 %v1902_v59, %v1901_v51 }
 0x18b   :  { %v1814_v7 = vmul.f32 1.442695, %v14239_v56  ;;  %v6124_v12 = vpop.eup %6123  ;;  %v14241_v28 = vsub.f32 %v8814_v41, %v8921_v46  ;;  %v1845_v37 = vmul.f32 %v9149_v63, %v14238_v17  ;;  %v1874_v44 = vadd.f32 %v1873_v18, %v1872_v49  ;;  %v6510_v17 = vld [vmem:[%s13528_s0 + $0x8] sm:$0xff] }
 0x18c   :  { %v1818_v33 = vmul.f32 1.442695, %v14240_v11  ;;  %v1904_v60 = vsel %vm519_vm0, %v1843_v54, 0.0  ;;  %6137 = vpow2.f32 %v1808_v1  ;;  %v1846_v56 = vmul.f32 %v6120_v35, %v14242_v2 }
 0x18d   :  { %v1822_v26 = vmul.f32 1.442695, %v14241_v28  ;;  %v1875_v62 = vsel %vm519_vm0, %v1844_v58, 0.0  ;;  %v1940_v4 = vadd.f32 %v1939_v24, %v1938_v45  ;;  %v9166_v22 = vpop.eup %6125  ;;  %6139 = vpow2.f32 %v1814_v7 }
 0x18e   :  { %v9168_v32 = vmul.f32 1.442695, %v1765_v36  ;;  %v1941_v41 = vsel %vm519_vm0, %v6124_v12, 0.0  ;;  %v1959_v51 = vsel %vm519_vm0, %v9076_v20, 0.0  ;;  %v6128_v59 = vpop.eup %6127  ;;  %6141 = vpow2.f32 %v1812_v40  ;;  %v14244_v20 = vld [vmem:[#allocation33_spill] sm:$0xff] }
 0x18f   :  { %v14243_v1 = vsub.f32 %v8851_v43, %v8921_v46  ;;  %v1847_v35 = vmul.f32 %v9166_v22, %v14242_v2  ;;  %v1905_v49 = vadd.f32 %v1904_v60, %v1903_v53  ;;  %v1876_v58 = vadd.f32 %v1875_v62, %v1874_v44 }
 0x190   :  { %v1906_v18 = vsel %vm519_vm0, %v1845_v37, 0.0  ;;  %v1960_v36 = vsel %vm519_vm0, %v9082_v52, 0.0  ;;  %v1962_v45 = vsel %vm519_vm0, %v9100_v6, 0.0  ;;  %v1848_v7 = vmul.f32 %v6124_v12, %v14244_v20 }
 0x191   :  { %v1826_v54 = vmul.f32 1.442695, %v14243_v1  ;;  %v1877_v40 = vsel %vm519_vm0, %v1846_v56, 0.0  ;;  %v1942_v24 = vadd.f32 %v1941_v41, %v1940_v4  ;;  %v1961_v43 = vadd.f32 %v1960_v36, %v1959_v51  ;;  %v9185_v11 = vpop.eup %6129  ;;  %v14250_v36 = vld [vmem:[#allocation49_spill] sm:$0xff] }
 0x192   :  { %6143 = vpow2.f32 %v1818_v33  ;;  %v1828_v28 = vmul.f32 1.442695, %v1767_v39  ;;  %v14245_v53 = vsub.f32 %v8855_v30, %v8921_v46  ;;  %v1943_v52 = vsel %vm519_vm0, %v6128_v59, 0.0  ;;  %v6132_v44 = vpop.eup %6131  ;;  %v14246_v30 = vld [vmem:[#allocation34_spill] sm:$0xff] }
 0x193   :  { %6145 = vpow2.f32 %v1822_v26  ;;  %v1907_v6 = vadd.f32 %v1906_v18, %v1905_v49  ;;  %v1963_v60 = vadd.f32 %v1962_v45, %v1961_v43  ;;  %v1964_v12 = vsel %vm519_vm0, %v9117_v27, 0.0  ;;  %v14252_v43 = vld [vmem:[#allocation50_spill] sm:$0xff] }
 0x194   :  { %v9190_v37 = vmul.f32 1.442695, %v14245_v53  ;;  %6147 = vpow2.f32 %v1826_v54  ;;  %v1849_v4 = vmul.f32 %v9185_v11, %v14244_v20  ;;  %v1878_v33 = vadd.f32 %v1877_v40, %v1876_v58  ;;  %v9200_v41 = vpop.eup %6133  ;;  %v14249_v58 = vld [vmem:[#allocation48_spill] sm:$0xff] }
 0x195   :  { %v1908_v39 = vsel %vm519_vm0, %v1847_v35, 0.0  ;;  %6149 = vpow2.f32 %v1816_v50  ;;  %v1850_v46 = vmul.f32 %v6128_v59, %v14246_v30  ;;  %v1879_v56 = vsel %vm519_vm0, %v1848_v7, 0.0  ;;  %v14248_v35 = vld [vmem:[#allocation47_spill] sm:$0xff] }
 0x196   :  { %v1944_v62 = vadd.f32 %v1943_v52, %v1942_v24  ;;  %6151 = vpow2.f32 %v1820_v0  ;;  %v14247_v26 = vsub.f32 %v8896_v3, %v8950_v13  ;;  %v1945_v51 = vsel %vm519_vm0, %v6132_v44, 0.0  ;;  %v6136_v54 = vpop.eup %6135  ;;  %v14251_v7 = vld [vmem:[#allocation35_spill] sm:$0xff] }
 0x197   :  { %v1965_v1 = vadd.f32 %v1964_v12, %v1963_v60  ;;  %v1909_v49 = vadd.f32 %v1908_v39, %v1907_v6  ;;  %v1966_v50 = vsel %vm519_vm0, %v9133_v25, 0.0  ;;  %v9210_v59 = vmul.f32 %v9034_v47, %v14248_v35  ;;  %v14253_v12 = vld [vmem:[#allocation51_spill] sm:$0xff] }
 0x198   :  { %v1832_v27 = vmul.f32 1.442695, %v14247_v26  ;;  %v9214_v18 = vmul.f32 %v9034_v47, %v14249_v58  ;;  %v1851_v3 = vmul.f32 %v9200_v41, %v14246_v30  ;;  %v1880_v13 = vadd.f32 %v1879_v56, %v1878_v33  ;;  %v14254_v33 = vld [vmem:[#allocation52_spill] sm:$0xff] }
 0x199   :  { %v1910_v0 = vsel %vm519_vm0, %v1849_v4, 0.0  ;;  %v9221_v45 = vmul.f32 %v9034_v47, %v14250_v36  ;;  %v1852_v25 = vmul.f32 %v6132_v44, %v14251_v7  ;;  %v1881_v40 = vsel %vm519_vm0, %v1850_v46, 0.0  ;;  %v6138_v52 = vpop.eup %6137  ;;  %v14259_v36 = vld [vmem:[#allocation56_spill] sm:$0xff] }
 0x19a   :  { %v1946_v24 = vadd.f32 %v1945_v51, %v1944_v62  ;;  %v9227_v53 = vmul.f32 %v9034_v47, %v14252_v43  ;;  %v1947_v6 = vsel %vm519_vm0, %v6136_v54, 0.0  ;;  %v1967_v60 = vadd.f32 %v1966_v50, %v1965_v1  ;;  %v6140_v44 = vpop.eup %6139  ;;  %v14255_v62 = vld [vmem:[#allocation53_spill] sm:$0xff]  ;;  %v14256_v51 = vld [vmem:[#allocation54_spill] sm:$0xff] }
 0x19b   :  { %v9232_v4 = vmul.f32 %v9034_v47, %v14253_v12  ;;  %v9236_v39 = vmul.f32 %v9034_v47, %v14254_v33  ;;  %v1911_v56 = vadd.f32 %v1910_v0, %v1909_v49  ;;  %v1968_v46 = vsel %vm519_vm0, %v9149_v63, 0.0  ;;  %v6142_v50 = vpop.eup %6141  ;;  %v14257_v12 = vld [vmem:[#allocation55_spill] sm:$0xff]  ;;  %v14258_v0 = vld [vmem:[#allocation36_spill] sm:$0xff] }
 0x19c   :  { %v9242_v26 = vmul.f32 %v9034_v47, %v14255_v62  ;;  %v9246_v1 = vmul.f32 %v9034_v47, %v14256_v51  ;;  %v1853_v30 = vmul.f32 %v6138_v52, %v14251_v7  ;;  %v1882_v20 = vadd.f32 %v1881_v40, %v1880_v13  ;;  %v14260_v7 = vld [vmem:[#allocation57_spill] sm:$0xff] }
 0x19d   :  { %v1912_v33 = vsel %vm519_vm0, %v1851_v3, 0.0  ;;  %v9252_v49 = vmul.f32 %v9034_v47, %v14257_v12  ;;  %v1854_v63 = vmul.f32 %v6136_v54, %v14258_v0  ;;  %v1883_v43 = vsel %vm519_vm0, %v1852_v25, 0.0  ;;  %v14261_v3 = vld [vmem:[#allocation58_spill] sm:$0xff] }
 0x19e   :  { %v1948_v62 = vadd.f32 %v1947_v6, %v1946_v24  ;;  %v9258_v2 = vmul.f32 %v9034_v47, %v14259_v36  ;;  %v1949_v51 = vsel %vm519_vm0, %v6140_v44, 0.0  ;;  %v1969_v58 = vadd.f32 %v1968_v46, %v1967_v60  ;;  %v14263_v24 = vld [vmem:[#allocation59_spill] sm:$0xff] }
 0x19f   :  { %v9263_v13 = vmul.f32 %v9034_v47, %v14260_v7  ;;  %v9267_v40 = vmul.f32 %v9034_v47, %v14261_v3  ;;  %v9269_v12 = vpop.eup %6143  ;;  %6153 = vpow2.f32 %v9168_v32  ;;  %v1913_v54 = vadd.f32 %v1912_v33, %v1911_v56  ;;  %v14265_v3 = vld [vmem:[#allocation60_spill] sm:$0xff]  ;;  %v14267_v33 = vld [vmem:[#allocation61_spill] sm:$0xff] }
 0x1a0   :  { %14262 = vst [vmem:[#allocation87_spill] sm:$0xff] %v9269_v12  ;;  %v1970_v25 = vsel %vm519_vm0, %v9166_v22, 0.0  ;;  %v9276_v6 = vmul.f32 %v9034_v47, %v14263_v24  ;;  %v9278_v60 = vpop.eup %6145  ;;  %6155 = vpow2.f32 %v1828_v28  ;;  %v1884_v46 = vadd.f32 %v1883_v43, %v1882_v20 }
 0x1a1   :  { %14264 = vst [vmem:[#allocation98_spill] sm:$0xff] %v9278_v60  ;;  %v1914_v7 = vsel %vm519_vm0, %v1853_v30, 0.0  ;;  %v9283_v36 = vmul.f32 %v9034_v47, %v14265_v3  ;;  %v9285_v35 = vpop.eup %6147  ;;  %6157 = vpow2.f32 %v9190_v37  ;;  %v1885_v22 = vsel %vm519_vm0, %v1854_v63, 0.0  ;;  %v14277_v3 = vld [vmem:[#allocation63_spill] sm:$0xff] }
 0x1a2   :  { %14266 = vst [vmem:[#allocation84_spill] sm:$0xff] %v9285_v35  ;;  %v1950_v32 = vadd.f32 %v1949_v51, %v1948_v62  ;;  %v9291_v56 = vmul.f32 %v9034_v47, %v14267_v33  ;;  %v6150_v24 = vpop.eup %6149  ;;  %6159 = vpow2.f32 %v1832_v27  ;;  %v9294_v20 = vmul.f32 %v6142_v50, %v14258_v0 }
 0x1a3   :  { %v1951_v28 = vsel %vm519_vm0, %v9269_v12, 0.0  ;;  %v1971_v30 = vadd.f32 %v1970_v25, %v1969_v58  ;;  %v9298_v43 = vpop.eup %6151  ;;  %v9301_v37 = vmul.f32 %v6140_v44, %v14206_v31  ;;  %v9304_v62 = vmul.f32 %v6150_v24, %v14206_v31  ;;  %v14276_v31 = vld [vmem:[#allocation62_spill] sm:$0xff] }
 0x1a4   :  { %14268 = vst [vmem:[#allocation83_spill] sm:$0xff] %v9294_v20  ;;  %14269 = vst [vmem:[#allocation88_spill] sm:$0xff] %v9298_v43  ;;  %v9306_v51 = vadd.f32 %v1914_v7, %v1913_v54  ;;  %v1972_v27 = vsel %vm519_vm0, %v9185_v11, 0.0  ;;  %v9310_v63 = vadd.f32 %v1885_v22, %v1884_v46  ;;  %v9314_v0 = vsel %vm519_vm0, %v9278_v60, 0.0  ;;  %v14308_v12 = vld [vmem:[#allocation14_spill] sm:$0xff]  ;;  %v14311_v20 = vld [vmem:[#allocation25_spill] sm:$0xff] }
 0x1a5   :  { %14270 = vst [vmem:[#allocation82_spill] sm:$0xff] %v9301_v37  ;;  %14271 = vst [vmem:[#allocation86_spill] sm:$0xff] %v9304_v62  ;;  %v9318_v58 = vsel %vm519_vm0, %v9285_v35, 0.0  ;;  %v1974_v44 = vsel %vm519_vm0, %v9200_v41, 0.0  ;;  %v9322_v7 = vadd.f32 %v1951_v28, %v1950_v32  ;;  %v1976_v54 = vsel %vm519_vm0, %v6138_v52, 0.0  ;;  %v14278_v32 = vld [vmem:[#allocation64_spill] sm:$0xff] }
 0x1a6   :  { %14272 = vst [vmem:[#allocation77_spill] sm:$0xff] %v9306_v51  ;;  %14273 = vst [vmem:[#allocation89_spill] sm:$0xff] %v9310_v63  ;;  %v1978_v11 = vsel %vm519_vm0, %v6142_v50, 0.0  ;;  %v9327_v25 = vsel %vm519_vm0, %v6150_v24, 0.0  ;;  %v1973_v46 = vadd.f32 %v1972_v27, %v1971_v30  ;;  %v9331_v22 = vsel %vm519_vm0, %v9298_v43, 0.0  ;;  %v14279_v52 = vld [vmem:[#allocation65_spill] sm:$0xff] }
 0x1a7   :  { %14274 = vst [vmem:[#allocation99_spill] sm:$0xff] %v9318_v58  ;;  %14275 = vst [vmem:[#allocation101_spill] sm:$0xff] %v9331_v22  ;;  %v2029_v33 = vmul.f32 %v9034_v47, %v14276_v31  ;;  %v2030_v41 = vmul.f32 %v9034_v47, %v14277_v3  ;;  %v2031_v28 = vmul.f32 %v9034_v47, %v14278_v32  ;;  %v6509_v24 = vld [vmem:[%s13528_s0] sm:$0xff]  ;;  %v14280_v30 = vstv %s8995_s7  ;;  %v14283_v35 = vld [vmem:[#allocation67_spill] sm:$0xff]  ;;  %s12177_s7 = sld [smem:[#allocation3 + $0x7]] }
 0x1a8   :  { %v2032_v50 = vmul.f32 %v9034_v47, %v14279_v52  ;;  %v2042_v27 = vmul.f32 %v6509_v24, %v14280_v30  ;;  %v14281_v31 = vmov %v14280_v30  ;;  %v2033_v3 = vmul.f32 %v9034_v47, %v14282_v42  ;;  %v14287_v30 = vld [vmem:[#allocation71_spill] sm:$0xff]  ;;  %v14306_v58 = vld [vmem:[#allocation22_spill] sm:$0xff] }
 0x1a9   :  { %v2043_v55 = vmul.f32 %v6510_v17, %v14281_v31  ;;  %v2034_v32 = vmul.f32 %v9034_v47, %v14283_v35  ;;  %v2035_v52 = vmul.f32 %v9034_v47, %v14284_v8  ;;  %v2036_v29 = vmul.f32 %v9034_v47, %v14285_v48  ;;  %v14289_v17 = vld [vmem:[#allocation73_spill] sm:$0xff]  ;;  %v14291_v8 = vld [vmem:[#allocation10_spill] sm:$0xff]  ;;  %v14292_v48 = vld [vmem:[#allocation16_spill] sm:$0xff] }
 0x1aa   :  { %v2037_v24 = vmul.f32 %v9034_v47, %v14286_v10  ;;  %v2038_v23 = vmul.f32 %v9034_v47, %v14287_v30  ;;  %v2039_v31 = vmul.f32 %v9034_v47, %v14288_v38  ;;  %v2040_v42 = vmul.f32 %v9034_v47, %v14289_v17  ;;  %v14290_v35 = vld [vmem:[#allocation9_spill] sm:$0xff]  ;;  %v14293_v43 = vld [vmem:[#allocation19_spill] sm:$0xff] }
 0x1ab   :  { %v1975_v60 = vadd.f32 %v1974_v44, %v1973_v46  ;;  %v2077_v61 = vmul.f32 %v9044_v57, %v14290_v35  ;;  %v2078_v62 = vmul.f32 %v9044_v57, %v14291_v8  ;;  %v2079_v63 = vmul.f32 %v9044_v57, %v14292_v48 }
 0x1ac   :  { %v2044_v10 = vadd.f32 %v2042_v27, %v9050_v21  ;;  %v9375_v30 = vadd.f32 %v2043_v55, %v9054_v5  ;;  %v2046_v38 = vadd.f32 %v2042_v27, %v9058_v9  ;;  %v2080_v47 = vmul.f32 %v9044_v57, %v14293_v43  ;;  %v9380_v44 = vpop.eup %6153 }
 0x1ad   :  { %14294 = vst [vmem:[#allocation91_spill] sm:$0xff] %v9380_v44  ;;  %v9383_v46 = vadd.f32 %v2043_v55, %v9062_v14  ;;  %v2048_v8 = vadd.f32 %v2042_v27, %v9066_v34  ;;  %v9387_v35 = vadd.f32 %v2043_v55, %v9210_v59  ;;  %v2050_v21 = vadd.f32 %v2042_v27, %v9214_v18  ;;  %v9390_v48 = vpop.eup %6155  ;;  %v14307_v44 = vld [vmem:[#allocation24_spill] sm:$0xff] }
 0x1ae   :  { %14295 = vst [vmem:[#allocation103_spill] sm:$0xff] %v9390_v48  ;;  %v9393_v5 = vadd.f32 %v2043_v55, %v9221_v45  ;;  %v2052_v9 = vadd.f32 %v2042_v27, %v9227_v53  ;;  %v9397_v43 = vadd.f32 %v2043_v55, %v9232_v4  ;;  %v2054_v14 = vadd.f32 %v2042_v27, %v9236_v39  ;;  %v9400_v17 = vpop.eup %6157 }
 0x1af   :  { %14296 = vst [vmem:[#allocation102_spill] sm:$0xff] %v9400_v17  ;;  %v1977_v34 = vadd.f32 %v1976_v54, %v1975_v60  ;;  %v9403_v59 = vadd.f32 %v2043_v55, %v9242_v26  ;;  %v9406_v18 = vadd.f32 %v2042_v27, %v9246_v1  ;;  %v9409_v48 = vadd.f32 %v2043_v55, %v9252_v49  ;;  %v9411_v45 = vpop.eup %6159  ;;  %v14303_v17 = vld [vmem:[#allocation21_spill] sm:$0xff] }
 0x1b0   :  { %14297 = vst [vmem:[#allocation90_spill] sm:$0xff] %v9411_v45  ;;  %v2058_v53 = vadd.f32 %v2042_v27, %v9258_v2  ;;  %v9415_v4 = vadd.f32 %v2043_v55, %v9263_v13  ;;  %v9418_v39 = vadd.f32 %v2042_v27, %v9267_v40  ;;  %v9421_v60 = vadd.f32 %v2043_v55, %v9276_v6 }
 0x1b1   :  { %v9426_v26 = vadd.f32 %v2042_v27, %v9283_v36  ;;  %v9429_v1 = vadd.f32 %v2043_v55, %v9291_v56  ;;  %v9431_v49 = vadd.f32 %v2042_v27, %v2029_v33  ;;  %v9433_v2 = vadd.f32 %v2043_v55, %v2030_v41  ;;  %v14298_v36 = vld [vmem:[#allocation11_spill] sm:$0xff]  ;;  %v14300_v41 = vld [vmem:[#allocation18_spill] sm:$0xff] }
 0x1b2   :  { %v9435_v13 = vadd.f32 %v2042_v27, %v2031_v28  ;;  %v9437_v54 = vadd.f32 %v2043_v55, %v2032_v50  ;;  %v9439_v40 = vadd.f32 %v2042_v27, %v2033_v3  ;;  %v9441_v6 = vadd.f32 %v2043_v55, %v2034_v32 }
 0x1b3   :  { %v9443_v45 = vadd.f32 %v1978_v11, %v1977_v34  ;;  %v9445_v51 = vadd.f32 %v2042_v27, %v2035_v52  ;;  %v2081_v56 = vmul.f32 %v9044_v57, %v14298_v36  ;;  %v2082_v33 = vmul.f32 %v9044_v57, %v14299_v15  ;;  %v14302_v15 = vld [vmem:[#allocation20_spill] sm:$0xff] }
 0x1b4   :  { %v2112_v19 = vrot.slane %v2077_v61, %v14300_v41  ;;  %v2116_v28 = vrot.slane %v2078_v62, %v14300_v41  ;;  %v2120_v50 = vrot.slane %v2079_v63, %v14300_v41  ;;  %v2124_v3 = vrot.slane %v2080_v47, %v14300_v41  ;;  %v14304_v63 = vld [vmem:[#allocation13_spill] sm:$0xff] }
 0x1b5   :  { %v9455_v32 = vadd.f32 %v2043_v55, %v2036_v29  ;;  %v9457_v11 = vadd.f32 %v2042_v27, %v2037_v24  ;;  %v9459_v52 = vadd.f32 %v2043_v55, %v2038_v23  ;;  %v9461_v34 = vadd.f32 %v2042_v27, %v2039_v31  ;;  %v14305_v29 = vld [vmem:[#allocation15_spill] sm:$0xff] }
 0x1b6   :  { %v9463_v36 = vadd.f32 %v2043_v55, %v2040_v42  ;;  %v2083_v61 = vmul.f32 %v9044_v57, %v14302_v15  ;;  %v2084_v62 = vmul.f32 %v9044_v57, %v14303_v17  ;;  %v2085_v47 = vmul.f32 %v9044_v57, %v14304_v63 }
 0x1b7   :  { %v2086_v24 = vmul.f32 %v9044_v57, %v14305_v29  ;;  %v2087_v23 = vmul.f32 %v9044_v57, %v14306_v58  ;;  %v2128_v27 = vrot.slane %v2081_v56, %v14300_v41  ;;  %v2132_v42 = vrot.slane %v2082_v33, %v14300_v41  ;;  %v14310_v58 = vld [vmem:[#allocation23_spill] sm:$0xff] }
 0x1b8   :  { %14301 = vst [vmem:[#allocation104_spill] sm:$0xff] %v9463_v36  ;;  %v2189_v55 = vadd.f32 %v2112_v19, %v2044_v10  ;;  %v2191_v31 = vadd.f32 %v2116_v28, %v2046_v38  ;;  %v2193_v37 = vadd.f32 %v2120_v50, %v2048_v8  ;;  %v2195_v15 = vadd.f32 %v2124_v3, %v2050_v21 }
 0x1b9   :  { %v2088_v17 = vmul.f32 %v9044_v57, %v14307_v44  ;;  %v2089_v63 = vmul.f32 %v9044_v57, %v14308_v12  ;;  %v2090_v29 = vmul.f32 %v9044_v57, %v14309_v16  ;;  %v9484_v22 = vstv %s9423_s13 }
 0x1ba   :  { %v2091_v56 = vmul.f32 %v9044_v57, %v14310_v58  ;;  %v2092_v10 = vmul.f32 %v9044_v57, %v14311_v20  ;;  %v2136_v38 = vrot.slane %v2083_v61, %v14300_v41  ;;  %v2140_v8 = vrot.slane %v2084_v62, %v14300_v41  ;;  %v14334_v20 = vld [vmem:[#allocation89_spill] sm:$0xff] }
 0x1bb   :  { %v2144_v21 = vrot.slane %v2085_v47, %v14300_v41  ;;  %v2148_v33 = vrot.slane %v2086_v24, %v14300_v41  ;;  %v2197_v12 = vadd.f32 %v2128_v27, %v2052_v9  ;;  %v2199_v44 = vadd.f32 %v2132_v42, %v2054_v14 }
 0x1bc   :  { %v9495_v16 = vadd.f32 %v9484_v22, %v2189_v55  ;;  %v9498_v36 = vadd.f32 %v9484_v22, %v2191_v31  ;;  %v9501_v58 = vadd.f32 %v9484_v22, %v2193_v37  ;;  %v9504_v57 = vadd.f32 %v9484_v22, %v2195_v15 }
 0x1bd   :  { %v9507_v61 = vrot.slane %v2087_v23, %v14300_v41  ;;  %v9510_v62 = vrot.slane %v2088_v17, %v14300_v41  ;;  %v9513_v9 = vrot.slane %v2089_v63, %v14300_v41  ;;  %v9516_v14 = vrot.slane %v2090_v29, %v14300_v41 }
 0x1be   :  { %v2190_v47 = vadd.f32 %v2112_v19, %v9375_v30  ;;  %v2192_v37 = vadd.f32 %v2116_v28, %v9383_v46  ;;  %v2194_v24 = vadd.f32 %v2120_v50, %v9387_v35  ;;  %v2196_v15 = vadd.f32 %v2124_v3, %v9393_v5 }
 0x1bf   :  { %v2201_v23 = vadd.f32 %v2136_v38, %v9406_v18  ;;  %v2203_v55 = vadd.f32 %v2140_v8, %v2058_v53  ;;  %v9524_v17 = vadd.f32 %v9484_v22, %v2197_v12  ;;  %v9527_v63 = vadd.f32 %v9484_v22, %v2199_v44 }
 0x1c0   :  { %v2254_v29 = vsel %vm519_vm0, %v9495_v16, -inf  ;;  %v2255_v19 = vsel %vm519_vm0, %v9498_v36, -inf  ;;  %v2256_v35 = vsel %vm519_vm0, %v9501_v58, -inf  ;;  %v2258_v30 = vsel %vm519_vm0, %v9504_v57, -inf }
 0x1c1   :  { %v9538_v46 = vrot.slane %v2091_v56, %v14300_v41  ;;  %v9541_v12 = vrot.slane %v2092_v10, %v14300_v41  ;;  %v2198_v44 = vadd.f32 %v2128_v27, %v9397_v43  ;;  %v2200_v5 = vadd.f32 %v2132_v42, %v9403_v59 }
 0x1c2   :  { %v9546_v18 = vadd.f32 %v9484_v22, %v2190_v47  ;;  %v9549_v53 = vadd.f32 %v9484_v22, %v2192_v37  ;;  %v9552_v28 = vadd.f32 %v9484_v22, %v2194_v24  ;;  %v9555_v50 = vadd.f32 %v9484_v22, %v2196_v15 }
 0x1c3   :  { %v2205_v3 = vadd.f32 %v2144_v21, %v9418_v39  ;;  %v2207_v31 = vadd.f32 %v2148_v33, %v9426_v26  ;;  %v2257_v56 = vmax.f32 %v2254_v29, %v2256_v35  ;;  %v2259_v43 = vmax.f32 %v2255_v19, %v2258_v30 }
 0x1c4   :  { %v9560_v59 = vadd.f32 %v9484_v22, %v2201_v23  ;;  %v9563_v27 = vadd.f32 %v9484_v22, %v2203_v55  ;;  %v2260_v42 = vsel %vm519_vm0, %v9524_v17, -inf  ;;  %v2262_v10 = vsel %vm519_vm0, %v9527_v63, -inf }
 0x1c5   :  { %v2202_v47 = vadd.f32 %v2136_v38, %v9409_v48  ;;  %v2204_v39 = vadd.f32 %v2140_v8, %v9415_v4  ;;  %v9572_v26 = vadd.f32 %v9484_v22, %v2198_v44  ;;  %v9575_v37 = vadd.f32 %v9484_v22, %v2200_v5 }
 0x1c6   :  { %v2285_v24 = vsel %vm519_vm0, %v9546_v18, -inf  ;;  %v2286_v15 = vsel %vm519_vm0, %v9549_v53, -inf  ;;  %v2287_v23 = vsel %vm519_vm0, %v9552_v28, -inf  ;;  %v2289_v48 = vsel %vm519_vm0, %v9555_v50, -inf }
 0x1c7   :  { %v2209_v4 = vadd.f32 %v9507_v61, %v9431_v49  ;;  %v2211_v38 = vadd.f32 %v9510_v62, %v9435_v13  ;;  %v2261_v8 = vmax.f32 %v2257_v56, %v2260_v42  ;;  %v2263_v55 = vmax.f32 %v2259_v43, %v2262_v10 }
 0x1c8   :  { %v9590_v29 = vadd.f32 %v9484_v22, %v2205_v3  ;;  %v9593_v19 = vadd.f32 %v9484_v22, %v2207_v31  ;;  %v2264_v35 = vsel %vm519_vm0, %v9560_v59, -inf  ;;  %v2266_v30 = vsel %vm519_vm0, %v9563_v27, -inf }
 0x1c9   :  { %v2206_v44 = vadd.f32 %v2144_v21, %v9421_v60  ;;  %v2208_v49 = vadd.f32 %v2148_v33, %v9429_v1  ;;  %v2288_v5 = vmax.f32 %v2285_v24, %v2287_v23  ;;  %v2290_v13 = vmax.f32 %v2286_v15, %v2289_v48 }
 0x1ca   :  { %v9602_v56 = vadd.f32 %v9484_v22, %v2202_v47  ;;  %v9605_v3 = vadd.f32 %v9484_v22, %v2204_v39  ;;  %v2291_v31 = vsel %vm519_vm0, %v9572_v26, -inf  ;;  %v2293_v43 = vsel %vm519_vm0, %v9575_v37, -inf }
 0x1cb   :  { %v2213_v42 = vadd.f32 %v9513_v9, %v9439_v40  ;;  %v2215_v60 = vadd.f32 %v9516_v14, %v9445_v51  ;;  %v2265_v1 = vmax.f32 %v2261_v8, %v2264_v35  ;;  %v2267_v21 = vmax.f32 %v2263_v55, %v2266_v30 }
 0x1cc   :  { %v9616_v33 = vadd.f32 %v9484_v22, %v2209_v4  ;;  %v9619_v10 = vadd.f32 %v9484_v22, %v2211_v38  ;;  %v2268_v47 = vsel %vm519_vm0, %v9590_v29, -inf  ;;  %v2270_v39 = vsel %vm519_vm0, %v9593_v19, -inf }
 0x1cd   :  { %v2210_v40 = vadd.f32 %v9507_v61, %v9433_v2  ;;  %v2212_v51 = vadd.f32 %v9510_v62, %v9437_v54  ;;  %v2292_v24 = vmax.f32 %v2288_v5, %v2291_v31  ;;  %v2294_v15 = vmax.f32 %v2290_v13, %v2293_v43 }
 0x1ce   :  { %v9630_v23 = vadd.f32 %v9484_v22, %v2206_v44  ;;  %v9633_v48 = vadd.f32 %v9484_v22, %v2208_v49  ;;  %v2295_v4 = vsel %vm519_vm0, %v9602_v56, -inf  ;;  %v2297_v38 = vsel %vm519_vm0, %v9605_v3, -inf }
 0x1cf   :  { %v2217_v2 = vadd.f32 %v9538_v46, %v9457_v11  ;;  %v2219_v54 = vadd.f32 %v9541_v12, %v9461_v34  ;;  %v2269_v61 = vmax.f32 %v2265_v1, %v2268_v47  ;;  %v2271_v62 = vmax.f32 %v2267_v21, %v2270_v39 }
 0x1d0   :  { %14312 = vst [vmem:[#allocation105_spill] sm:$0xff] %v9633_v48  ;;  %v9644_v8 = vadd.f32 %v9484_v22, %v2213_v42  ;;  %v9647_v55 = vadd.f32 %v9484_v22, %v2215_v60  ;;  %v2272_v35 = vsel %vm519_vm0, %v9616_v33, -inf  ;;  %v2274_v30 = vsel %vm519_vm0, %v9619_v10, -inf }
 0x1d1   :  { %v2214_v11 = vadd.f32 %v9513_v9, %v9441_v6  ;;  %v2216_v34 = vadd.f32 %v9516_v14, %v9455_v32  ;;  %v2296_v44 = vmax.f32 %v2292_v24, %v2295_v4  ;;  %v2298_v49 = vmax.f32 %v2294_v15, %v2297_v38  ;;  %v14319_v15 = vld [vmem:[#allocation83_spill] sm:$0xff] }
 0x1d2   :  { %v9658_v5 = vadd.f32 %v9484_v22, %v2210_v40  ;;  %v9661_v13 = vadd.f32 %v9484_v22, %v2212_v51  ;;  %v2299_v31 = vsel %vm519_vm0, %v9630_v23, -inf  ;;  %v2301_v43 = vsel %vm519_vm0, %v9633_v48, -inf  ;;  %v14348_v48 = vld [vmem:[#allocation75_spill] sm:$0xff] }
 0x1d3   :  { %v1954_v6 = vadd.f32 %v9314_v0, %v9322_v7  ;;  %v1981_v32 = vadd.f32 %v9327_v25, %v9443_v45  ;;  %v2273_v9 = vmax.f32 %v2269_v61, %v2272_v35  ;;  %v2275_v14 = vmax.f32 %v2271_v62, %v2274_v30  ;;  %v14316_v7 = vld [vmem:[#allocation104_spill] sm:$0xff]  ;;  %v14323_v62 = vld [vmem:[#allocation91_spill] sm:$0xff] }
 0x1d4   :  { %14313 = vst [vmem:[#allocation106_spill] sm:$0xff] %v9658_v5  ;;  %14314 = vst [vmem:[#allocation107_spill] sm:$0xff] %v9661_v13  ;;  %v9672_v42 = vadd.f32 %v9484_v22, %v2217_v2  ;;  %v9675_v60 = vadd.f32 %v9484_v22, %v2219_v54  ;;  %v2276_v1 = vsel %vm519_vm0, %v9644_v8, -inf  ;;  %v2278_v21 = vsel %vm519_vm0, %v9647_v55, -inf  ;;  %v14321_v2 = vld [vmem:[#allocation38_spill] sm:$0xff]  ;;  %v14322_v54 = vld [vmem:[#allocation87_spill] sm:$0xff] }
 0x1d5   :  { %v2218_v0 = vadd.f32 %v9538_v46, %v9459_v52  ;;  %v2220_v25 = vadd.f32 %v9541_v12, %v14316_v7  ;;  %v2300_v45 = vmax.f32 %v2296_v44, %v2299_v31  ;;  %v2302_v47 = vmax.f32 %v2298_v49, %v2301_v43  ;;  %v14320_v46 = vld [vmem:[#allocation101_spill] sm:$0xff]  ;;  %v14325_v49 = vld [vmem:[#allocation99_spill] sm:$0xff]  ;;  %v14328_v7 = vld [vmem:[#allocation102_spill] sm:$0xff] }
 0x1d6   :  { %14315 = vst [vmem:[#allocation108_spill] sm:$0xff] %v9675_v60  ;;  %v9686_v39 = vadd.f32 %v9484_v22, %v2214_v11  ;;  %v9689_v40 = vadd.f32 %v9484_v22, %v2216_v34  ;;  %v2303_v51 = vsel %vm519_vm0, %v9658_v5, -inf  ;;  %v2305_v24 = vsel %vm519_vm0, %v9661_v13, -inf  ;;  %v14324_v34 = vld [vmem:[#allocation82_spill] sm:$0xff] }
 0x1d7   :  { %v1916_v52 = vsel %vm519_vm0, %v14319_v15, 0.0  ;;  %v1983_v4 = vadd.f32 %v14320_v46, %v1981_v32  ;;  %v2277_v12 = vmax.f32 %v2273_v9, %v2276_v1  ;;  %v2279_v38 = vmax.f32 %v2275_v14, %v2278_v21 }
 0x1d8   :  { %14317 = vst [vmem:[#allocation104_spill] sm:$0xff] %v9686_v39  ;;  %14318 = vst [vmem:[#allocation109_spill] sm:$0xff] %v9689_v40  ;;  %v1858_v61 = vmul.f32 %v14322_v54, %v14321_v2  ;;  %v1984_v35 = vsel %vm519_vm0, %v14323_v62, 0.0  ;;  %v2280_v30 = vsel %vm519_vm0, %v9672_v42, -inf  ;;  %v2282_v11 = vsel %vm519_vm0, %v9675_v60, -inf }
 0x1d9   :  { %v1887_v44 = vsel %vm519_vm0, %v14324_v34, 0.0  ;;  %v1956_v31 = vadd.f32 %v14325_v49, %v1954_v6  ;;  %v2304_v43 = vmax.f32 %v2300_v45, %v2303_v51  ;;  %v2306_v32 = vmax.f32 %v2302_v47, %v2305_v24  ;;  %v14329_v45 = vld [vmem:[#allocation85_spill] sm:$0xff]  ;;  %v14333_v34 = vld [vmem:[#allocation88_spill] sm:$0xff] }
 0x1da   :  { %v9710_v9 = vadd.f32 %v9484_v22, %v2218_v0  ;;  %v9713_v14 = vadd.f32 %v9484_v22, %v2220_v25  ;;  %v2307_v1 = vsel %vm519_vm0, %v9686_v39, -inf  ;;  %v2309_v21 = vsel %vm519_vm0, %v9689_v40, -inf  ;;  %v14330_v0 = vld [vmem:[#allocation81_spill] sm:$0xff]  ;;  %v14332_v25 = vld [vmem:[#allocation103_spill] sm:$0xff] }
 0x1db   :  { %v1957_v15 = vsel %vm519_vm0, %v14328_v7, 0.0  ;;  %v1985_v46 = vadd.f32 %v1984_v35, %v1983_v4  ;;  %v2281_v54 = vmax.f32 %v2277_v12, %v2280_v30  ;;  %v2283_v6 = vmax.f32 %v2279_v38, %v2282_v11  ;;  %v14331_v51 = vld [vmem:[#allocation77_spill] sm:$0xff]  ;;  %v14335_v4 = vld [vmem:[#allocation86_spill] sm:$0xff]  ;;  %v14336_v30 = vld [vmem:[#allocation39_spill] sm:$0xff] }
 0x1dc   :  { %14326 = vst [vmem:[#allocation83_spill] sm:$0xff] %v9710_v9  ;;  %14327 = vst [vmem:[#allocation101_spill] sm:$0xff] %v9713_v14  ;;  %v1344_v47 = vsel %vm519_vm0, %v14329_v45, 0.0  ;;  %6161 = vrcp.f32 %v14330_v0  ;;  %v1917_v22 = vadd.f32 %v1916_v52, %v14331_v51  ;;  %v1986_v24 = vsel %vm519_vm0, %v14332_v25, 0.0  ;;  %v14337_v11 = vld [vmem:[#allocation98_spill] sm:$0xff] }
 0x1dd   :  { %v1859_v49 = vmul.f32 %v14333_v34, %v14321_v2  ;;  %v1888_v41 = vadd.f32 %v1887_v44, %v14334_v20  ;;  %v2308_v40 = vmax.f32 %v2304_v43, %v2307_v1  ;;  %v2310_v39 = vmax.f32 %v2306_v32, %v2309_v21  ;;  %v14338_v20 = vld [vmem:[#allocation41_spill] sm:$0xff]  ;;  %v14339_v44 = vld [vmem:[#allocation100_spill] sm:$0xff]  ;;  %v14340_v32 = vld [vmem:[#allocation79_spill] sm:$0xff] }
 0x1de   :  { %v1918_v12 = vsel %vm519_vm0, %v14335_v4, 0.0  ;;  %v1958_v38 = vadd.f32 %v1957_v15, %v1956_v31  ;;  %v2311_v35 = vsel %vm519_vm0, %v9710_v9, -inf  ;;  %v2313_v52 = vsel %vm519_vm0, %v9713_v14, -inf  ;;  %v14341_v1 = vld [vmem:[#allocation97_spill] sm:$0xff]  ;;  %v14342_v15 = vld [vmem:[#allocation90_spill] sm:$0xff]  ;;  %v14343_v2 = vld [vmem:[#allocation96_spill] sm:$0xff] }
 0x1df   :  { %v1860_v45 = vmul.f32 %v14337_v11, %v14336_v30  ;;  %v1889_v0 = vsel %vm519_vm0, %v1858_v61, 0.0  ;;  %v1987_v51 = vadd.f32 %v1986_v24, %v1985_v46  ;;  %v9739_v34 = vmax.f32 %v2281_v54, %v2283_v6  ;;  %v14344_v11 = vld [vmem:[#allocation94_spill] sm:$0xff]  ;;  %v14345_v9 = vld [vmem:[#allocation40_spill] sm:$0xff] }
 0x1e0   :  { %v1286_v43 = vmul.f32 %v14339_v44, %v14338_v20  ;;  %v1315_v31 = vsel %vm519_vm0, %v14340_v32, 0.0  ;;  %v1345_v21 = vadd.f32 %v1344_v47, %v14341_v1  ;;  %v1988_v4 = vsel %vm519_vm0, %v14342_v15, 0.0  ;;  %v14346_v32 = vld [vmem:[#allocation84_spill] sm:$0xff] }
 0x1e1   :  { %v1287_v14 = vmul.f32 %v14343_v2, %v14338_v20  ;;  %v1346_v61 = vsel %vm519_vm0, %v14344_v11, 0.0  ;;  %v2312_v46 = vmax.f32 %v2308_v40, %v2311_v35  ;;  %v2314_v54 = vmax.f32 %v2310_v39, %v2313_v52  ;;  %v14347_v2 = vld [vmem:[#allocation76_spill] sm:$0xff] }
 0x1e2   :  { %v1890_v6 = vadd.f32 %v1889_v0, %v1888_v41  ;;  %v1919_v24 = vadd.f32 %v1918_v12, %v1917_v22  ;;  %v1920_v44 = vsel %vm519_vm0, %v1859_v49, 0.0  ;;  %6163 = vrcp.f32 %v1958_v38  ;;  %v14349_v40 = vld [vmem:[#allocation92_spill] sm:$0xff]  ;;  %v14350_v22 = vld [vmem:[#allocation93_spill] sm:$0xff]  ;;  %v14351_v12 = vld [vmem:[#allocation78_spill] sm:$0xff] }
 0x1e3   :  { %v1862_v13 = vmul.f32 %v14346_v32, %v14345_v9  ;;  %v1891_v47 = vsel %vm519_vm0, %v1860_v45, 0.0  ;;  %v1989_v1 = vadd.f32 %v1988_v4, %v1987_v51  ;;  %v2316_v5 = vsub.f32 %v9495_v16, %v9739_v34 }
 0x1e4   :  { %v740_v60 = vadd.f32 %v14348_v48, %v14347_v2  ;;  %v1861_v39 = vmul.f32 %v14323_v62, %v14336_v30  ;;  %v2318_v41 = vsub.f32 %v9498_v36, %v9739_v34  ;;  %v771_v49 = vadd.f32 %v14350_v22, %v14349_v40  ;;  %v14430_v30 = vld [vmem:[#allocation9_spill] sm:$0xff] }
 0x1e5   :  { %v1316_v38 = vadd.f32 %v1315_v31, %v14351_v12  ;;  %v1347_v35 = vadd.f32 %v1346_v61, %v1345_v21  ;;  %v9767_v52 = vmax.f32 %v2312_v46, %v2314_v54  ;;  %v1317_v45 = vsel %vm519_vm0, %v1286_v43, 0.0 }
 0x1e6   :  { %v1348_v16 = vsel %vm519_vm0, %v1287_v14, 0.0  ;;  %v1892_v0 = vadd.f32 %v1891_v47, %v1890_v6  ;;  %v1921_v48 = vadd.f32 %v1920_v44, %v1919_v24  ;;  %v1864_v62 = vmul.f32 %v14328_v7, %v14338_v20  ;;  %v14352_v14 = vld [vmem:[#allocation95_spill] sm:$0xff] }
 0x1e7   :  { %v1893_v51 = vsel %vm519_vm0, %v1862_v13, 0.0  ;;  %6165 = vrcp.f32 %v1989_v1  ;;  %v2348_v36 = vmul.f32 1.442695, %v2316_v5  ;;  %v1863_v4 = vmul.f32 %v14332_v25, %v14345_v9  ;;  %v14353_v13 = vld [vmem:[#allocation80_spill] sm:$0xff]  ;;  %v14354_v1 = vld [vmem:[#allocation74_spill] sm:$0xff] }
 0x1e8   :  { %v1922_v31 = vsel %vm519_vm0, %v1861_v39, 0.0  ;;  %v2320_v21 = vsub.f32 %v9501_v58, %v9739_v34  ;;  %v2352_v43 = vmul.f32 1.442695, %v2318_v41  ;;  %v835_v61 = vmul.f32 %v14352_v14, %v740_v60 }
 0x1e9   :  { %v6162_v11 = vpop.eup %6161  ;;  %v1318_v46 = vadd.f32 %v1317_v45, %v1316_v38  ;;  %v1349_v54 = vadd.f32 %v1348_v16, %v1347_v35  ;;  %v2317_v7 = vsub.f32 %v9546_v18, %v9767_v52  ;;  %v837_v6 = vmul.f32 %v14353_v13, %v771_v49  ;;  %v14361_v13 = vld [vmem:[#allocation44_spill] sm:$0xff] }
 0x1ea   :  { %v1894_v5 = vadd.f32 %v1893_v51, %v1892_v0  ;;  %v2319_v25 = vsub.f32 %v9549_v53, %v9767_v52  ;;  %v1865_v24 = vmul.f32 %v14342_v15, %v14338_v20  ;;  %v1895_v58 = vsel %vm519_vm0, %v1864_v62, 0.0 }
 0x1eb   :  { %v1923_v44 = vadd.f32 %v1922_v31, %v1921_v48  ;;  %6167 = vpow2.f32 %v2348_v36  ;;  %v1924_v60 = vsel %vm519_vm0, %v1863_v4, 0.0  ;;  %v2322_v32 = vsub.f32 %v9504_v57, %v9739_v34 }
 0x1ec   :  { %6169 = vpow2.f32 %v2352_v43  ;;  %v2356_v18 = vmul.f32 1.442695, %v2320_v21  ;;  %v838_v47 = vsel %vm519_vm0, %v835_v61, 0.0  ;;  %v1413_v2 = vmul.f32 %v14354_v1, %v1318_v46  ;;  %v14359_v46 = vld [vmem:[#allocation42_spill] sm:$0xff] }
 0x1ed   :  { %v1415_v53 = vmul.f32 %v6162_v11, %v1349_v54  ;;  %v2350_v39 = vmul.f32 1.442695, %v2317_v7  ;;  %v839_v15 = vsel %vm519_vm0, %v837_v6, 0.0  ;;  %v1896_v41 = vadd.f32 %v1895_v58, %v1894_v5  ;;  %v14360_v54 = vld [vmem:[#allocation43_spill] sm:$0xff] }
 0x1ee   :  { %v2321_v40 = vsub.f32 %v9552_v28, %v9767_v52  ;;  %v2354_v22 = vmul.f32 1.442695, %v2319_v25  ;;  %v1925_v12 = vadd.f32 %v1924_v60, %v1923_v44  ;;  %v1926_v57 = vsel %vm519_vm0, %v1865_v24, 0.0  ;;  %v14362_v24 = vld [vmem:[#allocation45_spill] sm:$0xff] }
 0x1ef   :  { %v6164_v49 = vpop.eup %6163  ;;  %v2324_v38 = vsub.f32 %v9524_v17, %v9739_v34  ;;  %6171 = vpow2.f32 %v2356_v18  ;;  %v2360_v35 = vmul.f32 1.442695, %v2322_v32  ;;  %v9799_v45 = vadd.f32 %v839_v15, %v838_v47  ;;  %v14363_v47 = vld [vmem:[#allocation46_spill] sm:$0xff] }
 0x1f0   :  { %v1416_v16 = vsel %vm519_vm0, %v1413_v2, 0.0  ;;  %v1417_v0 = vsel %vm519_vm0, %v1415_v53, 0.0  ;;  %6173 = vpow2.f32 %v2350_v39  ;;  %v1991_v48 = vmul.f32 %v6164_v49, %v1896_v41 }
 0x1f1   :  { %14355 = vst [vmem:[#allocation87_spill] sm:$0xff] %v9799_v45  ;;  %v2323_v28 = vsub.f32 %v9555_v50, %v9767_v52  ;;  %6175 = vpow2.f32 %v2354_v22  ;;  %v2358_v62 = vmul.f32 1.442695, %v2321_v40  ;;  %v1927_v51 = vadd.f32 %v1926_v57, %v1925_v12  ;;  %v14364_v12 = vld [vmem:[#allocation108_spill] sm:$0xff]  ;;  %v14373_v57 = vld [vmem:[#allocation83_spill] sm:$0xff]  ;;  %v14431_v45 = vld [vmem:[#allocation10_spill] sm:$0xff] }
 0x1f2   :  { %v2326_v17 = vsub.f32 %v9527_v63, %v9739_v34  ;;  %6177 = vpow2.f32 %v2360_v35  ;;  %v2364_v4 = vmul.f32 1.442695, %v2324_v38  ;;  %v9807_v31 = vstv %s5822_s14 }
 0x1f3   :  { %v9810_v43 = vadd.f32 %v1417_v0, %v1416_v16  ;;  %v9813_v11 = vsel %vm519_vm0, %v1991_v48, 0.0  ;;  %v2325_v50 = vsub.f32 %v9572_v26, %v9767_v52  ;;  %6179 = vpow2.f32 %v2358_v62  ;;  %v14365_v16 = vld [vmem:[#allocation26_spill] sm:$0xff]  ;;  %v14366_v48 = vld [vmem:[#allocation27_spill] sm:$0xff] }
 0x1f4   :  { %v6166_v36 = vpop.eup %6165  ;;  %14357 = vst [vmem:[#allocation82_spill] sm:$0xff] %v9813_v11  ;;  %v2362_v14 = vmul.f32 1.442695, %v2323_v28  ;;  %v9821_v63 = vmul.f32 %v9807_v31, %v14359_v46  ;;  %v9825_v7 = vmul.f32 %v9807_v31, %v14360_v54  ;;  %v9829_v6 = vmul.f32 %v9807_v31, %v14361_v13  ;;  %v14425_v54 = vld [vmem:[#allocation70_spill] sm:$0xff] }
 0x1f5   :  { %14356 = vst [vmem:[#allocation91_spill] sm:$0xff] %v9810_v43  ;;  %v9817_v61 = vmul.f32 %v6166_v36, %v1927_v51  ;;  %v2328_v26 = vsub.f32 %v9560_v59, %v9739_v34  ;;  %6181 = vpow2.f32 %v2364_v4  ;;  %v2368_v25 = vmul.f32 1.442695, %v2326_v17  ;;  %v14433_v43 = vld [vmem:[#allocation16_spill] sm:$0xff] }
 0x1f6   :  { %v9835_v58 = vmul.f32 %v9807_v31, %v14362_v24  ;;  %v2330_v60 = vsub.f32 %v9563_v27, %v9739_v34  ;;  %v2332_v32 = vsub.f32 %v9590_v29, %v9739_v34  ;;  %v2334_v18 = vsub.f32 %v9593_v19, %v9739_v34  ;;  %v14423_v24 = vld [vmem:[#allocation68_spill] sm:$0xff] }
 0x1f7   :  { %14358 = vst [vmem:[#allocation99_spill] sm:$0xff] %v9817_v61  ;;  %v9845_v1 = vmul.f32 %v9807_v31, %v14363_v47  ;;  %v2327_v59 = vsub.f32 %v9575_v37, %v9767_v52  ;;  %v2336_v2 = vsub.f32 %v9616_v33, %v9739_v34  ;;  %6183 = vpow2.f32 %v2362_v14 }
 0x1f8   :  { %v6168_v5 = vpop.eup %6167  ;;  %v2366_v53 = vmul.f32 1.442695, %v2325_v50  ;;  %6185 = vpow2.f32 %v2368_v25  ;;  %v2372_v15 = vmul.f32 1.442695, %v2328_v26  ;;  %v2329_v40 = vsub.f32 %v9602_v56, %v9767_v52  ;;  %v14367_v56 = vld [vmem:[#allocation105_spill] sm:$0xff]  ;;  %v14369_v26 = vld [vmem:[#allocation107_spill] sm:$0xff] }
 0x1f9   :  { %v6170_v44 = vpop.eup %6169  ;;  %v2506_v37 = vsel %vm519_vm0, %v6168_v5, 0.0  ;;  %v2331_v22 = vsub.f32 %v9605_v3, %v9767_v52  ;;  %v2333_v49 = vsub.f32 %v9630_v23, %v9767_v52  ;;  %v2370_v35 = vmul.f32 1.442695, %v2327_v59  ;;  %v14368_v3 = vld [vmem:[#allocation106_spill] sm:$0xff] }
 0x1fa   :  { %v2507_v33 = vsel %vm519_vm0, %v6170_v44, 0.0  ;;  %6187 = vpow2.f32 %v2366_v53  ;;  %v2412_v0 = vmul.f32 %v6168_v5, %v14365_v16  ;;  %v2414_v28 = vmul.f32 %v6170_v44, %v14366_v48  ;;  %v14370_v44 = vld [vmem:[#allocation104_spill] sm:$0xff]  ;;  %v14371_v53 = vld [vmem:[#allocation109_spill] sm:$0xff] }
 0x1fb   :  { %v2335_v51 = vsub.f32 %v14367_v56, %v9767_v52  ;;  %v2337_v36 = vsub.f32 %v14368_v3, %v9767_v52  ;;  %v2376_v23 = vmul.f32 1.442695, %v2330_v60  ;;  %v2508_v17 = vadd.f32 %v2507_v33, %v2506_v37 }
 0x1fc   :  { %v6172_v41 = vpop.eup %6171  ;;  %6189 = vpow2.f32 %v2372_v15  ;;  %v2339_v25 = vsub.f32 %v14369_v26, %v9767_v52  ;;  %v2341_v59 = vsub.f32 %v14370_v44, %v9767_v52  ;;  %v2343_v60 = vsub.f32 %v14371_v53, %v9767_v52  ;;  %v14372_v15 = vld [vmem:[#allocation28_spill] sm:$0xff] }
 0x1fd   :  { %v9869_v38 = vpop.eup %6173  ;;  %v2509_v14 = vsel %vm519_vm0, %v6172_v41, 0.0  ;;  %v2374_v37 = vmul.f32 1.442695, %v2329_v40  ;;  %6191 = vpow2.f32 %v2370_v35  ;;  %v2416_v33 = vmul.f32 %v6172_v41, %v14372_v15 }
 0x1fe   :  { %v9873_v62 = vpop.eup %6175  ;;  %v2413_v4 = vmul.f32 %v9869_v38, %v14365_v16  ;;  %v2444_v56 = vsel %vm519_vm0, %v2412_v0, 0.0  ;;  %v2445_v3 = vsel %vm519_vm0, %v2414_v28, 0.0  ;;  %v2345_v39 = vsub.f32 %v14373_v57, %v9767_v52  ;;  %v14374_v28 = vld [vmem:[#allocation101_spill] sm:$0xff] }
 0x1ff   :  { %v2415_v50 = vmul.f32 %v9873_v62, %v14366_v48  ;;  %v6178_v5 = vpop.eup %6177  ;;  %6193 = vpow2.f32 %v2376_v23  ;;  %v2380_v26 = vmul.f32 1.442695, %v2332_v32  ;;  %v2510_v19 = vadd.f32 %v2509_v14, %v2508_v17  ;;  %v14375_v32 = vld [vmem:[#allocation29_spill] sm:$0xff] }
 0x200   :  { %v9893_v21 = vpop.eup %6179  ;;  %v2475_v40 = vsel %vm519_vm0, %v2413_v4, 0.0  ;;  %v2511_v41 = vsel %vm519_vm0, %v6178_v5, 0.0  ;;  %v2347_v53 = vsub.f32 %v14374_v28, %v9767_v52  ;;  %v2378_v29 = vmul.f32 1.442695, %v2331_v22 }
 0x201   :  { %v2417_v44 = vmul.f32 %v9893_v21, %v14372_v15  ;;  %v2476_v35 = vsel %vm519_vm0, %v2415_v50, 0.0  ;;  %v2382_v27 = vmul.f32 1.442695, %v2333_v49  ;;  %v2446_v48 = vadd.f32 %v2445_v3, %v2444_v56  ;;  %v14378_v56 = vld [vmem:[#allocation30_spill] sm:$0xff] }
 0x202   :  { %v6182_v0 = vpop.eup %6181  ;;  %6195 = vpow2.f32 %v2374_v37  ;;  %v2384_v57 = vmul.f32 1.442695, %v2334_v18  ;;  %v2418_v23 = vmul.f32 %v6178_v5, %v14375_v32  ;;  %v2447_v17 = vsel %vm519_vm0, %v2416_v33, 0.0 }
 0x203   :  { %v2386_v4 = vmul.f32 1.442695, %v2335_v51  ;;  %v2388_v15 = vmul.f32 1.442695, %v2336_v2  ;;  %v2477_v50 = vadd.f32 %v2476_v35, %v2475_v40  ;;  %v2512_v16 = vadd.f32 %v2511_v41, %v2510_v19 }
 0x204   :  { %v9906_v14 = vpop.eup %6183  ;;  %6197 = vpow2.f32 %v2380_v26  ;;  %v2478_v52 = vsel %vm519_vm0, %v2417_v44, 0.0  ;;  %v2513_v22 = vsel %vm519_vm0, %v6182_v0, 0.0  ;;  %v9912_v18 = vmul.f32 1.442695, %v2337_v36 }
 0x205   :  { %v2419_v47 = vmul.f32 %v9906_v14, %v14375_v32  ;;  %v6186_v49 = vpop.eup %6185  ;;  %v14376_v5 = vsub.f32 %v9619_v10, %v9739_v34  ;;  %v9917_v33 = vmul.f32 1.442695, %v2339_v25  ;;  %v2448_v2 = vadd.f32 %v2447_v17, %v2446_v48 }
 0x206   :  { %6199 = vpow2.f32 %v2378_v29  ;;  %v14377_v19 = vsub.f32 %v9644_v8, %v9739_v34  ;;  %v2420_v3 = vmul.f32 %v6182_v0, %v14378_v56  ;;  %v2449_v26 = vsel %vm519_vm0, %v2418_v23, 0.0 }
 0x207   :  { %v2392_v37 = vmul.f32 1.442695, %v14376_v5  ;;  %v9926_v44 = vpop.eup %6187  ;;  %v9928_v36 = vmul.f32 1.442695, %v2341_v59  ;;  %v14379_v10 = vsub.f32 %v9647_v55, %v9739_v34  ;;  %v2479_v48 = vadd.f32 %v2478_v52, %v2477_v50 }
 0x208   :  { %v9922_v51 = vmul.f32 1.442695, %v14377_v19  ;;  %v2514_v29 = vadd.f32 %v2513_v22, %v2512_v16  ;;  %6201 = vpow2.f32 %v2384_v57  ;;  %v2421_v8 = vmul.f32 %v9926_v44, %v14378_v56  ;;  %v14384_v19 = vld [vmem:[#allocation47_spill] sm:$0xff] }
 0x209   :  { %v9933_v25 = vmul.f32 1.442695, %v14379_v10  ;;  %v2480_v40 = vsel %vm519_vm0, %v2419_v47, 0.0  ;;  %v2515_v35 = vsel %vm519_vm0, %v6186_v49, 0.0  ;;  %v6190_v41 = vpop.eup %6189  ;;  %v9939_v0 = vmul.f32 1.442695, %v2343_v60 }
 0x20a   :  { %v14380_v59 = vsub.f32 %v9672_v42, %v9739_v34  ;;  %v9946_v55 = vmul.f32 1.442695, %v2345_v39  ;;  %v2450_v23 = vadd.f32 %v2449_v26, %v2448_v2  ;;  %6203 = vpow2.f32 %v2382_v27  ;;  %v14382_v47 = vld [vmem:[#allocation31_spill] sm:$0xff]  ;;  %v9955_v60 = vpop.eup %6191 }
 0x20b   :  { %v14381_v16 = vsub.f32 %v14364_v12, %v9739_v34  ;;  %v2422_v17 = vmul.f32 %v6186_v49, %v14382_v47  ;;  %v2451_v50 = vsel %vm519_vm0, %v2420_v3, 0.0  ;;  %v2481_v52 = vadd.f32 %v2480_v40, %v2479_v48 }
 0x20c   :  { %v9944_v28 = vmul.f32 1.442695, %v14380_v59  ;;  %v2516_v22 = vadd.f32 %v2515_v35, %v2514_v29  ;;  %v2537_v42 = vsel %vm519_vm0, %v9869_v38, 0.0  ;;  %v2538_v39 = vsel %vm519_vm0, %v9873_v62, 0.0  ;;  %v6194_v27 = vpop.eup %6193  ;;  %v14385_v38 = vld [vmem:[#allocation48_spill] sm:$0xff] }
 0x20d   :  { %v9951_v57 = vmul.f32 1.442695, %v14381_v16  ;;  %6205 = vpow2.f32 %v2388_v15  ;;  %v2423_v34 = vmul.f32 %v9955_v60, %v14382_v47  ;;  %v2482_v12 = vsel %vm519_vm0, %v2421_v8, 0.0  ;;  %v14386_v62 = vld [vmem:[#allocation32_spill] sm:$0xff] }
 0x20e   :  { %v2517_v49 = vsel %vm519_vm0, %v6190_v41, 0.0  ;;  %v9965_v5 = vmul.f32 1.442695, %v2347_v53  ;;  %v2452_v2 = vadd.f32 %v2451_v50, %v2450_v23  ;;  %v9969_v3 = vmul.f32 %v9807_v31, %v14384_v19  ;;  %v14387_v23 = vld [vmem:[#allocation49_spill] sm:$0xff]  ;;  %v14388_v50 = vld [vmem:[#allocation50_spill] sm:$0xff]  ;;  %v14421_v19 = vld [vmem:[#allocation67_spill] sm:$0xff] }
 0x20f   :  { %v9973_v26 = vmul.f32 %v9807_v31, %v14385_v38  ;;  %6207 = vpow2.f32 %v2386_v4  ;;  %v2424_v15 = vmul.f32 %v6190_v41, %v14386_v62  ;;  %v2453_v10 = vsel %vm519_vm0, %v2422_v17, 0.0  ;;  %v9977_v29 = vpop.eup %6195 }
 0x210   :  { %14383 = vst [vmem:[#allocation102_spill] sm:$0xff] %v9965_v5  ;;  %v2539_v48 = vadd.f32 %v2538_v39, %v2537_v42  ;;  %6209 = vpow2.f32 %v2392_v37  ;;  %v2483_v53 = vadd.f32 %v2482_v12, %v2481_v52  ;;  %v2518_v8 = vadd.f32 %v2517_v49, %v2516_v22  ;;  %v14389_v52 = vld [vmem:[#allocation51_spill] sm:$0xff]  ;;  %v14390_v22 = vld [vmem:[#allocation52_spill] sm:$0xff]  ;;  %v14391_v39 = vld [vmem:[#allocation33_spill] sm:$0xff] }
 0x211   :  { %v2540_v40 = vsel %vm519_vm0, %v9893_v21, 0.0  ;;  %v2425_v35 = vmul.f32 %v9977_v29, %v14386_v62  ;;  %v2484_v59 = vsel %vm519_vm0, %v2423_v34, 0.0  ;;  %v2519_v4 = vsel %vm519_vm0, %v6194_v27, 0.0  ;;  %v6198_v16 = vpop.eup %6197  ;;  %v14392_v62 = vld [vmem:[#allocation53_spill] sm:$0xff] }
 0x212   :  { %v9987_v41 = vmul.f32 %v9807_v31, %v14387_v23  ;;  %v2454_v17 = vadd.f32 %v2453_v10, %v2452_v2  ;;  %v9991_v37 = vmul.f32 %v9807_v31, %v14388_v50  ;;  %v9995_v21 = vmul.f32 %v9807_v31, %v14389_v52  ;;  %v14393_v23 = vld [vmem:[#allocation54_spill] sm:$0xff] }
 0x213   :  { %v9999_v42 = vmul.f32 %v9807_v31, %v14390_v22  ;;  %v2426_v34 = vmul.f32 %v6194_v27, %v14391_v39  ;;  %v2455_v12 = vsel %vm519_vm0, %v2424_v15, 0.0  ;;  %v2541_v49 = vadd.f32 %v2540_v40, %v2539_v48  ;;  %v6200_v10 = vpop.eup %6199  ;;  %v14394_v48 = vld [vmem:[#allocation55_spill] sm:$0xff] }
 0x214   :  { %v10005_v2 = vmul.f32 %v9807_v31, %v14392_v62  ;;  %v2485_v47 = vadd.f32 %v2484_v59, %v2483_v53  ;;  %v2520_v50 = vadd.f32 %v2519_v4, %v2518_v8  ;;  %v2542_v52 = vsel %vm519_vm0, %v9906_v14, 0.0  ;;  %v14395_v8 = vld [vmem:[#allocation56_spill] sm:$0xff]  ;;  %v14396_v59 = vld [vmem:[#allocation57_spill] sm:$0xff] }
 0x215   :  { %v10011_v56 = vmul.f32 %v9807_v31, %v14393_v23  ;;  %v2427_v22 = vmul.f32 %v6200_v10, %v14391_v39  ;;  %v2486_v27 = vsel %vm519_vm0, %v2425_v35, 0.0  ;;  %v2521_v15 = vsel %vm519_vm0, %v6198_v16, 0.0  ;;  %v6202_v62 = vpop.eup %6201  ;;  %v14397_v35 = vld [vmem:[#allocation34_spill] sm:$0xff] }
 0x216   :  { %v10018_v40 = vmul.f32 %v9807_v31, %v14394_v48  ;;  %6211 = vpow2.f32 %v9912_v18  ;;  %v2456_v53 = vadd.f32 %v2455_v12, %v2454_v17  ;;  %v10023_v14 = vmul.f32 %v9807_v31, %v14395_v8 }
 0x217   :  { %v10027_v4 = vmul.f32 %v9807_v31, %v14396_v59  ;;  %6213 = vpow2.f32 %v9917_v33  ;;  %v2428_v39 = vmul.f32 %v6198_v16, %v14397_v35  ;;  %v2457_v23 = vsel %vm519_vm0, %v2426_v34, 0.0  ;;  %v6204_v38 = vpop.eup %6203 }
 0x218   :  { %v2543_v48 = vadd.f32 %v2542_v52, %v2541_v49  ;;  %6215 = vpow2.f32 %v9922_v51  ;;  %v2487_v18 = vadd.f32 %v2486_v27, %v2485_v47  ;;  %v2522_v17 = vadd.f32 %v2521_v15, %v2520_v50  ;;  %v14398_v51 = vld [vmem:[#allocation58_spill] sm:$0xff]  ;;  %v14399_v50 = vld [vmem:[#allocation59_spill] sm:$0xff] }
 0x219   :  { %v2544_v12 = vsel %vm519_vm0, %v9926_v44, 0.0  ;;  %6217 = vpow2.f32 %v9928_v36  ;;  %v2429_v59 = vmul.f32 %v6204_v38, %v14397_v35  ;;  %v2488_v33 = vsel %vm519_vm0, %v2427_v22, 0.0  ;;  %v14400_v36 = vld [vmem:[#allocation35_spill] sm:$0xff] }
 0x21a   :  { %v2523_v16 = vsel %vm519_vm0, %v6202_v62, 0.0  ;;  %v6206_v34 = vpop.eup %6205  ;;  %6219 = vpow2.f32 %v9933_v25  ;;  %v2458_v52 = vadd.f32 %v2457_v23, %v2456_v53  ;;  %v10046_v47 = vmul.f32 %v9807_v31, %v14398_v51  ;;  %v14420_v51 = vld [vmem:[#allocation66_spill] sm:$0xff] }
 0x21b   :  { %v10050_v44 = vmul.f32 %v9807_v31, %v14399_v50  ;;  %6221 = vpow2.f32 %v9939_v0  ;;  %v2430_v22 = vmul.f32 %v6202_v62, %v14400_v36  ;;  %v2459_v49 = vsel %vm519_vm0, %v2428_v39, 0.0  ;;  %v14403_v39 = vld [vmem:[#allocation60_spill] sm:$0xff] }
 0x21c   :  { %v2545_v27 = vadd.f32 %v2544_v12, %v2543_v48  ;;  %v10055_v15 = vpop.eup %6207  ;;  %6223 = vpow2.f32 %v9944_v28  ;;  %v2489_v25 = vadd.f32 %v2488_v33, %v2487_v18  ;;  %v2524_v23 = vadd.f32 %v2523_v16, %v2522_v17 }
 0x21d   :  { %14401 = vst [vmem:[#allocation85_spill] sm:$0xff] %v10055_v15  ;;  %v2546_v53 = vsel %vm519_vm0, %v9955_v60, 0.0  ;;  %v10060_v35 = vpop.eup %6209  ;;  %6225 = vpow2.f32 %v9946_v55  ;;  %v2490_v0 = vsel %vm519_vm0, %v2429_v59, 0.0  ;;  %v2525_v62 = vsel %vm519_vm0, %v6206_v34, 0.0  ;;  %v14406_v60 = vld [vmem:[#allocation61_spill] sm:$0xff]  ;;  %v14407_v55 = vld [vmem:[#allocation36_spill] sm:$0xff] }
 0x21e   :  { %14402 = vst [vmem:[#allocation81_spill] sm:$0xff] %v10060_v35  ;;  %v10067_v48 = vmul.f32 %v9807_v31, %v14403_v39  ;;  %6227 = vpow2.f32 %v9951_v57  ;;  %v10072_v28 = vmul.f32 %v10055_v15, %v14400_v36  ;;  %v10074_v18 = vadd.f32 %v2459_v49, %v2458_v52 }
 0x21f   :  { %v2606_v17 = vmul.f32 %v9807_v31, %v14406_v60  ;;  %v10079_v12 = vmul.f32 %v6206_v34, %v14407_v55  ;;  %v10082_v59 = vsel %vm519_vm0, %v2430_v22, 0.0  ;;  %v2547_v33 = vadd.f32 %v2546_v53, %v2545_v27  ;;  %v14414_v22 = vld [vmem:[#allocation62_spill] sm:$0xff]  ;;  %v14415_v53 = vld [vmem:[#allocation63_spill] sm:$0xff] }
 0x220   :  { %14404 = vst [vmem:[#allocation77_spill] sm:$0xff] %v10072_v28  ;;  %14405 = vst [vmem:[#allocation103_spill] sm:$0xff] %v10074_v18  ;;  %v2619_v16 = vstv %s10032_s15  ;;  %v10085_v39 = vadd.f32 %v2490_v0, %v2489_v25  ;;  %v10087_v57 = vadd.f32 %v2525_v62, %v2524_v23  ;;  %v10091_v52 = vsel %vm519_vm0, %v10060_v35, 0.0  ;;  %v14416_v23 = vld [vmem:[#allocation64_spill] sm:$0xff]  ;;  %v14448_v28 = vld [vmem:[#allocation22_spill] sm:$0xff] }
 0x221   :  { %14408 = vst [vmem:[#allocation88_spill] sm:$0xff] %v10079_v12  ;;  %14409 = vst [vmem:[#allocation89_spill] sm:$0xff] %v10082_v59  ;;  %v2548_v49 = vsel %vm519_vm0, %v9977_v29, 0.0  ;;  %v2550_v34 = vsel %vm519_vm0, %v6200_v10, 0.0  ;;  %v10097_v36 = vsel %vm519_vm0, %v6204_v38, 0.0  ;;  %v2607_v27 = vmul.f32 %v9807_v31, %v14414_v22  ;;  %v10108_v62 = vld [vmem:[%s13528_s0] sm:$0xff] }
 0x222   :  { %14410 = vst [vmem:[#allocation86_spill] sm:$0xff] %v10085_v39  ;;  %14411 = vst [vmem:[#allocation98_spill] sm:$0xff] %v10087_v57  ;;  %v2608_v25 = vmul.f32 %v9807_v31, %v14415_v53  ;;  %v2609_v0 = vmul.f32 %v9807_v31, %v14416_v23  ;;  %v2620_v29 = vmul.f32 %v10108_v62, %v2619_v16  ;;  %v10114_v38 = vld [vmem:[%s13528_s0 + $0x8] sm:$0xff]  ;;  %v10118_v22 = vstv %s10042_s16  ;;  %v14452_v59 = vld [vmem:[#allocation23_spill] sm:$0xff] }
 0x223   :  { %14412 = vst [vmem:[#allocation100_spill] sm:$0xff] %v10091_v52  ;;  %14413 = vst [vmem:[#allocation79_spill] sm:$0xff] %v10097_v36  ;;  %v2621_v10 = vmul.f32 %v10114_v38, %v2619_v16  ;;  %v10120_v53 = vpop.eup %6211  ;;  %v2549_v60 = vadd.f32 %v2548_v49, %v2547_v33  ;;  %v14419_v23 = vld [vmem:[#allocation65_spill] sm:$0xff]  ;;  %v2611_v8 = vmul.f32 %v9807_v31, %v14420_v51  ;;  %v14426_v49 = vld [vmem:[#allocation71_spill] sm:$0xff]  ;;  %v10276_v57 = vstv %s10219_s21 }
 0x224   :  { %14417 = vst [vmem:[#allocation97_spill] sm:$0xff] %v10108_v62  ;;  %14418 = vst [vmem:[#allocation90_spill] sm:$0xff] %v10114_v38  ;;  %v2610_v50 = vmul.f32 %v9807_v31, %v14419_v23  ;;  %v2612_v62 = vmul.f32 %v9807_v31, %v14421_v19  ;;  %v10128_v32 = vpop.eup %6213  ;;  %v2613_v13 = vmul.f32 %v9807_v31, %v14423_v24  ;;  %v14424_v16 = vld [vmem:[#allocation69_spill] sm:$0xff]  ;;  %v14428_v51 = vld [vmem:[#allocation72_spill] sm:$0xff] }
 0x225   :  { %14422 = vst [vmem:[#allocation96_spill] sm:$0xff] %v10128_v32  ;;  %v2614_v38 = vmul.f32 %v9807_v31, %v14424_v16  ;;  %v2615_v33 = vmul.f32 %v9807_v31, %v14425_v54  ;;  %v2616_v23 = vmul.f32 %v9807_v31, %v14426_v49  ;;  %v10138_v46 = vpop.eup %6215  ;;  %v2617_v20 = vmul.f32 %v9807_v31, %v14428_v51  ;;  %v14429_v19 = vld [vmem:[#allocation73_spill] sm:$0xff]  ;;  %v14434_v51 = vld [vmem:[#allocation19_spill] sm:$0xff]  ;;  %v14444_v39 = vld [vmem:[#allocation18_spill] sm:$0xff] }
 0x226   :  { %14427 = vst [vmem:[#allocation94_spill] sm:$0xff] %v10138_v46  ;;  %v2618_v9 = vmul.f32 %v9807_v31, %v14429_v19  ;;  %v2655_v24 = vmul.f32 %v10118_v22, %v14430_v30  ;;  %v2656_v16 = vmul.f32 %v10118_v22, %v14431_v45  ;;  %v10148_v11 = vpop.eup %6217  ;;  %v2622_v54 = vadd.f32 %v2620_v29, %v9821_v63  ;;  %v14445_v12 = vld [vmem:[#allocation21_spill] sm:$0xff]  ;;  %v14450_v35 = vld [vmem:[#allocation14_spill] sm:$0xff] }
 0x227   :  { %14432 = vst [vmem:[#allocation84_spill] sm:$0xff] %v10148_v11  ;;  %v10152_v49 = vadd.f32 %v2621_v10, %v9825_v7  ;;  %v2657_v32 = vmul.f32 %v10118_v22, %v14433_v43  ;;  %v2658_v5 = vmul.f32 %v10118_v22, %v14434_v51  ;;  %v10158_v31 = vpop.eup %6219  ;;  %v10160_v19 = vadd.f32 %v2550_v34, %v2549_v60  ;;  %v14451_v46 = vld [vmem:[#allocation17_spill] sm:$0xff] }
 0x228   :  { %14435 = vst [vmem:[#allocation76_spill] sm:$0xff] %v10158_v31  ;;  %v2624_v30 = vadd.f32 %v2620_v29, %v9829_v6  ;;  %v10164_v45 = vadd.f32 %v2621_v10, %v9835_v58  ;;  %v2626_v63 = vadd.f32 %v2620_v29, %v9845_v1  ;;  %v10167_v11 = vpop.eup %6221  ;;  %v10170_v7 = vadd.f32 %v2621_v10, %v9969_v3  ;;  %v14442_v31 = vld [vmem:[#allocation12_spill] sm:$0xff] }
 0x229   :  { %14436 = vst [vmem:[#allocation75_spill] sm:$0xff] %v10160_v19  ;;  %14437 = vst [vmem:[#allocation92_spill] sm:$0xff] %v10167_v11  ;;  %v2628_v43 = vadd.f32 %v2620_v29, %v9973_v26  ;;  %v10174_v51 = vadd.f32 %v2621_v10, %v9987_v41  ;;  %v10177_v60 = vadd.f32 %v2620_v29, %v9991_v37  ;;  %v10179_v34 = vpop.eup %6223 }
 0x22a   :  { %14438 = vst [vmem:[#allocation93_spill] sm:$0xff] %v10179_v34  ;;  %v10182_v6 = vadd.f32 %v2621_v10, %v9995_v21  ;;  %v10185_v58 = vadd.f32 %v2620_v29, %v9999_v42  ;;  %v10188_v1 = vadd.f32 %v2621_v10, %v10005_v2  ;;  %v10191_v3 = vadd.f32 %v2620_v29, %v10011_v56  ;;  %v10193_v26 = vpop.eup %6225 }
 0x22b   :  { %14439 = vst [vmem:[#allocation78_spill] sm:$0xff] %v10193_v26  ;;  %v10196_v41 = vadd.f32 %v2621_v10, %v10018_v40  ;;  %v10199_v37 = vadd.f32 %v2620_v29, %v10023_v14  ;;  %v10202_v21 = vadd.f32 %v2621_v10, %v10027_v4  ;;  %v10205_v42 = vadd.f32 %v2620_v29, %v10046_v47  ;;  %v10207_v11 = vpop.eup %6227 }
 0x22c   :  { %14440 = vst [vmem:[#allocation95_spill] sm:$0xff] %v10207_v11  ;;  %v10210_v2 = vadd.f32 %v2621_v10, %v10050_v44  ;;  %v10213_v56 = vadd.f32 %v2620_v29, %v10067_v48  ;;  %v10215_v26 = vadd.f32 %v2621_v10, %v2606_v17  ;;  %v10217_v40 = vadd.f32 %v2620_v29, %v2607_v27 }
 0x22d   :  { %v10221_v14 = vadd.f32 %v2621_v10, %v2608_v25  ;;  %v10223_v4 = vadd.f32 %v2620_v29, %v2609_v0  ;;  %v10225_v47 = vadd.f32 %v2621_v10, %v2610_v50  ;;  %v10227_v34 = vadd.f32 %v2620_v29, %v2611_v8  ;;  %v14441_v0 = vld [vmem:[#allocation11_spill] sm:$0xff] }
 0x22e   :  { %v10229_v11 = vadd.f32 %v2621_v10, %v2612_v62  ;;  %v10231_v44 = vadd.f32 %v2620_v29, %v2613_v13  ;;  %v10233_v48 = vadd.f32 %v2621_v10, %v2614_v38  ;;  %v10235_v17 = vadd.f32 %v2620_v29, %v2615_v33  ;;  %v14443_v62 = vld [vmem:[#allocation20_spill] sm:$0xff] }
 0x22f   :  { %v10237_v27 = vadd.f32 %v2621_v10, %v2616_v23  ;;  %v10239_v61 = vadd.f32 %v2620_v29, %v2617_v20  ;;  %v10241_v25 = vadd.f32 %v2621_v10, %v2618_v9  ;;  %v2659_v50 = vmul.f32 %v10118_v22, %v14441_v0  ;;  %v14446_v20 = vld [vmem:[#allocation13_spill] sm:$0xff]  ;;  %v14447_v0 = vld [vmem:[#allocation15_spill] sm:$0xff] }
 0x230   :  { %v2660_v8 = vmul.f32 %v10118_v22, %v14442_v31  ;;  %v2661_v13 = vmul.f32 %v10118_v22, %v14443_v62  ;;  %v2690_v38 = vrot.slane %v2655_v24, %v14444_v39  ;;  %v2698_v33 = vrot.slane %v2657_v32, %v14444_v39  ;;  %v14449_v24 = vld [vmem:[#allocation24_spill] sm:$0xff] }
 0x231   :  { %v2662_v23 = vmul.f32 %v10118_v22, %v14445_v12  ;;  %v2663_v9 = vmul.f32 %v10118_v22, %v14446_v20  ;;  %v2694_v29 = vrot.slane %v2656_v16, %v14444_v39  ;;  %v2702_v10 = vrot.slane %v2658_v5, %v14444_v39  ;;  %v14453_v5 = vld [vmem:[#allocation25_spill] sm:$0xff] }
 0x232   :  { %v2664_v31 = vmul.f32 %v10118_v22, %v14447_v0  ;;  %v2665_v62 = vmul.f32 %v10118_v22, %v14448_v28  ;;  %v2666_v32 = vmul.f32 %v10118_v22, %v14449_v24  ;;  %v2667_v12 = vmul.f32 %v10118_v22, %v14450_v35 }
 0x233   :  { %v2668_v20 = vmul.f32 %v10118_v22, %v14451_v46  ;;  %v2669_v16 = vmul.f32 %v10118_v22, %v14452_v59  ;;  %v2670_v18 = vmul.f32 %v10118_v22, %v14453_v5  ;;  %v2706_v0 = vrot.slane %v2659_v50, %v14444_v39 }
 0x234   :  { %v2710_v15 = vrot.slane %v2660_v8, %v14444_v39  ;;  %v2714_v28 = vrot.slane %v2661_v13, %v14444_v39  ;;  %v2767_v36 = vadd.f32 %v2690_v38, %v2622_v54  ;;  %v2771_v24 = vadd.f32 %v2698_v33, %v2626_v63 }
 0x235   :  { %v2718_v19 = vrot.slane %v2662_v23, %v14444_v39  ;;  %v2769_v35 = vadd.f32 %v2694_v29, %v2624_v30  ;;  %v2773_v52 = vadd.f32 %v2702_v10, %v2628_v43  ;;  %v2722_v46 = vrot.slane %v2663_v9, %v14444_v39 }
 0x236   :  { %v2726_v59 = vrot.slane %v2664_v31, %v14444_v39  ;;  %v2730_v22 = vrot.slane %v2665_v62, %v14444_v39  ;;  %v2734_v50 = vrot.slane %v2666_v32, %v14444_v39  ;;  %v10283_v8 = vrot.slane %v2667_v12, %v14444_v39 }
 0x237   :  { %v10286_v54 = vrot.slane %v2668_v20, %v14444_v39  ;;  %v2768_v63 = vadd.f32 %v2690_v38, %v10152_v49  ;;  %v2770_v30 = vadd.f32 %v2694_v29, %v10164_v45  ;;  %v2772_v43 = vadd.f32 %v2698_v33, %v10170_v7 }
 0x238   :  { %v2774_v13 = vadd.f32 %v2702_v10, %v10174_v51  ;;  %v10293_v31 = vadd.f32 %v10276_v57, %v2767_v36  ;;  %v10296_v62 = vadd.f32 %v10276_v57, %v2771_v24  ;;  %v2775_v12 = vadd.f32 %v2706_v0, %v10177_v60 }
 0x239   :  { %v2777_v23 = vadd.f32 %v2710_v15, %v10185_v58  ;;  %v10301_v20 = vadd.f32 %v10276_v57, %v2769_v35  ;;  %v10304_v49 = vadd.f32 %v10276_v57, %v2773_v52  ;;  %v10307_v45 = vrot.slane %v2669_v16, %v14444_v39 }
 0x23a   :  { %v10310_v51 = vrot.slane %v2670_v18, %v14444_v39  ;;  %v2776_v36 = vadd.f32 %v2706_v0, %v10182_v6  ;;  %v2778_v7 = vadd.f32 %v2710_v15, %v10188_v1  ;;  %v2779_v60 = vadd.f32 %v2714_v28, %v10191_v3  ;;  %v14470_v39 = vld [vmem:[#allocation76_spill] sm:$0xff] }
 0x23b   :  { %v2781_v58 = vadd.f32 %v2718_v19, %v10199_v37  ;;  %v10317_v35 = vadd.f32 %v10276_v57, %v2768_v63  ;;  %v10320_v52 = vadd.f32 %v10276_v57, %v2770_v30  ;;  %v10323_v38 = vadd.f32 %v10276_v57, %v2772_v43 }
 0x23c   :  { %v10326_v18 = vadd.f32 %v10276_v57, %v2774_v13  ;;  %v2832_v6 = vsel %vm519_vm0, %v10293_v31, -inf  ;;  %v2834_v15 = vsel %vm519_vm0, %v10296_v62, -inf  ;;  %v10333_v1 = vadd.f32 %v10276_v57, %v2775_v12 }
 0x23d   :  { %v10336_v3 = vadd.f32 %v10276_v57, %v2777_v23  ;;  %v2833_v37 = vsel %vm519_vm0, %v10301_v20, -inf  ;;  %v2836_v0 = vsel %vm519_vm0, %v10304_v49, -inf  ;;  %v2780_v33 = vadd.f32 %v2714_v28, %v10196_v41 }
 0x23e   :  { %v2782_v9 = vadd.f32 %v2718_v19, %v10202_v21  ;;  %v2783_v29 = vadd.f32 %v2722_v46, %v10205_v42  ;;  %v2785_v10 = vadd.f32 %v2726_v59, %v10213_v56  ;;  %v10347_v24 = vadd.f32 %v10276_v57, %v2776_v36 }
 0x23f   :  { %v10350_v32 = vadd.f32 %v10276_v57, %v2778_v7  ;;  %v2835_v16 = vmax.f32 %v2832_v6, %v2834_v15  ;;  %v2863_v63 = vsel %vm519_vm0, %v10317_v35, -inf  ;;  %v2837_v30 = vmax.f32 %v2833_v37, %v2836_v0 }
 0x240   :  { %v2864_v28 = vsel %vm519_vm0, %v10320_v52, -inf  ;;  %v2865_v19 = vsel %vm519_vm0, %v10323_v38, -inf  ;;  %v2867_v41 = vsel %vm519_vm0, %v10326_v18, -inf  ;;  %v10361_v21 = vadd.f32 %v10276_v57, %v2779_v60 }
 0x241   :  { %v10364_v42 = vadd.f32 %v10276_v57, %v2781_v58  ;;  %v2838_v56 = vsel %vm519_vm0, %v10333_v1, -inf  ;;  %v2840_v43 = vsel %vm519_vm0, %v10336_v3, -inf  ;;  %v2784_v13 = vadd.f32 %v2722_v46, %v10210_v2 }
 0x242   :  { %v2786_v12 = vadd.f32 %v2726_v59, %v10215_v26  ;;  %v2866_v23 = vmax.f32 %v2863_v63, %v2865_v19  ;;  %v2868_v36 = vmax.f32 %v2864_v28, %v2867_v41  ;;  %v10373_v7 = vadd.f32 %v10276_v57, %v2780_v33 }
 0x243   :  { %v10376_v60 = vadd.f32 %v10276_v57, %v2782_v9  ;;  %v2869_v58 = vsel %vm519_vm0, %v10347_v24, -inf  ;;  %v2871_v6 = vsel %vm519_vm0, %v10350_v32, -inf  ;;  %v2787_v15 = vadd.f32 %v2730_v22, %v10217_v40 }
 0x244   :  { %v2789_v46 = vadd.f32 %v2734_v50, %v10223_v4  ;;  %v2839_v2 = vmax.f32 %v2835_v16, %v2838_v56  ;;  %v2841_v59 = vmax.f32 %v2837_v30, %v2840_v43  ;;  %v10385_v26 = vadd.f32 %v10276_v57, %v2783_v29 }
 0x245   :  { %v10388_v37 = vadd.f32 %v10276_v57, %v2785_v10  ;;  %v2842_v0 = vsel %vm519_vm0, %v10361_v21, -inf  ;;  %v2844_v33 = vsel %vm519_vm0, %v10364_v42, -inf  ;;  %v2788_v9 = vadd.f32 %v2730_v22, %v10221_v14 }
 0x246   :  { %v2790_v40 = vadd.f32 %v2734_v50, %v10225_v47  ;;  %v2870_v63 = vmax.f32 %v2866_v23, %v2869_v58  ;;  %v2872_v4 = vmax.f32 %v2868_v36, %v2871_v6  ;;  %v10397_v16 = vadd.f32 %v10276_v57, %v2784_v13 }
 0x247   :  { %v10400_v29 = vadd.f32 %v10276_v57, %v2786_v12  ;;  %v2873_v10 = vsel %vm519_vm0, %v10373_v7, -inf  ;;  %v2875_v30 = vsel %vm519_vm0, %v10376_v60, -inf  ;;  %v2791_v28 = vadd.f32 %v10283_v8, %v10227_v34 }
 0x248   :  { %v2793_v14 = vadd.f32 %v10286_v54, %v10231_v44  ;;  %v2843_v47 = vmax.f32 %v2839_v2, %v2842_v0  ;;  %v2845_v22 = vmax.f32 %v2841_v59, %v2844_v33  ;;  %v10411_v50 = vadd.f32 %v10276_v57, %v2787_v15 }
 0x249   :  { %v10414_v19 = vadd.f32 %v10276_v57, %v2789_v46  ;;  %v2846_v41 = vsel %vm519_vm0, %v10385_v26, -inf  ;;  %v2848_v56 = vsel %vm519_vm0, %v10388_v37, -inf  ;;  %v2792_v34 = vadd.f32 %v10283_v8, %v10229_v11 }
 0x24a   :  { %v2794_v44 = vadd.f32 %v10286_v54, %v10233_v48  ;;  %v2874_v43 = vmax.f32 %v2870_v63, %v2873_v10  ;;  %v2876_v13 = vmax.f32 %v2872_v4, %v2875_v30  ;;  %v10425_v12 = vadd.f32 %v10276_v57, %v2788_v9  ;;  %v14456_v4 = vld [vmem:[#allocation100_spill] sm:$0xff] }
 0x24b   :  { %v10428_v23 = vadd.f32 %v10276_v57, %v2790_v40  ;;  %v2877_v36 = vsel %vm519_vm0, %v10397_v16, -inf  ;;  %v2879_v58 = vsel %vm519_vm0, %v10400_v29, -inf  ;;  %v2795_v11 = vadd.f32 %v10307_v45, %v10235_v17 }
 0x24c   :  { %v2797_v48 = vadd.f32 %v10310_v51, %v10239_v61  ;;  %v2847_v8 = vmax.f32 %v2843_v47, %v2846_v41  ;;  %v2849_v54 = vmax.f32 %v2845_v22, %v2848_v56  ;;  %v10439_v6 = vadd.f32 %v10276_v57, %v2791_v28  ;;  %v14457_v22 = vld [vmem:[#allocation75_spill] sm:$0xff] }
 0x24d   :  { %v10442_v15 = vadd.f32 %v10276_v57, %v2793_v14  ;;  %v2850_v46 = vsel %vm519_vm0, %v10411_v50, -inf  ;;  %v2852_v2 = vsel %vm519_vm0, %v10414_v19, -inf  ;;  %v2796_v17 = vadd.f32 %v10307_v45, %v10237_v27  ;;  %v14455_v45 = vld [vmem:[#allocation98_spill] sm:$0xff]  ;;  %v14458_v41 = vld [vmem:[#allocation79_spill] sm:$0xff] }
 0x24e   :  { %v2798_v61 = vadd.f32 %v10310_v51, %v10241_v25  ;;  %v2878_v59 = vmax.f32 %v2874_v43, %v2877_v36  ;;  %v2880_v0 = vmax.f32 %v2876_v13, %v2879_v58  ;;  %v10453_v33 = vadd.f32 %v10276_v57, %v2792_v34  ;;  %v14459_v34 = vld [vmem:[#allocation85_spill] sm:$0xff] }
 0x24f   :  { %v10456_v9 = vadd.f32 %v10276_v57, %v2794_v44  ;;  %v2881_v40 = vsel %vm519_vm0, %v10425_v12, -inf  ;;  %v2883_v63 = vsel %vm519_vm0, %v10428_v23, -inf  ;;  %v2433_v27 = vmul.f32 %v10120_v53, %v14407_v55 }
 0x250   :  { %v2528_v25 = vadd.f32 %v14456_v4, %v14455_v45  ;;  %v2851_v51 = vmax.f32 %v2847_v8, %v2850_v46  ;;  %v2853_v10 = vmax.f32 %v2849_v54, %v2852_v2  ;;  %v10467_v30 = vadd.f32 %v10276_v57, %v2795_v11  ;;  %v14462_v8 = vld [vmem:[#allocation103_spill] sm:$0xff]  ;;  %v14463_v54 = vld [vmem:[#allocation89_spill] sm:$0xff]  ;;  %v14464_v2 = vld [vmem:[#allocation94_spill] sm:$0xff] }
 0x251   :  { %14454 = vst [vmem:[#allocation80_spill] sm:$0xff] %v10456_v9  ;;  %v10470_v28 = vadd.f32 %v10276_v57, %v2797_v48  ;;  %v2854_v14 = vsel %vm519_vm0, %v10439_v6, -inf  ;;  %v2856_v47 = vsel %vm519_vm0, %v10442_v15, -inf  ;;  %v2553_v56 = vadd.f32 %v14458_v41, %v14457_v22  ;;  %v14467_v4 = vld [vmem:[#allocation77_spill] sm:$0xff]  ;;  %v14468_v41 = vld [vmem:[#allocation88_spill] sm:$0xff] }
 0x252   :  { %v2554_v44 = vsel %vm519_vm0, %v14459_v34, 0.0  ;;  %v2882_v43 = vmax.f32 %v2878_v59, %v2881_v40  ;;  %v2884_v13 = vmax.f32 %v2880_v0, %v2883_v63  ;;  %v10481_v36 = vadd.f32 %v10276_v57, %v2796_v17  ;;  %v14465_v40 = vld [vmem:[#allocation37_spill] sm:$0xff] }
 0x253   :  { %v10484_v58 = vadd.f32 %v10276_v57, %v2798_v61  ;;  %v2885_v11 = vsel %vm519_vm0, %v10453_v33, -inf  ;;  %v2887_v48 = vsel %vm519_vm0, %v10456_v9, -inf  ;;  %v2462_v46 = vadd.f32 %v14463_v54, %v14462_v8  ;;  %v14466_v17 = vld [vmem:[#allocation81_spill] sm:$0xff] }
 0x254   :  { %14460 = vst [vmem:[#allocation74_spill] sm:$0xff] %v10481_v36  ;;  %v2529_v45 = vsel %vm519_vm0, %v14464_v2, 0.0  ;;  %v2855_v59 = vmax.f32 %v2851_v51, %v2854_v14  ;;  %v2857_v0 = vmax.f32 %v2853_v10, %v2856_v47  ;;  %v2434_v63 = vmul.f32 %v14466_v17, %v14465_v40  ;;  %v14469_v17 = vld [vmem:[#allocation86_spill] sm:$0xff] }
 0x255   :  { %14461 = vst [vmem:[#allocation108_spill] sm:$0xff] %v10484_v58  ;;  %v2492_v57 = vsel %vm519_vm0, %v14467_v4, 0.0  ;;  %v2858_v61 = vsel %vm519_vm0, %v10467_v30, -inf  ;;  %v2860_v22 = vsel %vm519_vm0, %v10470_v28, -inf  ;;  %v2463_v34 = vsel %vm519_vm0, %v14468_v41, 0.0 }
 0x256   :  { %v2555_v8 = vadd.f32 %v2554_v44, %v2553_v56  ;;  %v2886_v54 = vmax.f32 %v2882_v43, %v2885_v11  ;;  %v2888_v55 = vmax.f32 %v2884_v13, %v2887_v48  ;;  %v2530_v51 = vadd.f32 %v2529_v45, %v2528_v25  ;;  %v14471_v56 = vld [vmem:[#allocation99_spill] sm:$0xff]  ;;  %v14472_v25 = vld [vmem:[#allocation102_spill] sm:$0xff] }
 0x257   :  { %v2556_v10 = vsel %vm519_vm0, %v10120_v53, 0.0  ;;  %v2889_v14 = vsel %vm519_vm0, %v10481_v36, -inf  ;;  %v2891_v47 = vsel %vm519_vm0, %v10484_v58, -inf  ;;  %v2493_v4 = vadd.f32 %v2492_v57, %v14469_v17  ;;  %v14473_v53 = vld [vmem:[#allocation96_spill] sm:$0xff]  ;;  %v14474_v57 = vld [vmem:[#allocation38_spill] sm:$0xff]  ;;  %v14476_v36 = vld [vmem:[#allocation93_spill] sm:$0xff] }
 0x258   :  { %v2531_v5 = vsel %vm519_vm0, %v14470_v39, 0.0  ;;  %v2859_v9 = vmax.f32 %v2855_v59, %v2858_v61  ;;  %v2861_v41 = vmax.f32 %v2857_v0, %v2860_v22  ;;  %v1995_v44 = vsel %vm519_vm0, %v14471_v56, 0.0  ;;  %v14475_v22 = vld [vmem:[#allocation91_spill] sm:$0xff] }
 0x259   :  { %6229 = vpow2.f32 %v14472_v25  ;;  %v2435_v43 = vmul.f32 %v14473_v53, %v14465_v40  ;;  %v2494_v13 = vsel %vm519_vm0, %v2433_v27, 0.0  ;;  %v2464_v11 = vadd.f32 %v2463_v34, %v2462_v46  ;;  %v14477_v46 = vld [vmem:[#allocation82_spill] sm:$0xff] }
 0x25a   :  { %v2557_v48 = vadd.f32 %v2556_v10, %v2555_v8  ;;  %v2890_v45 = vmax.f32 %v2886_v54, %v2889_v14  ;;  %v2892_v58 = vmax.f32 %v2888_v55, %v2891_v47  ;;  %v2436_v17 = vmul.f32 %v14464_v2, %v14474_v57  ;;  %v14478_v55 = vld [vmem:[#allocation84_spill] sm:$0xff]  ;;  %v14482_v47 = vld [vmem:[#allocation39_spill] sm:$0xff] }
 0x25b   :  { %v2465_v59 = vsel %vm519_vm0, %v2434_v63, 0.0  ;;  %v2532_v0 = vadd.f32 %v2531_v5, %v2530_v51  ;;  %v2558_v61 = vsel %vm519_vm0, %v14473_v53, 0.0  ;;  %v1419_v56 = vrot.slane %v14475_v22, 4  ;;  %v14479_v63 = vld [vmem:[#allocation87_spill] sm:$0xff] }
 0x25c   :  { %v2495_v25 = vadd.f32 %v2494_v13, %v2493_v4  ;;  %v2533_v40 = vsel %vm519_vm0, %v14476_v36, 0.0  ;;  %v10527_v27 = vmax.f32 %v2859_v9, %v2861_v41  ;;  %v1996_v34 = vadd.f32 %v1995_v44, %v14477_v46  ;;  %v14484_v13 = vld [vmem:[#allocation95_spill] sm:$0xff] }
 0x25d   :  { %v2437_v8 = vmul.f32 %v14478_v55, %v14474_v57  ;;  %v2496_v2 = vsel %vm519_vm0, %v2435_v43, 0.0  ;;  %v14480_v5 = vrot.slane %v14479_v63, 4  ;;  %v2466_v51 = vadd.f32 %v2465_v59, %v2464_v11  ;;  %v14554_v57 = vld [vmem:[#allocation66_spill] sm:$0xff] }
 0x25e   :  { %v2559_v10 = vadd.f32 %v2558_v61, %v2557_v48  ;;  %v10538_v14 = vmax.f32 %v2890_v45, %v2892_v58  ;;  %v2438_v9 = vmul.f32 %v14470_v39, %v14482_v47  ;;  %v2467_v4 = vsel %vm519_vm0, %v2436_v17, 0.0  ;;  %v14485_v48 = vld [vmem:[#allocation92_spill] sm:$0xff] }
 0x25f   :  { %v10536_v54 = vadd.f32 %v14480_v5, %v14479_v63  ;;  %v2534_v41 = vadd.f32 %v2533_v40, %v2532_v0  ;;  %v2560_v44 = vsel %vm519_vm0, %v14478_v55, 0.0  ;;  %v10546_v53 = vadd.f32 %v1419_v56, %v14475_v22  ;;  %v14486_v55 = vld [vmem:[#allocation40_spill] sm:$0xff] }
 0x260   :  { %v2497_v43 = vadd.f32 %v2496_v2, %v2495_v25  ;;  %v2535_v46 = vsel %vm519_vm0, %v14484_v13, 0.0  ;;  %v2894_v58 = vsub.f32 %v10293_v31, %v10527_v27  ;;  %v1997_v11 = vrot.slane %v1996_v34, 4 }
 0x261   :  { %14481 = vst [vmem:[#allocation105_spill] sm:$0xff] %v10536_v54  ;;  %14483 = vst [vmem:[#allocation106_spill] sm:$0xff] %v10546_v53  ;;  %v2439_v39 = vmul.f32 %v14485_v48, %v14482_v47  ;;  %v2498_v45 = vsel %vm519_vm0, %v2437_v8, 0.0  ;;  %v2896_v40 = vsub.f32 %v10301_v20, %v10527_v27  ;;  %v2468_v59 = vadd.f32 %v2467_v4, %v2466_v51  ;;  %v14507_v54 = vld [vmem:[#allocation26_spill] sm:$0xff] }
 0x262   :  { %v2561_v0 = vadd.f32 %v2560_v44, %v2559_v10  ;;  %v2895_v61 = vsub.f32 %v10317_v35, %v10538_v14  ;;  %v2469_v31 = vsel %vm519_vm0, %v2438_v9, 0.0  ;;  %v2536_v22 = vadd.f32 %v2535_v46, %v2534_v41  ;;  %v14488_v9 = vld [vmem:[#allocation78_spill] sm:$0xff] }
 0x263   :  { %v2562_v56 = vsel %vm519_vm0, %v14485_v48, 0.0  ;;  %v2897_v25 = vsub.f32 %v10320_v52, %v10538_v14  ;;  %v2440_v8 = vmul.f32 %v14476_v36, %v14486_v55  ;;  %v2499_v2 = vadd.f32 %v2498_v45, %v2497_v43 }
 0x264   :  { %v2926_v63 = vmul.f32 1.442695, %v2894_v58  ;;  %v10574_v35 = vadd.f32 %v1997_v11, %v1996_v34  ;;  %v2500_v5 = vsel %vm519_vm0, %v2439_v39, 0.0  ;;  %v2898_v51 = vsub.f32 %v10296_v62, %v10527_v27  ;;  %v14491_v62 = vld [vmem:[#allocation41_spill] sm:$0xff] }
 0x265   :  { %v2930_v10 = vmul.f32 1.442695, %v2896_v40  ;;  %v10581_v4 = vmul.f32 %v14488_v9, %v14486_v55  ;;  %v10583_v41 = vadd.f32 %v2469_v31, %v2468_v59  ;;  %v2563_v36 = vadd.f32 %v2562_v56, %v2561_v0  ;;  %v14499_v56 = vld [vmem:[#allocation43_spill] sm:$0xff] }
 0x266   :  { %14487 = vst [vmem:[#allocation107_spill] sm:$0xff] %v10574_v35  ;;  %v6230_v52 = vpop.eup %6229  ;;  %v2928_v44 = vmul.f32 1.442695, %v2895_v61  ;;  %v2564_v34 = vsel %vm519_vm0, %v14488_v9, 0.0  ;;  %6231 = vrcp.f32 %v2536_v22  ;;  %v2899_v43 = vsub.f32 %v10323_v38, %v10538_v14 }
 0x267   :  { %14489 = vst [vmem:[#allocation104_spill] sm:$0xff] %v10581_v4  ;;  %14490 = vst [vmem:[#allocation109_spill] sm:$0xff] %v10583_v41  ;;  %v2932_v46 = vmul.f32 1.442695, %v2897_v25  ;;  %v10591_v58 = vmul.f32 %v14484_v13, %v14491_v62  ;;  %v10594_v11 = vsel %vm519_vm0, %v2440_v8, 0.0  ;;  %v10596_v48 = vadd.f32 %v2500_v5, %v2499_v2  ;;  %v14500_v8 = vld [vmem:[#allocation44_spill] sm:$0xff] }
 0x268   :  { %14493 = vst [vmem:[#allocation101_spill] sm:$0xff] %v10594_v11  ;;  %6233 = vpow2.f32 %v2926_v63  ;;  %v2900_v39 = vsub.f32 %v10304_v49, %v10527_v27  ;;  %v2934_v45 = vmul.f32 1.442695, %v2898_v51  ;;  %v10601_v40 = vstv %s10557_s22  ;;  %v14498_v49 = vld [vmem:[#allocation42_spill] sm:$0xff]  ;;  %v14501_v51 = vld [vmem:[#allocation45_spill] sm:$0xff]  ;;  %v14567_v4 = vld [vmem:[#allocation16_spill] sm:$0xff] }
 0x269   :  { %14492 = vst [vmem:[#allocation83_spill] sm:$0xff] %v10591_v58  ;;  %14494 = vst [vmem:[#allocation98_spill] sm:$0xff] %v10596_v48  ;;  %6235 = vpow2.f32 %v2930_v10  ;;  %v10604_v38 = vmul.f32 %v6230_v52, %v14491_v62  ;;  %v10606_v59 = vadd.f32 %v2564_v34, %v2563_v36  ;;  %v10609_v13 = vsel %vm519_vm0, %v6230_v52, 0.0  ;;  %v14527_v62 = vld [vmem:[#allocation56_spill] sm:$0xff]  ;;  %v14557_v58 = vld [vmem:[#allocation90_spill] sm:$0xff] }
 0x26a   :  { %14497 = vst [vmem:[#allocation79_spill] sm:$0xff] %v10609_v13  ;;  %6237 = vpow2.f32 %v2928_v44  ;;  %v2901_v0 = vsub.f32 %v10326_v18, %v10538_v14  ;;  %v2936_v61 = vmul.f32 1.442695, %v2899_v43  ;;  %v10616_v22 = vmul.f32 %v10601_v40, %v14498_v49  ;;  %v14502_v44 = vld [vmem:[#allocation46_spill] sm:$0xff]  ;;  %v14562_v13 = vld [vmem:[#allocation71_spill] sm:$0xff] }
 0x26b   :  { %14495 = vst [vmem:[#allocation100_spill] sm:$0xff] %v10604_v38  ;;  %14496 = vst [vmem:[#allocation75_spill] sm:$0xff] %v10606_v59  ;;  %6239 = vpow2.f32 %v2932_v46  ;;  %v10620_v25 = vmul.f32 %v10601_v40, %v14499_v56  ;;  %v10624_v2 = vmul.f32 %v10601_v40, %v14500_v8  ;;  %v10627_v63 = vstv %s10572_s24  ;;  %v14509_v8 = vld [vmem:[#allocation28_spill] sm:$0xff]  ;;  %v14555_v38 = vld [vmem:[#allocation67_spill] sm:$0xff] }
 0x26c   :  { %v2902_v18 = vsub.f32 %v10333_v1, %v10527_v27  ;;  %6241 = vpow2.f32 %v2934_v45  ;;  %v2938_v5 = vmul.f32 1.442695, %v2900_v39  ;;  %v10633_v10 = vmul.f32 %v10601_v40, %v14501_v51 }
 0x26d   :  { %v2903_v52 = vsub.f32 %v10347_v24, %v10538_v14  ;;  %v2904_v9 = vsub.f32 %v10336_v3, %v10527_v27  ;;  %v2906_v36 = vsub.f32 %v10361_v21, %v10527_v27  ;;  %v10643_v34 = vmul.f32 %v10601_v40, %v14502_v44 }
 0x26e   :  { %v2908_v1 = vsub.f32 %v10364_v42, %v10527_v27  ;;  %v2910_v43 = vsub.f32 %v10385_v26, %v10527_v27  ;;  %6243 = vpow2.f32 %v2936_v61  ;;  %v2940_v46 = vmul.f32 1.442695, %v2901_v0 }
 0x26f   :  { %v2905_v24 = vsub.f32 %v10350_v32, %v10538_v14  ;;  %v2912_v3 = vsub.f32 %v10388_v37, %v10527_v27  ;;  %v2914_v21 = vsub.f32 %v10411_v50, %v10527_v27  ;;  %v2916_v39 = vsub.f32 %v10414_v19, %v10527_v27 }
 0x270   :  { %v2918_v42 = vsub.f32 %v10439_v6, %v10527_v27  ;;  %v2920_v26 = vsub.f32 %v10442_v15, %v10527_v27  ;;  %6245 = vpow2.f32 %v2938_v5  ;;  %v2942_v45 = vmul.f32 1.442695, %v2902_v18 }
 0x271   :  { %v2907_v32 = vsub.f32 %v10373_v7, %v10538_v14  ;;  %v2922_v37 = vsub.f32 %v10467_v30, %v10527_v27  ;;  %v2944_v0 = vmul.f32 1.442695, %v2903_v52  ;;  %v2909_v19 = vsub.f32 %v10376_v60, %v10538_v14 }
 0x272   :  { %v2911_v6 = vsub.f32 %v10397_v16, %v10538_v14  ;;  %6247 = vpow2.f32 %v2940_v46  ;;  %v2946_v15 = vmul.f32 1.442695, %v2904_v9  ;;  %v2913_v7 = vsub.f32 %v10400_v29, %v10538_v14  ;;  %v14504_v16 = vld [vmem:[#allocation80_spill] sm:$0xff]  ;;  %v14505_v9 = vld [vmem:[#allocation74_spill] sm:$0xff] }
 0x273   :  { %v10671_v61 = vpop.eup %6231  ;;  %v2915_v30 = vsub.f32 %v10425_v12, %v10538_v14  ;;  %v2917_v18 = vsub.f32 %v10428_v23, %v10538_v14  ;;  %v2948_v5 = vmul.f32 1.442695, %v2905_v24  ;;  %v2919_v60 = vsub.f32 %v10453_v33, %v10538_v14  ;;  %v14506_v29 = vld [vmem:[#allocation108_spill] sm:$0xff] }
 0x274   :  { %14503 = vst [vmem:[#allocation85_spill] sm:$0xff] %v10671_v61  ;;  %v2921_v46 = vsub.f32 %v14504_v16, %v10538_v14  ;;  %v2923_v20 = vsub.f32 %v14505_v9, %v10538_v14  ;;  %6249 = vpow2.f32 %v2942_v45  ;;  %v2925_v31 = vsub.f32 %v14506_v29, %v10538_v14  ;;  %v14508_v45 = vld [vmem:[#allocation27_spill] sm:$0xff]  ;;  %v14535_v61 = vld [vmem:[#allocation60_spill] sm:$0xff] }
 0x275   :  { %v6234_v52 = vpop.eup %6233  ;;  %6251 = vpow2.f32 %v2944_v0  ;;  %v2950_v12 = vmul.f32 1.442695, %v2906_v36  ;;  %v2952_v50 = vmul.f32 1.442695, %v2907_v32  ;;  %v2954_v24 = vmul.f32 1.442695, %v2908_v1 }
 0x276   :  { %v6236_v17 = vpop.eup %6235  ;;  %6253 = vpow2.f32 %v2946_v15  ;;  %v2956_v35 = vmul.f32 1.442695, %v2909_v19  ;;  %v2958_v33 = vmul.f32 1.442695, %v2910_v43  ;;  %v2960_v16 = vmul.f32 1.442695, %v2911_v6 }
 0x277   :  { %v10687_v23 = vpop.eup %6237  ;;  %6255 = vpow2.f32 %v2948_v5  ;;  %v2990_v9 = vmul.f32 %v6234_v52, %v14507_v54  ;;  %v2992_v44 = vmul.f32 %v6236_v17, %v14508_v45  ;;  %v3084_v32 = vsel %vm519_vm0, %v6234_v52, 0.0 }
 0x278   :  { %v10689_v53 = vpop.eup %6239  ;;  %v2991_v14 = vmul.f32 %v10687_v23, %v14507_v54  ;;  %v3085_v1 = vsel %vm519_vm0, %v6236_v17, 0.0  ;;  %6257 = vpow2.f32 %v2950_v12  ;;  %v2962_v43 = vmul.f32 1.442695, %v2912_v3 }
 0x279   :  { %v2993_v36 = vmul.f32 %v10689_v53, %v14508_v45  ;;  %v6242_v0 = vpop.eup %6241  ;;  %v2964_v19 = vmul.f32 1.442695, %v2913_v7  ;;  %v2966_v15 = vmul.f32 1.442695, %v2914_v21  ;;  %6259 = vpow2.f32 %v2952_v50 }
 0x27a   :  { %v2968_v6 = vmul.f32 1.442695, %v2915_v30  ;;  %v10699_v5 = vmul.f32 1.442695, %v2916_v39  ;;  %v10701_v29 = vmul.f32 1.442695, %v2917_v18  ;;  %v2994_v56 = vmul.f32 %v6242_v0, %v14509_v8 }
 0x27b   :  { %v10703_v51 = vpop.eup %6243  ;;  %v3022_v49 = vsel %vm519_vm0, %v2990_v9, 0.0  ;;  %v3023_v52 = vsel %vm519_vm0, %v2992_v44, 0.0  ;;  %v3086_v17 = vadd.f32 %v3085_v1, %v3084_v32  ;;  %v3053_v21 = vsel %vm519_vm0, %v2991_v14, 0.0  ;;  %v14510_v14 = vld [vmem:[#allocation29_spill] sm:$0xff] }
 0x27c   :  { %v2995_v3 = vmul.f32 %v10703_v51, %v14509_v8  ;;  %v3054_v50 = vsel %vm519_vm0, %v2993_v36, 0.0  ;;  %v3087_v39 = vsel %vm519_vm0, %v6242_v0, 0.0  ;;  %6261 = vpow2.f32 %v2954_v24 }
 0x27d   :  { %v6246_v7 = vpop.eup %6245  ;;  %v10713_v30 = vmul.f32 1.442695, %v2918_v42  ;;  %v10715_v18 = vmul.f32 1.442695, %v2919_v60  ;;  %v10717_v12 = vmul.f32 1.442695, %v2920_v26  ;;  %6263 = vpow2.f32 %v2956_v35 }
 0x27e   :  { %v10719_v44 = vmul.f32 1.442695, %v2921_v46  ;;  %v10721_v9 = vmul.f32 1.442695, %v2922_v37  ;;  %v3024_v32 = vadd.f32 %v3023_v52, %v3022_v49  ;;  %v2996_v36 = vmul.f32 %v6246_v7, %v14510_v14 }
 0x27f   :  { %v10723_v1 = vpop.eup %6247  ;;  %v3025_v0 = vsel %vm519_vm0, %v2994_v56, 0.0  ;;  %v3055_v8 = vadd.f32 %v3054_v50, %v3053_v21  ;;  %v3088_v24 = vadd.f32 %v3087_v39, %v3086_v17  ;;  %6265 = vpow2.f32 %v2958_v33  ;;  %v14515_v17 = vld [vmem:[#allocation47_spill] sm:$0xff]  ;;  %v14516_v21 = vld [vmem:[#allocation48_spill] sm:$0xff]  ;;  %v14517_v50 = vld [vmem:[#allocation30_spill] sm:$0xff] }
 0x280   :  { %v2997_v42 = vmul.f32 %v10723_v1, %v14510_v14  ;;  %v3056_v26 = vsel %vm519_vm0, %v2995_v3, 0.0  ;;  %v3089_v35 = vsel %vm519_vm0, %v6246_v7, 0.0  ;;  %6267 = vpow2.f32 %v2960_v16  ;;  %v14522_v14 = vld [vmem:[#allocation52_spill] sm:$0xff] }
 0x281   :  { %v6250_v60 = vpop.eup %6249  ;;  %v10731_v37 = vmul.f32 1.442695, %v2923_v20  ;;  %v14512_v49 = vsub.f32 %v10470_v28, %v10527_v27  ;;  %v10738_v56 = vmul.f32 1.442695, %v2925_v31  ;;  %6269 = vpow2.f32 %v2962_v43 }
 0x282   :  { %v10740_v52 = vpop.eup %6251  ;;  %v3026_v33 = vadd.f32 %v3025_v0, %v3024_v32  ;;  %v10744_v3 = vmul.f32 %v10601_v40, %v14515_v17  ;;  %v10748_v16 = vmul.f32 %v10601_v40, %v14516_v21  ;;  %v2998_v39 = vmul.f32 %v6250_v60, %v14517_v50 }
 0x283   :  { %14511 = vst [vmem:[#allocation103_spill] sm:$0xff] %v10731_v37  ;;  %v10736_v46 = vmul.f32 1.442695, %v14512_v49  ;;  %14514 = vst [vmem:[#allocation94_spill] sm:$0xff] %v10738_v56  ;;  %v6254_v20 = vpop.eup %6253  ;;  %v3027_v28 = vsel %vm519_vm0, %v2996_v36, 0.0  ;;  %v3057_v27 = vadd.f32 %v3056_v26, %v3055_v8  ;;  %v3090_v31 = vadd.f32 %v3089_v35, %v3088_v24  ;;  %v14518_v36 = vld [vmem:[#allocation49_spill] sm:$0xff] }
 0x284   :  { %v10752_v7 = vpop.eup %6255  ;;  %6271 = vpow2.f32 %v2964_v19  ;;  %v2999_v43 = vmul.f32 %v10740_v52, %v14517_v50  ;;  %v3058_v32 = vsel %vm519_vm0, %v2997_v42, 0.0  ;;  %v3091_v0 = vsel %vm519_vm0, %v6250_v60, 0.0  ;;  %v14519_v26 = vld [vmem:[#allocation50_spill] sm:$0xff]  ;;  %v14520_v42 = vld [vmem:[#allocation51_spill] sm:$0xff] }
 0x285   :  { %14513 = vst [vmem:[#allocation89_spill] sm:$0xff] %v10736_v46  ;;  %6273 = vpow2.f32 %v2966_v15  ;;  %v3115_v49 = vsel %vm519_vm0, %v10687_v23, 0.0  ;;  %v3116_v21 = vsel %vm519_vm0, %v10689_v53, 0.0  ;;  %v10764_v8 = vmul.f32 %v10601_v40, %v14518_v36  ;;  %v6258_v24 = vpop.eup %6257  ;;  %v14521_v23 = vld [vmem:[#allocation31_spill] sm:$0xff]  ;;  %v14561_v56 = vld [vmem:[#allocation70_spill] sm:$0xff] }
 0x286   :  { %6275 = vpow2.f32 %v2968_v6  ;;  %v3028_v19 = vadd.f32 %v3027_v28, %v3026_v33  ;;  %v10768_v35 = vmul.f32 %v10601_v40, %v14519_v26  ;;  %v10772_v15 = vmul.f32 %v10601_v40, %v14520_v42  ;;  %v10774_v60 = vpop.eup %6259 }
 0x287   :  { %v3000_v17 = vmul.f32 %v6254_v20, %v14521_v23  ;;  %v3029_v53 = vsel %vm519_vm0, %v2998_v39, 0.0  ;;  %v3059_v50 = vadd.f32 %v3058_v32, %v3057_v27  ;;  %v3092_v36 = vadd.f32 %v3091_v0, %v3090_v31  ;;  %v14523_v39 = vld [vmem:[#allocation53_spill] sm:$0xff]  ;;  %v14524_v32 = vld [vmem:[#allocation54_spill] sm:$0xff]  ;;  %v14526_v0 = vld [vmem:[#allocation32_spill] sm:$0xff] }
 0x288   :  { %v3001_v6 = vmul.f32 %v10752_v7, %v14521_v23  ;;  %v3060_v33 = vsel %vm519_vm0, %v2999_v43, 0.0  ;;  %v3093_v28 = vsel %vm519_vm0, %v6254_v20, 0.0  ;;  %v3117_v26 = vadd.f32 %v3116_v21, %v3115_v49 }
 0x289   :  { %6277 = vpow2.f32 %v10699_v5  ;;  %v3118_v42 = vsel %vm519_vm0, %v10703_v51, 0.0  ;;  %v10787_v45 = vmul.f32 %v10601_v40, %v14522_v14  ;;  %v10791_v27 = vmul.f32 %v10601_v40, %v14523_v39  ;;  %v6262_v31 = vpop.eup %6261  ;;  %v14525_v5 = vld [vmem:[#allocation55_spill] sm:$0xff] }
 0x28a   :  { %6279 = vpow2.f32 %v10701_v29  ;;  %v3030_v43 = vadd.f32 %v3029_v53, %v3028_v19  ;;  %v10796_v21 = vmul.f32 %v10601_v40, %v14524_v32  ;;  %v10800_v20 = vmul.f32 %v10601_v40, %v14525_v5  ;;  %v10802_v51 = vpop.eup %6263 }
 0x28b   :  { %v3002_v49 = vmul.f32 %v6258_v24, %v14526_v0  ;;  %v3031_v14 = vsel %vm519_vm0, %v3000_v17, 0.0  ;;  %v3061_v39 = vadd.f32 %v3060_v33, %v3059_v50  ;;  %v3094_v23 = vadd.f32 %v3093_v28, %v3092_v36  ;;  %v14528_v17 = vld [vmem:[#allocation57_spill] sm:$0xff] }
 0x28c   :  { %v3003_v29 = vmul.f32 %v10774_v60, %v14526_v0  ;;  %v3062_v19 = vsel %vm519_vm0, %v3001_v6, 0.0  ;;  %v3095_v53 = vsel %vm519_vm0, %v6258_v24, 0.0  ;;  %v3119_v32 = vadd.f32 %v3118_v42, %v3117_v26  ;;  %v6266_v54 = vpop.eup %6265  ;;  %v14530_v26 = vld [vmem:[#allocation58_spill] sm:$0xff]  ;;  %v14533_v33 = vld [vmem:[#allocation33_spill] sm:$0xff] }
 0x28d   :  { %6281 = vpow2.f32 %v10713_v30  ;;  %v3120_v5 = vsel %vm519_vm0, %v10723_v1, 0.0  ;;  %v10815_v55 = vmul.f32 %v10601_v40, %v14527_v62  ;;  %v10819_v50 = vmul.f32 %v10601_v40, %v14528_v17  ;;  %v10821_v36 = vpop.eup %6267  ;;  %v14531_v30 = vld [vmem:[#allocation59_spill] sm:$0xff] }
 0x28e   :  { %14529 = vst [vmem:[#allocation81_spill] sm:$0xff] %v10821_v36  ;;  %6283 = vpow2.f32 %v10715_v18  ;;  %v3032_v24 = vadd.f32 %v3031_v14, %v3030_v43  ;;  %v10826_v42 = vmul.f32 %v10601_v40, %v14530_v26  ;;  %v10830_v1 = vmul.f32 %v10601_v40, %v14531_v30  ;;  %v10832_v6 = vpop.eup %6269 }
 0x28f   :  { %14532 = vst [vmem:[#allocation77_spill] sm:$0xff] %v10832_v6  ;;  %v3004_v28 = vmul.f32 %v6262_v31, %v14533_v33  ;;  %v3033_v17 = vsel %vm519_vm0, %v3002_v49, 0.0  ;;  %v3063_v62 = vadd.f32 %v3062_v19, %v3061_v39  ;;  %v3096_v0 = vadd.f32 %v3095_v53, %v3094_v23  ;;  %v14536_v49 = vld [vmem:[#allocation61_spill] sm:$0xff] }
 0x290   :  { %6285 = vpow2.f32 %v10717_v12  ;;  %v3064_v18 = vsel %vm519_vm0, %v3003_v29, 0.0  ;;  %v3097_v14 = vsel %vm519_vm0, %v6262_v31, 0.0  ;;  %v3121_v43 = vadd.f32 %v3120_v5, %v3119_v32  ;;  %v14539_v31 = vld [vmem:[#allocation34_spill] sm:$0xff] }
 0x291   :  { %v10839_v26 = vpop.eup %6271  ;;  %6287 = vpow2.f32 %v10719_v44  ;;  %v3122_v30 = vsel %vm519_vm0, %v10740_v52, 0.0  ;;  %v3183_v47 = vmul.f32 %v10601_v40, %v14535_v61  ;;  %v3184_v23 = vmul.f32 %v10601_v40, %v14536_v49  ;;  %v14547_v61 = vld [vmem:[#allocation62_spill] sm:$0xff] }
 0x292   :  { %14534 = vst [vmem:[#allocation88_spill] sm:$0xff] %v10839_v26  ;;  %v10848_v39 = vpop.eup %6273  ;;  %6289 = vpow2.f32 %v10721_v9  ;;  %v10853_v12 = vmul.f32 %v10802_v51, %v14533_v33  ;;  %v10856_v44 = vmul.f32 %v6266_v54, %v14539_v31  ;;  %v10858_v32 = vadd.f32 %v3033_v17, %v3032_v24  ;;  %v14574_v26 = vld [vmem:[#allocation11_spill] sm:$0xff] }
 0x293   :  { %14537 = vst [vmem:[#allocation86_spill] sm:$0xff] %v10848_v39  ;;  %v10860_v52 = vpop.eup %6275  ;;  %v10864_v5 = vmul.f32 %v10821_v36, %v14539_v31  ;;  %v10867_v29 = vsel %vm519_vm0, %v3004_v28, 0.0  ;;  %v10869_v9 = vadd.f32 %v3064_v18, %v3063_v62  ;;  %v10871_v19 = vadd.f32 %v3097_v14, %v3096_v0  ;;  %v14548_v28 = vld [vmem:[#allocation63_spill] sm:$0xff]  ;;  %v14549_v18 = vld [vmem:[#allocation64_spill] sm:$0xff]  ;;  %v14582_v39 = vld [vmem:[#allocation14_spill] sm:$0xff] }
 0x294   :  { %14538 = vst [vmem:[#allocation76_spill] sm:$0xff] %v10853_v12  ;;  %14540 = vst [vmem:[#allocation99_spill] sm:$0xff] %v10856_v44  ;;  %v10874_v53 = vsel %vm519_vm0, %v6266_v54, 0.0  ;;  %v3123_v49 = vadd.f32 %v3122_v30, %v3121_v43  ;;  %v3124_v17 = vsel %vm519_vm0, %v10752_v7, 0.0  ;;  %v10880_v24 = vsel %vm519_vm0, %v10774_v60, 0.0  ;;  %v14551_v54 = vld [vmem:[#allocation97_spill] sm:$0xff] }
 0x295   :  { %14541 = vst [vmem:[#allocation102_spill] sm:$0xff] %v10858_v32  ;;  %14542 = vst [vmem:[#allocation96_spill] sm:$0xff] %v10860_v52  ;;  %v3185_v31 = vmul.f32 %v10601_v40, %v14547_v61  ;;  %v3186_v62 = vmul.f32 %v10601_v40, %v14548_v28  ;;  %v3187_v0 = vmul.f32 %v10601_v40, %v14549_v18  ;;  %v14550_v14 = vstv %s10567_s23  ;;  %v14553_v43 = vld [vmem:[#allocation65_spill] sm:$0xff]  ;;  %v14559_v18 = vld [vmem:[#allocation68_spill] sm:$0xff] }
 0x296   :  { %14543 = vst [vmem:[#allocation91_spill] sm:$0xff] %v10864_v5  ;;  %14544 = vst [vmem:[#allocation93_spill] sm:$0xff] %v10867_v29  ;;  %v3198_v33 = vmul.f32 %v14551_v54, %v14550_v14  ;;  %v10891_v30 = vpop.eup %6277  ;;  %v3188_v7 = vmul.f32 %v10601_v40, %v14553_v43  ;;  %v3189_v60 = vmul.f32 %v10601_v40, %v14554_v57  ;;  %v14556_v48 = vmov %v14550_v14  ;;  %v14560_v14 = vld [vmem:[#allocation69_spill] sm:$0xff]  ;;  %v14584_v44 = vld [vmem:[#allocation23_spill] sm:$0xff] }
 0x297   :  { %14545 = vst [vmem:[#allocation82_spill] sm:$0xff] %v10869_v9  ;;  %14546 = vst [vmem:[#allocation84_spill] sm:$0xff] %v10874_v53  ;;  %v3190_v61 = vmul.f32 %v10601_v40, %v14555_v38  ;;  %v3199_v28 = vmul.f32 %v14557_v58, %v14556_v48  ;;  %v10902_v11 = vpop.eup %6279  ;;  %v3191_v41 = vmul.f32 %v10601_v40, %v14559_v18  ;;  %v14563_v38 = vld [vmem:[#allocation72_spill] sm:$0xff]  ;;  %v14564_v58 = vld [vmem:[#allocation73_spill] sm:$0xff] }
 0x298   :  { %14552 = vst [vmem:[#allocation87_spill] sm:$0xff] %v10891_v30  ;;  %14558 = vst [vmem:[#allocation95_spill] sm:$0xff] %v10902_v11  ;;  %v3192_v54 = vmul.f32 %v10601_v40, %v14560_v14  ;;  %v3193_v43 = vmul.f32 %v10601_v40, %v14561_v56  ;;  %v3194_v57 = vmul.f32 %v10601_v40, %v14562_v13  ;;  %v14565_v11 = vld [vmem:[#allocation9_spill] sm:$0xff]  ;;  %v14566_v14 = vld [vmem:[#allocation10_spill] sm:$0xff] }
 0x299   :  { %v10912_v59 = vadd.f32 %v3124_v17, %v3123_v49  ;;  %v3195_v30 = vmul.f32 %v10601_v40, %v14563_v38  ;;  %v3196_v48 = vmul.f32 %v10601_v40, %v14564_v58  ;;  %v3233_v18 = vmul.f32 %v10627_v63, %v14565_v11  ;;  %v14568_v49 = vld [vmem:[#allocation19_spill] sm:$0xff]  ;;  %v14585_v12 = vld [vmem:[#allocation25_spill] sm:$0xff]  ;;  %v14586_v29 = vld [vmem:[#allocation18_spill] sm:$0xff] }
 0x29a   :  { %v10921_v46 = vadd.f32 %v3198_v33, %v10616_v22  ;;  %v3234_v56 = vmul.f32 %v10627_v63, %v14566_v14  ;;  %v3235_v13 = vmul.f32 %v10627_v63, %v14567_v4  ;;  %v3236_v17 = vmul.f32 %v10627_v63, %v14568_v49  ;;  %v10929_v52 = vpop.eup %6281 }
 0x29b   :  { %14569 = vst [vmem:[#allocation92_spill] sm:$0xff] %v10929_v52  ;;  %v10932_v38 = vadd.f32 %v3199_v28, %v10620_v25  ;;  %v10935_v40 = vadd.f32 %v3198_v33, %v10624_v2  ;;  %v10938_v22 = vadd.f32 %v3199_v28, %v10633_v10  ;;  %v10941_v11 = vadd.f32 %v3198_v33, %v10643_v34  ;;  %v10943_v14 = vpop.eup %6283 }
 0x29c   :  { %14570 = vst [vmem:[#allocation78_spill] sm:$0xff] %v10943_v14  ;;  %v10946_v4 = vadd.f32 %v3199_v28, %v10744_v3  ;;  %v10949_v49 = vadd.f32 %v3198_v33, %v10748_v16  ;;  %v10952_v25 = vadd.f32 %v3199_v28, %v10764_v8  ;;  %v10955_v2 = vadd.f32 %v3198_v33, %v10768_v35 }
 0x29d   :  { %v10958_v10 = vadd.f32 %v3199_v28, %v10772_v15  ;;  %v10961_v34 = vadd.f32 %v3198_v33, %v10787_v45  ;;  %v10964_v58 = vadd.f32 %v3199_v28, %v10791_v27  ;;  %v10967_v3 = vadd.f32 %v3198_v33, %v10796_v21  ;;  %v10969_v16 = vpop.eup %6285 }
 0x29e   :  { %14571 = vst [vmem:[#allocation80_spill] sm:$0xff] %v10969_v16  ;;  %v10972_v8 = vadd.f32 %v3199_v28, %v10800_v20  ;;  %v10975_v35 = vadd.f32 %v3198_v33, %v10815_v55  ;;  %v10978_v15 = vadd.f32 %v3199_v28, %v10819_v50  ;;  %v10981_v45 = vadd.f32 %v3198_v33, %v10826_v42  ;;  %v10983_v14 = vpop.eup %6287 }
 0x29f   :  { %14572 = vst [vmem:[#allocation74_spill] sm:$0xff] %v10983_v14  ;;  %v10986_v27 = vadd.f32 %v3199_v28, %v10830_v1  ;;  %v10988_v21 = vadd.f32 %v3198_v33, %v3183_v47  ;;  %v10990_v16 = vadd.f32 %v3199_v28, %v3184_v23  ;;  %v10992_v20 = vadd.f32 %v3198_v33, %v3185_v31  ;;  %v10994_v52 = vpop.eup %6289 }
 0x2a0   :  { %14573 = vst [vmem:[#allocation108_spill] sm:$0xff] %v10994_v52  ;;  %v3221_v55 = vadd.f32 %v3199_v28, %v3186_v62  ;;  %v3222_v5 = vadd.f32 %v3198_v33, %v3187_v0  ;;  %v3223_v50 = vadd.f32 %v3199_v28, %v3188_v7  ;;  %v3224_v9 = vadd.f32 %v3198_v33, %v3189_v60  ;;  %v14575_v0 = vld [vmem:[#allocation12_spill] sm:$0xff]  ;;  %v14577_v60 = vld [vmem:[#allocation21_spill] sm:$0xff]  ;;  %v14579_v52 = vld [vmem:[#allocation15_spill] sm:$0xff] }
 0x2a1   :  { %v10996_v37 = vadd.f32 %v3199_v28, %v3190_v61  ;;  %v10998_v42 = vadd.f32 %v3198_v33, %v3191_v41  ;;  %v11000_v14 = vadd.f32 %v3199_v28, %v3192_v54  ;;  %v11002_v1 = vadd.f32 %v3198_v33, %v3193_v43  ;;  %v14576_v61 = vld [vmem:[#allocation20_spill] sm:$0xff]  ;;  %v14578_v43 = vld [vmem:[#allocation13_spill] sm:$0xff] }
 0x2a2   :  { %v11004_v47 = vadd.f32 %v3199_v28, %v3194_v57  ;;  %v11006_v23 = vadd.f32 %v3198_v33, %v3195_v30  ;;  %v11008_v31 = vadd.f32 %v3199_v28, %v3196_v48  ;;  %v3237_v62 = vmul.f32 %v10627_v63, %v14574_v26  ;;  %v14580_v28 = vld [vmem:[#allocation22_spill] sm:$0xff]  ;;  %v14581_v48 = vld [vmem:[#allocation24_spill] sm:$0xff] }
 0x2a3   :  { %v3238_v7 = vmul.f32 %v10627_v63, %v14575_v0  ;;  %v3239_v41 = vmul.f32 %v10627_v63, %v14576_v61  ;;  %v3240_v54 = vmul.f32 %v10627_v63, %v14577_v60  ;;  %v3241_v57 = vmul.f32 %v10627_v63, %v14578_v43  ;;  %v14583_v61 = vld [vmem:[#allocation17_spill] sm:$0xff] }
 0x2a4   :  { %v3242_v33 = vmul.f32 %v10627_v63, %v14579_v52  ;;  %v3243_v30 = vmul.f32 %v10627_v63, %v14580_v28  ;;  %v3244_v26 = vmul.f32 %v10627_v63, %v14581_v48  ;;  %v3245_v0 = vmul.f32 %v10627_v63, %v14582_v39 }
 0x2a5   :  { %v3246_v60 = vmul.f32 %v10627_v63, %v14583_v61  ;;  %v3247_v43 = vmul.f32 %v10627_v63, %v14584_v44  ;;  %v3248_v52 = vmul.f32 %v10627_v63, %v14585_v12  ;;  %v3268_v32 = vrot.slane %v3233_v18, %v14586_v29 }
 0x2a6   :  { %v3272_v28 = vrot.slane %v3234_v56, %v14586_v29  ;;  %v3276_v48 = vrot.slane %v3235_v13, %v14586_v29  ;;  %v3280_v36 = vrot.slane %v3236_v17, %v14586_v29  ;;  %v3284_v39 = vrot.slane %v3237_v62, %v14586_v29 }
 0x2a7   :  { %v3288_v6 = vrot.slane %v3238_v7, %v14586_v29  ;;  %v3292_v61 = vrot.slane %v3239_v41, %v14586_v29  ;;  %v3296_v53 = vrot.slane %v3240_v54, %v14586_v29  ;;  %v3300_v44 = vrot.slane %v3241_v57, %v14586_v29 }
 0x2a8   :  { %v3304_v63 = vrot.slane %v3242_v33, %v14586_v29  ;;  %v3308_v18 = vrot.slane %v3243_v30, %v14586_v29  ;;  %v3312_v56 = vrot.slane %v3244_v26, %v14586_v29  ;;  %v3316_v13 = vrot.slane %v3245_v0, %v14586_v29 }
 0x2a9   :  { %v3320_v17 = vrot.slane %v3246_v60, %v14586_v29  ;;  %v11051_v62 = vrot.slane %v3247_v43, %v14586_v29  ;;  %v11054_v7 = vrot.slane %v3248_v52, %v14586_v29  ;;  %v3345_v41 = vadd.f32 %v3268_v32, %v10921_v46  ;;  %v14598_v29 = vld [vmem:[#allocation103_spill] sm:$0xff] }
 0x2aa   :  { %v3346_v54 = vadd.f32 %v3268_v32, %v10932_v38  ;;  %v3347_v57 = vadd.f32 %v3272_v28, %v10935_v40  ;;  %v3348_v33 = vadd.f32 %v3272_v28, %v10938_v22  ;;  %v3349_v26 = vadd.f32 %v3276_v48, %v10941_v11 }
 0x2ab   :  { %v3350_v0 = vadd.f32 %v3276_v48, %v10946_v4  ;;  %v3351_v60 = vadd.f32 %v3280_v36, %v10949_v49  ;;  %v3352_v43 = vadd.f32 %v3280_v36, %v10952_v25  ;;  %v3353_v52 = vadd.f32 %v3284_v39, %v10955_v2 }
 0x2ac   :  { %v3354_v30 = vadd.f32 %v3284_v39, %v10958_v10  ;;  %v3355_v46 = vadd.f32 %v3288_v6, %v10961_v34  ;;  %v3356_v38 = vadd.f32 %v3288_v6, %v10964_v58  ;;  %v3357_v32 = vadd.f32 %v3292_v61, %v10967_v3 }
 0x2ad   :  { %v3358_v40 = vadd.f32 %v3292_v61, %v10972_v8  ;;  %v3359_v11 = vadd.f32 %v3296_v53, %v10975_v35  ;;  %v3360_v4 = vadd.f32 %v3296_v53, %v10978_v15  ;;  %v11073_v22 = vstv %s11028_s25 }
 0x2ae   :  { %v3361_v36 = vadd.f32 %v3300_v44, %v10981_v45  ;;  %v3362_v49 = vadd.f32 %v3300_v44, %v10986_v27  ;;  %v3363_v39 = vadd.f32 %v3304_v63, %v10988_v21  ;;  %v3364_v25 = vadd.f32 %v3304_v63, %v10990_v16 }
 0x2af   :  { %v3365_v6 = vadd.f32 %v3308_v18, %v10992_v20  ;;  %v3366_v58 = vadd.f32 %v3308_v18, %v3221_v55  ;;  %v3367_v2 = vadd.f32 %v3312_v56, %v3222_v5  ;;  %v3368_v10 = vadd.f32 %v3312_v56, %v3223_v50 }
 0x2b0   :  { %v3369_v34 = vadd.f32 %v3316_v13, %v3224_v9  ;;  %v11081_v3 = vadd.f32 %v11073_v22, %v3345_v41  ;;  %v11084_v53 = vadd.f32 %v11073_v22, %v3347_v57  ;;  %v11087_v8 = vadd.f32 %v11073_v22, %v3349_v26 }
 0x2b1   :  { %v11090_v44 = vadd.f32 %v3316_v13, %v10996_v37  ;;  %v3371_v16 = vadd.f32 %v3320_v17, %v10998_v42  ;;  %v11094_v35 = vadd.f32 %v11073_v22, %v3351_v60  ;;  %v11097_v5 = vadd.f32 %v11073_v22, %v3353_v52 }
 0x2b2   :  { %v11100_v9 = vadd.f32 %v3320_v17, %v11000_v14  ;;  %v11104_v15 = vadd.f32 %v11051_v62, %v11002_v1  ;;  %v11108_v45 = vadd.f32 %v11054_v7, %v11006_v23  ;;  %v11111_v37 = vadd.f32 %v11073_v22, %v3355_v46 }
 0x2b3   :  { %v11114_v27 = vadd.f32 %v11073_v22, %v3346_v54  ;;  %v11117_v21 = vadd.f32 %v11073_v22, %v3348_v33  ;;  %v11120_v14 = vadd.f32 %v11073_v22, %v3350_v0  ;;  %v11123_v20 = vadd.f32 %v11073_v22, %v3357_v32 }
 0x2b4   :  { %v11126_v55 = vadd.f32 %v11073_v22, %v3359_v11  ;;  %v3410_v50 = vsel %vm519_vm0, %v11081_v3, -inf  ;;  %v3411_v42 = vsel %vm519_vm0, %v11084_v53, -inf  ;;  %v3412_v1 = vsel %vm519_vm0, %v11087_v8, -inf }
 0x2b5   :  { %v11135_v23 = vadd.f32 %v11073_v22, %v3352_v43  ;;  %v3413_v61 = vmax.f32 %v3410_v50, %v3412_v1  ;;  %v3414_v28 = vsel %vm519_vm0, %v11094_v35, -inf  ;;  %v3416_v48 = vsel %vm519_vm0, %v11097_v5, -inf }
 0x2b6   :  { %v11142_v63 = vadd.f32 %v11073_v22, %v3354_v30  ;;  %v11145_v18 = vadd.f32 %v11073_v22, %v3361_v36  ;;  %v3415_v56 = vmax.f32 %v3411_v42, %v3414_v28  ;;  %v3418_v13 = vsel %vm519_vm0, %v11111_v37, -inf }
 0x2b7   :  { %v11150_v17 = vadd.f32 %v11073_v22, %v3356_v38  ;;  %v11153_v41 = vadd.f32 %v11073_v22, %v3358_v40  ;;  %v3417_v54 = vmax.f32 %v3413_v61, %v3416_v48  ;;  %v3420_v57 = vsel %vm519_vm0, %v11123_v20, -inf }
 0x2b8   :  { %v11158_v33 = vadd.f32 %v11073_v22, %v3360_v4  ;;  %v11161_v26 = vadd.f32 %v11073_v22, %v3363_v39  ;;  %v3419_v0 = vmax.f32 %v3415_v56, %v3418_v13  ;;  %v3422_v60 = vsel %vm519_vm0, %v11126_v55, -inf }
 0x2b9   :  { %v11166_v43 = vadd.f32 %v11073_v22, %v3362_v49  ;;  %v11169_v52 = vadd.f32 %v11073_v22, %v3364_v25  ;;  %v11172_v30 = vadd.f32 %v11073_v22, %v3365_v6  ;;  %v11175_v46 = vadd.f32 %v11073_v22, %v3366_v58 }
 0x2ba   :  { %v11178_v38 = vadd.f32 %v11073_v22, %v3367_v2  ;;  %v3421_v32 = vmax.f32 %v3417_v54, %v3420_v57  ;;  %v3424_v40 = vsel %vm519_vm0, %v11145_v18, -inf  ;;  %v3441_v11 = vsel %vm519_vm0, %v11114_v27, -inf }
 0x2bb   :  { %v3423_v4 = vmax.f32 %v3419_v0, %v3422_v60  ;;  %v3442_v36 = vsel %vm519_vm0, %v11117_v21, -inf  ;;  %v3443_v49 = vsel %vm519_vm0, %v11120_v14, -inf  ;;  %v3445_v39 = vsel %vm519_vm0, %v11135_v23, -inf }
 0x2bc   :  { %v11191_v25 = vadd.f32 %v11073_v22, %v3368_v10  ;;  %v3426_v6 = vsel %vm519_vm0, %v11161_v26, -inf  ;;  %v3444_v58 = vmax.f32 %v3441_v11, %v3443_v49  ;;  %v3446_v2 = vmax.f32 %v3442_v36, %v3445_v39 }
 0x2bd   :  { %v11196_v50 = vadd.f32 %v11073_v22, %v3369_v34  ;;  %v3447_v42 = vsel %vm519_vm0, %v11142_v63, -inf  ;;  %v3449_v1 = vsel %vm519_vm0, %v11150_v17, -inf  ;;  %v3451_v61 = vsel %vm519_vm0, %v11153_v41, -inf }
 0x2be   :  { %v11205_v10 = vadd.f32 %v11073_v22, %v3371_v16  ;;  %v3425_v28 = vmax.f32 %v3421_v32, %v3424_v40  ;;  %v3448_v48 = vmax.f32 %v3444_v58, %v3447_v42  ;;  %v3450_v56 = vmax.f32 %v3446_v2, %v3449_v1  ;;  %v14588_v42 = vld [vmem:[#allocation77_spill] sm:$0xff] }
 0x2bf   :  { %v3427_v13 = vmax.f32 %v3423_v4, %v3426_v6  ;;  %v3453_v34 = vsel %vm519_vm0, %v11158_v33, -inf  ;;  %v3455_v54 = vsel %vm519_vm0, %v11166_v43, -inf  ;;  %v3457_v57 = vsel %vm519_vm0, %v11169_v52, -inf }
 0x2c0   :  { %v3428_v0 = vsel %vm519_vm0, %v11172_v30, -inf  ;;  %v3430_v16 = vsel %vm519_vm0, %v11178_v38, -inf  ;;  %v3452_v60 = vmax.f32 %v3448_v48, %v3451_v61  ;;  %v3454_v32 = vmax.f32 %v3450_v56, %v3453_v34 }
 0x2c1   :  { %v3127_v40 = vadd.f32 %v10880_v24, %v10912_v59  ;;  %v3128_v11 = vsel %vm519_vm0, %v10802_v51, 0.0  ;;  %v3374_v4 = vadd.f32 %v11051_v62, %v11004_v47  ;;  %v3376_v36 = vadd.f32 %v11054_v7, %v11008_v31 }
 0x2c2   :  { %v11227_v49 = vadd.f32 %v11073_v22, %v11090_v44  ;;  %v11231_v39 = vadd.f32 %v11073_v22, %v11100_v9  ;;  %v3456_v6 = vmax.f32 %v3452_v60, %v3455_v54  ;;  %v3458_v58 = vmax.f32 %v3454_v32, %v3457_v57  ;;  %v14587_v9 = vld [vmem:[#allocation84_spill] sm:$0xff] }
 0x2c3   :  { %v3429_v59 = vmax.f32 %v3425_v28, %v3428_v0  ;;  %v3431_v24 = vmax.f32 %v3427_v13, %v3430_v16  ;;  %v3459_v51 = vsel %vm519_vm0, %v11175_v46, -inf  ;;  %v3461_v47 = vsel %vm519_vm0, %v11191_v25, -inf  ;;  %v14589_v28 = vld [vmem:[#allocation81_spill] sm:$0xff]  ;;  %v14591_v0 = vld [vmem:[#allocation102_spill] sm:$0xff]  ;;  %v14593_v32 = vld [vmem:[#allocation76_spill] sm:$0xff] }
 0x2c4   :  { %v11239_v31 = vadd.f32 %v11073_v22, %v11104_v15  ;;  %v11243_v62 = vadd.f32 %v11073_v22, %v11108_v45  ;;  %v3432_v7 = vsel %vm519_vm0, %v11196_v50, -inf  ;;  %v3434_v44 = vsel %vm519_vm0, %v11205_v10, -inf  ;;  %v14592_v16 = vld [vmem:[#allocation93_spill] sm:$0xff] }
 0x2c5   :  { %v3100_v2 = vadd.f32 %v14587_v9, %v10871_v19  ;;  %v3101_v1 = vsel %vm519_vm0, %v14588_v42, 0.0  ;;  %v3129_v61 = vadd.f32 %v3128_v11, %v3127_v40  ;;  %v3130_v15 = vsel %vm519_vm0, %v14589_v28, 0.0 }
 0x2c6   :  { %v11256_v48 = vadd.f32 %v11073_v22, %v3374_v4  ;;  %v11259_v45 = vadd.f32 %v11073_v22, %v3376_v36  ;;  %v3460_v56 = vmax.f32 %v3456_v6, %v3459_v51  ;;  %v3462_v13 = vmax.f32 %v3458_v58, %v3461_v47  ;;  %v14594_v4 = vld [vmem:[#allocation35_spill] sm:$0xff]  ;;  %v14596_v51 = vld [vmem:[#allocation86_spill] sm:$0xff] }
 0x2c7   :  { %v3433_v34 = vmax.f32 %v3429_v59, %v3432_v7  ;;  %v3435_v54 = vmax.f32 %v3431_v24, %v3434_v44  ;;  %v3463_v19 = vsel %vm519_vm0, %v11227_v49, -inf  ;;  %v3465_v57 = vsel %vm519_vm0, %v11231_v39, -inf  ;;  %v14595_v6 = vld [vmem:[#allocation99_spill] sm:$0xff]  ;;  %v14597_v7 = vld [vmem:[#allocation88_spill] sm:$0xff] }
 0x2c8   :  { %14590 = vst [vmem:[#allocation97_spill] sm:$0xff] %v11259_v45  ;;  %v3036_v60 = vadd.f32 %v14592_v16, %v14591_v0  ;;  %v3066_v40 = vsel %vm519_vm0, %v14593_v32, 0.0  ;;  %v3436_v22 = vsel %vm519_vm0, %v11239_v31, -inf  ;;  %v3438_v11 = vsel %vm519_vm0, %v11243_v62, -inf }
 0x2c9   :  { %v3008_v36 = vmul.f32 %v14588_v42, %v14594_v4  ;;  %v3037_v58 = vsel %vm519_vm0, %v14595_v6, 0.0  ;;  %v3102_v59 = vadd.f32 %v3101_v1, %v3100_v2  ;;  %v3131_v24 = vadd.f32 %v3130_v15, %v3129_v61  ;;  %v14599_v61 = vld [vmem:[#allocation82_spill] sm:$0xff]  ;;  %v14600_v6 = vld [vmem:[#allocation36_spill] sm:$0xff] }
 0x2ca   :  { %v3103_v47 = vsel %vm519_vm0, %v14596_v51, 0.0  ;;  %v3132_v44 = vsel %vm519_vm0, %v14597_v7, 0.0  ;;  %v3464_v9 = vmax.f32 %v3460_v56, %v3463_v19  ;;  %v3466_v28 = vmax.f32 %v3462_v13, %v3465_v57 }
 0x2cb   :  { %v3437_v0 = vmax.f32 %v3433_v34, %v3436_v22  ;;  %v3439_v16 = vmax.f32 %v3435_v54, %v3438_v11  ;;  %v3467_v32 = vsel %vm519_vm0, %v11256_v48, -inf  ;;  %v3469_v42 = vsel %vm519_vm0, %v11259_v45, -inf  ;;  %v14601_v34 = vld [vmem:[#allocation91_spill] sm:$0xff]  ;;  %v14602_v22 = vld [vmem:[#allocation96_spill] sm:$0xff] }
 0x2cc   :  { %6291 = vpow2.f32 %v14598_v29  ;;  %v3009_v2 = vmul.f32 %v14597_v7, %v14594_v4  ;;  %v3038_v1 = vadd.f32 %v3037_v58, %v3036_v60  ;;  %v3067_v15 = vadd.f32 %v3066_v40, %v14599_v61  ;;  %v14603_v45 = vld [vmem:[#allocation104_spill] sm:$0xff]  ;;  %v14604_v58 = vld [vmem:[#allocation89_spill] sm:$0xff]  ;;  %v14605_v40 = vld [vmem:[#allocation87_spill] sm:$0xff] }
 0x2cd   :  { %v3010_v56 = vmul.f32 %v14596_v51, %v14600_v6  ;;  %v3039_v13 = vsel %vm519_vm0, %v3008_v36, 0.0  ;;  %v3068_v54 = vsel %vm519_vm0, %v14601_v34, 0.0  ;;  %v3133_v19 = vadd.f32 %v3132_v44, %v3131_v24  ;;  %v14606_v36 = vld [vmem:[#allocation75_spill] sm:$0xff]  ;;  %v14608_v24 = vld [vmem:[#allocation94_spill] sm:$0xff]  ;;  %v14609_v44 = vld [vmem:[#allocation37_spill] sm:$0xff] }
 0x2ce   :  { %v3104_v57 = vadd.f32 %v3103_v47, %v3102_v59  ;;  %v3134_v11 = vsel %vm519_vm0, %v14602_v22, 0.0  ;;  %v3468_v29 = vmax.f32 %v3464_v9, %v3467_v32  ;;  %v3470_v12 = vmax.f32 %v3466_v28, %v3469_v42  ;;  %v14607_v61 = vld [vmem:[#allocation79_spill] sm:$0xff] }
 0x2cf   :  { %v2502_v60 = vsel %vm519_vm0, %v14603_v45, 0.0  ;;  %6293 = vpow2.f32 %v14604_v58  ;;  %v3105_v51 = vsel %vm519_vm0, %v14605_v40, 0.0  ;;  %v11301_v7 = vmax.f32 %v3437_v0, %v3439_v16  ;;  %v14610_v16 = vld [vmem:[#allocation95_spill] sm:$0xff] }
 0x2d0   :  { %v2567_v34 = vadd.f32 %v14607_v61, %v14606_v36  ;;  %6295 = vpow2.f32 %v14608_v24  ;;  %v3011_v59 = vmul.f32 %v14602_v22, %v14600_v6  ;;  %v3069_v47 = vadd.f32 %v3068_v54, %v3067_v15  ;;  %v14611_v61 = vld [vmem:[#allocation109_spill] sm:$0xff]  ;;  %v14613_v22 = vld [vmem:[#allocation83_spill] sm:$0xff]  ;;  %v14614_v54 = vld [vmem:[#allocation92_spill] sm:$0xff] }
 0x2d1   :  { %v3012_v9 = vmul.f32 %v14605_v40, %v14609_v44  ;;  %v3040_v45 = vadd.f32 %v3039_v13, %v3038_v1  ;;  %v3070_v28 = vsel %vm519_vm0, %v3009_v2, 0.0  ;;  %v3135_v32 = vadd.f32 %v3134_v11, %v3133_v19  ;;  %v14612_v24 = vld [vmem:[#allocation101_spill] sm:$0xff]  ;;  %v14615_v13 = vld [vmem:[#allocation98_spill] sm:$0xff] }
 0x2d2   :  { %v3041_v42 = vsel %vm519_vm0, %v3010_v56, 0.0  ;;  %v3106_v0 = vadd.f32 %v3105_v51, %v3104_v57  ;;  %v3136_v58 = vsel %vm519_vm0, %v14610_v16, 0.0  ;;  %v11314_v36 = vmax.f32 %v3468_v29, %v3470_v12 }
 0x2d3   :  { %v2472_v4 = vadd.f32 %v14612_v24, %v14611_v61  ;;  %v2473_v15 = vsel %vm519_vm0, %v14613_v22, 0.0  ;;  %v3107_v1 = vsel %vm519_vm0, %v14614_v54, 0.0  ;;  %v3472_v2 = vsub.f32 %v11081_v3, %v11301_v7  ;;  %v14616_v24 = vld [vmem:[#allocation78_spill] sm:$0xff] }
 0x2d4   :  { %v2503_v56 = vadd.f32 %v2502_v60, %v14615_v13  ;;  %6297 = vrcp.f32 %v2567_v34  ;;  %v3071_v19 = vadd.f32 %v3070_v28, %v3069_v47  ;;  %v3474_v12 = vsub.f32 %v11084_v53, %v11301_v7  ;;  %v14617_v47 = vld [vmem:[#allocation80_spill] sm:$0xff] }
 0x2d5   :  { %v3013_v57 = vmul.f32 %v14610_v16, %v14609_v44  ;;  %v3042_v11 = vadd.f32 %v3041_v42, %v3040_v45  ;;  %v3072_v29 = vsel %vm519_vm0, %v3011_v59, 0.0  ;;  %v3137_v40 = vadd.f32 %v3136_v58, %v3135_v32  ;;  %v14618_v42 = vld [vmem:[#allocation100_spill] sm:$0xff]  ;;  %v14619_v32 = vld [vmem:[#allocation38_spill] sm:$0xff] }
 0x2d6   :  { %v3043_v51 = vsel %vm519_vm0, %v3012_v9, 0.0  ;;  %v3108_v61 = vadd.f32 %v3107_v1, %v3106_v0  ;;  %v3138_v3 = vsel %vm519_vm0, %v14616_v24, 0.0  ;;  %v3473_v60 = vsub.f32 %v11114_v27, %v11314_v36  ;;  %v14621_v44 = vld [vmem:[#allocation108_spill] sm:$0xff] }
 0x2d7   :  { %v2474_v34 = vadd.f32 %v2473_v15, %v2472_v4  ;;  %v3109_v53 = vsel %vm519_vm0, %v14617_v47, 0.0  ;;  %v3475_v28 = vsub.f32 %v11117_v21, %v11314_v36  ;;  %v3504_v45 = vmul.f32 1.442695, %v3472_v2  ;;  %v14620_v2 = vld [vmem:[#allocation74_spill] sm:$0xff] }
 0x2d8   :  { %v2504_v59 = vsel %vm519_vm0, %v14618_v42, 0.0  ;;  %v3014_v9 = vmul.f32 %v14614_v54, %v14619_v32  ;;  %v3476_v0 = vsub.f32 %v11087_v8, %v11301_v7  ;;  %v3508_v16 = vmul.f32 1.442695, %v3474_v12 }
 0x2d9   :  { %v6292_v58 = vpop.eup %6291  ;;  %v3015_v27 = vmul.f32 %v14616_v24, %v14619_v32  ;;  %v3044_v4 = vadd.f32 %v3043_v51, %v3042_v11  ;;  %v3073_v22 = vadd.f32 %v3072_v29, %v3071_v19  ;;  %v3139_v15 = vadd.f32 %v3138_v3, %v3137_v40  ;;  %v14622_v24 = vld [vmem:[#allocation39_spill] sm:$0xff] }
 0x2da   :  { %v3074_v21 = vsel %vm519_vm0, %v3013_v57, 0.0  ;;  %v3110_v1 = vadd.f32 %v3109_v53, %v3108_v61  ;;  %v3140_v13 = vsel %vm519_vm0, %v14620_v2, 0.0  ;;  %v3506_v42 = vmul.f32 1.442695, %v3473_v60 }
 0x2db   :  { %v3111_v54 = vsel %vm519_vm0, %v14621_v44, 0.0  ;;  %v3477_v8 = vsub.f32 %v11120_v14, %v11314_v36  ;;  %6299 = vpow2.f32 %v3504_v45  ;;  %v3510_v12 = vmul.f32 1.442695, %v3475_v28  ;;  %v14623_v45 = vld [vmem:[#allocation85_spill] sm:$0xff] }
 0x2dc   :  { %v6294_v6 = vpop.eup %6293  ;;  %v3016_v19 = vmul.f32 %v14617_v47, %v14622_v24  ;;  %v3478_v57 = vsub.f32 %v11094_v35, %v11301_v7  ;;  %6301 = vpow2.f32 %v3508_v16  ;;  %v3512_v11 = vmul.f32 1.442695, %v3476_v0 }
 0x2dd   :  { %v6296_v29 = vpop.eup %6295  ;;  %v3017_v40 = vmul.f32 %v14620_v2, %v14622_v24  ;;  %v3045_v51 = vsel %vm519_vm0, %v3014_v9, 0.0  ;;  %v3075_v61 = vadd.f32 %v3074_v21, %v3073_v22  ;;  %v3141_v3 = vadd.f32 %v3140_v13, %v3139_v15  ;;  %v14624_v15 = vld [vmem:[#allocation40_spill] sm:$0xff]  ;;  %v14694_v24 = vld [vmem:[#allocation67_spill] sm:$0xff] }
 0x2de   :  { %v3076_v14 = vsel %vm519_vm0, %v3015_v27, 0.0  ;;  %v3112_v60 = vadd.f32 %v3111_v54, %v3110_v1  ;;  %v3142_v53 = vsel %vm519_vm0, %v6292_v58, 0.0  ;;  %6303 = vpow2.f32 %v3506_v42 }
 0x2df   :  { %v3113_v47 = vsel %vm519_vm0, %v6294_v6, 0.0  ;;  %v3479_v35 = vsub.f32 %v11135_v23, %v11314_v36  ;;  %6305 = vpow2.f32 %v3510_v12  ;;  %v3514_v28 = vmul.f32 1.442695, %v3477_v8  ;;  %v14626_v12 = vld [vmem:[#allocation41_spill] sm:$0xff] }
 0x2e0   :  { %v2569_v0 = vmul.f32 %v14623_v45, %v2474_v34  ;;  %v3480_v9 = vsub.f32 %v11097_v5, %v11301_v7  ;;  %6307 = vpow2.f32 %v3512_v11  ;;  %v3516_v16 = vmul.f32 1.442695, %v3478_v57  ;;  %v14634_v45 = vld [vmem:[#allocation27_spill] sm:$0xff] }
 0x2e1   :  { %v6298_v27 = vpop.eup %6297  ;;  %v2505_v22 = vadd.f32 %v2504_v59, %v2503_v56  ;;  %v3018_v21 = vmul.f32 %v14621_v44, %v14624_v15  ;;  %v3046_v1 = vadd.f32 %v3045_v51, %v3044_v4  ;;  %v3143_v2 = vadd.f32 %v3142_v53, %v3141_v3 }
 0x2e2   :  { %v3047_v23 = vsel %vm519_vm0, %v3016_v19, 0.0  ;;  %v3077_v13 = vadd.f32 %v3076_v14, %v3075_v61  ;;  %v3114_v42 = vadd.f32 %v3113_v47, %v3112_v60  ;;  %v3144_v54 = vsel %vm519_vm0, %v6296_v29, 0.0 }
 0x2e3   :  { %v3078_v34 = vsel %vm519_vm0, %v3017_v40, 0.0  ;;  %v3481_v5 = vsub.f32 %v11142_v63, %v11314_v36  ;;  %6309 = vpow2.f32 %v3514_v28  ;;  %v3518_v8 = vmul.f32 1.442695, %v3479_v35  ;;  %v14633_v28 = vld [vmem:[#allocation26_spill] sm:$0xff] }
 0x2e4   :  { %v11379_v56 = vsel %vm519_vm0, %v2569_v0, 0.0  ;;  %v3482_v44 = vsub.f32 %v11111_v37, %v11301_v7  ;;  %6311 = vpow2.f32 %v3516_v16  ;;  %v3520_v59 = vmul.f32 1.442695, %v3480_v9  ;;  %v14636_v16 = vld [vmem:[#allocation43_spill] sm:$0xff] }
 0x2e5   :  { %14625 = vst [vmem:[#allocation90_spill] sm:$0xff] %v11379_v56  ;;  %v3019_v4 = vmul.f32 %v6292_v58, %v14624_v15  ;;  %v3020_v19 = vmul.f32 %v6294_v6, %v14626_v12  ;;  %v3048_v57 = vadd.f32 %v3047_v23, %v3046_v1  ;;  %v3145_v11 = vadd.f32 %v3144_v54, %v3143_v2  ;;  %v14637_v2 = vld [vmem:[#allocation44_spill] sm:$0xff] }
 0x2e6   :  { %v11385_v40 = vmul.f32 %v6298_v27, %v2505_v22  ;;  %v3049_v63 = vsel %vm519_vm0, %v3018_v21, 0.0  ;;  %v11388_v51 = vadd.f32 %v3078_v34, %v3077_v13  ;;  %6313 = vrcp.f32 %v3114_v42  ;;  %v14638_v34 = vld [vmem:[#allocation45_spill] sm:$0xff] }
 0x2e7   :  { %v3483_v61 = vsub.f32 %v11150_v17, %v11314_v36  ;;  %6315 = vpow2.f32 %v3518_v8  ;;  %v3522_v37 = vmul.f32 1.442695, %v3481_v5  ;;  %v11393_v3 = vstv %s11366_s26 }
 0x2e8   :  { %14627 = vst [vmem:[#allocation84_spill] sm:$0xff] %v11385_v40  ;;  %14628 = vst [vmem:[#allocation77_spill] sm:$0xff] %v11388_v51  ;;  %v11395_v14 = vpop.eup %6299  ;;  %v11398_v6 = vmul.f32 %v6296_v29, %v14626_v12  ;;  %v3484_v58 = vsub.f32 %v11123_v20, %v11301_v7  ;;  %6317 = vpow2.f32 %v3520_v59  ;;  %v3524_v60 = vmul.f32 1.442695, %v3482_v44  ;;  %v14635_v20 = vld [vmem:[#allocation42_spill] sm:$0xff]  ;;  %v14696_v51 = vld [vmem:[#allocation68_spill] sm:$0xff] }
 0x2e9   :  { %v11402_v53 = vpop.eup %6301  ;;  %v11404_v47 = vadd.f32 %v3049_v63, %v3048_v57  ;;  %v11407_v17 = vsel %vm519_vm0, %v3020_v19, 0.0  ;;  %v11410_v35 = vsel %vm519_vm0, %v3019_v4, 0.0  ;;  %6319 = vrcp.f32 %v3145_v11  ;;  %v14639_v4 = vld [vmem:[#allocation46_spill] sm:$0xff]  ;;  %v14640_v57 = vld [vmem:[#allocation28_spill] sm:$0xff]  ;;  %v14699_v40 = vld [vmem:[#allocation71_spill] sm:$0xff] }
 0x2ea   :  { %14629 = vst [vmem:[#allocation81_spill] sm:$0xff] %v11398_v6  ;;  %14631 = vst [vmem:[#allocation93_spill] sm:$0xff] %v11407_v17  ;;  %v3568_v29 = vmul.f32 %v11395_v14, %v14633_v28  ;;  %v3570_v0 = vmul.f32 %v11402_v53, %v14634_v45  ;;  %v11418_v9 = vmul.f32 %v11393_v3, %v14635_v20  ;;  %6321 = vpow2.f32 %v3522_v37  ;;  %v11730_v6 = vld [vmem:[%s13528_s0 + $0x8] sm:$0xff] }
 0x2eb   :  { %14630 = vst [vmem:[#allocation102_spill] sm:$0xff] %v11404_v47  ;;  %14632 = vst [vmem:[#allocation76_spill] sm:$0xff] %v11410_v35  ;;  %v11422_v27 = vmul.f32 %v11393_v3, %v14636_v16  ;;  %v11424_v22 = vpop.eup %6303  ;;  %v3485_v21 = vsub.f32 %v11153_v41, %v11314_v36  ;;  %v3526_v1 = vmul.f32 1.442695, %v3483_v61  ;;  %v11430_v23 = vmul.f32 %v11393_v3, %v14637_v2  ;;  %v14644_v2 = vld [vmem:[#allocation30_spill] sm:$0xff]  ;;  %v14697_v17 = vld [vmem:[#allocation69_spill] sm:$0xff] }
 0x2ec   :  { %v11432_v13 = vpop.eup %6305  ;;  %v3486_v42 = vsub.f32 %v11126_v55, %v11301_v7  ;;  %6323 = vpow2.f32 %v3524_v60  ;;  %v3528_v54 = vmul.f32 1.442695, %v3484_v58  ;;  %v11438_v5 = vmul.f32 %v11393_v3, %v14638_v34  ;;  %14695 = vst [vmem:[#allocation74_spill] sm:$0xff] %v11730_v6  ;;  %v14698_v47 = vld [vmem:[#allocation70_spill] sm:$0xff] }
 0x2ed   :  { %v11440_v8 = vpop.eup %6307  ;;  %v3488_v41 = vsub.f32 %v11145_v18, %v11301_v7  ;;  %v3490_v44 = vsub.f32 %v11161_v26, %v11301_v7  ;;  %v3569_v59 = vmul.f32 %v11424_v22, %v14633_v28  ;;  %v11450_v55 = vmul.f32 %v11393_v3, %v14639_v4 }
 0x2ee   :  { %v3571_v19 = vmul.f32 %v11432_v13, %v14634_v45  ;;  %v3572_v11 = vmul.f32 %v11440_v8, %v14640_v57  ;;  %v3600_v63 = vsel %vm519_vm0, %v3568_v29, 0.0  ;;  %v3601_v18 = vsel %vm519_vm0, %v3570_v0, 0.0 }
 0x2ef   :  { %v3487_v26 = vsub.f32 %v11158_v33, %v11314_v36  ;;  %v3492_v61 = vsub.f32 %v11172_v30, %v11301_v7  ;;  %6325 = vpow2.f32 %v3526_v1  ;;  %v3530_v37 = vmul.f32 1.442695, %v3485_v21 }
 0x2f0   :  { %v11462_v58 = vpop.eup %6309  ;;  %v3494_v60 = vsub.f32 %v11178_v38, %v11301_v7  ;;  %v3496_v45 = vsub.f32 %v11196_v50, %v11301_v7  ;;  %6327 = vpow2.f32 %v3528_v54  ;;  %v3532_v29 = vmul.f32 1.442695, %v3486_v42  ;;  %v14641_v38 = vld [vmem:[#allocation29_spill] sm:$0xff] }
 0x2f1   :  { %v11468_v28 = vpop.eup %6311  ;;  %v3498_v33 = vsub.f32 %v11205_v10, %v11301_v7  ;;  %v3602_v0 = vadd.f32 %v3601_v18, %v3600_v63  ;;  %v3631_v21 = vsel %vm519_vm0, %v3569_v59, 0.0  ;;  %v3573_v1 = vmul.f32 %v11462_v58, %v14640_v57 }
 0x2f2   :  { %v3574_v4 = vmul.f32 %v11468_v28, %v14641_v38  ;;  %v3603_v50 = vsel %vm519_vm0, %v3572_v11, 0.0  ;;  %v3632_v42 = vsel %vm519_vm0, %v3571_v19, 0.0  ;;  %v3489_v10 = vsub.f32 %v11166_v43, %v11314_v36 }
 0x2f3   :  { %v11481_v54 = vpop.eup %6313  ;;  %v3502_v63 = vsub.f32 %v11243_v62, %v11301_v7  ;;  %6329 = vpow2.f32 %v3530_v37  ;;  %v3534_v59 = vmul.f32 1.442695, %v3487_v26  ;;  %v3491_v30 = vsub.f32 %v11169_v52, %v11314_v36 }
 0x2f4   :  { %14642 = vst [vmem:[#allocation99_spill] sm:$0xff] %v11481_v54  ;;  %v11487_v18 = vpop.eup %6315  ;;  %v3493_v11 = vsub.f32 %v11175_v46, %v11314_v36  ;;  %6331 = vpow2.f32 %v3532_v29  ;;  %v3536_v19 = vmul.f32 1.442695, %v3488_v41  ;;  %v3495_v43 = vsub.f32 %v11191_v25, %v11314_v36 }
 0x2f5   :  { %v11493_v57 = vpop.eup %6317  ;;  %v3497_v62 = vsub.f32 %v11227_v49, %v11314_v36  ;;  %v3604_v37 = vadd.f32 %v3603_v50, %v3602_v0  ;;  %v3633_v26 = vadd.f32 %v3632_v42, %v3631_v21  ;;  %v3575_v52 = vmul.f32 %v11487_v18, %v14641_v38  ;;  %v14645_v50 = vld [vmem:[#allocation97_spill] sm:$0xff] }
 0x2f6   :  { %v11499_v34 = vpop.eup %6319  ;;  %v3576_v46 = vmul.f32 %v11493_v57, %v14644_v2  ;;  %v3605_v41 = vsel %vm519_vm0, %v3574_v4, 0.0  ;;  %v3634_v29 = vsel %vm519_vm0, %v3573_v1, 0.0  ;;  %v3499_v25 = vsub.f32 %v11231_v39, %v11314_v36 }
 0x2f7   :  { %14643 = vst [vmem:[#allocation86_spill] sm:$0xff] %v11499_v34  ;;  %v3501_v49 = vsub.f32 %v11256_v48, %v11314_v36  ;;  %6333 = vpow2.f32 %v3534_v59  ;;  %v3538_v0 = vmul.f32 1.442695, %v3489_v10  ;;  %v11511_v21 = vpop.eup %6321  ;;  %v3503_v42 = vsub.f32 %v14645_v50, %v11314_v36  ;;  %v14646_v59 = vld [vmem:[#allocation31_spill] sm:$0xff] }
 0x2f8   :  { %6335 = vpow2.f32 %v3536_v19  ;;  %v3540_v38 = vmul.f32 1.442695, %v3490_v44  ;;  %v3542_v16 = vmul.f32 1.442695, %v3491_v30  ;;  %v3606_v4 = vadd.f32 %v3605_v41, %v3604_v37 }
 0x2f9   :  { %v11515_v20 = vpop.eup %6323  ;;  %v3635_v1 = vadd.f32 %v3634_v29, %v3633_v26  ;;  %v3662_v39 = vsel %vm519_vm0, %v11395_v14, 0.0  ;;  %v3663_v48 = vsel %vm519_vm0, %v11402_v53, 0.0  ;;  %v3577_v10 = vmul.f32 %v11511_v21, %v14644_v2 }
 0x2fa   :  { %v3578_v12 = vmul.f32 %v11515_v20, %v14646_v59  ;;  %v3607_v36 = vsel %vm519_vm0, %v3576_v46, 0.0  ;;  %v3636_v44 = vsel %vm519_vm0, %v3575_v52, 0.0  ;;  %6337 = vpow2.f32 %v3538_v0  ;;  %v14647_v52 = vld [vmem:[#allocation32_spill] sm:$0xff] }
 0x2fb   :  { %v3544_v30 = vmul.f32 1.442695, %v3492_v61  ;;  %v3546_v19 = vmul.f32 1.442695, %v3493_v11  ;;  %v3548_v37 = vmul.f32 1.442695, %v3494_v60  ;;  %6339 = vpow2.f32 %v3540_v38 }
 0x2fc   :  { %v11527_v26 = vpop.eup %6325  ;;  %v3550_v14 = vmul.f32 1.442695, %v3495_v43  ;;  %v3552_v41 = vmul.f32 1.442695, %v3496_v45  ;;  %v3554_v53 = vmul.f32 1.442695, %v3497_v62  ;;  %v3608_v2 = vadd.f32 %v3607_v36, %v3606_v4 }
 0x2fd   :  { %v11529_v29 = vpop.eup %6327  ;;  %v3556_v50 = vmul.f32 1.442695, %v3498_v33  ;;  %v3637_v34 = vadd.f32 %v3636_v44, %v3635_v1  ;;  %v3664_v15 = vadd.f32 %v3663_v48, %v3662_v39  ;;  %v3579_v46 = vmul.f32 %v11527_v26, %v14646_v59  ;;  %v14651_v36 = vld [vmem:[#allocation48_spill] sm:$0xff]  ;;  %v14653_v44 = vld [vmem:[#allocation49_spill] sm:$0xff] }
 0x2fe   :  { %v3580_v61 = vmul.f32 %v11529_v29, %v14647_v52  ;;  %v3609_v60 = vsel %vm519_vm0, %v3578_v12, 0.0  ;;  %v3638_v11 = vsel %vm519_vm0, %v3577_v10, 0.0  ;;  %6341 = vpow2.f32 %v3542_v16 }
 0x2ff   :  { %v3558_v38 = vmul.f32 1.442695, %v3499_v25  ;;  %v14648_v45 = vsub.f32 %v11239_v31, %v11301_v7  ;;  %v3665_v33 = vsel %vm519_vm0, %v11440_v8, 0.0  ;;  %6343 = vpow2.f32 %v3544_v30  ;;  %v14649_v7 = vld [vmem:[#allocation33_spill] sm:$0xff] }
 0x300   :  { %v11542_v62 = vpop.eup %6329  ;;  %v3562_v0 = vmul.f32 1.442695, %v3501_v49  ;;  %v11544_v4 = vmul.f32 1.442695, %v3502_v63  ;;  %v11546_v1 = vmul.f32 1.442695, %v3503_v42  ;;  %6345 = vpow2.f32 %v3546_v19 }
 0x301   :  { %v3560_v43 = vmul.f32 1.442695, %v14648_v45  ;;  %v11548_v12 = vpop.eup %6331  ;;  %v3581_v16 = vmul.f32 %v11542_v62, %v14647_v52  ;;  %v3610_v25 = vadd.f32 %v3609_v60, %v3608_v2  ;;  %v3639_v31 = vadd.f32 %v3638_v11, %v3637_v34  ;;  %v14650_v42 = vld [vmem:[#allocation47_spill] sm:$0xff]  ;;  %v14657_v11 = vld [vmem:[#allocation34_spill] sm:$0xff] }
 0x302   :  { %v3582_v39 = vmul.f32 %v11548_v12, %v14649_v7  ;;  %v3611_v8 = vsel %vm519_vm0, %v3580_v61, 0.0  ;;  %v3640_v48 = vsel %vm519_vm0, %v3579_v46, 0.0  ;;  %v3666_v49 = vadd.f32 %v3665_v33, %v3664_v15  ;;  %v14654_v15 = vld [vmem:[#allocation50_spill] sm:$0xff] }
 0x303   :  { %6347 = vpow2.f32 %v3548_v37  ;;  %v3667_v63 = vsel %vm519_vm0, %v11468_v28, 0.0  ;;  %v11560_v10 = vmul.f32 %v11393_v3, %v14650_v42  ;;  %v11564_v2 = vmul.f32 %v11393_v3, %v14651_v36  ;;  %v14655_v28 = vld [vmem:[#allocation51_spill] sm:$0xff] }
 0x304   :  { %v11566_v34 = vpop.eup %6333  ;;  %6349 = vpow2.f32 %v3550_v14  ;;  %v11570_v30 = vmul.f32 %v11393_v3, %v14653_v44  ;;  %v11574_v19 = vmul.f32 %v11393_v3, %v14654_v15  ;;  %v11578_v37 = vmul.f32 %v11393_v3, %v14655_v28 }
 0x305   :  { %14652 = vst [vmem:[#allocation88_spill] sm:$0xff] %v11566_v34  ;;  %v11580_v46 = vpop.eup %6335  ;;  %6351 = vpow2.f32 %v3552_v41  ;;  %v3583_v61 = vmul.f32 %v11566_v34, %v14649_v7  ;;  %v3612_v60 = vadd.f32 %v3611_v8, %v3610_v25  ;;  %v3641_v14 = vadd.f32 %v3640_v48, %v3639_v31  ;;  %v14659_v31 = vld [vmem:[#allocation52_spill] sm:$0xff] }
 0x306   :  { %14656 = vst [vmem:[#allocation103_spill] sm:$0xff] %v11580_v46  ;;  %v3584_v45 = vmul.f32 %v11580_v46, %v14657_v11  ;;  %v3613_v33 = vsel %vm519_vm0, %v3582_v39, 0.0  ;;  %v3642_v52 = vsel %vm519_vm0, %v3581_v16, 0.0  ;;  %v3668_v15 = vadd.f32 %v3667_v63, %v3666_v49  ;;  %v14660_v39 = vld [vmem:[#allocation53_spill] sm:$0xff]  ;;  %v14663_v63 = vld [vmem:[#allocation35_spill] sm:$0xff] }
 0x307   :  { %6353 = vpow2.f32 %v3554_v53  ;;  %v3669_v28 = vsel %vm519_vm0, %v11493_v57, 0.0  ;;  %v3693_v41 = vsel %vm519_vm0, %v11424_v22, 0.0  ;;  %v3694_v7 = vsel %vm519_vm0, %v11432_v13, 0.0  ;;  %v11594_v25 = vpop.eup %6337  ;;  %v14661_v53 = vld [vmem:[#allocation54_spill] sm:$0xff] }
 0x308   :  { %14658 = vst [vmem:[#allocation82_spill] sm:$0xff] %v11594_v25  ;;  %6355 = vpow2.f32 %v3556_v50  ;;  %v11598_v8 = vmul.f32 %v11393_v3, %v14659_v31  ;;  %v11602_v16 = vmul.f32 %v11393_v3, %v14660_v39  ;;  %v11606_v57 = vmul.f32 %v11393_v3, %v14661_v53  ;;  %v11608_v48 = vpop.eup %6339 }
 0x309   :  { %14662 = vst [vmem:[#allocation91_spill] sm:$0xff] %v11608_v48  ;;  %v3585_v22 = vmul.f32 %v11594_v25, %v14657_v11  ;;  %v3614_v13 = vadd.f32 %v3613_v33, %v3612_v60  ;;  %v3643_v49 = vadd.f32 %v3642_v52, %v3641_v14  ;;  %v3644_v50 = vsel %vm519_vm0, %v3583_v61, 0.0  ;;  %v14664_v60 = vld [vmem:[#allocation55_spill] sm:$0xff]  ;;  %v14666_v14 = vld [vmem:[#allocation56_spill] sm:$0xff] }
 0x30a   :  { %v3586_v31 = vmul.f32 %v11608_v48, %v14663_v63  ;;  %v3615_v39 = vsel %vm519_vm0, %v3584_v45, 0.0  ;;  %v3670_v44 = vadd.f32 %v3669_v28, %v3668_v15  ;;  %v3695_v59 = vadd.f32 %v3694_v7, %v3693_v41  ;;  %v14718_v48 = vld [vmem:[#allocation24_spill] sm:$0xff] }
 0x30b   :  { %6357 = vpow2.f32 %v3558_v38  ;;  %v3671_v53 = vsel %vm519_vm0, %v11515_v20, 0.0  ;;  %v3696_v11 = vsel %vm519_vm0, %v11462_v58, 0.0  ;;  %v11624_v52 = vmul.f32 %v11393_v3, %v14664_v60  ;;  %v11626_v61 = vpop.eup %6341  ;;  %v14667_v38 = vld [vmem:[#allocation57_spill] sm:$0xff]  ;;  %v14668_v20 = vld [vmem:[#allocation58_spill] sm:$0xff] }
 0x30c   :  { %14665 = vst [vmem:[#allocation96_spill] sm:$0xff] %v11626_v61  ;;  %6359 = vpow2.f32 %v3560_v43  ;;  %v11632_v15 = vmul.f32 %v11393_v3, %v14666_v14  ;;  %v11636_v7 = vmul.f32 %v11393_v3, %v14667_v38  ;;  %v11640_v58 = vmul.f32 %v11393_v3, %v14668_v20  ;;  %v11642_v28 = vpop.eup %6343 }
 0x30d   :  { %14669 = vst [vmem:[#allocation104_spill] sm:$0xff] %v11642_v28  ;;  %6361 = vpow2.f32 %v3562_v0  ;;  %v3587_v43 = vmul.f32 %v11626_v61, %v14663_v63  ;;  %v3616_v45 = vadd.f32 %v3615_v39, %v3614_v13  ;;  %v3645_v33 = vadd.f32 %v3644_v50, %v3643_v49  ;;  %v11646_v41 = vpop.eup %6345  ;;  %v14671_v63 = vld [vmem:[#allocation59_spill] sm:$0xff]  ;;  %v14700_v61 = vld [vmem:[#allocation72_spill] sm:$0xff] }
 0x30e   :  { %14670 = vst [vmem:[#allocation89_spill] sm:$0xff] %v11646_v41  ;;  %v3617_v14 = vsel %vm519_vm0, %v3586_v31, 0.0  ;;  %v3646_v60 = vsel %vm519_vm0, %v3585_v22, 0.0  ;;  %v3672_v38 = vadd.f32 %v3671_v53, %v3670_v44  ;;  %v3697_v36 = vadd.f32 %v3696_v11, %v3695_v59  ;;  %v14673_v31 = vld [vmem:[#allocation36_spill] sm:$0xff]  ;;  %v14676_v11 = vld [vmem:[#allocation61_spill] sm:$0xff] }
 0x30f   :  { %6363 = vpow2.f32 %v11544_v4  ;;  %v3673_v20 = vsel %vm519_vm0, %v11529_v29, 0.0  ;;  %v3698_v0 = vsel %vm519_vm0, %v11487_v18, 0.0  ;;  %v11657_v39 = vmul.f32 %v11393_v3, %v14671_v63  ;;  %v14675_v59 = vld [vmem:[#allocation60_spill] sm:$0xff]  ;;  %v14682_v63 = vld [vmem:[#allocation37_spill] sm:$0xff] }
 0x310   :  { %v11659_v13 = vpop.eup %6347  ;;  %6365 = vpow2.f32 %v11546_v1  ;;  %v11664_v44 = vmul.f32 %v11642_v28, %v14673_v31  ;;  %v3761_v4 = vmul.f32 %v11393_v3, %v14675_v59  ;;  %v3762_v29 = vmul.f32 %v11393_v3, %v14676_v11 }
 0x311   :  { %14672 = vst [vmem:[#allocation87_spill] sm:$0xff] %v11659_v13  ;;  %v11670_v53 = vpop.eup %6349  ;;  %v11674_v18 = vmul.f32 %v11646_v41, %v14673_v31  ;;  %v11676_v22 = vadd.f32 %v3617_v14, %v3616_v45  ;;  %v11678_v49 = vadd.f32 %v3646_v60, %v3645_v33  ;;  %v3775_v1 = vstv %s11613_s27  ;;  %v14686_v33 = vld [vmem:[#allocation62_spill] sm:$0xff] }
 0x312   :  { %14674 = vst [vmem:[#allocation75_spill] sm:$0xff] %v11664_v44  ;;  %14677 = vst [vmem:[#allocation79_spill] sm:$0xff] %v11670_v53  ;;  %v11681_v50 = vpop.eup %6351  ;;  %v11685_v59 = vmul.f32 %v11659_v13, %v14682_v63  ;;  %v11688_v11 = vsel %vm519_vm0, %v3587_v43, 0.0  ;;  %v11690_v42 = vadd.f32 %v3673_v20, %v3672_v38  ;;  %v3699_v54 = vadd.f32 %v3698_v0, %v3697_v36  ;;  %v14688_v43 = vld [vmem:[#allocation63_spill] sm:$0xff]  ;;  %v14689_v36 = vld [vmem:[#allocation64_spill] sm:$0xff] }
 0x313   :  { %14678 = vst [vmem:[#allocation94_spill] sm:$0xff] %v11674_v18  ;;  %14679 = vst [vmem:[#allocation95_spill] sm:$0xff] %v11676_v22  ;;  %v11694_v14 = vsel %vm519_vm0, %v11548_v12, 0.0  ;;  %v3700_v60 = vsel %vm519_vm0, %v11511_v21, 0.0  ;;  %v11700_v45 = vsel %vm519_vm0, %v11527_v26, 0.0  ;;  %v3763_v31 = vmul.f32 %v11393_v3, %v14686_v33  ;;  %v11713_v12 = vld [vmem:[%s13528_s0] sm:$0xff] }
 0x314   :  { %14680 = vst [vmem:[#allocation109_spill] sm:$0xff] %v11678_v49  ;;  %14681 = vst [vmem:[#allocation101_spill] sm:$0xff] %v11681_v50  ;;  %v11704_v56 = vpop.eup %6353  ;;  %v3764_v38 = vmul.f32 %v11393_v3, %v14688_v43  ;;  %v3765_v20 = vmul.f32 %v11393_v3, %v14689_v36  ;;  %v3776_v21 = vmul.f32 %v11713_v12, %v3775_v1  ;;  %v11717_v26 = vstv %s11628_s5  ;;  %v14692_v33 = vld [vmem:[#allocation65_spill] sm:$0xff]  ;;  %v14693_v13 = vld [vmem:[#allocation66_spill] sm:$0xff]  ;;  %s11845_s0 = sld [smem:[#allocation3 + $0x186]] }
 0x315   :  { %14683 = vst [vmem:[#allocation83_spill] sm:$0xff] %v11685_v59  ;;  %14684 = vst [vmem:[#allocation92_spill] sm:$0xff] %v11688_v11  ;;  %v11719_v0 = vpop.eup %6355  ;;  %v3766_v41 = vmul.f32 %v11393_v3, %v14692_v33  ;;  %v3767_v43 = vmul.f32 %v11393_v3, %v14693_v13  ;;  %v3768_v36 = vmul.f32 %v11393_v3, %v14694_v24  ;;  %v14705_v59 = vld [vmem:[#allocation16_spill] sm:$0xff]  ;;  %v14706_v22 = vld [vmem:[#allocation19_spill] sm:$0xff] }
 0x316   :  { %14685 = vst [vmem:[#allocation98_spill] sm:$0xff] %v11694_v14  ;;  %14687 = vst [vmem:[#allocation78_spill] sm:$0xff] %v11704_v56  ;;  %v11733_v35 = vadd.f32 %v3700_v60, %v3699_v54  ;;  %v3770_v33 = vmul.f32 %v11393_v3, %v14697_v17  ;;  %v3771_v13 = vmul.f32 %v11393_v3, %v14698_v47  ;;  %v14701_v56 = vld [vmem:[#allocation73_spill] sm:$0xff]  ;;  %v14704_v17 = vld [vmem:[#allocation10_spill] sm:$0xff] }
 0x317   :  { %14690 = vst [vmem:[#allocation80_spill] sm:$0xff] %v11713_v12  ;;  %14691 = vst [vmem:[#allocation100_spill] sm:$0xff] %v11719_v0  ;;  %v3777_v12 = vmul.f32 %v11730_v6, %v3775_v1  ;;  %v3769_v0 = vmul.f32 %v11393_v3, %v14696_v51  ;;  %v3772_v24 = vmul.f32 %v11393_v3, %v14699_v40  ;;  %v14702_v54 = vld [vmem:[#allocation9_spill] sm:$0xff]  ;;  %v14719_v53 = vld [vmem:[#allocation14_spill] sm:$0xff] }
 0x318   :  { %v3773_v28 = vmul.f32 %v11393_v3, %v14700_v61  ;;  %v3774_v1 = vmul.f32 %v11393_v3, %v14701_v56  ;;  %v3811_v60 = vmul.f32 %v11717_v26, %v14702_v54  ;;  %v11749_v6 = vpop.eup %6357  ;;  %v11752_v51 = vadd.f32 %v3776_v21, %v11418_v9  ;;  %v14720_v63 = vld [vmem:[#allocation17_spill] sm:$0xff]  ;;  %v14721_v11 = vld [vmem:[#allocation23_spill] sm:$0xff]  ;;  %v14723_v44 = vld [vmem:[#allocation18_spill] sm:$0xff] }
 0x319   :  { %14703 = vst [vmem:[#allocation108_spill] sm:$0xff] %v11749_v6  ;;  %v3812_v47 = vmul.f32 %v11717_v26, %v14704_v17  ;;  %v3813_v40 = vmul.f32 %v11717_v26, %v14705_v59  ;;  %v3814_v61 = vmul.f32 %v11717_v26, %v14706_v22  ;;  %v11760_v50 = vpop.eup %6359  ;;  %v11763_v3 = vadd.f32 %v3777_v12, %v11422_v27  ;;  %v14722_v49 = vld [vmem:[#allocation25_spill] sm:$0xff] }
 0x31a   :  { %14707 = vst [vmem:[#allocation85_spill] sm:$0xff] %v11760_v50  ;;  %v11766_v54 = vadd.f32 %v3776_v21, %v11430_v23  ;;  %v11769_v9 = vadd.f32 %v3777_v12, %v11438_v5  ;;  %v11772_v56 = vadd.f32 %v3776_v21, %v11450_v55  ;;  %v11774_v17 = vpop.eup %6361  ;;  %v11777_v59 = vadd.f32 %v3777_v12, %v11560_v10 }
 0x31b   :  { %14708 = vst [vmem:[#allocation97_spill] sm:$0xff] %v11774_v17  ;;  %v11780_v22 = vadd.f32 %v3776_v21, %v11564_v2  ;;  %v11783_v27 = vadd.f32 %v3777_v12, %v11570_v30  ;;  %v3786_v23 = vadd.f32 %v3776_v21, %v11574_v19  ;;  %v11787_v50 = vadd.f32 %v3777_v12, %v11578_v37 }
 0x31c   :  { %v11790_v5 = vadd.f32 %v3776_v21, %v11598_v8  ;;  %v11793_v55 = vadd.f32 %v3777_v12, %v11602_v16  ;;  %v11796_v10 = vadd.f32 %v3776_v21, %v11606_v57  ;;  %v11798_v17 = vpop.eup %6363  ;;  %v11801_v2 = vadd.f32 %v3777_v12, %v11624_v52 }
 0x31d   :  { %14709 = vst [vmem:[#allocation110_spill] sm:$0xff] %v11798_v17  ;;  %v11804_v30 = vadd.f32 %v3776_v21, %v11632_v15  ;;  %v11807_v19 = vadd.f32 %v3777_v12, %v11636_v7  ;;  %v11810_v37 = vadd.f32 %v3776_v21, %v11640_v58  ;;  %v11812_v8 = vpop.eup %6365  ;;  %v3795_v16 = vadd.f32 %v3777_v12, %v11657_v39 }
 0x31e   :  { %14710 = vst [vmem:[#allocation111_spill] sm:$0xff] %v11812_v8  ;;  %v11815_v57 = vadd.f32 %v3776_v21, %v3761_v4  ;;  %v11817_v6 = vadd.f32 %v3777_v12, %v3762_v29  ;;  %v11819_v17 = vadd.f32 %v3776_v21, %v3763_v31  ;;  %v11821_v52 = vadd.f32 %v3777_v12, %v3764_v38  ;;  %v14711_v38 = vld [vmem:[#allocation11_spill] sm:$0xff] }
 0x31f   :  { %v11823_v15 = vadd.f32 %v3776_v21, %v3765_v20  ;;  %v11825_v32 = vadd.f32 %v3777_v12, %v3766_v41  ;;  %v11827_v7 = vadd.f32 %v3776_v21, %v3767_v43  ;;  %v11829_v58 = vadd.f32 %v3777_v12, %v3768_v36  ;;  %v14712_v43 = vld [vmem:[#allocation12_spill] sm:$0xff] }
 0x320   :  { %v11831_v25 = vadd.f32 %v3776_v21, %v3769_v0  ;;  %v11833_v8 = vadd.f32 %v3777_v12, %v3770_v33  ;;  %v11835_v39 = vadd.f32 %v3776_v21, %v3771_v13  ;;  %v11837_v4 = vadd.f32 %v3777_v12, %v3772_v24  ;;  %v14713_v20 = vld [vmem:[#allocation20_spill] sm:$0xff]  ;;  %v14714_v0 = vld [vmem:[#allocation21_spill] sm:$0xff] }
 0x321   :  { %v11839_v31 = vadd.f32 %v3776_v21, %v3773_v28  ;;  %v11841_v29 = vadd.f32 %v3777_v12, %v3774_v1  ;;  %v3815_v41 = vmul.f32 %v11717_v26, %v14711_v38  ;;  %v3816_v36 = vmul.f32 %v11717_v26, %v14712_v43  ;;  %v14715_v24 = vld [vmem:[#allocation13_spill] sm:$0xff]  ;;  %v14716_v21 = vld [vmem:[#allocation15_spill] sm:$0xff]  ;;  %v14717_v1 = vld [vmem:[#allocation22_spill] sm:$0xff] }
 0x322   :  { %v3817_v33 = vmul.f32 %v11717_v26, %v14713_v20  ;;  %v3818_v13 = vmul.f32 %v11717_v26, %v14714_v0  ;;  %v3819_v28 = vmul.f32 %v11717_v26, %v14715_v24  ;;  %v3820_v12 = vmul.f32 %v11717_v26, %v14716_v21 }
 0x323   :  { %v3821_v38 = vmul.f32 %v11717_v26, %v14717_v1  ;;  %v3822_v18 = vmul.f32 %v11717_v26, %v14718_v48  ;;  %v3823_v43 = vmul.f32 %v11717_v26, %v14719_v53  ;;  %v3824_v20 = vmul.f32 %v11717_v26, %v14720_v63 }
 0x324   :  { %v3825_v0 = vmul.f32 %v11717_v26, %v14721_v11  ;;  %v3826_v24 = vmul.f32 %v11717_v26, %v14722_v49  ;;  %v3846_v21 = vrot.slane %v3811_v60, %v14723_v44  ;;  %v3850_v34 = vrot.slane %v3812_v47, %v14723_v44 }
 0x325   :  { %v3854_v1 = vrot.slane %v3813_v40, %v14723_v44  ;;  %v3858_v48 = vrot.slane %v3814_v61, %v14723_v44  ;;  %v3862_v46 = vrot.slane %v3815_v41, %v14723_v44  ;;  %v3866_v53 = vrot.slane %v3816_v36, %v14723_v44 }
 0x326   :  { %v3870_v63 = vrot.slane %v3817_v33, %v14723_v44  ;;  %v3874_v14 = vrot.slane %v3818_v13, %v14723_v44  ;;  %v3878_v11 = vrot.slane %v3819_v28, %v14723_v44  ;;  %v3882_v26 = vrot.slane %v3820_v12, %v14723_v44 }
 0x327   :  { %v3886_v60 = vrot.slane %v3821_v38, %v14723_v44  ;;  %v3890_v47 = vrot.slane %v3822_v18, %v14723_v44  ;;  %v3894_v40 = vrot.slane %v3823_v43, %v14723_v44  ;;  %v11883_v61 = vrot.slane %v3824_v20, %v14723_v44 }
 0x328   :  { %v11886_v41 = vrot.slane %v3825_v0, %v14723_v44  ;;  %v11889_v36 = vrot.slane %v3826_v24, %v14723_v44  ;;  %v3923_v33 = vadd.f32 %v3846_v21, %v11752_v51  ;;  %v3924_v13 = vadd.f32 %v3846_v21, %v11763_v3 }
 0x329   :  { %v3925_v28 = vadd.f32 %v3850_v34, %v11766_v54  ;;  %v3926_v38 = vadd.f32 %v3850_v34, %v11769_v9  ;;  %v3927_v18 = vadd.f32 %v3854_v1, %v11772_v56  ;;  %v3928_v43 = vadd.f32 %v3854_v1, %v11777_v59 }
 0x32a   :  { %v3929_v20 = vadd.f32 %v3858_v48, %v11780_v22  ;;  %v3931_v12 = vadd.f32 %v3862_v46, %v3786_v23  ;;  %v11899_v0 = vstv %s11845_s0  ;;  %v3930_v24 = vadd.f32 %v3858_v48, %v11783_v27 }
 0x32b   :  { %v3932_v44 = vadd.f32 %v3862_v46, %v11787_v50  ;;  %v3933_v51 = vadd.f32 %v3866_v53, %v11790_v5  ;;  %v3934_v3 = vadd.f32 %v3866_v53, %v11793_v55  ;;  %v3935_v54 = vadd.f32 %v3870_v63, %v11796_v10 }
 0x32c   :  { %v3936_v34 = vadd.f32 %v3870_v63, %v11801_v2  ;;  %v3937_v56 = vadd.f32 %v3874_v14, %v11804_v30  ;;  %v3938_v59 = vadd.f32 %v3874_v14, %v11807_v19  ;;  %v3939_v22 = vadd.f32 %v3878_v11, %v11810_v37 }
 0x32d   :  { %v3940_v9 = vadd.f32 %v3878_v11, %v3795_v16  ;;  %v11911_v23 = vadd.f32 %v11899_v0, %v3923_v33  ;;  %v11914_v46 = vadd.f32 %v11899_v0, %v3925_v28  ;;  %v3941_v48 = vadd.f32 %v3882_v26, %v11815_v57 }
 0x32e   :  { %v11918_v53 = vadd.f32 %v11899_v0, %v3927_v18  ;;  %v11921_v63 = vadd.f32 %v11899_v0, %v3929_v20  ;;  %v11924_v50 = vadd.f32 %v11899_v0, %v3931_v12  ;;  %v3942_v14 = vadd.f32 %v3882_v26, %v11817_v6 }
 0x32f   :  { %v3943_v11 = vadd.f32 %v3886_v60, %v11819_v17  ;;  %v3944_v27 = vadd.f32 %v3886_v60, %v11821_v52  ;;  %v11930_v5 = vadd.f32 %v11899_v0, %v3933_v51  ;;  %v3945_v55 = vadd.f32 %v3890_v47, %v11823_v15 }
 0x330   :  { %v3946_v10 = vadd.f32 %v3890_v47, %v11825_v32  ;;  %v3947_v2 = vadd.f32 %v3894_v40, %v11827_v7  ;;  %v11936_v30 = vadd.f32 %v3894_v40, %v11829_v58  ;;  %v3949_v19 = vadd.f32 %v11883_v61, %v11831_v25 }
 0x331   :  { %v11941_v6 = vadd.f32 %v11899_v0, %v3924_v13  ;;  %v3988_v17 = vsel %vm519_vm0, %v11911_v23, -inf  ;;  %v3989_v37 = vsel %vm519_vm0, %v11914_v46, -inf  ;;  %v11948_v16 = vadd.f32 %v11899_v0, %v3935_v54 }
 0x332   :  { %v3990_v32 = vsel %vm519_vm0, %v11918_v53, -inf  ;;  %v3992_v57 = vsel %vm519_vm0, %v11921_v63, -inf  ;;  %v3994_v25 = vsel %vm519_vm0, %v11924_v50, -inf  ;;  %v11957_v52 = vadd.f32 %v11899_v0, %v3937_v56 }
 0x333   :  { %v3991_v15 = vmax.f32 %v3988_v17, %v3990_v32  ;;  %v3993_v7 = vmax.f32 %v3989_v37, %v3992_v57  ;;  %v3996_v58 = vsel %vm519_vm0, %v11930_v5, -inf  ;;  %v11962_v21 = vadd.f32 %v11899_v0, %v3926_v38 }
 0x334   :  { %v11965_v1 = vadd.f32 %v11899_v0, %v3928_v43  ;;  %v11968_v26 = vadd.f32 %v11899_v0, %v3930_v24  ;;  %v11971_v60 = vadd.f32 %v11899_v0, %v3932_v44  ;;  %v11974_v47 = vadd.f32 %v11899_v0, %v3934_v3 }
 0x335   :  { %v11977_v40 = vadd.f32 %v11899_v0, %v3936_v34  ;;  %v11980_v33 = vadd.f32 %v11899_v0, %v3938_v59  ;;  %v3995_v13 = vmax.f32 %v3991_v15, %v3994_v25  ;;  %v11983_v28 = vadd.f32 %v11899_v0, %v3939_v22 }
 0x336   :  { %v11986_v38 = vadd.f32 %v11899_v0, %v3940_v9  ;;  %v3997_v18 = vmax.f32 %v3993_v7, %v3996_v58  ;;  %v3998_v44 = vsel %vm519_vm0, %v11948_v16, -inf  ;;  %v11991_v43 = vadd.f32 %v11899_v0, %v3941_v48 }
 0x337   :  { %v11994_v20 = vadd.f32 %v11899_v0, %v3942_v14  ;;  %v4000_v12 = vsel %vm519_vm0, %v11957_v52, -inf  ;;  %v4019_v24 = vsel %vm519_vm0, %v11941_v6, -inf  ;;  %v12001_v51 = vadd.f32 %v11899_v0, %v3943_v11 }
 0x338   :  { %v4020_v3 = vsel %vm519_vm0, %v11962_v21, -inf  ;;  %v4021_v54 = vsel %vm519_vm0, %v11965_v1, -inf  ;;  %v4023_v34 = vsel %vm519_vm0, %v11968_v26, -inf  ;;  %v12010_v56 = vadd.f32 %v11899_v0, %v3945_v55 }
 0x339   :  { %v3999_v59 = vmax.f32 %v3995_v13, %v3998_v44  ;;  %v4022_v22 = vmax.f32 %v4019_v24, %v4021_v54  ;;  %v4024_v9 = vmax.f32 %v4020_v3, %v4023_v34  ;;  %v4001_v48 = vmax.f32 %v3997_v18, %v4000_v12 }
 0x33a   :  { %v4025_v14 = vsel %vm519_vm0, %v11971_v60, -inf  ;;  %v4027_v11 = vsel %vm519_vm0, %v11974_v47, -inf  ;;  %v4029_v17 = vsel %vm519_vm0, %v11977_v40, -inf  ;;  %v4002_v37 = vsel %vm519_vm0, %v11983_v28, -inf }
 0x33b   :  { %v4004_v55 = vsel %vm519_vm0, %v11991_v43, -inf  ;;  %v4026_v32 = vmax.f32 %v4022_v22, %v4025_v14  ;;  %v4028_v57 = vmax.f32 %v4024_v9, %v4027_v11  ;;  %v3950_v25 = vadd.f32 %v11883_v61, %v11833_v8 }
 0x33c   :  { %v3951_v15 = vadd.f32 %v11886_v41, %v11835_v39  ;;  %v3953_v7 = vadd.f32 %v11889_v36, %v11839_v31  ;;  %v4031_v58 = vsel %vm519_vm0, %v11980_v33, -inf  ;;  %v12031_v13 = vadd.f32 %v11899_v0, %v3944_v27 }
 0x33d   :  { %v12034_v18 = vadd.f32 %v11899_v0, %v3946_v10  ;;  %v4030_v44 = vmax.f32 %v4026_v32, %v4029_v17  ;;  %v4032_v12 = vmax.f32 %v4028_v57, %v4031_v58  ;;  %v4003_v24 = vmax.f32 %v3999_v59, %v4002_v37  ;;  %v14729_v17 = vld [vmem:[#allocation103_spill] sm:$0xff]  ;;  %v14730_v32 = vld [vmem:[#allocation88_spill] sm:$0xff] }
 0x33e   :  { %14724 = vst [vmem:[#allocation112_spill] sm:$0xff] %v12031_v13  ;;  %v4005_v3 = vmax.f32 %v4001_v48, %v4004_v55  ;;  %v4033_v8 = vsel %vm519_vm0, %v11986_v38, -inf  ;;  %v4035_v39 = vsel %vm519_vm0, %v11994_v20, -inf  ;;  %v12041_v31 = vadd.f32 %v11899_v0, %v3947_v2 }
 0x33f   :  { %14725 = vst [vmem:[#allocation113_spill] sm:$0xff] %v12034_v18  ;;  %v12044_v61 = vadd.f32 %v11899_v0, %v3949_v19  ;;  %v4006_v27 = vsel %vm519_vm0, %v12001_v51, -inf  ;;  %v4008_v10 = vsel %vm519_vm0, %v12010_v56, -inf  ;;  %v3703_v54 = vadd.f32 %v11700_v45, %v11733_v35 }
 0x340   :  { %v3704_v34 = vsel %vm519_vm0, %v11542_v62, 0.0  ;;  %v3952_v59 = vadd.f32 %v11886_v41, %v11837_v4  ;;  %v3954_v2 = vadd.f32 %v11889_v36, %v11841_v29  ;;  %v12060_v19 = vadd.f32 %v11899_v0, %v11936_v30  ;;  %v14728_v30 = vld [vmem:[#allocation98_spill] sm:$0xff] }
 0x341   :  { %v12063_v22 = vadd.f32 %v11899_v0, %v3950_v25  ;;  %v4034_v9 = vmax.f32 %v4030_v44, %v4033_v8  ;;  %v4036_v48 = vmax.f32 %v4032_v12, %v4035_v39  ;;  %v4007_v14 = vmax.f32 %v4003_v24, %v4006_v27  ;;  %v14734_v39 = vld [vmem:[#allocation109_spill] sm:$0xff]  ;;  %v14735_v27 = vld [vmem:[#allocation92_spill] sm:$0xff] }
 0x342   :  { %14726 = vst [vmem:[#allocation114_spill] sm:$0xff] %v12060_v19  ;;  %v4009_v35 = vmax.f32 %v4005_v3, %v4008_v10  ;;  %v4037_v62 = vsel %vm519_vm0, %v12031_v13, -inf  ;;  %v4039_v45 = vsel %vm519_vm0, %v12034_v18, -inf  ;;  %v12070_v4 = vadd.f32 %v11899_v0, %v3951_v15  ;;  %v14733_v3 = vld [vmem:[#allocation75_spill] sm:$0xff]  ;;  %v14760_v18 = vld [vmem:[#allocation90_spill] sm:$0xff] }
 0x343   :  { %14727 = vst [vmem:[#allocation115_spill] sm:$0xff] %v12063_v22  ;;  %v12073_v29 = vadd.f32 %v11899_v0, %v3953_v7  ;;  %v4010_v41 = vsel %vm519_vm0, %v12041_v31, -inf  ;;  %v4012_v36 = vsel %vm519_vm0, %v12044_v61, -inf  ;;  %v3676_v11 = vadd.f32 %v14728_v30, %v11690_v42 }
 0x344   :  { %v3677_v37 = vsel %vm519_vm0, %v14729_v17, 0.0  ;;  %v3705_v55 = vadd.f32 %v3704_v34, %v3703_v54  ;;  %v3706_v57 = vsel %vm519_vm0, %v14730_v32, 0.0  ;;  %v12086_v25 = vadd.f32 %v11899_v0, %v3952_v59  ;;  %v14736_v34 = vld [vmem:[#allocation37_spill] sm:$0xff]  ;;  %v14737_v59 = vld [vmem:[#allocation79_spill] sm:$0xff] }
 0x345   :  { %v12089_v15 = vadd.f32 %v11899_v0, %v3954_v2  ;;  %v4038_v7 = vmax.f32 %v4034_v9, %v4037_v62  ;;  %v4040_v58 = vmax.f32 %v4036_v48, %v4039_v45  ;;  %v4011_v44 = vmax.f32 %v4007_v14, %v4010_v41  ;;  %v14738_v9 = vld [vmem:[#allocation94_spill] sm:$0xff]  ;;  %v14739_v62 = vld [vmem:[#allocation91_spill] sm:$0xff] }
 0x346   :  { %14731 = vst [vmem:[#allocation98_spill] sm:$0xff] %v12086_v25  ;;  %v4013_v12 = vmax.f32 %v4009_v35, %v4012_v36  ;;  %v4041_v42 = vsel %vm519_vm0, %v12060_v19, -inf  ;;  %v4043_v24 = vsel %vm519_vm0, %v12063_v22, -inf  ;;  %v3619_v8 = vsel %vm519_vm0, %v14733_v3, 0.0  ;;  %v14740_v41 = vld [vmem:[#allocation82_spill] sm:$0xff]  ;;  %v14751_v22 = vld [vmem:[#allocation77_spill] sm:$0xff] }
 0x347   :  { %14732 = vst [vmem:[#allocation103_spill] sm:$0xff] %v12089_v15  ;;  %v3649_v10 = vadd.f32 %v14735_v27, %v14734_v39  ;;  %v4014_v0 = vsel %vm519_vm0, %v12070_v4, -inf  ;;  %v4016_v54 = vsel %vm519_vm0, %v12073_v29, -inf  ;;  %v3591_v2 = vmul.f32 %v14737_v59, %v14736_v34  ;;  %v14741_v34 = vld [vmem:[#allocation38_spill] sm:$0xff] }
 0x348   :  { %v3650_v48 = vsel %vm519_vm0, %v14738_v9, 0.0  ;;  %v3678_v14 = vadd.f32 %v3677_v37, %v3676_v11  ;;  %v3707_v35 = vadd.f32 %v3706_v57, %v3705_v55  ;;  %v3679_v45 = vsel %vm519_vm0, %v14739_v62, 0.0  ;;  %v14742_v9 = vld [vmem:[#allocation101_spill] sm:$0xff]  ;;  %v14743_v37 = vld [vmem:[#allocation95_spill] sm:$0xff] }
 0x349   :  { %v3708_v36 = vsel %vm519_vm0, %v14740_v41, 0.0  ;;  %v4042_v30 = vmax.f32 %v4038_v7, %v4041_v42  ;;  %v4044_v17 = vmax.f32 %v4040_v58, %v4043_v24  ;;  %v4015_v32 = vmax.f32 %v4011_v44, %v4014_v0  ;;  %v14744_v57 = vld [vmem:[#allocation83_spill] sm:$0xff]  ;;  %v14745_v7 = vld [vmem:[#allocation78_spill] sm:$0xff]  ;;  %v14746_v24 = vld [vmem:[#allocation104_spill] sm:$0xff] }
 0x34a   :  { %v4017_v3 = vmax.f32 %v4013_v12, %v4016_v54  ;;  %v4045_v39 = vsel %vm519_vm0, %v12086_v25, -inf  ;;  %v4047_v27 = vsel %vm519_vm0, %v12089_v15, -inf  ;;  %v3592_v11 = vmul.f32 %v14742_v9, %v14741_v34  ;;  %v14747_v54 = vld [vmem:[#allocation96_spill] sm:$0xff] }
 0x34b   :  { %v3620_v55 = vadd.f32 %v3619_v8, %v14743_v37  ;;  %v3621_v62 = vsel %vm519_vm0, %v14744_v57, 0.0  ;;  %v3651_v49 = vadd.f32 %v3650_v48, %v3649_v10  ;;  %v3593_v58 = vmul.f32 %v14745_v7, %v14741_v34  ;;  %v14748_v8 = vld [vmem:[#allocation84_spill] sm:$0xff]  ;;  %v14749_v57 = vld [vmem:[#allocation102_spill] sm:$0xff]  ;;  %v14750_v10 = vld [vmem:[#allocation93_spill] sm:$0xff] }
 0x34c   :  { %v3652_v44 = vsel %vm519_vm0, %v3591_v2, 0.0  ;;  %v3680_v12 = vadd.f32 %v3679_v45, %v3678_v14  ;;  %v3709_v42 = vadd.f32 %v3708_v36, %v3707_v35  ;;  %v3681_v0 = vsel %vm519_vm0, %v14746_v24, 0.0  ;;  %v14752_v34 = vld [vmem:[#allocation76_spill] sm:$0xff]  ;;  %v14753_v14 = vld [vmem:[#allocation81_spill] sm:$0xff]  ;;  %v14754_v45 = vld [vmem:[#allocation39_spill] sm:$0xff] }
 0x34d   :  { %v3710_v41 = vsel %vm519_vm0, %v14747_v54, 0.0  ;;  %v4046_v15 = vmax.f32 %v4042_v30, %v4045_v39  ;;  %v4048_v25 = vmax.f32 %v4044_v17, %v4047_v27  ;;  %v2573_v37 = vsel %vm519_vm0, %v14748_v8, 0.0  ;;  %v14755_v36 = vld [vmem:[#allocation100_spill] sm:$0xff] }
 0x34e   :  { %v3052_v48 = vadd.f32 %v14750_v10, %v14749_v57  ;;  %v3081_v19 = vadd.f32 %v14752_v34, %v14751_v22  ;;  %v12133_v2 = vmax.f32 %v4015_v32, %v4017_v3  ;;  %v3082_v35 = vsel %vm519_vm0, %v14753_v14, 0.0  ;;  %v14756_v17 = vld [vmem:[#allocation108_spill] sm:$0xff]  ;;  %v14757_v22 = vld [vmem:[#allocation87_spill] sm:$0xff]  ;;  %v14758_v32 = vld [vmem:[#allocation89_spill] sm:$0xff] }
 0x34f   :  { %v3594_v24 = vmul.f32 %v14755_v36, %v14754_v45  ;;  %v3622_v54 = vadd.f32 %v3621_v62, %v3620_v55  ;;  %v3623_v30 = vsel %vm519_vm0, %v3592_v11, 0.0  ;;  %v3595_v39 = vmul.f32 %v14756_v17, %v14754_v45  ;;  %v14762_v62 = vld [vmem:[#allocation99_spill] sm:$0xff] }
 0x350   :  { %v3653_v27 = vadd.f32 %v3652_v44, %v3651_v49  ;;  %v3682_v8 = vadd.f32 %v3681_v0, %v3680_v12  ;;  %v3711_v57 = vadd.f32 %v3710_v41, %v3709_v42  ;;  %v3654_v10 = vsel %vm519_vm0, %v3593_v58, 0.0  ;;  %v14763_v44 = vld [vmem:[#allocation40_spill] sm:$0xff]  ;;  %v14764_v12 = vld [vmem:[#allocation85_spill] sm:$0xff] }
 0x351   :  { %v3683_v34 = vsel %vm519_vm0, %v14757_v22, 0.0  ;;  %v3712_v3 = vsel %vm519_vm0, %v14758_v32, 0.0  ;;  %v12147_v14 = vmax.f32 %v4046_v15, %v4048_v25  ;;  %v12150_v55 = vadd.f32 %v2573_v37, %v14760_v18  ;;  %v14765_v25 = vld [vmem:[#allocation97_spill] sm:$0xff] }
 0x352   :  { %v3083_v11 = vadd.f32 %v3082_v35, %v3081_v19  ;;  %v3147_v13 = vmul.f32 %v14762_v62, %v3052_v48  ;;  %v4050_v49 = vsub.f32 %v11911_v23, %v12133_v2  ;;  %v3596_v58 = vmul.f32 %v14764_v12, %v14763_v44 }
 0x353   :  { %14759 = vst [vmem:[#allocation88_spill] sm:$0xff] %v12147_v14  ;;  %14761 = vst [vmem:[#allocation75_spill] sm:$0xff] %v12150_v55  ;;  %v3624_v42 = vadd.f32 %v3623_v30, %v3622_v54  ;;  %v3625_v0 = vsel %vm519_vm0, %v3594_v24, 0.0  ;;  %v4052_v41 = vsub.f32 %v11914_v46, %v12133_v2  ;;  %v3597_v15 = vmul.f32 %v14765_v25, %v14763_v44  ;;  %v14766_v54 = vld [vmem:[#allocation86_spill] sm:$0xff] }
 0x354   :  { %v3655_v18 = vadd.f32 %v3654_v10, %v3653_v27  ;;  %v3684_v37 = vadd.f32 %v3683_v34, %v3682_v8  ;;  %v3713_v19 = vadd.f32 %v3712_v3, %v3711_v57  ;;  %v3656_v48 = vsel %vm519_vm0, %v3595_v39, 0.0  ;;  %v14769_v39 = vld [vmem:[#allocation41_spill] sm:$0xff] }
 0x355   :  { %v3685_v23 = vsel %vm519_vm0, %v14742_v9, 0.0  ;;  %v3714_v35 = vsel %vm519_vm0, %v14737_v59, 0.0  ;;  %v4051_v24 = vsub.f32 %v11941_v6, %v12147_v14  ;;  %v12170_v30 = vmul.f32 %v14766_v54, %v3083_v11  ;;  %v14770_v9 = vld [vmem:[#allocation110_spill] sm:$0xff] }
 0x356   :  { %v12173_v46 = vsel %vm519_vm0, %v3147_v13, 0.0  ;;  %v4053_v27 = vsub.f32 %v11962_v21, %v12147_v14  ;;  %v4082_v8 = vmul.f32 1.442695, %v4050_v49  ;;  %v3598_v57 = vmul.f32 %v14770_v9, %v14769_v39 }
 0x357   :  { %14767 = vst [vmem:[#allocation109_spill] sm:$0xff] %v12170_v30  ;;  %14768 = vst [vmem:[#allocation92_spill] sm:$0xff] %v12173_v46  ;;  %v3626_v10 = vadd.f32 %v3625_v0, %v3624_v42  ;;  %v4054_v59 = vsub.f32 %v11918_v53, %v12133_v2  ;;  %v4086_v6 = vmul.f32 1.442695, %v4052_v41  ;;  %v3627_v22 = vsel %vm519_vm0, %v3596_v58, 0.0  ;;  %v14771_v53 = vld [vmem:[#allocation111_spill] sm:$0xff] }
 0x358   :  { %v3657_v13 = vadd.f32 %v3656_v48, %v3655_v18  ;;  %v3686_v34 = vadd.f32 %v3685_v23, %v3684_v37  ;;  %v3715_v32 = vadd.f32 %v3714_v35, %v3713_v19  ;;  %v3658_v21 = vsel %vm519_vm0, %v3597_v15, 0.0 }
 0x359   :  { %v3687_v3 = vsel %vm519_vm0, %v14755_v36, 0.0  ;;  %v3716_v11 = vsel %vm519_vm0, %v14745_v7, 0.0  ;;  %v4084_v62 = vmul.f32 1.442695, %v4051_v24  ;;  %v12195_v49 = vmul.f32 %v14771_v53, %v14769_v39 }
 0x35a   :  { %v4055_v58 = vsub.f32 %v11965_v1, %v12147_v14  ;;  %6367 = vpow2.f32 %v4082_v8  ;;  %v4088_v42 = vmul.f32 1.442695, %v4053_v27  ;;  %v12199_v0 = vadd.f32 %v3627_v22, %v3626_v10 }
 0x35b   :  { %14772 = vst [vmem:[#allocation79_spill] sm:$0xff] %v12195_v49  ;;  %v4056_v41 = vsub.f32 %v11921_v63, %v12133_v2  ;;  %6369 = vpow2.f32 %v4086_v6  ;;  %v4090_v36 = vmul.f32 1.442695, %v4054_v59  ;;  %v12204_v7 = vsel %vm519_vm0, %v3598_v57, 0.0  ;;  %v14840_v49 = vld [vmem:[#allocation74_spill] sm:$0xff] }
 0x35c   :  { %14773 = vst [vmem:[#allocation94_spill] sm:$0xff] %v12199_v0  ;;  %14774 = vst [vmem:[#allocation91_spill] sm:$0xff] %v12204_v7  ;;  %v12206_v15 = vadd.f32 %v3658_v21, %v3657_v13  ;;  %v3688_v18 = vadd.f32 %v3687_v3, %v3686_v34  ;;  %v3717_v37 = vadd.f32 %v3716_v11, %v3715_v32  ;;  %v3689_v1 = vsel %vm519_vm0, %v14764_v12, 0.0  ;;  %v14784_v34 = vld [vmem:[#allocation45_spill] sm:$0xff]  ;;  %v14785_v11 = vld [vmem:[#allocation46_spill] sm:$0xff] }
 0x35d   :  { %v12212_v19 = vsel %vm519_vm0, %v14770_v9, 0.0  ;;  %v3718_v63 = vsel %vm519_vm0, %v14756_v17, 0.0  ;;  %6371 = vpow2.f32 %v4084_v62  ;;  %v4057_v48 = vsub.f32 %v11968_v26, %v12147_v14  ;;  %v14781_v9 = vld [vmem:[#allocation42_spill] sm:$0xff]  ;;  %v14844_v0 = vld [vmem:[#allocation69_spill] sm:$0xff] }
 0x35e   :  { %14775 = vst [vmem:[#allocation82_spill] sm:$0xff] %v12206_v15  ;;  %14776 = vst [vmem:[#allocation101_spill] sm:$0xff] %v12212_v19  ;;  %6373 = vpow2.f32 %v4088_v42  ;;  %v4092_v23 = vmul.f32 1.442695, %v4055_v58  ;;  %v12219_v35 = vstv %s12177_s7  ;;  %v12223_v24 = vsel %vm519_vm0, %v14765_v25, 0.0  ;;  %v14782_v25 = vld [vmem:[#allocation43_spill] sm:$0xff] }
 0x35f   :  { %14777 = vst [vmem:[#allocation95_spill] sm:$0xff] %v12223_v24  ;;  %v4058_v12 = vsub.f32 %v11924_v50, %v12133_v2  ;;  %6375 = vpow2.f32 %v4090_v36  ;;  %v4094_v54 = vmul.f32 1.442695, %v4056_v41  ;;  %v12227_v27 = vadd.f32 %v3689_v1, %v3688_v18  ;;  %v14783_v50 = vld [vmem:[#allocation44_spill] sm:$0xff]  ;;  %v14849_v24 = vld [vmem:[#allocation9_spill] sm:$0xff] }
 0x360   :  { %v12229_v17 = vadd.f32 %v3718_v63, %v3717_v37  ;;  %v12233_v26 = vsel %vm519_vm0, %v14771_v53, 0.0  ;;  %v12238_v57 = vmul.f32 %v12219_v35, %v14781_v9  ;;  %v12242_v10 = vmul.f32 %v12219_v35, %v14782_v25  ;;  %v14789_v25 = vld [vmem:[#allocation26_spill] sm:$0xff] }
 0x361   :  { %14778 = vst [vmem:[#allocation83_spill] sm:$0xff] %v12227_v27  ;;  %14780 = vst [vmem:[#allocation104_spill] sm:$0xff] %v12233_v26  ;;  %v12246_v59 = vmul.f32 %v12219_v35, %v14783_v50  ;;  %v12249_v6 = vstv %s12186_s9  ;;  %v4059_v22 = vsub.f32 %v11971_v60, %v12147_v14  ;;  %6377 = vpow2.f32 %v4092_v23 }
 0x362   :  { %14779 = vst [vmem:[#allocation78_spill] sm:$0xff] %v12229_v17  ;;  %v4096_v13 = vmul.f32 1.442695, %v4057_v48  ;;  %v12255_v32 = vmul.f32 %v12219_v35, %v14784_v34  ;;  %v4060_v21 = vsub.f32 %v11930_v5, %v12133_v2  ;;  %6379 = vpow2.f32 %v4094_v54  ;;  %v14786_v48 = vld [vmem:[#allocation112_spill] sm:$0xff]  ;;  %v14788_v54 = vld [vmem:[#allocation114_spill] sm:$0xff] }
 0x363   :  { %v4098_v3 = vmul.f32 1.442695, %v4058_v12  ;;  %v12261_v62 = vmul.f32 %v12219_v35, %v14785_v11  ;;  %v4062_v53 = vsub.f32 %v11948_v16, %v12133_v2  ;;  %v4064_v60 = vsub.f32 %v11957_v52, %v12133_v2  ;;  %v14850_v17 = vld [vmem:[#allocation10_spill] sm:$0xff] }
 0x364   :  { %v4066_v58 = vsub.f32 %v11983_v28, %v12133_v2  ;;  %v4068_v42 = vsub.f32 %v11991_v43, %v12133_v2  ;;  %v4070_v5 = vsub.f32 %v12001_v51, %v12133_v2  ;;  %v4072_v41 = vsub.f32 %v12010_v56, %v12133_v2 }
 0x365   :  { %v4074_v36 = vsub.f32 %v12041_v31, %v12133_v2  ;;  %v4061_v52 = vsub.f32 %v11974_v47, %v12147_v14  ;;  %6381 = vpow2.f32 %v4096_v13  ;;  %v4100_v43 = vmul.f32 1.442695, %v4059_v22  ;;  %v14790_v22 = vld [vmem:[#allocation27_spill] sm:$0xff] }
 0x366   :  { %v4063_v51 = vsub.f32 %v11977_v40, %v12147_v14  ;;  %6383 = vpow2.f32 %v4098_v3  ;;  %v4102_v31 = vmul.f32 1.442695, %v4060_v21  ;;  %v4065_v1 = vsub.f32 %v11980_v33, %v12147_v14  ;;  %v14787_v40 = vld [vmem:[#allocation113_spill] sm:$0xff] }
 0x367   :  { %v6368_v18 = vpop.eup %6367  ;;  %v4067_v47 = vsub.f32 %v11986_v38, %v12147_v14  ;;  %v4069_v63 = vsub.f32 %v11994_v20, %v12147_v14  ;;  %v4071_v23 = vsub.f32 %v14786_v48, %v12147_v14  ;;  %v4073_v12 = vsub.f32 %v14787_v40, %v12147_v14  ;;  %v14791_v38 = vld [vmem:[#allocation115_spill] sm:$0xff]  ;;  %v14792_v20 = vld [vmem:[#allocation98_spill] sm:$0xff] }
 0x368   :  { %v6370_v37 = vpop.eup %6369  ;;  %v4075_v9 = vsub.f32 %v14788_v54, %v12147_v14  ;;  %v4146_v50 = vmul.f32 %v6368_v18, %v14789_v25  ;;  %v4077_v34 = vsub.f32 %v14791_v38, %v12147_v14  ;;  %v4079_v21 = vsub.f32 %v14792_v20, %v12147_v14  ;;  %v14845_v14 = vld [vmem:[#allocation70_spill] sm:$0xff] }
 0x369   :  { %v4148_v13 = vmul.f32 %v6370_v37, %v14790_v22  ;;  %6385 = vpow2.f32 %v4100_v43  ;;  %v4104_v3 = vmul.f32 1.442695, %v4061_v52  ;;  %v4106_v54 = vmul.f32 1.442695, %v4062_v53  ;;  %v14794_v43 = vld [vmem:[#allocation28_spill] sm:$0xff] }
 0x36a   :  { %v12301_v33 = vpop.eup %6371  ;;  %6387 = vpow2.f32 %v4102_v31  ;;  %v4108_v8 = vmul.f32 1.442695, %v4063_v51  ;;  %v4110_v28 = vmul.f32 1.442695, %v4064_v60  ;;  %v4240_v38 = vsel %vm519_vm0, %v6368_v18, 0.0 }
 0x36b   :  { %v12307_v11 = vpop.eup %6373  ;;  %v4147_v16 = vmul.f32 %v12301_v33, %v14789_v25  ;;  %v4241_v46 = vsel %vm519_vm0, %v6370_v37, 0.0  ;;  %v4178_v55 = vsel %vm519_vm0, %v4146_v50, 0.0  ;;  %v4179_v31 = vsel %vm519_vm0, %v4148_v13, 0.0  ;;  %v14795_v13 = vld [vmem:[#allocation29_spill] sm:$0xff] }
 0x36c   :  { %v6376_v56 = vpop.eup %6375  ;;  %v4149_v52 = vmul.f32 %v12307_v11, %v14790_v22  ;;  %6389 = vpow2.f32 %v4104_v3  ;;  %v4112_v53 = vmul.f32 1.442695, %v4065_v1  ;;  %v4114_v51 = vmul.f32 1.442695, %v4066_v58 }
 0x36d   :  { %v4150_v20 = vmul.f32 %v6376_v56, %v14794_v43  ;;  %v4116_v60 = vmul.f32 1.442695, %v4067_v47  ;;  %6391 = vpow2.f32 %v4106_v54  ;;  %v4118_v30 = vmul.f32 1.442695, %v4068_v42 }
 0x36e   :  { %v12320_v40 = vpop.eup %6377  ;;  %v4120_v18 = vmul.f32 1.442695, %v4069_v63  ;;  %v4122_v39 = vmul.f32 1.442695, %v4070_v5  ;;  %v4124_v25 = vmul.f32 1.442695, %v4071_v23  ;;  %v4180_v44 = vadd.f32 %v4179_v31, %v4178_v55 }
 0x36f   :  { %v6380_v37 = vpop.eup %6379  ;;  %v4209_v22 = vsel %vm519_vm0, %v4147_v16, 0.0  ;;  %v4242_v45 = vadd.f32 %v4241_v46, %v4240_v38  ;;  %v4151_v50 = vmul.f32 %v12320_v40, %v14794_v43  ;;  %v4181_v58 = vsel %vm519_vm0, %v4150_v20, 0.0 }
 0x370   :  { %v4152_v3 = vmul.f32 %v6380_v37, %v14795_v13  ;;  %v4210_v1 = vsel %vm519_vm0, %v4149_v52, 0.0  ;;  %6393 = vpow2.f32 %v4108_v8  ;;  %v4126_v47 = vmul.f32 1.442695, %v4072_v41 }
 0x371   :  { %v12328_v42 = vmul.f32 1.442695, %v4073_v12  ;;  %v4243_v5 = vsel %vm519_vm0, %v6376_v56, 0.0  ;;  %6395 = vpow2.f32 %v4110_v28  ;;  %v12333_v55 = vmul.f32 1.442695, %v4074_v36  ;;  %v14797_v12 = vld [vmem:[#allocation30_spill] sm:$0xff] }
 0x372   :  { %v12331_v63 = vpop.eup %6381  ;;  %v12335_v46 = vmul.f32 1.442695, %v4075_v9  ;;  %v14796_v16 = vsub.f32 %v12044_v61, %v12133_v2  ;;  %v12342_v38 = vmul.f32 1.442695, %v4077_v34  ;;  %v4182_v41 = vadd.f32 %v4181_v58, %v4180_v44  ;;  %v14805_v58 = vld [vmem:[#allocation31_spill] sm:$0xff] }
 0x373   :  { %v6384_v54 = vpop.eup %6383  ;;  %v4153_v8 = vmul.f32 %v12331_v63, %v14795_v13  ;;  %v4211_v56 = vadd.f32 %v4210_v1, %v4209_v22  ;;  %v4183_v36 = vsel %vm519_vm0, %v4152_v3, 0.0  ;;  %v4212_v28 = vsel %vm519_vm0, %v4151_v50, 0.0  ;;  %v14803_v50 = vld [vmem:[#allocation47_spill] sm:$0xff] }
 0x374   :  { %v12340_v23 = vmul.f32 1.442695, %v14796_v16  ;;  %v4154_v52 = vmul.f32 %v6384_v54, %v14797_v12  ;;  %v4244_v9 = vadd.f32 %v4243_v5, %v4242_v45  ;;  %6397 = vpow2.f32 %v4112_v53  ;;  %v14804_v53 = vld [vmem:[#allocation48_spill] sm:$0xff] }
 0x375   :  { %v14798_v61 = vsub.f32 %v12070_v4, %v12133_v2  ;;  %v12354_v34 = vmul.f32 1.442695, %v4079_v21  ;;  %v4245_v31 = vsel %vm519_vm0, %v6380_v37, 0.0  ;;  %6399 = vpow2.f32 %v4114_v51 }
 0x376   :  { %v12357_v16 = vpop.eup %6385  ;;  %v14801_v44 = vsub.f32 %v12073_v29, %v12133_v2  ;;  %v12366_v45 = vmul.f32 %v12219_v35, %v14803_v50  ;;  %v12370_v4 = vmul.f32 %v12219_v35, %v14804_v53  ;;  %6401 = vpow2.f32 %v4116_v60  ;;  %v14807_v60 = vld [vmem:[#allocation50_spill] sm:$0xff] }
 0x377   :  { %v12352_v20 = vmul.f32 1.442695, %v14798_v61  ;;  %14800 = vst [vmem:[#allocation84_spill] sm:$0xff] %v12354_v34  ;;  %v6388_v21 = vpop.eup %6387  ;;  %v4155_v37 = vmul.f32 %v12357_v16, %v14797_v12  ;;  %v4184_v3 = vadd.f32 %v4183_v36, %v4182_v41  ;;  %v4213_v51 = vadd.f32 %v4212_v28, %v4211_v56 }
 0x378   :  { %v12362_v22 = vmul.f32 1.442695, %v14801_v44  ;;  %v4156_v1 = vmul.f32 %v6388_v21, %v14805_v58  ;;  %v4185_v29 = vsel %vm519_vm0, %v4154_v52, 0.0  ;;  %v4214_v2 = vsel %vm519_vm0, %v4153_v8, 0.0  ;;  %v14806_v44 = vld [vmem:[#allocation49_spill] sm:$0xff]  ;;  %v14808_v52 = vld [vmem:[#allocation51_spill] sm:$0xff] }
 0x379   :  { %14799 = vst [vmem:[#allocation96_spill] sm:$0xff] %v12352_v20  ;;  %v4246_v5 = vadd.f32 %v4245_v31, %v4244_v9  ;;  %6403 = vpow2.f32 %v4118_v30  ;;  %v4247_v61 = vsel %vm519_vm0, %v6384_v54, 0.0  ;;  %v12380_v50 = vmul.f32 %v12219_v35, %v14806_v44  ;;  %v12386_v41 = vpop.eup %6389  ;;  %v14809_v30 = vld [vmem:[#allocation52_spill] sm:$0xff] }
 0x37a   :  { %14802 = vst [vmem:[#allocation102_spill] sm:$0xff] %v12362_v22  ;;  %v12384_v53 = vmul.f32 %v12219_v35, %v14807_v60  ;;  %6405 = vpow2.f32 %v4120_v18  ;;  %v4271_v56 = vsel %vm519_vm0, %v12301_v33, 0.0  ;;  %v12392_v8 = vmul.f32 %v12219_v35, %v14808_v52  ;;  %v6392_v36 = vpop.eup %6391  ;;  %v14810_v44 = vld [vmem:[#allocation32_spill] sm:$0xff] }
 0x37b   :  { %v12396_v54 = vmul.f32 %v12219_v35, %v14809_v30  ;;  %6407 = vpow2.f32 %v4122_v39  ;;  %v4157_v28 = vmul.f32 %v12386_v41, %v14805_v58  ;;  %v4186_v9 = vadd.f32 %v4185_v29, %v4184_v3  ;;  %v14814_v58 = vld [vmem:[#allocation55_spill] sm:$0xff] }
 0x37c   :  { %v4215_v31 = vadd.f32 %v4214_v2, %v4213_v51  ;;  %v4158_v18 = vmul.f32 %v6392_v36, %v14810_v44  ;;  %v4187_v60 = vsel %vm519_vm0, %v4156_v1, 0.0  ;;  %v4216_v33 = vsel %vm519_vm0, %v4155_v37, 0.0  ;;  %v14811_v51 = vld [vmem:[#allocation53_spill] sm:$0xff]  ;;  %v14812_v1 = vld [vmem:[#allocation54_spill] sm:$0xff] }
 0x37d   :  { %v4248_v12 = vadd.f32 %v4247_v61, %v4246_v5  ;;  %6409 = vpow2.f32 %v4124_v25  ;;  %v4249_v52 = vsel %vm519_vm0, %v6388_v21, 0.0  ;;  %v4272_v30 = vsel %vm519_vm0, %v12307_v11, 0.0  ;;  %v6394_v13 = vpop.eup %6393  ;;  %v14813_v61 = vld [vmem:[#allocation33_spill] sm:$0xff] }
 0x37e   :  { %v4274_v39 = vsel %vm519_vm0, %v12320_v40, 0.0  ;;  %6411 = vpow2.f32 %v4126_v47  ;;  %v4273_v3 = vadd.f32 %v4272_v30, %v4271_v56  ;;  %v12410_v29 = vmul.f32 %v12219_v35, %v14811_v51  ;;  %v6396_v25 = vpop.eup %6395 }
 0x37f   :  { %v12414_v37 = vmul.f32 %v12219_v35, %v14812_v1  ;;  %v4159_v21 = vmul.f32 %v6394_v13, %v14810_v44  ;;  %v4188_v2 = vadd.f32 %v4187_v60, %v4186_v9  ;;  %v4217_v5 = vadd.f32 %v4216_v33, %v4215_v31 }
 0x380   :  { %v4218_v11 = vsel %vm519_vm0, %v4157_v28, 0.0  ;;  %v4160_v40 = vmul.f32 %v6396_v25, %v14813_v61  ;;  %v4189_v47 = vsel %vm519_vm0, %v4158_v18, 0.0  ;;  %v4250_v56 = vadd.f32 %v4249_v52, %v4248_v12  ;;  %v14815_v28 = vld [vmem:[#allocation56_spill] sm:$0xff]  ;;  %v14816_v12 = vld [vmem:[#allocation57_spill] sm:$0xff] }
 0x381   :  { %v4275_v30 = vadd.f32 %v4274_v39, %v4273_v3  ;;  %6413 = vpow2.f32 %v12328_v42  ;;  %v4251_v51 = vsel %vm519_vm0, %v6392_v36, 0.0  ;;  %v4276_v1 = vsel %vm519_vm0, %v12331_v63, 0.0  ;;  %v12428_v9 = vpop.eup %6397  ;;  %v14817_v36 = vld [vmem:[#allocation58_spill] sm:$0xff] }
 0x382   :  { %v12426_v44 = vmul.f32 %v12219_v35, %v14814_v58  ;;  %6415 = vpow2.f32 %v12333_v55  ;;  %v12433_v31 = vmul.f32 %v12219_v35, %v14815_v28  ;;  %v12437_v42 = vmul.f32 %v12219_v35, %v14816_v12  ;;  %v6400_v63 = vpop.eup %6399 }
 0x383   :  { %v12441_v18 = vmul.f32 %v12219_v35, %v14817_v36  ;;  %6417 = vpow2.f32 %v12335_v46  ;;  %v4161_v58 = vmul.f32 %v12428_v9, %v14813_v61  ;;  %v4190_v60 = vadd.f32 %v4189_v47, %v4188_v2  ;;  %v12446_v33 = vpop.eup %6401  ;;  %v14819_v36 = vld [vmem:[#allocation59_spill] sm:$0xff]  ;;  %v14822_v47 = vld [vmem:[#allocation61_spill] sm:$0xff] }
 0x384   :  { %v4219_v55 = vadd.f32 %v4218_v11, %v4217_v5  ;;  %14818 = vst [vmem:[#allocation93_spill] sm:$0xff] %v12446_v33  ;;  %v4191_v52 = vsel %vm519_vm0, %v4160_v40, 0.0  ;;  %v4220_v39 = vsel %vm519_vm0, %v4159_v21, 0.0  ;;  %v4252_v3 = vadd.f32 %v4251_v51, %v4250_v56  ;;  %v14820_v5 = vld [vmem:[#allocation34_spill] sm:$0xff]  ;;  %v14821_v21 = vld [vmem:[#allocation60_spill] sm:$0xff] }
 0x385   :  { %v4277_v28 = vadd.f32 %v4276_v1, %v4275_v30  ;;  %6419 = vpow2.f32 %v12340_v23  ;;  %v4253_v12 = vsel %vm519_vm0, %v6396_v25, 0.0  ;;  %v4278_v46 = vsel %vm519_vm0, %v12357_v16, 0.0 }
 0x386   :  { %v4338_v61 = vmul.f32 %v12219_v35, %v14819_v36  ;;  %v12456_v2 = vpop.eup %6403  ;;  %6421 = vpow2.f32 %v12342_v38  ;;  %v12460_v11 = vmul.f32 %v6400_v63, %v14820_v5  ;;  %v4339_v40 = vmul.f32 %v12219_v35, %v14821_v21 }
 0x387   :  { %v4340_v23 = vmul.f32 %v12219_v35, %v14822_v47  ;;  %v12466_v25 = vpop.eup %6405  ;;  %v12470_v16 = vmul.f32 %v12446_v33, %v14820_v5  ;;  %v12472_v56 = vadd.f32 %v4191_v52, %v4190_v60  ;;  %v12474_v38 = vadd.f32 %v4220_v39, %v4219_v55  ;;  %v14831_v52 = vld [vmem:[#allocation62_spill] sm:$0xff]  ;;  %v14832_v39 = vld [vmem:[#allocation63_spill] sm:$0xff]  ;;  %v14833_v5 = vld [vmem:[#allocation64_spill] sm:$0xff] }
 0x388   :  { %14823 = vst [vmem:[#allocation77_spill] sm:$0xff] %v12466_v25  ;;  %v12477_v30 = vsel %vm519_vm0, %v4161_v58, 0.0  ;;  %v12479_v51 = vpop.eup %6407  ;;  %v12481_v1 = vadd.f32 %v4253_v12, %v4252_v3  ;;  %v12484_v36 = vsel %vm519_vm0, %v6400_v63, 0.0  ;;  %v4279_v21 = vadd.f32 %v4278_v46, %v4277_v28  ;;  %v14835_v63 = vld [vmem:[#allocation65_spill] sm:$0xff]  ;;  %v14836_v46 = vld [vmem:[#allocation66_spill] sm:$0xff] }
 0x389   :  { %14824 = vst [vmem:[#allocation76_spill] sm:$0xff] %v12470_v16  ;;  %14825 = vst [vmem:[#allocation81_spill] sm:$0xff] %v12472_v56  ;;  %v4280_v47 = vsel %vm519_vm0, %v12386_v41, 0.0  ;;  %v12489_v60 = vsel %vm519_vm0, %v6394_v13, 0.0  ;;  %v4341_v55 = vmul.f32 %v12219_v35, %v14831_v52  ;;  %v4342_v58 = vmul.f32 %v12219_v35, %v14832_v39  ;;  %v14838_v13 = vld [vmem:[#allocation80_spill] sm:$0xff]  ;;  %v14842_v39 = vld [vmem:[#allocation67_spill] sm:$0xff] }
 0x38a   :  { %14826 = vst [vmem:[#allocation100_spill] sm:$0xff] %v12474_v38  ;;  %14827 = vst [vmem:[#allocation108_spill] sm:$0xff] %v12477_v30  ;;  %v4343_v3 = vmul.f32 %v12219_v35, %v14833_v5  ;;  %v12497_v12 = vpop.eup %6409  ;;  %v4344_v28 = vmul.f32 %v12219_v35, %v14835_v63  ;;  %v4345_v41 = vmul.f32 %v12219_v35, %v14836_v46  ;;  %v14837_v43 = vstv %s12183_s8  ;;  %v14843_v5 = vld [vmem:[#allocation68_spill] sm:$0xff] }
 0x38b   :  { %14828 = vst [vmem:[#allocation87_spill] sm:$0xff] %v12479_v51  ;;  %14829 = vst [vmem:[#allocation89_spill] sm:$0xff] %v12481_v1  ;;  %v4354_v15 = vmul.f32 %v14838_v13, %v14837_v43  ;;  %v14839_v26 = vmov %v14837_v43  ;;  %v12509_v19 = vpop.eup %6411  ;;  %v4346_v27 = vmul.f32 %v12219_v35, %v14842_v39  ;;  %v4347_v7 = vmul.f32 %v12219_v35, %v14843_v5  ;;  %v14846_v43 = vld [vmem:[#allocation71_spill] sm:$0xff] }
 0x38c   :  { %14830 = vst [vmem:[#allocation90_spill] sm:$0xff] %v12484_v36  ;;  %14834 = vst [vmem:[#allocation99_spill] sm:$0xff] %v12497_v12  ;;  %v4355_v52 = vmul.f32 %v14840_v49, %v14839_v26  ;;  %v4348_v63 = vmul.f32 %v12219_v35, %v14844_v0  ;;  %v4349_v46 = vmul.f32 %v12219_v35, %v14845_v14  ;;  %v14847_v49 = vld [vmem:[#allocation72_spill] sm:$0xff] }
 0x38d   :  { %14841 = vst [vmem:[#allocation85_spill] sm:$0xff] %v12509_v19  ;;  %v12519_v48 = vadd.f32 %v4280_v47, %v4279_v21  ;;  %v4350_v13 = vmul.f32 %v12219_v35, %v14846_v43  ;;  %v4351_v26 = vmul.f32 %v12219_v35, %v14847_v49  ;;  %v14848_v19 = vld [vmem:[#allocation73_spill] sm:$0xff]  ;;  %v4389_v5 = vmul.f32 %v12249_v6, %v14849_v24  ;;  %v14851_v12 = vld [vmem:[#allocation16_spill] sm:$0xff]  ;;  %v14852_v21 = vld [vmem:[#allocation19_spill] sm:$0xff] }
 0x38e   :  { %v4352_v39 = vmul.f32 %v12219_v35, %v14848_v19  ;;  %v4390_v0 = vmul.f32 %v12249_v6, %v14850_v17  ;;  %v4391_v14 = vmul.f32 %v12249_v6, %v14851_v12  ;;  %v4392_v47 = vmul.f32 %v12249_v6, %v14852_v21  ;;  %v12535_v22 = vpop.eup %6413 }
 0x38f   :  { %14853 = vst [vmem:[#allocation97_spill] sm:$0xff] %v12535_v22  ;;  %v12538_v43 = vadd.f32 %v4354_v15, %v12238_v57  ;;  %v12541_v49 = vadd.f32 %v4355_v52, %v12242_v10  ;;  %v12544_v19 = vadd.f32 %v4354_v15, %v12246_v59  ;;  %v12547_v35 = vadd.f32 %v4355_v52, %v12255_v32  ;;  %v12549_v24 = vpop.eup %6415 }
 0x390   :  { %14854 = vst [vmem:[#allocation86_spill] sm:$0xff] %v12549_v24  ;;  %v12552_v17 = vadd.f32 %v4354_v15, %v12261_v62  ;;  %v12555_v12 = vadd.f32 %v4355_v52, %v12366_v45  ;;  %v12558_v57 = vadd.f32 %v4354_v15, %v12370_v4  ;;  %v12561_v10 = vadd.f32 %v4355_v52, %v12380_v50  ;;  %v12563_v21 = vpop.eup %6417 }
 0x391   :  { %14855 = vst [vmem:[#allocation110_spill] sm:$0xff] %v12563_v21  ;;  %v12566_v59 = vadd.f32 %v4354_v15, %v12384_v53  ;;  %v12569_v32 = vadd.f32 %v4355_v52, %v12392_v8  ;;  %v12572_v62 = vadd.f32 %v4354_v15, %v12396_v54  ;;  %v12575_v45 = vadd.f32 %v4355_v52, %v12410_v29 }
 0x392   :  { %v12578_v4 = vadd.f32 %v4354_v15, %v12414_v37  ;;  %v12581_v50 = vadd.f32 %v4355_v52, %v12426_v44  ;;  %v12584_v21 = vadd.f32 %v4354_v15, %v12433_v31  ;;  %v12587_v53 = vadd.f32 %v4355_v52, %v12437_v42  ;;  %v12589_v8 = vpop.eup %6419 }
 0x393   :  { %14856 = vst [vmem:[#allocation111_spill] sm:$0xff] %v12589_v8  ;;  %v4372_v54 = vadd.f32 %v4354_v15, %v12441_v18  ;;  %v4373_v24 = vadd.f32 %v4355_v52, %v4338_v61  ;;  %v4374_v22 = vadd.f32 %v4354_v15, %v4339_v40  ;;  %v4375_v29 = vadd.f32 %v4355_v52, %v4340_v23  ;;  %v12592_v34 = vpop.eup %6421  ;;  %v14858_v8 = vld [vmem:[#allocation11_spill] sm:$0xff]  ;;  %v14859_v61 = vld [vmem:[#allocation12_spill] sm:$0xff] }
 0x394   :  { %14857 = vst [vmem:[#allocation42_spill] sm:$0xff] %v12592_v34  ;;  %v4376_v37 = vadd.f32 %v4354_v15, %v4341_v55  ;;  %v4377_v51 = vadd.f32 %v4355_v52, %v4342_v58  ;;  %v4378_v20 = vadd.f32 %v4354_v15, %v4343_v3  ;;  %v4379_v44 = vadd.f32 %v4355_v52, %v4344_v28  ;;  %v14860_v23 = vld [vmem:[#allocation20_spill] sm:$0xff]  ;;  %v14861_v58 = vld [vmem:[#allocation21_spill] sm:$0xff]  ;;  %v14870_v34 = vld [vmem:[#allocation18_spill] sm:$0xff] }
 0x395   :  { %v4380_v33 = vadd.f32 %v4354_v15, %v4345_v41  ;;  %v4381_v16 = vadd.f32 %v4355_v52, %v4346_v27  ;;  %v4382_v31 = vadd.f32 %v4354_v15, %v4347_v7  ;;  %v4383_v56 = vadd.f32 %v4355_v52, %v4348_v63  ;;  %v14862_v28 = vld [vmem:[#allocation13_spill] sm:$0xff]  ;;  %v14863_v27 = vld [vmem:[#allocation15_spill] sm:$0xff]  ;;  %v14865_v63 = vld [vmem:[#allocation24_spill] sm:$0xff] }
 0x396   :  { %v4384_v25 = vadd.f32 %v4354_v15, %v4349_v46  ;;  %v4385_v42 = vadd.f32 %v4355_v52, %v4350_v13  ;;  %v4386_v36 = vadd.f32 %v4354_v15, %v4351_v26  ;;  %v4387_v1 = vadd.f32 %v4355_v52, %v4352_v39  ;;  %v14864_v15 = vld [vmem:[#allocation22_spill] sm:$0xff]  ;;  %v14867_v39 = vld [vmem:[#allocation17_spill] sm:$0xff] }
 0x397   :  { %v4393_v18 = vmul.f32 %v12249_v6, %v14858_v8  ;;  %v4394_v40 = vmul.f32 %v12249_v6, %v14859_v61  ;;  %v4395_v55 = vmul.f32 %v12249_v6, %v14860_v23  ;;  %v4396_v3 = vmul.f32 %v12249_v6, %v14861_v58  ;;  %v14866_v13 = vld [vmem:[#allocation14_spill] sm:$0xff]  ;;  %v14868_v61 = vld [vmem:[#allocation23_spill] sm:$0xff]  ;;  %v14869_v58 = vld [vmem:[#allocation25_spill] sm:$0xff] }
 0x398   :  { %v4397_v7 = vmul.f32 %v12249_v6, %v14862_v28  ;;  %v4398_v41 = vmul.f32 %v12249_v6, %v14863_v27  ;;  %v4399_v52 = vmul.f32 %v12249_v6, %v14864_v15  ;;  %v4400_v46 = vmul.f32 %v12249_v6, %v14865_v63 }
 0x399   :  { %v4401_v26 = vmul.f32 %v12249_v6, %v14866_v13  ;;  %v4402_v8 = vmul.f32 %v12249_v6, %v14867_v39  ;;  %v4403_v23 = vmul.f32 %v12249_v6, %v14868_v61  ;;  %v4404_v28 = vmul.f32 %v12249_v6, %v14869_v58 }
 0x39a   :  { %v4424_v27 = vrot.slane %v4389_v5, %v14870_v34  ;;  %v4428_v30 = vrot.slane %v4390_v0, %v14870_v34  ;;  %v4432_v15 = vrot.slane %v4391_v14, %v14870_v34  ;;  %v4436_v63 = vrot.slane %v4392_v47, %v14870_v34 }
 0x39b   :  { %v4440_v13 = vrot.slane %v4393_v18, %v14870_v34  ;;  %v4444_v39 = vrot.slane %v4394_v40, %v14870_v34  ;;  %v4448_v38 = vrot.slane %v4395_v55, %v14870_v34  ;;  %v4452_v61 = vrot.slane %v4396_v3, %v14870_v34 }
 0x39c   :  { %v4456_v6 = vrot.slane %v4397_v7, %v14870_v34  ;;  %v4460_v5 = vrot.slane %v4398_v41, %v14870_v34  ;;  %v4464_v0 = vrot.slane %v4399_v52, %v14870_v34  ;;  %v4468_v14 = vrot.slane %v4400_v46, %v14870_v34 }
 0x39d   :  { %v4472_v47 = vrot.slane %v4401_v26, %v14870_v34  ;;  %v4476_v58 = vrot.slane %v4402_v8, %v14870_v34  ;;  %v4480_v18 = vrot.slane %v4403_v23, %v14870_v34  ;;  %v4484_v40 = vrot.slane %v4404_v28, %v14870_v34 }
 0x39e   :  { %v4501_v55 = vadd.f32 %v4424_v27, %v12538_v43  ;;  %v4502_v3 = vadd.f32 %v4424_v27, %v12541_v49  ;;  %v4503_v7 = vadd.f32 %v4428_v30, %v12544_v19  ;;  %v4504_v41 = vadd.f32 %v4428_v30, %v12547_v35 }
 0x39f   :  { %v4505_v52 = vadd.f32 %v4432_v15, %v12552_v17  ;;  %v4506_v46 = vadd.f32 %v4432_v15, %v12555_v12  ;;  %v4507_v26 = vadd.f32 %v4436_v63, %v12558_v57  ;;  %v4508_v8 = vadd.f32 %v4436_v63, %v12561_v10 }
 0x3a0   :  { %v4509_v23 = vadd.f32 %v4440_v13, %v12566_v59  ;;  %v4510_v28 = vadd.f32 %v4440_v13, %v12569_v32  ;;  %v4511_v43 = vadd.f32 %v4444_v39, %v12572_v62  ;;  %v4512_v49 = vadd.f32 %v4444_v39, %v12575_v45 }
 0x3a1   :  { %v4513_v19 = vadd.f32 %v4448_v38, %v12578_v4  ;;  %v4514_v30 = vadd.f32 %v4448_v38, %v12581_v50  ;;  %v4515_v35 = vadd.f32 %v4452_v61, %v12584_v21  ;;  %v4516_v17 = vadd.f32 %v4452_v61, %v12587_v53 }
 0x3a2   :  { %v4517_v12 = vadd.f32 %v4456_v6, %v4372_v54  ;;  %v4518_v57 = vadd.f32 %v4456_v6, %v4373_v24  ;;  %v4519_v10 = vadd.f32 %v4460_v5, %v4374_v22  ;;  %v4520_v27 = vadd.f32 %v4460_v5, %v4375_v29 }
 0x3a3   :  { %v4521_v15 = vadd.f32 %v4464_v0, %v4376_v37  ;;  %v4522_v59 = vadd.f32 %v4464_v0, %v4377_v51  ;;  %v4523_v63 = vadd.f32 %v4468_v14, %v4378_v20  ;;  %v12653_v32 = vstv %s12622_s10 }
 0x3a4   :  { %v4524_v62 = vadd.f32 %v4468_v14, %v4379_v44  ;;  %v4525_v13 = vadd.f32 %v4472_v47, %v4380_v33  ;;  %v4526_v45 = vadd.f32 %v4472_v47, %v4381_v16  ;;  %v4527_v39 = vadd.f32 %v4476_v58, %v4382_v31 }
 0x3a5   :  { %v4528_v4 = vadd.f32 %v4476_v58, %v4383_v56  ;;  %v4529_v34 = vadd.f32 %v4480_v18, %v4384_v25  ;;  %v12655_v38 = vadd.f32 %v4480_v18, %v4385_v42  ;;  %v4531_v21 = vadd.f32 %v4484_v40, %v4386_v36 }
 0x3a6   :  { %v12657_v50 = vadd.f32 %v4484_v40, %v4387_v1  ;;  %v12660_v24 = vadd.f32 %v12653_v32, %v4501_v55  ;;  %v12663_v22 = vadd.f32 %v12653_v32, %v4502_v3  ;;  %v12666_v20 = vadd.f32 %v12653_v32, %v4503_v7 }
 0x3a7   :  { %v12669_v33 = vadd.f32 %v12653_v32, %v4504_v41  ;;  %v12672_v16 = vadd.f32 %v12653_v32, %v4505_v52  ;;  %v12675_v25 = vadd.f32 %v12653_v32, %v4506_v46  ;;  %v12678_v56 = vadd.f32 %v12653_v32, %v4507_v26 }
 0x3a8   :  { %v12681_v51 = vadd.f32 %v12653_v32, %v4508_v8  ;;  %v12684_v1 = vadd.f32 %v12653_v32, %v4509_v23  ;;  %v12687_v36 = vadd.f32 %v12653_v32, %v4510_v28  ;;  %v12690_v53 = vadd.f32 %v12653_v32, %v4511_v43 }
 0x3a9   :  { %v12693_v54 = vadd.f32 %v12653_v32, %v4512_v49  ;;  %v12696_v29 = vadd.f32 %v12653_v32, %v4513_v19  ;;  %v12699_v37 = vadd.f32 %v12653_v32, %v4514_v30  ;;  %v12702_v44 = vadd.f32 %v12653_v32, %v4515_v35 }
 0x3aa   :  { %v12705_v31 = vadd.f32 %v12653_v32, %v4516_v17  ;;  %v12708_v42 = vadd.f32 %v12653_v32, %v4517_v12  ;;  %v12711_v61 = vadd.f32 %v12653_v32, %v4518_v57  ;;  %v12714_v6 = vadd.f32 %v12653_v32, %v4519_v10 }
 0x3ab   :  { %v12717_v5 = vadd.f32 %v12653_v32, %v4520_v27  ;;  %v12720_v0 = vadd.f32 %v12653_v32, %v4521_v15  ;;  %v12723_v14 = vadd.f32 %v12653_v32, %v4522_v59  ;;  %v12726_v47 = vadd.f32 %v12653_v32, %v4523_v63 }
 0x3ac   :  { %v12729_v58 = vadd.f32 %v12653_v32, %v4524_v62  ;;  %v4566_v18 = vsel %vm519_vm0, %v12660_v24, -inf  ;;  %v4567_v40 = vsel %vm519_vm0, %v12666_v20, -inf  ;;  %v4568_v55 = vsel %vm519_vm0, %v12672_v16, -inf }
 0x3ad   :  { %v12738_v3 = vadd.f32 %v12653_v32, %v4525_v13  ;;  %v4569_v7 = vmax.f32 %v4566_v18, %v4568_v55  ;;  %v4570_v41 = vsel %vm519_vm0, %v12678_v56, -inf  ;;  %v4572_v52 = vsel %vm519_vm0, %v12684_v1, -inf }
 0x3ae   :  { %v12745_v46 = vadd.f32 %v12653_v32, %v4527_v39  ;;  %v4571_v26 = vmax.f32 %v4567_v40, %v4570_v41  ;;  %v4574_v8 = vsel %vm519_vm0, %v12690_v53, -inf  ;;  %v4576_v23 = vsel %vm519_vm0, %v12696_v29, -inf }
 0x3af   :  { %v12752_v28 = vadd.f32 %v12653_v32, %v4526_v45  ;;  %v12755_v43 = vadd.f32 %v12653_v32, %v4528_v4  ;;  %v4573_v49 = vmax.f32 %v4569_v7, %v4572_v52  ;;  %v4578_v19 = vsel %vm519_vm0, %v12702_v44, -inf }
 0x3b0   :  { %v12760_v30 = vadd.f32 %v12653_v32, %v4529_v34  ;;  %v12763_v35 = vadd.f32 %v12653_v32, %v4531_v21  ;;  %v4575_v17 = vmax.f32 %v4571_v26, %v4574_v8  ;;  %v4580_v12 = vsel %vm519_vm0, %v12708_v42, -inf }
 0x3b1   :  { %v4577_v57 = vmax.f32 %v4573_v49, %v4576_v23  ;;  %v4582_v10 = vsel %vm519_vm0, %v12714_v6, -inf  ;;  %v4584_v27 = vsel %vm519_vm0, %v12720_v0, -inf  ;;  %v4586_v15 = vsel %vm519_vm0, %v12726_v47, -inf }
 0x3b2   :  { %v4579_v59 = vmax.f32 %v4575_v17, %v4578_v19  ;;  %v4588_v34 = vsel %vm519_vm0, %v12738_v3, -inf  ;;  %v4590_v63 = vsel %vm519_vm0, %v12745_v46, -inf  ;;  %v4597_v62 = vsel %vm519_vm0, %v12663_v22, -inf }
 0x3b3   :  { %v4581_v13 = vmax.f32 %v4577_v57, %v4580_v12  ;;  %v4598_v45 = vsel %vm519_vm0, %v12669_v33, -inf  ;;  %v4599_v39 = vsel %vm519_vm0, %v12675_v25, -inf  ;;  %v4601_v4 = vsel %vm519_vm0, %v12681_v51, -inf }
 0x3b4   :  { %v4583_v21 = vmax.f32 %v4579_v59, %v4582_v10  ;;  %v4592_v18 = vsel %vm519_vm0, %v12760_v30, -inf  ;;  %v4600_v40 = vmax.f32 %v4597_v62, %v4599_v39  ;;  %v4602_v55 = vmax.f32 %v4598_v45, %v4601_v4 }
 0x3b5   :  { %v4585_v7 = vmax.f32 %v4581_v13, %v4584_v27  ;;  %v4603_v41 = vsel %vm519_vm0, %v12687_v36, -inf  ;;  %v4605_v52 = vsel %vm519_vm0, %v12693_v54, -inf  ;;  %v4607_v26 = vsel %vm519_vm0, %v12699_v37, -inf }
 0x3b6   :  { %v4587_v8 = vmax.f32 %v4583_v21, %v4586_v15  ;;  %v4594_v23 = vsel %vm519_vm0, %v12763_v35, -inf  ;;  %v4604_v49 = vmax.f32 %v4600_v40, %v4603_v41  ;;  %v4606_v19 = vmax.f32 %v4602_v55, %v4605_v52  ;;  %v14871_v55 = vld [vmem:[#allocation35_spill] sm:$0xff] }
 0x3b7   :  { %v4589_v17 = vmax.f32 %v4585_v7, %v4588_v34  ;;  %v4609_v12 = vsel %vm519_vm0, %v12705_v31, -inf  ;;  %v4611_v57 = vsel %vm519_vm0, %v12711_v61, -inf  ;;  %v4613_v10 = vsel %vm519_vm0, %v12717_v5, -inf }
 0x3b8   :  { %v12803_v27 = vadd.f32 %v12653_v32, %v12655_v38  ;;  %v4591_v15 = vmax.f32 %v4587_v8, %v4590_v63  ;;  %v4608_v59 = vmax.f32 %v4604_v49, %v4607_v26  ;;  %v4610_v62 = vmax.f32 %v4606_v19, %v4609_v12  ;;  %v4970_v63 = vld [vmem:[%s13531_s3 + $0xf0] sm:$0xff]  ;;  %v5513_v26 = vld [vmem:[%s13532_s4 + $0xd8] sm:$0xff]  ;;  %v14874_v19 = vld [vmem:[#allocation89_spill] sm:$0xff] }
 0x3b9   :  { %v12807_v13 = vadd.f32 %v12653_v32, %v12657_v50  ;;  %v4593_v34 = vmax.f32 %v4589_v17, %v4592_v18  ;;  %v4615_v45 = vsel %vm519_vm0, %v12723_v14, -inf  ;;  %v4617_v39 = vsel %vm519_vm0, %v12729_v58, -inf  ;;  %5124 = vperm.xlu0 %5959, %v4970_v63   ;;  %v14872_v8 = vld [vmem:[#allocation100_spill] sm:$0xff]  ;;  %v14875_v17 = vld [vmem:[#allocation90_spill] sm:$0xff]  ;;  %5655 = vperm.xlu1 %5960, %v5513_v26   ;;  %v14879_v63 = vld [vmem:[#allocation93_spill] sm:$0xff] }
 0x3ba   :  { %v4283_v4 = vadd.f32 %v12489_v60, %v12519_v48  ;;  %v4595_v21 = vmax.f32 %v4591_v15, %v4594_v23  ;;  %v4612_v38 = vmax.f32 %v4608_v59, %v4611_v57  ;;  %v4614_v40 = vmax.f32 %v4610_v62, %v4613_v10  ;;  %v14873_v23 = vld [vmem:[#allocation108_spill] sm:$0xff] }
 0x3bb   :  { %v4164_v32 = vmul.f32 %v12456_v2, %v14871_v55  ;;  %v4284_v50 = vsel %vm519_vm0, %v12428_v9, 0.0  ;;  %v4619_v18 = vsel %vm519_vm0, %v12752_v28, -inf  ;;  %v4621_v7 = vsel %vm519_vm0, %v12755_v43, -inf  ;;  %v4971_v9 = vld [vmem:[%s13531_s3 + $0xf8] sm:$0xff] }
 0x3bc   :  { %v4193_v48 = vsel %vm519_vm0, %v12460_v11, 0.0  ;;  %v12828_v60 = vmax.f32 %v4593_v34, %v4595_v21  ;;  %v4616_v41 = vmax.f32 %v4612_v38, %v4615_v45  ;;  %v4618_v52 = vmax.f32 %v4614_v40, %v4617_v39  ;;  %v14876_v34 = vld [vmem:[#allocation77_spill] sm:$0xff]  ;;  %v14878_v38 = vld [vmem:[#allocation76_spill] sm:$0xff] }
 0x3bd   :  { %v4223_v49 = vadd.f32 %v14873_v23, %v14872_v8  ;;  %v4256_v12 = vadd.f32 %v14875_v17, %v14874_v19  ;;  %v4623_v11 = vsel %vm519_vm0, %v12803_v27, -inf  ;;  %v4625_v57 = vsel %vm519_vm0, %v12807_v13, -inf  ;;  %v14877_v39 = vld [vmem:[#allocation81_spill] sm:$0xff]  ;;  %5129 = vperm.xlu0 %5959, %v4971_v9   ;;  %v14883_v9 = vld [vmem:[#allocation84_spill] sm:$0xff] }
 0x3be   :  { %v4257_v10 = vsel %vm519_vm0, %v12456_v2, 0.0  ;;  %v4285_v15 = vadd.f32 %v4284_v50, %v4283_v4  ;;  %v4620_v59 = vmax.f32 %v4616_v41, %v4619_v18  ;;  %v4622_v62 = vmax.f32 %v4618_v52, %v4621_v7  ;;  %v5514_v4 = vld [vmem:[%s13532_s4 + $0xe0] sm:$0xff]  ;;  %v5516_v50 = vld [vmem:[%s13532_s4 + $0xf0] sm:$0xff] }
 0x3bf   :  { %v4165_v45 = vmul.f32 %v14876_v34, %v14871_v55  ;;  %v4194_v21 = vadd.f32 %v4193_v48, %v14877_v39  ;;  %v4224_v40 = vsel %vm519_vm0, %v14878_v38, 0.0  ;;  %v4286_v8 = vsel %vm519_vm0, %v14879_v63, 0.0  ;;  %v14880_v18 = vld [vmem:[#allocation96_spill] sm:$0xff]  ;;  %v14882_v48 = vld [vmem:[#allocation87_spill] sm:$0xff]  ;;  %5660 = vperm.xlu1 %5960, %v5514_v4  }
 0x3c0   :  { %v4195_v26 = vsel %vm519_vm0, %v4164_v32, 0.0  ;;  %v4624_v23 = vmax.f32 %v4620_v59, %v4623_v11  ;;  %v4626_v19 = vmax.f32 %v4622_v62, %v4625_v57  ;;  %v4628_v2 = vsub.f32 %v12660_v24, %v12828_v60  ;;  %v14881_v7 = vld [vmem:[#allocation36_spill] sm:$0xff]  ;;  %v14884_v57 = vld [vmem:[#allocation102_spill] sm:$0xff] }
 0x3c1   :  { %6423 = vpow2.f32 %v14880_v18  ;;  %v4166_v41 = vmul.f32 %v14882_v48, %v14881_v7  ;;  %v4258_v52 = vadd.f32 %v4257_v10, %v4256_v12  ;;  %v4630_v32 = vsub.f32 %v12666_v20, %v12828_v60  ;;  %5670 = vperm.xlu0 %5959, %v5516_v50   ;;  %v5779_v63 = vld [vmem:[#allocation2] sm:$0x1]  ;;  %v14890_v50 = vld [vmem:[#allocation103_spill] sm:$0xff] }
 0x3c2   :  { %6425 = vpow2.f32 %v14883_v9  ;;  %v4259_v24 = vsel %vm519_vm0, %v14882_v48, 0.0  ;;  %v4287_v17 = vadd.f32 %v4286_v8, %v4285_v15  ;;  %v12870_v11 = vmax.f32 %v4624_v23, %v4626_v19  ;;  %v5515_v15 = vld [vmem:[%s13532_s4 + $0xe8] sm:$0xff]  ;;  %v14891_v18 = vld [vmem:[#allocation88_spill] sm:$0xff] }
 0x3c3   :  { %6427 = vpow2.f32 %v14884_v57  ;;  %v4196_v59 = vadd.f32 %v4195_v26, %v4194_v21  ;;  %v4225_v62 = vadd.f32 %v4224_v40, %v4223_v49  ;;  %v4288_v39 = vsel %vm519_vm0, %v14876_v34, 0.0  ;;  %v14885_v49 = vld [vmem:[#allocation99_spill] sm:$0xff]  ;;  %5665 = vperm.xlu1 %5960, %v5515_v15   ;;  %v14888_v23 = vld [vmem:[#allocation37_spill] sm:$0xff] }
 0x3c4   :  { %v4226_v12 = vsel %vm519_vm0, %v4165_v45, 0.0  ;;  %v4629_v20 = vsub.f32 %v12663_v22, %v12870_v11  ;;  %v4631_v10 = vsub.f32 %v12669_v33, %v12870_v11  ;;  %v4660_v38 = vmul.f32 1.442695, %v4628_v2  ;;  %v14886_v45 = vld [vmem:[#allocation78_spill] sm:$0xff]  ;;  %v14887_v26 = vld [vmem:[#allocation95_spill] sm:$0xff]  ;;  %v14889_v19 = vld [vmem:[#allocation85_spill] sm:$0xff] }
 0x3c5   :  { %v4167_v21 = vmul.f32 %v14885_v49, %v14881_v7  ;;  %v4197_v34 = vsel %vm519_vm0, %v4166_v41, 0.0  ;;  %v4260_v40 = vadd.f32 %v4259_v24, %v4258_v52  ;;  %v4664_v8 = vmul.f32 1.442695, %v4630_v32  ;;  %v14893_v57 = vld [vmem:[#allocation97_spill] sm:$0xff]  ;;  %5782 = vperm.xlu0 %5959, %v5779_v63   ;;  %v14895_v7 = vld [vmem:[#allocation86_spill] sm:$0xff]  ;;  %v14897_v63 = vld [vmem:[#allocation91_spill] sm:$0xff] }
 0x3c6   :  { %v3721_v22 = vadd.f32 %v14887_v26, %v14886_v45  ;;  %v4168_v33 = vmul.f32 %v14889_v19, %v14888_v23  ;;  %v4261_v2 = vsel %vm519_vm0, %v14889_v19, 0.0  ;;  %v4289_v4 = vadd.f32 %v4288_v39, %v4287_v17  ;;  %v14894_v26 = vld [vmem:[#allocation38_spill] sm:$0xff] }
 0x3c7   :  { %v14892_v48 = vsub.f32 %v14890_v50, %v14891_v18  ;;  %v4169_v41 = vmul.f32 %v14893_v57, %v14888_v23  ;;  %v4227_v52 = vadd.f32 %v4226_v12, %v4225_v62  ;;  %v4290_v32 = vsel %vm519_vm0, %v14885_v49, 0.0  ;;  %v14896_v49 = vld [vmem:[#allocation94_spill] sm:$0xff] }
 0x3c8   :  { %v4198_v24 = vadd.f32 %v4197_v34, %v4196_v59  ;;  %6429 = vpow2.f32 %v4660_v38  ;;  %v4662_v15 = vmul.f32 1.442695, %v4629_v20  ;;  %v4666_v45 = vmul.f32 1.442695, %v4631_v10  ;;  %v14898_v20 = vld [vmem:[#allocation83_spill] sm:$0xff]  ;;  %v14899_v10 = vld [vmem:[#allocation101_spill] sm:$0xff] }
 0x3c9   :  { %v4144_v9 = vmul.f32 1.442695, %v14892_v48  ;;  %v4170_v19 = vmul.f32 %v14895_v7, %v14894_v26  ;;  %v4228_v17 = vsel %vm519_vm0, %v4167_v21, 0.0  ;;  %v4262_v39 = vadd.f32 %v4261_v2, %v4260_v40  ;;  %v14900_v21 = vld [vmem:[#allocation79_spill] sm:$0xff]  ;;  %v14902_v2 = vld [vmem:[#allocation110_spill] sm:$0xff] }
 0x3ca   :  { %6431 = vpow2.f32 %v4664_v8  ;;  %v4199_v50 = vsel %vm519_vm0, %v4168_v33, 0.0  ;;  %v4263_v62 = vsel %vm519_vm0, %v14895_v7, 0.0  ;;  %v4291_v12 = vadd.f32 %v4290_v32, %v4289_v4  ;;  %v14901_v8 = vld [vmem:[#allocation104_spill] sm:$0xff] }
 0x3cb   :  { %6433 = vpow2.f32 %v4662_v15  ;;  %v12907_v59 = vadd.f32 %v14897_v63, %v14896_v49  ;;  %v3692_v38 = vadd.f32 %v14899_v10, %v14898_v20  ;;  %v4292_v34 = vsel %vm519_vm0, %v14893_v57, 0.0 }
 0x3cc   :  { %6435 = vpow2.f32 %v4666_v45  ;;  %v3660_v40 = vsel %vm519_vm0, %v14900_v21, 0.0  ;;  %v3723_v33 = vadd.f32 %v14901_v8, %v3721_v22  ;;  %v4632_v7 = vsub.f32 %v12672_v16, %v12828_v60  ;;  %v14903_v45 = vld [vmem:[#allocation111_spill] sm:$0xff]  ;;  %v4924_v21 = vld [vmem:[%s13530_s2 + $0x80] sm:$0xff] }
 0x3cd   :  { %6437 = vpow2.f32 %v4144_v9  ;;  %v4171_v4 = vmul.f32 %v14902_v2, %v14894_v26  ;;  %v4200_v18 = vadd.f32 %v4199_v50, %v4198_v24  ;;  %v4229_v48 = vadd.f32 %v4228_v17, %v4227_v52  ;;  %v14904_v9 = vld [vmem:[#allocation82_spill] sm:$0xff]  ;;  %5929 = vmatprep.mubr.msk.f32.mxu1 %vm5132_vm1, %v4924_v21 }
 0x3ce   :  { %v4264_v32 = vadd.f32 %v4263_v62, %v4262_v39  ;;  %v6424_v15 = vpop.eup %6423  ;;  %v4201_v49 = vsel %vm519_vm0, %v4170_v19, 0.0  ;;  %v4230_v57 = vsel %vm519_vm0, %v4169_v41, 0.0  ;;  %v4265_v63 = vsel %vm519_vm0, %v14903_v45, 0.0  ;;  %v14906_v41 = vld [vmem:[#allocation39_spill] sm:$0xff]  ;;  %v14907_v50 = vld [vmem:[#allocation42_spill] sm:$0xff] }
 0x3cf   :  { %v4293_v20 = vadd.f32 %v4292_v34, %v4291_v12  ;;  %v12924_v22 = vpop.eup %6425  ;;  %v12927_v10 = vadd.f32 %v3660_v40, %v14904_v9  ;;  %6439 = vrcp.f32 %v3692_v38  ;;  %v4294_v16 = vsel %vm519_vm0, %v14902_v2, 0.0 }
 0x3d0   :  { %v4633_v52 = vsub.f32 %v12675_v25, %v12870_v11  ;;  %v12933_v24 = vpop.eup %6427  ;;  %6441 = vrcp.f32 %v3723_v33  ;;  %v4172_v19 = vmul.f32 %v14903_v45, %v14906_v41  ;;  %v4634_v17 = vsub.f32 %v12678_v56, %v12828_v60  ;;  %v4908_v25 = vld [vmem:[%s13530_s2] sm:$0xff]  ;;  %v5517_v56 = vld [vmem:[%s13532_s4 + $0xf8] sm:$0xff] }
 0x3d1   :  { %14905 = vst [vmem:[#allocation43_spill] sm:$0xff] %v12927_v10  ;;  %v4668_v39 = vmul.f32 1.442695, %v4632_v7  ;;  %v12941_v62 = vmul.f32 %v14907_v50, %v14906_v41  ;;  %v12943_v12 = vadd.f32 %v4201_v49, %v4200_v18  ;;  %v4231_v38 = vadd.f32 %v4230_v57, %v4229_v48  ;;  %5675 = vperm.xlu1 %5960, %v5517_v56  }
 0x3d2   :  { %v4266_v34 = vadd.f32 %v4265_v63, %v4264_v32  ;;  %v4232_v40 = vsel %vm519_vm0, %v4171_v4, 0.0  ;;  %v4267_v8 = vsel %vm519_vm0, %v6424_v15, 0.0  ;;  %v4295_v33 = vadd.f32 %v4294_v16, %v4293_v20  ;;  %v14908_v32 = vld [vmem:[#allocation40_spill] sm:$0xff]  ;;  %5905 = vmatprep.mubr.msk.f32.mxu0 %vm5132_vm1, %v4908_v25  ;;  %v14910_v25 = vld [vmem:[#allocation27_spill] sm:$0xff] }
 0x3d3   :  { %v4635_v7 = vsub.f32 %v12681_v51, %v12870_v11  ;;  %v4296_v2 = vsel %vm519_vm0, %v14907_v50, 0.0  ;;  %v4636_v18 = vsub.f32 %v12684_v1, %v12828_v60  ;;  %v4670_v48 = vmul.f32 1.442695, %v4633_v52 }
 0x3d4   :  { %v12963_v49 = vmul.f32 %v6424_v15, %v14908_v32  ;;  %v4203_v4 = vsel %vm519_vm0, %v4172_v19, 0.0  ;;  %6443 = vpow2.f32 %v4668_v39  ;;  %v4672_v57 = vmul.f32 1.442695, %v4634_v17  ;;  %v14909_v19 = vld [vmem:[#allocation26_spill] sm:$0xff] }
 0x3d5   :  { %v6430_v51 = vpop.eup %6429  ;;  %v4268_v45 = vadd.f32 %v4267_v8, %v4266_v34  ;;  %v4269_v63 = vsel %vm519_vm0, %v12933_v24, 0.0  ;;  %v4298_v1 = vsel %vm519_vm0, %v12924_v22, 0.0  ;;  %v4638_v15 = vsub.f32 %v12690_v53, %v12828_v60 }
 0x3d6   :  { %v4297_v9 = vadd.f32 %v4296_v2, %v4295_v33  ;;  %v4637_v16 = vsub.f32 %v12687_v36, %v12870_v11  ;;  %v4674_v52 = vmul.f32 1.442695, %v4635_v7  ;;  %v4724_v17 = vmul.f32 %v6430_v51, %v14909_v19 }
 0x3d7   :  { %v6432_v20 = vpop.eup %6431  ;;  %v4640_v50 = vsub.f32 %v12696_v29, %v12828_v60  ;;  %6445 = vpow2.f32 %v4670_v48  ;;  %v4676_v34 = vmul.f32 1.442695, %v4636_v18  ;;  %v4642_v53 = vsub.f32 %v12702_v44, %v12828_v60 }
 0x3d8   :  { %v12977_v39 = vpop.eup %6433  ;;  %v4726_v21 = vmul.f32 %v6432_v20, %v14910_v25  ;;  %6447 = vpow2.f32 %v4672_v57  ;;  %v4756_v8 = vsel %vm519_vm0, %v4724_v17, 0.0  ;;  %v4639_v29 = vsub.f32 %v12693_v54, %v12870_v11 }
 0x3d9   :  { %v12982_v56 = vpop.eup %6435  ;;  %v4725_v36 = vmul.f32 %v12977_v39, %v14909_v19  ;;  %v4680_v7 = vmul.f32 1.442695, %v4638_v15  ;;  %6449 = vpow2.f32 %v4674_v52  ;;  %v4678_v48 = vmul.f32 1.442695, %v4637_v16 }
 0x3da   :  { %v12989_v33 = vpop.eup %6437  ;;  %v4727_v2 = vmul.f32 %v12982_v56, %v14910_v25  ;;  %v4757_v18 = vsel %vm519_vm0, %v4726_v21, 0.0  ;;  %v4644_v19 = vsub.f32 %v12708_v42, %v12828_v60  ;;  %6451 = vpow2.f32 %v4676_v34 }
 0x3db   :  { %v12996_v44 = vadd.f32 %v4757_v18, %v4756_v8  ;;  %v4787_v57 = vsel %vm519_vm0, %v4725_v36, 0.0  ;;  %v4684_v17 = vmul.f32 1.442695, %v4640_v50  ;;  %v4233_v15 = vadd.f32 %v4232_v40, %v4231_v38 }
 0x3dc   :  { %v4788_v41 = vsel %vm519_vm0, %v4727_v2, 0.0  ;;  %v13002_v54 = vpop.eup %6439  ;;  %v4270_v26 = vadd.f32 %v4269_v63, %v4268_v45  ;;  %v4299_v25 = vadd.f32 %v4298_v1, %v4297_v9  ;;  %v4300_v16 = vsel %vm519_vm0, %v12989_v33, 0.0 }
 0x3dd   :  { %v13004_v10 = vadd.f32 %v4788_v41, %v4787_v57  ;;  %v13006_v52 = vpop.eup %6441  ;;  %v4646_v21 = vsub.f32 %v12714_v6, %v12828_v60  ;;  %6453 = vpow2.f32 %v4680_v7  ;;  %v4688_v42 = vmul.f32 1.442695, %v4642_v53  ;;  %v14911_v6 = vld [vmem:[#allocation41_spill] sm:$0xff]  ;;  %v14912_v53 = vld [vmem:[#allocation28_spill] sm:$0xff] }
 0x3de   :  { %v13014_v50 = vmul.f32 %v12924_v22, %v14908_v32  ;;  %v13017_v38 = vadd.f32 %v4203_v4, %v12943_v12  ;;  %6455 = vpow2.f32 %v4678_v48  ;;  %v4682_v41 = vmul.f32 1.442695, %v4639_v29  ;;  %v14913_v57 = vld [vmem:[#allocation29_spill] sm:$0xff] }
 0x3df   :  { %v4234_v40 = vsel %vm519_vm0, %v12941_v62, 0.0  ;;  %v4648_v45 = vsub.f32 %v12720_v0, %v12828_v60  ;;  %6457 = vpow2.f32 %v4684_v17  ;;  %v4692_v63 = vmul.f32 1.442695, %v4644_v19 }
 0x3e0   :  { %v13025_v1 = vmul.f32 %v12933_v24, %v14911_v6  ;;  %v4301_v9 = vadd.f32 %v4300_v16, %v4299_v25  ;;  %6459 = vrcp.f32 %v4270_v26  ;;  %v4641_v22 = vsub.f32 %v12699_v37, %v12870_v11 }
 0x3e1   :  { %v6444_v12 = vpop.eup %6443  ;;  %6461 = vpow2.f32 %v4688_v42  ;;  %v4696_v4 = vmul.f32 1.442695, %v4646_v21  ;;  %v4818_v34 = vsel %vm519_vm0, %v6430_v51, 0.0  ;;  %v4819_v62 = vsel %vm519_vm0, %v6432_v20, 0.0 }
 0x3e2   :  { %v13033_v0 = vsel %vm519_vm0, %v12963_v49, 0.0  ;;  %v4643_v24 = vsub.f32 %v12705_v31, %v12870_v11  ;;  %6463 = vpow2.f32 %v4682_v41  ;;  %v4728_v26 = vmul.f32 %v6444_v12, %v14912_v53 }
 0x3e3   :  { %v13038_v36 = vadd.f32 %v4234_v40, %v4233_v15  ;;  %v4650_v37 = vsub.f32 %v12726_v47, %v12828_v60  ;;  %6465 = vpow2.f32 %v4692_v63  ;;  %v4700_v8 = vmul.f32 1.442695, %v4648_v45 }
 0x3e4   :  { %v13042_v51 = vpop.eup %6445  ;;  %6467 = vrcp.f32 %v4301_v9  ;;  %v4645_v49 = vsub.f32 %v12711_v61, %v12870_v11  ;;  %v4686_v20 = vmul.f32 1.442695, %v4641_v22  ;;  %v4820_v29 = vadd.f32 %v4819_v62, %v4818_v34  ;;  %v14914_v9 = vld [vmem:[#allocation30_spill] sm:$0xff] }
 0x3e5   :  { %v6448_v7 = vpop.eup %6447  ;;  %v4652_v31 = vsub.f32 %v12738_v3, %v12828_v60  ;;  %6469 = vpow2.f32 %v4696_v4  ;;  %v4729_v2 = vmul.f32 %v13042_v51, %v14912_v53  ;;  %v4821_v47 = vsel %vm519_vm0, %v6444_v12, 0.0 }
 0x3e6   :  { %v4654_v18 = vsub.f32 %v12745_v46, %v12828_v60  ;;  %v4690_v48 = vmul.f32 1.442695, %v4643_v24  ;;  %v4730_v19 = vmul.f32 %v6448_v7, %v14913_v57  ;;  %v4759_v61 = vsel %vm519_vm0, %v4728_v26, 0.0  ;;  %v13055_v17 = vpop.eup %6449 }
 0x3e7   :  { %v4656_v15 = vsub.f32 %v12760_v30, %v12828_v60  ;;  %v4658_v3 = vsub.f32 %v12763_v35, %v12828_v60  ;;  %6471 = vpow2.f32 %v4700_v8  ;;  %v4704_v25 = vmul.f32 1.442695, %v4650_v37  ;;  %v6452_v16 = vpop.eup %6451 }
 0x3e8   :  { %v4647_v21 = vsub.f32 %v12717_v5, %v12870_v11  ;;  %6473 = vpow2.f32 %v4686_v20  ;;  %v4694_v46 = vmul.f32 1.442695, %v4645_v49  ;;  %v4822_v42 = vadd.f32 %v4821_v47, %v4820_v29 }
 0x3e9   :  { %v4731_v41 = vmul.f32 %v13055_v17, %v14913_v57  ;;  %v4760_v40 = vadd.f32 %v4759_v61, %v12996_v44  ;;  %v4790_v45 = vsel %vm519_vm0, %v4729_v2, 0.0  ;;  %v4823_v30 = vsel %vm519_vm0, %v6448_v7, 0.0  ;;  %v14915_v2 = vld [vmem:[#allocation31_spill] sm:$0xff] }
 0x3ea   :  { %v6454_v63 = vpop.eup %6453  ;;  %6475 = vpow2.f32 %v4690_v48  ;;  %v4732_v22 = vmul.f32 %v6452_v16, %v14914_v9  ;;  %v4761_v12 = vsel %vm519_vm0, %v4730_v19, 0.0  ;;  %v4824_v4 = vadd.f32 %v4823_v30, %v4822_v42 }
 0x3eb   :  { %v13070_v5 = vpop.eup %6455  ;;  %v4649_v34 = vsub.f32 %v12723_v14, %v12870_v11  ;;  %6477 = vpow2.f32 %v4704_v25  ;;  %v4708_v62 = vmul.f32 1.442695, %v4652_v31  ;;  %v4825_v44 = vsel %vm519_vm0, %v6452_v16, 0.0 }
 0x3ec   :  { %v6458_v24 = vpop.eup %6457  ;;  %v4651_v53 = vsub.f32 %v12729_v58, %v12870_v11  ;;  %v4698_v26 = vmul.f32 1.442695, %v4647_v21  ;;  %v4791_v37 = vadd.f32 %v4790_v45, %v13004_v10  ;;  %v4826_v8 = vadd.f32 %v4825_v44, %v4824_v4 }
 0x3ed   :  { %v13078_v49 = vpop.eup %6459  ;;  %v4733_v20 = vmul.f32 %v13070_v5, %v14914_v9  ;;  %v4762_v29 = vadd.f32 %v4761_v12, %v4760_v40  ;;  %v4792_v14 = vsel %vm519_vm0, %v4731_v41, 0.0  ;;  %v4827_v7 = vsel %vm519_vm0, %v6454_v63, 0.0 }
 0x3ee   :  { %v6462_v31 = vpop.eup %6461  ;;  %6479 = vpow2.f32 %v4694_v46  ;;  %v4734_v47 = vmul.f32 %v6454_v63, %v14915_v2  ;;  %v4763_v58 = vsel %vm519_vm0, %v4732_v22, 0.0  ;;  %v4828_v48 = vadd.f32 %v4827_v7, %v4826_v8  ;;  %v14916_v63 = vld [vmem:[#allocation32_spill] sm:$0xff] }
 0x3ef   :  { %v13086_v57 = vpop.eup %6463  ;;  %v4653_v10 = vsub.f32 %v12752_v28, %v12870_v11  ;;  %6481 = vpow2.f32 %v4708_v62  ;;  %v4712_v19 = vmul.f32 1.442695, %v4654_v18  ;;  %v4829_v61 = vsel %vm519_vm0, %v6458_v24, 0.0 }
 0x3f0   :  { %v6466_v25 = vpop.eup %6465  ;;  %v4655_v16 = vsub.f32 %v12755_v43, %v12870_v11  ;;  %v4702_v21 = vmul.f32 1.442695, %v4649_v34  ;;  %v4793_v46 = vadd.f32 %v4792_v14, %v4791_v37  ;;  %v4830_v42 = vadd.f32 %v4829_v61, %v4828_v48 }
 0x3f1   :  { %v13093_v41 = vpop.eup %6467  ;;  %v4735_v40 = vmul.f32 %v13086_v57, %v14915_v2  ;;  %v4764_v45 = vadd.f32 %v4763_v58, %v4762_v29  ;;  %v4794_v30 = vsel %vm519_vm0, %v4733_v20, 0.0  ;;  %v4831_v28 = vsel %vm519_vm0, %v6462_v31, 0.0 }
 0x3f2   :  { %v6470_v18 = vpop.eup %6469  ;;  %6483 = vpow2.f32 %v4698_v26  ;;  %v4736_v9 = vmul.f32 %v6458_v24, %v14916_v63  ;;  %v4765_v22 = vsel %vm519_vm0, %v4734_v47, 0.0  ;;  %v4832_v43 = vadd.f32 %v4831_v28, %v4830_v42 }
 0x3f3   :  { %v4657_v12 = vsub.f32 %v12803_v27, %v12870_v11  ;;  %6485 = vpow2.f32 %v4712_v19  ;;  %v4716_v4 = vmul.f32 1.442695, %v4656_v15  ;;  %v4833_v34 = vsel %vm519_vm0, %v6466_v25, 0.0 }
 0x3f4   :  { %v13104_v62 = vpop.eup %6471  ;;  %v4659_v44 = vsub.f32 %v12807_v13, %v12870_v11  ;;  %v4706_v37 = vmul.f32 1.442695, %v4651_v53  ;;  %v4795_v8 = vadd.f32 %v4794_v30, %v4793_v46  ;;  %v4834_v26 = vadd.f32 %v4833_v34, %v4832_v43  ;;  %v14917_v11 = vld [vmem:[#allocation33_spill] sm:$0xff] }
 0x3f5   :  { %v6474_v20 = vpop.eup %6473  ;;  %v4720_v24 = vmul.f32 1.442695, %v4658_v3  ;;  %v4766_v29 = vadd.f32 %v4765_v22, %v4764_v45  ;;  %v4796_v27 = vsel %vm519_vm0, %v4735_v40, 0.0  ;;  %v4835_v15 = vsel %vm519_vm0, %v6470_v18, 0.0  ;;  %v14918_v45 = vld [vmem:[#allocation34_spill] sm:$0xff] }
 0x3f6   :  { %6487 = vpow2.f32 %v4702_v21  ;;  %v4737_v14 = vmul.f32 %v6474_v20, %v14916_v63  ;;  %v4767_v7 = vsel %vm519_vm0, %v4736_v9, 0.0  ;;  %v4836_v2 = vadd.f32 %v4835_v15, %v4834_v26 }
 0x3f7   :  { %v6476_v13 = vpop.eup %6475  ;;  %6489 = vpow2.f32 %v4716_v4  ;;  %v4738_v53 = vmul.f32 %v6462_v31, %v14917_v11  ;;  %v4837_v47 = vsel %vm519_vm0, %v13104_v62, 0.0  ;;  %v4849_v35 = vsel %vm519_vm0, %v12977_v39, 0.0 }
 0x3f8   :  { %v13120_v60 = vpop.eup %6477  ;;  %6491 = vpow2.f32 %v4706_v37  ;;  %v4710_v3 = vmul.f32 1.442695, %v4653_v10  ;;  %v4714_v58 = vmul.f32 1.442695, %v4655_v16  ;;  %v4797_v48 = vadd.f32 %v4796_v27, %v4795_v8 }
 0x3f9   :  { %v4739_v19 = vmul.f32 %v6476_v13, %v14917_v11  ;;  %v4768_v61 = vadd.f32 %v4767_v7, %v4766_v29  ;;  %v4850_v21 = vsel %vm519_vm0, %v12982_v56, 0.0  ;;  %v4852_v31 = vsel %vm519_vm0, %v13042_v51, 0.0 }
 0x3fa   :  { %6493 = vpow2.f32 %v4720_v24  ;;  %v4798_v46 = vsel %vm519_vm0, %v4737_v14, 0.0  ;;  %v4838_v42 = vadd.f32 %v4837_v47, %v4836_v2  ;;  %v4851_v39 = vadd.f32 %v4850_v21, %v4849_v35  ;;  %v14919_v35 = vld [vmem:[#allocation36_spill] sm:$0xff] }
 0x3fb   :  { %v6480_v40 = vpop.eup %6479  ;;  %v4740_v30 = vmul.f32 %v6466_v25, %v14918_v45  ;;  %v4769_v10 = vsel %vm519_vm0, %v4738_v53, 0.0  ;;  %v4839_v16 = vsel %vm519_vm0, %v13120_v60, 0.0  ;;  %v4854_v28 = vsel %vm519_vm0, %v13055_v17, 0.0 }
 0x3fc   :  { %v13134_v56 = vpop.eup %6481  ;;  %6495 = vpow2.f32 %v4710_v3  ;;  %v4718_v51 = vmul.f32 1.442695, %v4657_v12  ;;  %v4722_v63 = vmul.f32 1.442695, %v4659_v44  ;;  %v4853_v9 = vadd.f32 %v4852_v31, %v4851_v39 }
 0x3fd   :  { %6497 = vpow2.f32 %v4714_v58  ;;  %v4741_v22 = vmul.f32 %v6480_v40, %v14918_v45  ;;  %v4799_v43 = vadd.f32 %v4798_v46, %v4797_v48  ;;  %v4856_v25 = vsel %vm519_vm0, %v13070_v5, 0.0 }
 0x3fe   :  { %v4770_v4 = vadd.f32 %v4769_v10, %v4768_v61  ;;  %v4800_v34 = vsel %vm519_vm0, %v4739_v19, 0.0  ;;  %v4840_v37 = vadd.f32 %v4839_v16, %v4838_v42  ;;  %v4855_v8 = vadd.f32 %v4854_v28, %v4853_v9  ;;  %v14920_v16 = vld [vmem:[#allocation43_spill] sm:$0xff] }
 0x3ff   :  { %v6484_v26 = vpop.eup %6483  ;;  %v4742_v17 = vmul.f32 %v6470_v18, %v14871_v55  ;;  %v4771_v24 = vsel %vm519_vm0, %v4740_v30, 0.0  ;;  %v4841_v12 = vsel %vm519_vm0, %v13134_v56, 0.0  ;;  %v4858_v44 = vsel %vm519_vm0, %v13086_v57, 0.0 }
 0x400   :  { %v13146_v29 = vpop.eup %6485  ;;  %v4177_v5 = vmul.f32 %v12989_v33, %v14911_v6  ;;  %v4236_v27 = vsel %vm519_vm0, %v13014_v50, 0.0  ;;  %6499 = vpow2.f32 %v4718_v51  ;;  %v4857_v15 = vadd.f32 %v4856_v25, %v4855_v8 }
 0x401   :  { %6501 = vpow2.f32 %v4722_v63  ;;  %v4743_v18 = vmul.f32 %v6484_v26, %v14871_v55  ;;  %v4801_v14 = vadd.f32 %v4800_v34, %v4799_v43  ;;  %v4860_v7 = vsel %vm519_vm0, %v6474_v20, 0.0 }
 0x402   :  { %v4772_v2 = vadd.f32 %v4771_v24, %v4770_v4  ;;  %v4802_v11 = vsel %vm519_vm0, %v4741_v22, 0.0  ;;  %v4842_v57 = vadd.f32 %v4841_v12, %v4840_v37  ;;  %v4859_v53 = vadd.f32 %v4858_v44, %v4857_v15 }
 0x403   :  { %v6488_v47 = vpop.eup %6487  ;;  %v4744_v33 = vmul.f32 %v13104_v62, %v14919_v35  ;;  %v4773_v3 = vsel %vm519_vm0, %v4742_v17, 0.0  ;;  %v4843_v50 = vsel %vm519_vm0, %v13146_v29, 0.0  ;;  %v4862_v58 = vsel %vm519_vm0, %v6476_v13, 0.0  ;;  %v14921_v17 = vld [vmem:[#allocation38_spill] sm:$0xff] }
 0x404   :  { %v13161_v55 = vpop.eup %6489  ;;  %v4206_v20 = vadd.f32 %v13033_v0, %v13017_v38  ;;  %v4207_v48 = vsel %vm519_vm0, %v13025_v1, 0.0  ;;  %v4237_v19 = vadd.f32 %v4236_v27, %v13038_v36  ;;  %v4861_v61 = vadd.f32 %v4860_v7, %v4859_v53 }
 0x405   :  { %v6492_v21 = vpop.eup %6491  ;;  %v4238_v62 = vsel %vm519_vm0, %v4177_v5, 0.0  ;;  %v4745_v31 = vmul.f32 %v6488_v47, %v14919_v35  ;;  %v4803_v46 = vadd.f32 %v4802_v11, %v4801_v14  ;;  %v4864_v42 = vsel %vm519_vm0, %v6480_v40, 0.0 }
 0x406   :  { %v4774_v13 = vadd.f32 %v4773_v3, %v4772_v2  ;;  %v4804_v39 = vsel %vm519_vm0, %v4743_v18, 0.0  ;;  %v4844_v45 = vadd.f32 %v4843_v50, %v4842_v57  ;;  %v4863_v30 = vadd.f32 %v4862_v58, %v4861_v61  ;;  %v14924_v58 = vld [vmem:[#allocation75_spill] sm:$0xff] }
 0x407   :  { %v13172_v38 = vpop.eup %6493  ;;  %v4746_v1 = vmul.f32 %v13120_v60, %v14888_v23  ;;  %v4775_v0 = vsel %vm519_vm0, %v4744_v33, 0.0  ;;  %v4845_v36 = vsel %vm519_vm0, %v13161_v55, 0.0  ;;  %v4866_v10 = vsel %vm519_vm0, %v6484_v26, 0.0  ;;  %v14923_v33 = vld [vmem:[#allocation39_spill] sm:$0xff] }
 0x408   :  { %v3725_v40 = vmul.f32 %v13002_v54, %v12907_v59  ;;  %v3727_v28 = vmul.f32 %v13006_v52, %v14920_v16  ;;  %v4208_v51 = vadd.f32 %v4207_v48, %v4206_v20  ;;  %v4865_v63 = vadd.f32 %v4864_v42, %v4863_v30  ;;  %v14925_v20 = vld [vmem:[#allocation92_spill] sm:$0xff] }
 0x409   :  { %v6496_v9 = vpop.eup %6495  ;;  %v4239_v22 = vadd.f32 %v4238_v62, %v4237_v19  ;;  %v4747_v43 = vmul.f32 %v6492_v21, %v14888_v23  ;;  %v4805_v60 = vadd.f32 %v4804_v39, %v4803_v46  ;;  %v4868_v25 = vsel %vm519_vm0, %v6488_v47, 0.0  ;;  %v14922_v23 = vld [vmem:[#allocation109_spill] sm:$0xff] }
 0x40a   :  { %v6498_v4 = vpop.eup %6497  ;;  %v4776_v34 = vadd.f32 %v4775_v0, %v4774_v13  ;;  %v4806_v37 = vsel %vm519_vm0, %v4745_v31, 0.0  ;;  %v4846_v8 = vadd.f32 %v4845_v36, %v4844_v45  ;;  %v4867_v26 = vadd.f32 %v4866_v10, %v4865_v63  ;;  %v14926_v0 = vld [vmem:[#allocation105_spill] sm:$0xff] }
 0x40b   :  { %v4748_v59 = vmul.f32 %v13134_v56, %v14921_v17  ;;  %v4777_v54 = vsel %vm519_vm0, %v4746_v1, 0.0  ;;  %v4847_v52 = vsel %vm519_vm0, %v13172_v38, 0.0  ;;  %v4870_v24 = vsel %vm519_vm0, %v6492_v21, 0.0 }
 0x40c   :  { %v3151_v12 = vsel %vm519_vm0, %v14922_v23, 0.0  ;;  %v3728_v44 = vsel %vm519_vm0, %v3725_v40, 0.0  ;;  %v3729_v5 = vsel %vm519_vm0, %v3727_v28, 0.0  ;;  %v4869_v27 = vadd.f32 %v4868_v25, %v4867_v26  ;;  %v14928_v28 = vld [vmem:[#allocation106_spill] sm:$0xff] }
 0x40d   :  { %v6500_v15 = vpop.eup %6499  ;;  %v4303_v18 = vmul.f32 %v13078_v49, %v4208_v51  ;;  %v4305_v56 = vmul.f32 %v13093_v41, %v4239_v22  ;;  %v4807_v14 = vadd.f32 %v4806_v37, %v4805_v60  ;;  %v4872_v7 = vsel %vm519_vm0, %v6496_v9, 0.0 }
 0x40e   :  { %v6502_v2 = vpop.eup %6501  ;;  %v4778_v11 = vadd.f32 %v4777_v54, %v4776_v34  ;;  %v4808_v57 = vsel %vm519_vm0, %v4747_v43, 0.0  ;;  %v4848_v53 = vadd.f32 %v4847_v52, %v4846_v8  ;;  %v4871_v47 = vadd.f32 %v4870_v24, %v4869_v27 }
 0x40f   :  { %v4749_v35 = vmul.f32 %v6496_v9, %v14921_v17  ;;  %v4750_v3 = vmul.f32 %v13146_v29, %v14923_v33  ;;  %v4779_v50 = vsel %vm519_vm0, %v4748_v59, 0.0  ;;  %v4874_v49 = vsel %vm519_vm0, %v6498_v4, 0.0  ;;  %v14930_v9 = vld [vmem:[#allocation107_spill] sm:$0xff] }
 0x410   :  { %v2575_v41 = vrot.slane %v14924_v58, 4  ;;  %v3152_v48 = vadd.f32 %v3151_v12, %v14925_v20  ;;  %v3730_v19 = vadd.f32 %v3729_v5, %v3728_v44  ;;  %v4873_v61 = vadd.f32 %v4872_v7, %v4871_v47 }
 0x411   :  { %v4306_v21 = vsel %vm519_vm0, %v4303_v18, 0.0  ;;  %v4307_v62 = vsel %vm519_vm0, %v4305_v56, 0.0  ;;  %v4809_v31 = vadd.f32 %v4808_v57, %v4807_v14  ;;  %v4876_v46 = vsel %vm519_vm0, %v6500_v15, 0.0 }
 0x412   :  { %v4751_v42 = vmul.f32 %v6498_v4, %v14923_v33  ;;  %v4780_v29 = vadd.f32 %v4779_v50, %v4778_v11  ;;  %v4875_v13 = vadd.f32 %v4874_v49, %v4873_v61  ;;  %6503 = vrcp.f32 %v4848_v53 }
 0x413   :  { %v4752_v39 = vmul.f32 %v13161_v55, %v14908_v32  ;;  %v4781_v45 = vsel %vm519_vm0, %v4750_v3, 0.0  ;;  %v4810_v30 = vsel %vm519_vm0, %v4749_v35, 0.0  ;;  %v4878_v1 = vsel %vm519_vm0, %v6502_v2, 0.0 }
 0x414   :  { %v14927_v36 = vrot.slane %v14926_v0, 2  ;;  %v3153_v40 = vrot.slane %v3152_v48, 4  ;;  %v4877_v16 = vadd.f32 %v4876_v46, %v4875_v13  ;;  %v14929_v51 = vrot.slane %v14928_v28, 2 }
 0x415   :  { %v1999_v22 = vrot.slane %v14930_v9, 2  ;;  %v2576_v55 = vadd.f32 %v2575_v41, %v14924_v58  ;;  %v3731_v43 = vrot.slane %v3730_v19, 4  ;;  %v4308_v60 = vadd.f32 %v4307_v62, %v4306_v21 }
 0x416   :  { %v844_v10 = vadd.f32 %v14927_v36, %v14926_v0  ;;  %v1422_v63 = vadd.f32 %v14929_v51, %v14928_v28  ;;  %v4782_v25 = vadd.f32 %v4781_v45, %v4780_v29  ;;  %v4811_v4 = vadd.f32 %v4810_v30, %v4809_v31 }
 0x417   :  { %v4879_v34 = vadd.f32 %v4878_v1, %v4877_v16  ;;  %v4753_v37 = vmul.f32 %v6500_v15, %v14908_v32  ;;  %v4754_v8 = vmul.f32 %v13172_v38, %v14911_v6  ;;  %v4783_v26 = vsel %vm519_vm0, %v4752_v39, 0.0 }
 0x418   :  { %v4812_v17 = vsel %vm519_vm0, %v4751_v42, 0.0  ;;  %v3154_v59 = vadd.f32 %v3153_v40, %v3152_v48  ;;  %v845_v54 = vrot.slane %v844_v10, 1  ;;  %v1423_v52 = vrot.slane %v1422_v63, 1 }
 0x419   :  { %6505 = vrcp.f32 %v4879_v34  ;;  %v2577_v24 = vrot.slane %v2576_v55, 2  ;;  %v2000_v23 = vadd.f32 %v1999_v22, %v14930_v9  ;;  %v4309_v12 = vrot.slane %v4308_v60, 4 }
 0x41a   :  { %v4784_v44 = vadd.f32 %v4783_v26, %v4782_v25  ;;  %v4813_v5 = vadd.f32 %v4812_v17, %v4811_v4  ;;  %v3732_v27 = vadd.f32 %v3731_v43, %v3730_v19  ;;  %v4755_v32 = vmul.f32 %v6502_v2, %v14911_v6 }
 0x41b   :  { %v4785_v15 = vsel %vm519_vm0, %v4754_v8, 0.0  ;;  %v4814_v38 = vsel %vm519_vm0, %v4753_v37, 0.0  ;;  %v3155_v18 = vrot.slane %v3154_v59, 2  ;;  %v2578_v56 = vadd.f32 %v2577_v24, %v2576_v55  ;;  %v4926_v24 = vld [vmem:[%s13530_s2 + $0x90] sm:$0xff] }
 0x41c   :  { %v2001_v14 = vrot.slane %v2000_v23, 1  ;;  %v4310_v7 = vadd.f32 %v4309_v12, %v4308_v60  ;;  %v4786_v11 = vadd.f32 %v4785_v15, %v4784_v44  ;;  %v4815_v57 = vadd.f32 %v4814_v38, %v4813_v5  ;;  %v4927_v12 = vld [vmem:[%s13530_s2 + $0x98] sm:$0xff]  ;;  %v4912_v44 = vld [vmem:[%s13530_s2 + $0x20] sm:$0xff]  ;;  %v4914_v15 = vld [vmem:[%s13530_s2 + $0x30] sm:$0xff] }
 0x41d   :  { %v846_v47 = vadd.f32 %v845_v54, %v844_v10  ;;  %v1424_v35 = vadd.f32 %v1423_v52, %v1422_v63  ;;  %v3733_v33 = vrot.slane %v3732_v27, 2  ;;  %v4816_v3 = vsel %vm519_vm0, %v4755_v32, 0.0  ;;  %v4925_v54 = vld [vmem:[%s13530_s2 + $0x88] sm:$0xff]  ;;  %v4910_v52 = vld [vmem:[%s13530_s2 + $0x10] sm:$0xff]  ;;  %v4928_v5 = vld [vmem:[%s13530_s2 + $0xa0] sm:$0xff] }
 0x41e   :  { %v3156_v50 = vadd.f32 %v3155_v18, %v3154_v59  ;;  %v2579_v49 = vrot.slane %v2578_v56, 1  ;;  %v2002_v58 = vadd.f32 %v2001_v14, %v2000_v23  ;;  %v4311_v6 = vrot.slane %v4310_v7, 2  ;;  %v4909_v59 = vld [vmem:[%s13530_s2 + $0x8] sm:$0xff]  ;;  %v4911_v23 = vld [vmem:[%s13530_s2 + $0x18] sm:$0xff]  ;;  %v4930_v38 = vld [vmem:[%s13530_s2 + $0xb0] sm:$0xff] }
 0x41f   :  { %v6504_v53 = vpop.eup %6503  ;;  %v4817_v2 = vadd.f32 %v4816_v3, %v4815_v57  ;;  %v847_v20 = vmul.f32 0.0625, %v846_v47  ;;  %v1425_v48 = vmul.f32 0.0625, %v1424_v35  ;;  %v3734_v19 = vadd.f32 %v3733_v33, %v3732_v27  ;;  %v4913_v27 = vld [vmem:[%s13530_s2 + $0x28] sm:$0xff]  ;;  %v4915_v18 = vld [vmem:[%s13530_s2 + $0x38] sm:$0xff]  ;;  %v4916_v14 = vld [vmem:[%s13530_s2 + $0x40] sm:$0xff] }
 0x420   :  { %v4881_v41 = vmul.f32 %v6504_v53, %v4786_v11  ;;  %v3157_v61 = vrot.slane %v3156_v50, 1  ;;  %v2580_v62 = vadd.f32 %v2579_v49, %v2578_v56  ;;  %v2003_v31 = vmul.f32 0.0625, %v2002_v58  ;;  %v4929_v32 = vld [vmem:[%s13530_s2 + $0xa8] sm:$0xff]  ;;  %v4931_v56 = vld [vmem:[%s13530_s2 + $0xb8] sm:$0xff]  ;;  %v4918_v53 = vld [vmem:[%s13530_s2 + $0x50] sm:$0xff] }
 0x421   :  { %v4312_v46 = vadd.f32 %v4311_v6, %v4310_v7  ;;  %v3735_v13 = vrot.slane %v3734_v19, 1  ;;  %v4895_v39 = vsel %vm4894_vm2, %v847_v20, %v1425_v48  ;;  %v4932_v7 = vld [vmem:[%s13530_s2 + $0xc0] sm:$0xff]  ;;  %v4917_v11 = vld [vmem:[%s13530_s2 + $0x48] sm:$0xff]  ;;  %v4934_v47 = vld [vmem:[%s13530_s2 + $0xd0] sm:$0xff]  ;;  %v4975_v48 = vpop.permute.xlu0 %4974 }
 0x422   :  { %v4884_v29 = vsel %vm519_vm0, %v4881_v41, 0.0  ;;  %v3158_v45 = vadd.f32 %v3157_v61, %v3156_v50  ;;  %v2581_v1 = vmul.f32 0.0625, %v2580_v62  ;;  %v4897_v10 = vsel %vm4896_vm3, %v4895_v39, %v2003_v31  ;;  %v4933_v57 = vld [vmem:[%s13530_s2 + $0xc8] sm:$0xff]  ;;  %v4919_v35 = vld [vmem:[%s13530_s2 + $0x58] sm:$0xff]  ;;  %v4920_v3 = vld [vmem:[%s13530_s2 + $0x60] sm:$0xff] }
 0x423   :  { %v4313_v36 = vrot.slane %v4312_v46, 1  ;;  %v3736_v40 = vadd.f32 %v3735_v13, %v3734_v19  ;;  %v4935_v33 = vld [vmem:[%s13530_s2 + $0xd8] sm:$0xff]  ;;  %v4936_v50 = vld [vmem:[%s13530_s2 + $0xe0] sm:$0xff]  ;;  %v4921_v49 = vld [vmem:[%s13530_s2 + $0x68] sm:$0xff]  ;;  %v4985_v19 = vpop.permute.xlu1 %4984 }
 0x424   :  { %v3159_v28 = vmul.f32 0.0625, %v3158_v45  ;;  %v4899_v63 = vsel %vm4898_vm4, %v4897_v10, %v2581_v1  ;;  %v4937_v58 = vld [vmem:[%s13530_s2 + $0xe8] sm:$0xff]  ;;  %v4922_v6 = vld [vmem:[%s13530_s2 + $0x70] sm:$0xff]  ;;  %v4923_v41 = vld [vmem:[%s13530_s2 + $0x78] sm:$0xff] }
 0x425   :  { %v4314_v9 = vadd.f32 %v4313_v36, %v4312_v46  ;;  %v3737_v22 = vmul.f32 0.0625, %v3736_v40  ;;  %v4939_v20 = vld [vmem:[%s13530_s2 + $0xf8] sm:$0xff]  ;;  %v4980_v61 = vpop.permute.xlu0 %4979 }
 0x426   :  { %v6506_v21 = vpop.eup %6505  ;;  %v4901_v43 = vsel %vm4900_vm5, %v4899_v63, %v3159_v28 }
 0x427   :  { %v4883_v42 = vmul.f32 %v6506_v21, %v4817_v2  ;;  %v4315_v25 = vmul.f32 0.0625, %v4314_v9  ;;  %v4903_v34 = vsel %vm4902_vm6, %v4901_v43, %v3737_v22  ;;  %v4938_v2 = vld [vmem:[%s13530_s2 + $0xf0] sm:$0xff]  ;;  %v4990_v21 = vpop.permute.xlu1 %4989  ;;  %s6554_s2 = smov [#allocation6]  }
 0x428   :  { %s5798_s28 = sshll.u32 %s6554_s2, 4  ;;  %s5799_s28 = int_to_ptr.vmem [resolvable:$true] %s5798_s28 }
 0x429   :  { %v4885_v30 = vsel %vm519_vm0, %v4883_v42, 0.0  ;;  %v4905_v8 = vsel %vm4904_vm7, %v4903_v34, %v4315_v25  ;;  %v4995_v62 = vpop.permute.xlu0 %4994  ;;  %s6527_s29 = scalar_lea.vmem %s5799_s28, 16  ;;  %s6531_s30 = scalar_lea.vmem %s5799_s28, 32 }
 0x42a   :  { %v4886_v0 = vadd.f32 %v4885_v30, %v4884_v29  ;;  %p6528_p5 = scmp.ne.s32.totalorder %s5799_s28, %s6527_s29  ;;  %p6532_p6 = scmp.lt.s32.totalorder %s5799_s28, %s5799_s28 }
 0x42b   :  { %v5000_v31 = vpop.permute.xlu1 %4999  ;;  %p6533_p7 = scmp.lt.s32.totalorder %s6531_s30, %s6527_s29 }
 0x42c   :  { %v4887_v16 = vrot.slane %v4886_v0, 4 }
 0x42d   :  { %v13357_v46 = vpop.permute.xlu0 %5004  ;;  %p6534_p8 = por %p6533_p7, %p6532_p6 }
 0x42e   :  { %v4888_v51 = vadd.f32 %v4887_v16, %v4886_v0 }
 0x42f   :  { %v13359_v42 = vpop.permute.xlu1 %5009  ;;  %p6535_p9 = pnand %p6534_p8, %p6528_p5 }
 0x430   :  { %v4889_v55 = vrot.slane %v4888_v51, 2 }
 0x431   :  { %v13361_v29 = vpop.permute.xlu0 %5014 }
 0x432   :  { %v4890_v60 = vadd.f32 %v4889_v55, %v4888_v51 }
 0x433   :  { %v13363_v13 = vpop.permute.xlu1 %5019 }
 0x434   :  { %v4891_v4 = vrot.slane %v4890_v60, 1 }
 0x435   :  { %v13365_v39 = vpop.permute.xlu0 %5024 }
 0x436   :  { %v4892_v37 = vadd.f32 %v4891_v4, %v4890_v60 }
 0x437   :  { %v13367_v45 = vpop.permute.xlu1 %5029 }
 0x438   :  { %v4893_v26 = vmul.f32 0.0625, %v4892_v37 }
 0x439   :  { %v13369_v30 = vpop.permute.xlu0 %5034 }
 0x43a   :  { %v4907_v17 = vsel %vm4906_vm8, %v4905_v8, %v4893_v26 }
 0x43b   :  { %5903 = vmatprep.subr.mxu0 %v4907_v17  ;;  %5953 = vmatprep.subr.mxu1 %v4907_v17  ;;  %v13371_v1 = vpop.permute.xlu1 %5039 }
 0x43c   :  { %5904 = vmatpush3.msra.mxu0 %v4907_v17  ;;  %5954 = vmatpush3.msra.mxu1 %v4907_v17 }
 0x43d   :  { %5906 = vmatmul.mubr.msk.f32.vlgmr.msra.gmra.mxu0 %vm5132_vm1, %v4909_v59  ;;  %5930 = vmatmul.mubr.msk.f32.vlgmr.msra.gmra.mxu1 %vm5132_vm1, %v4925_v54  ;;  %v13373_v0 = vpop.permute.xlu0 %5044 }
 0x43e   :  { %5908 = vmatprep.mubr.msk.f32.mxu0 %vm5132_vm1, %v4910_v52  ;;  %5932 = vmatprep.mubr.msk.f32.mxu1 %vm5132_vm1, %v4926_v24 }
 0x43f   :  { %v13375_v36 = vpop.permute.xlu1 %5049 }
 0x441   :  { %5909 = vmatmul.mubr.msk.f32.gmra.mxu0 %vm5132_vm1, %v4911_v23  ;;  %5933 = vmatmul.mubr.msk.f32.gmra.mxu1 %vm5132_vm1, %v4927_v12  ;;  %v13377_v10 = vpop.permute.xlu0 %5054 }
 0x442   :  { %5911 = vmatprep.mubr.msk.f32.mxu0 %vm5132_vm1, %v4912_v44  ;;  %5935 = vmatprep.mubr.msk.f32.mxu1 %vm5132_vm1, %v4928_v5 }
 0x443   :  { %v13379_v40 = vpop.permute.xlu1 %5059 }
 0x445   :  { %5912 = vmatmul.mubr.msk.f32.gmra.mxu0 %vm5132_vm1, %v4913_v27  ;;  %5936 = vmatmul.mubr.msk.f32.gmra.mxu1 %vm5132_vm1, %v4929_v32  ;;  %v13381_v16 = vpop.permute.xlu0 %5064 }
 0x446   :  { %5914 = vmatprep.mubr.msk.f32.mxu0 %vm5132_vm1, %v4914_v15  ;;  %5938 = vmatprep.mubr.msk.f32.mxu1 %vm5132_vm1, %v4930_v38 }
 0x447   :  { %v13383_v28 = vpop.permute.xlu1 %5069 }
 0x449   :  { %5915 = vmatmul.mubr.msk.f32.gmra.mxu0 %vm5132_vm1, %v4915_v18  ;;  %5939 = vmatmul.mubr.msk.f32.gmra.mxu1 %vm5132_vm1, %v4931_v56  ;;  %v13385_v51 = vpop.permute.xlu0 %5074 }
 0x44a   :  { %5917 = vmatprep.mubr.msk.f32.mxu0 %vm5132_vm1, %v4916_v14  ;;  %5941 = vmatprep.mubr.msk.f32.mxu1 %vm5132_vm1, %v4932_v7 }
 0x44b   :  { %v13387_v63 = vpop.permute.xlu1 %5079 }
 0x44d   :  { %5918 = vmatmul.mubr.msk.f32.gmra.mxu0 %vm5132_vm1, %v4917_v11  ;;  %5942 = vmatmul.mubr.msk.f32.gmra.mxu1 %vm5132_vm1, %v4933_v57  ;;  %v13389_v9 = vpop.permute.xlu0 %5084 }
 0x44e   :  { %5920 = vmatprep.mubr.msk.f32.mxu0 %vm5132_vm1, %v4918_v53  ;;  %5944 = vmatprep.mubr.msk.f32.mxu1 %vm5132_vm1, %v4934_v47 }
 0x44f   :  { %v13391_v22 = vpop.permute.xlu1 %5089 }
 0x451   :  { %5921 = vmatmul.mubr.msk.f32.gmra.mxu0 %vm5132_vm1, %v4919_v35  ;;  %5945 = vmatmul.mubr.msk.f32.gmra.mxu1 %vm5132_vm1, %v4935_v33  ;;  %v13393_v55 = vpop.permute.xlu0 %5094 }
 0x452   :  { %5923 = vmatprep.mubr.msk.f32.mxu0 %vm5132_vm1, %v4920_v3  ;;  %5947 = vmatprep.mubr.msk.f32.mxu1 %vm5132_vm1, %v4936_v50 }
 0x453   :  { %v13395_v43 = vpop.permute.xlu1 %5099 }
 0x455   :  { %5924 = vmatmul.mubr.msk.f32.gmra.mxu0 %vm5132_vm1, %v4921_v49  ;;  %5948 = vmatmul.mubr.msk.f32.gmra.mxu1 %vm5132_vm1, %v4937_v58  ;;  %v13397_v60 = vpop.permute.xlu0 %5104 }
 0x456   :  { %5926 = vmatprep.mubr.msk.f32.mxu0 %vm5132_vm1, %v4922_v6  ;;  %5950 = vmatprep.mubr.msk.f32.mxu1 %vm5132_vm1, %v4938_v2 }
 0x457   :  { %v13399_v25 = vpop.permute.xlu1 %5109 }
 0x459   :  { %5927 = vmatmul.mubr.msk.f32.gmra.mxu0 %vm5132_vm1, %v4923_v41  ;;  %5951 = vmatmul.mubr.msk.f32.gmra.mxu1 %vm5132_vm1, %v4939_v20  ;;  %v13401_v4 = vpop.permute.xlu0 %5114 }
 0x45b   :  { %v13403_v34 = vpop.permute.xlu1 %5119 }
 0x45d   :  { %v5521_v37 = vpop.permute.xlu0 %5520 }
 0x45f   :  { %v5526_v8 = vpop.permute.xlu1 %5525 }
 0x461   :  { %v5531_v26 = vpop.permute.xlu0 %5530 }
 0x463   :  { %v5536_v17 = vpop.permute.xlu1 %5535 }
 0x465   :  { %v5541_v59 = vpop.permute.xlu0 %5540 }
 0x467   :  { %v5546_v54 = vpop.permute.xlu1 %5545 }
 0x469   :  { %v13405_v52 = vpop.permute.xlu0 %5550 }
 0x46b   :  { %v5556_v24 = vpop.permute.xlu1 %5555 }
 0x46d   :  { %v13407_v23 = vpop.permute.xlu0 %5560 }
 0x46f   :  { %v13409_v12 = vpop.permute.xlu1 %5565 }
 0x471   :  { %v13413_v27 = vpop.permute.xlu0 %5570 }
 0x473   :  { %v13417_v18 = vpop.permute.xlu1 %5575 }
 0x475   :  { %v13421_v35 = vpop.permute.xlu0 %5580 }
 0x477   :  { %v13423_v6 = vpop.permute.xlu1 %5585 }
 0x4fd   :  { %v5907_v44 = vpop.f32.mrf.mxu0  ;;  %v13411_v5 = vpop.f32.mrf.mxu1 }
 0x4fe   :  { %v5301_v32 = vadd.f32 %v5907_v44, %v4980_v61 }
 0x4ff   :  { %v5295_v15 = vpop.f32.mrf.mxu0  ;;  %v13415_v38 = vpop.f32.mrf.mxu1 }
 0x500   :  { %v5296_v56 = vadd.f32 %v5295_v15, %v4975_v48  ;;  %v5455_v14 = vmax.f32 %v5301_v32, 0.0 }
 0x501   :  { %v5910_v7 = vpop.f32.mrf.mxu0  ;;  %v13419_v57 = vpop.f32.mrf.mxu1 }
 0x502   :  { %v5454_v11 = vmax.f32 %v5296_v56, 0.0  ;;  %v5311_v53 = vadd.f32 %v5910_v7, %v4990_v21  ;;  %v5679_v3 = vmul.f32 %v5526_v8, %v5455_v14  ;;  %v13429_v8 = vpop.permute.xlu0 %5590 }
 0x503   :  { %v5305_v47 = vpop.f32.mrf.mxu0  ;;  %v13425_v2 = vpop.f32.mrf.mxu1 }
 0x504   :  { %v5678_v33 = vmul.f32 %v5521_v37, %v5454_v11  ;;  %v5457_v50 = vmax.f32 %v5311_v53, 0.0  ;;  %v5306_v49 = vadd.f32 %v5305_v47, %v4985_v19  ;;  %v5711_v21 = vsel %vm519_vm0, %v5679_v3, 0.0  ;;  %v13435_v47 = vpop.permute.xlu1 %5595 }
 0x505   :  { %v5913_v58 = vpop.f32.mrf.mxu0  ;;  %v13431_v14 = vpop.f32.mrf.mxu1 }
 0x506   :  { %v5321_v41 = vadd.f32 %v5913_v58, %v5000_v31  ;;  %v5710_v20 = vsel %vm519_vm0, %v5678_v33, 0.0  ;;  %v5456_v48 = vmax.f32 %v5306_v49, 0.0  ;;  %v5681_v32 = vmul.f32 %v5536_v17, %v5457_v50 }
 0x507   :  { %v5315_v61 = vpop.f32.mrf.mxu0  ;;  %v5712_v19 = vadd.f32 %v5711_v21, %v5710_v20  ;;  %v13438_v49 = vpop.f32.mrf.mxu1 }
 0x508   :  { %v5316_v44 = vadd.f32 %v5315_v61, %v4995_v62  ;;  %v5680_v15 = vmul.f32 %v5531_v26, %v5456_v48  ;;  %v5459_v56 = vmax.f32 %v5321_v41, 0.0  ;;  %v5715_v33 = vsel %vm519_vm0, %v5681_v32, 0.0  ;;  %v13443_v61 = vpop.permute.xlu0 %5600 }
 0x509   :  { %v5916_v37 = vpop.f32.mrf.mxu0 }
 0x50a   :  { %v5458_v7 = vmax.f32 %v5316_v44, 0.0  ;;  %v5713_v11 = vsel %vm519_vm0, %v5680_v15, 0.0  ;;  %v5331_v31 = vadd.f32 %v5916_v37, %v13359_v42  ;;  %v5683_v17 = vmul.f32 %v5546_v54, %v5459_v56  ;;  %v13447_v15 = vpop.permute.xlu1 %5605  ;;  %v13449_v37 = vpop.f32.mrf.mxu1 }
 0x50b   :  { %v5325_v53 = vpop.f32.mrf.mxu0  ;;  %v5714_v62 = vadd.f32 %v5713_v11, %v5712_v19 }
 0x50c   :  { %v5682_v26 = vmul.f32 %v5541_v59, %v5458_v7  ;;  %v5461_v58 = vmax.f32 %v5331_v31, 0.0  ;;  %v5326_v41 = vadd.f32 %v5325_v53, %v13357_v46  ;;  %v5719_v32 = vsel %vm519_vm0, %v5683_v17, 0.0  ;;  %v13455_v17 = vpop.permute.xlu0 %5610 }
 0x50d   :  { %v5919_v3 = vpop.f32.mrf.mxu0  ;;  %v5716_v50 = vadd.f32 %v5715_v33, %v5714_v62 }
 0x50e   :  { %v5341_v20 = vadd.f32 %v5919_v3, %v13363_v13  ;;  %v5717_v48 = vsel %vm519_vm0, %v5682_v26, 0.0  ;;  %v5460_v21 = vmax.f32 %v5326_v41, 0.0  ;;  %v5685_v56 = vmul.f32 %v5556_v24, %v5461_v58  ;;  %v13458_v26 = vpop.f32.mrf.mxu1 }
 0x50f   :  { %v5335_v42 = vpop.f32.mrf.mxu0  ;;  %v5718_v44 = vadd.f32 %v5717_v48, %v5716_v50 }
 0x510   :  { %v5336_v59 = vadd.f32 %v5335_v42, %v13361_v29  ;;  %v5684_v46 = vmul.f32 %v13405_v52, %v5460_v21  ;;  %v5463_v19 = vmax.f32 %v5341_v20, 0.0  ;;  %v5723_v24 = vsel %vm519_vm0, %v5685_v56, 0.0  ;;  %v5616_v20 = vpop.permute.xlu1 %5615 }
 0x511   :  { %v5922_v54 = vpop.f32.mrf.mxu0  ;;  %v5720_v13 = vadd.f32 %v5719_v32, %v5718_v44  ;;  %v13465_v32 = vpop.f32.mrf.mxu1 }
 0x512   :  { %v5462_v7 = vmax.f32 %v5336_v59, 0.0  ;;  %v5351_v11 = vadd.f32 %v5922_v54, %v13367_v45  ;;  %v5721_v53 = vsel %vm519_vm0, %v5684_v46, 0.0  ;;  %v5687_v52 = vmul.f32 %v13409_v12, %v5463_v19 }
 0x513   :  { %v5345_v31 = vpop.f32.mrf.mxu0  ;;  %v5722_v62 = vadd.f32 %v5721_v53, %v5720_v13  ;;  %v5621_v13 = vpop.permute.xlu0 %5620 }
 0x514   :  { %v5686_v33 = vmul.f32 %v13407_v23, %v5462_v7  ;;  %v5465_v3 = vmax.f32 %v5351_v11, 0.0  ;;  %v5346_v50 = vadd.f32 %v5345_v31, %v13365_v39  ;;  %v5727_v21 = vsel %vm519_vm0, %v5687_v52, 0.0  ;;  %v5626_v53 = vpop.permute.xlu1 %5625 }
 0x515   :  { %v5925_v29 = vpop.f32.mrf.mxu0  ;;  %v5724_v58 = vadd.f32 %v5723_v24, %v5722_v62 }
 0x516   :  { %v5725_v45 = vsel %vm519_vm0, %v5686_v33, 0.0  ;;  %v5464_v48 = vmax.f32 %v5346_v50, 0.0  ;;  %v5361_v23 = vadd.f32 %v5925_v29, %v13371_v1  ;;  %v5689_v59 = vmul.f32 %v13417_v18, %v5465_v3 }
 0x517   :  { %v5355_v41 = vpop.f32.mrf.mxu0  ;;  %v5726_v42 = vadd.f32 %v5725_v45, %v5724_v58  ;;  %v5376_v1 = vadd.f32 %v13415_v38, %v13377_v10  ;;  %v5381_v18 = vadd.f32 %v13411_v5, %v13379_v40  ;;  %v5386_v10 = vadd.f32 %v13425_v2, %v13381_v16  ;;  %v5631_v50 = vpop.permute.xlu0 %5630 }
 0x518   :  { %v5688_v12 = vmul.f32 %v13413_v27, %v5464_v48  ;;  %v5467_v39 = vmax.f32 %v5361_v23, 0.0  ;;  %v5356_v56 = vadd.f32 %v5355_v41, %v13369_v30  ;;  %v5415_v27 = vpop.f32.mrf.mxu1  ;;  %v5731_v62 = vsel %vm519_vm0, %v5689_v59, 0.0  ;;  %v5636_v41 = vpop.permute.xlu1 %5635 }
 0x519   :  { %v5928_v44 = vpop.f32.mrf.mxu0  ;;  %v5728_v54 = vadd.f32 %v5727_v21, %v5726_v42  ;;  %v5470_v3 = vmax.f32 %v5376_v1, 0.0  ;;  %v5471_v40 = vmax.f32 %v5381_v18, 0.0  ;;  %v5472_v16 = vmax.f32 %v5386_v10, 0.0 }
 0x51a   :  { %v5729_v19 = vsel %vm519_vm0, %v5688_v12, 0.0  ;;  %v5371_v7 = vadd.f32 %v5928_v44, %v13375_v36  ;;  %v5466_v31 = vmax.f32 %v5356_v56, 0.0  ;;  %v5691_v33 = vmul.f32 %v13423_v6, %v5467_v39  ;;  %v5946_v5 = vpop.f32.mrf.mxu1 }
 0x51b   :  { %v5365_v46 = vpop.f32.mrf.mxu0  ;;  %v5730_v11 = vadd.f32 %v5729_v19, %v5728_v54  ;;  %v5694_v42 = vmul.f32 %v13443_v61, %v5470_v3  ;;  %v5396_v2 = vadd.f32 %v13438_v49, %v13385_v51  ;;  %v5641_v59 = vpop.permute.xlu0 %5640  ;;  %v5696_v54 = vmul.f32 %v13455_v17, %v5472_v16 }
 0x51c   :  { %v5366_v30 = vadd.f32 %v5365_v46, %v13373_v0  ;;  %v5690_v29 = vmul.f32 %v13421_v35, %v5466_v31  ;;  %v5469_v36 = vmax.f32 %v5371_v7, 0.0  ;;  %v5391_v0 = vadd.f32 %v13419_v57, %v13383_v28  ;;  %v5425_v44 = vpop.f32.mrf.mxu1  ;;  %v5646_v49 = vpop.permute.xlu1 %5645 }
 0x51d   :  { %v5732_v24 = vadd.f32 %v5731_v62, %v5730_v11  ;;  %v5735_v6 = vsel %vm519_vm0, %v5691_v33, 0.0  ;;  %v5695_v28 = vmul.f32 %v13447_v15, %v5471_v40  ;;  %v5741_v61 = vsel %vm519_vm0, %v5694_v42, 0.0 }
 0x51e   :  { %v5468_v52 = vmax.f32 %v5366_v30, 0.0  ;;  %v5733_v38 = vsel %vm519_vm0, %v5690_v29, 0.0  ;;  %v5693_v35 = vmul.f32 %v13435_v47, %v5469_v36  ;;  %v5473_v57 = vmax.f32 %v5391_v0, 0.0  ;;  %v5949_v56 = vpop.f32.mrf.mxu1 }
 0x51f   :  { %v5734_v58 = vadd.f32 %v5733_v38, %v5732_v24  ;;  %v5401_v47 = vadd.f32 %v13431_v14, %v13387_v63  ;;  %v5474_v39 = vmax.f32 %v5396_v2, 0.0  ;;  %v5406_v51 = vadd.f32 %v13458_v26, %v13389_v9  ;;  %v5651_v18 = vpop.permute.xlu0 %5650 }
 0x520   :  { %v5692_v45 = vmul.f32 %v13429_v8, %v5468_v52  ;;  %v5739_v8 = vsel %vm519_vm0, %v5693_v35, 0.0  ;;  %v5743_v15 = vsel %vm519_vm0, %v5695_v28, 0.0  ;;  %v5697_v19 = vmul.f32 %v5616_v20, %v5473_v57  ;;  %v5435_v62 = vpop.f32.mrf.mxu1  ;;  %v5656_v29 = vpop.permute.xlu1 %5655 }
 0x521   :  { %v5736_v48 = vadd.f32 %v5735_v6, %v5734_v58  ;;  %v5475_v7 = vmax.f32 %v5401_v47, 0.0  ;;  %v5411_v63 = vadd.f32 %v13449_v37, %v13391_v22  ;;  %v5745_v1 = vsel %vm519_vm0, %v5696_v54, 0.0 }
 0x522   :  { %v5737_v23 = vsel %vm519_vm0, %v5692_v45, 0.0  ;;  %v5698_v11 = vmul.f32 %v5621_v13, %v5474_v39  ;;  %v5476_v31 = vmax.f32 %v5406_v51, 0.0  ;;  %v5416_v17 = vadd.f32 %v5415_v27, %v13393_v55  ;;  %v5952_v52 = vpop.f32.mrf.mxu1 }
 0x523   :  { %v5738_v21 = vadd.f32 %v5737_v23, %v5736_v48  ;;  %v5747_v26 = vsel %vm519_vm0, %v5697_v19, 0.0  ;;  %v5699_v30 = vmul.f32 %v5626_v53, %v5475_v7  ;;  %v5477_v33 = vmax.f32 %v5411_v63, 0.0  ;;  %v5125_v38 = vpop.permute.xlu0 %5124 }
 0x524   :  { %v5421_v20 = vadd.f32 %v13465_v32, %v13395_v43  ;;  %v5749_v22 = vsel %vm519_vm0, %v5698_v11, 0.0  ;;  %v5700_v37 = vmul.f32 %v5631_v50, %v5476_v31  ;;  %v5478_v36 = vmax.f32 %v5416_v17, 0.0  ;;  %v5661_v50 = vpop.permute.xlu1 %5660  ;;  %v5445_v6 = vpop.f32.mrf.mxu1 }
 0x525   :  { %v5740_v12 = vadd.f32 %v5739_v8, %v5738_v21  ;;  %v5426_v13 = vadd.f32 %v5425_v44, %v13397_v60  ;;  %v5751_v27 = vsel %vm519_vm0, %v5699_v30, 0.0  ;;  %v5701_v3 = vmul.f32 %v5636_v41, %v5477_v33 }
 0x526   :  { %v5479_v10 = vmax.f32 %v5421_v20, 0.0  ;;  %v5431_v53 = vadd.f32 %v5946_v5, %v13399_v25  ;;  %v5753_v43 = vsel %vm519_vm0, %v5700_v37, 0.0  ;;  %v5702_v32 = vmul.f32 %v5641_v59, %v5478_v36 }
 0x527   :  { %v5742_v46 = vadd.f32 %v5741_v61, %v5740_v12  ;;  %v5480_v58 = vmax.f32 %v5426_v13, 0.0  ;;  %v5436_v0 = vadd.f32 %v5435_v62, %v13401_v4  ;;  %v5755_v60 = vsel %vm519_vm0, %v5701_v3, 0.0  ;;  %v5130_v23 = vpop.permute.xlu0 %5129 }
 0x528   :  { %v5703_v45 = vmul.f32 %v5646_v49, %v5479_v10  ;;  %v5481_v48 = vmax.f32 %v5431_v53, 0.0  ;;  %v5441_v41 = vadd.f32 %v5949_v56, %v13403_v34  ;;  %v5757_v25 = vsel %vm519_vm0, %v5702_v32, 0.0  ;;  %v5666_v47 = vpop.permute.xlu1 %5665 }
 0x529   :  { %v5744_v14 = vadd.f32 %v5743_v15, %v5742_v46  ;;  %v5704_v5 = vmul.f32 %v5651_v18, %v5480_v58  ;;  %v5482_v16 = vmax.f32 %v5436_v0, 0.0  ;;  %v5446_v2 = vadd.f32 %v5445_v6, %v5125_v38 }
 0x52a   :  { %v5759_v21 = vsel %vm519_vm0, %v5703_v45, 0.0  ;;  %v5705_v4 = vmul.f32 %v5656_v29, %v5481_v48  ;;  %v5483_v28 = vmax.f32 %v5441_v41, 0.0  ;;  %v5451_v57 = vadd.f32 %v5952_v52, %v5130_v23  ;;  %v14931_v29 = vld [vmem:[#allocation18_spill] sm:$0xff] }
 0x52b   :  { %v5746_v9 = vadd.f32 %v5745_v1, %v5744_v14  ;;  %v5761_v59 = vsel %vm519_vm0, %v5704_v5, 0.0  ;;  %v5706_v12 = vmul.f32 %v5661_v50, %v5482_v16  ;;  %v5484_v61 = vmax.f32 %v5446_v2, 0.0  ;;  %v5671_v49 = vpop.permute.xlu0 %5670 }
 0x52c   :  { %v5763_v54 = vsel %vm519_vm0, %v5705_v4, 0.0  ;;  %v5707_v39 = vmul.f32 %v5666_v47, %v5483_v28  ;;  %v5485_v51 = vmax.f32 %v5451_v57, 0.0  ;;  %v5676_v19 = vpop.permute.xlu1 %5675 }
 0x52d   :  { %v5748_v24 = vadd.f32 %v5747_v26, %v5746_v9  ;;  %v5765_v46 = vsel %vm519_vm0, %v5706_v12, 0.0  ;;  %v5708_v15 = vmul.f32 %v5671_v49, %v5484_v61 }
 0x52e   :  { %v5767_v63 = vsel %vm519_vm0, %v5707_v39, 0.0  ;;  %v5709_v14 = vmul.f32 %v5676_v19, %v5485_v51 }
 0x52f   :  { %v5750_v55 = vadd.f32 %v5749_v22, %v5748_v24  ;;  %v5769_v11 = vsel %vm519_vm0, %v5708_v15, 0.0  ;;  %v5783_v33 = vpop.permute.xlu0 %5782 }
 0x530   :  { %v5771_v17 = vsel %vm519_vm0, %v5709_v14, 0.0  ;;  %v5788_v24 = vrot.slane %v5783_v33, %v14931_v29 }
 0x531   :  { %v5752_v40 = vadd.f32 %v5751_v27, %v5750_v55 }
 0x533   :  { %v5754_v35 = vadd.f32 %v5753_v43, %v5752_v40 }
 0x535   :  { %v5756_v42 = vadd.f32 %v5755_v60, %v5754_v35 }
 0x537   :  { %v5758_v44 = vadd.f32 %v5757_v25, %v5756_v42 }
 0x539   :  { %v5760_v8 = vadd.f32 %v5759_v21, %v5758_v44 }
 0x53b   :  { %v5762_v34 = vadd.f32 %v5761_v59, %v5760_v8 }
 0x53d   :  { %v5764_v56 = vadd.f32 %v5763_v54, %v5762_v34 }
 0x53f   :  { %v5766_v7 = vadd.f32 %v5765_v46, %v5764_v56 }
 0x541   :  { %v5768_v1 = vadd.f32 %v5767_v63, %v5766_v7 }
 0x543   :  { %v5770_v31 = vadd.f32 %v5769_v11, %v5768_v1 }
 0x545   :  { %v5772_v18 = vadd.f32 %v5771_v17, %v5770_v31 }
 0x547   :  { %v5773_v62 = vrot.slane %v5772_v18, 4 }
 0x549   :  { %v5774_v9 = vadd.f32 %v5773_v62, %v5772_v18 }
 0x54b   :  { %v5775_v26 = vrot.slane %v5774_v9, 2 }
 0x54d   :  { %v5776_v30 = vadd.f32 %v5775_v26, %v5774_v9 }
 0x54f   :  { %v5777_v20 = vrot.slane %v5776_v30, 1 }
 0x551   :  { %v5778_v22 = vadd.f32 %v5777_v20, %v5776_v30 }
 0x553   :  { %v5789_v37 = vadd.f32 %v5788_v24, %v5778_v22 }
 0x555   :  { %5791 = vst.msk [vmem:[#allocation6] sm:$0x1] %vm5790_vm9, %v5789_v37 }
 0x556   :  { %6538 = shalt.err (!%p6535_p9)
}
 0x557   :  { %5801 = dma.vmem_to_hbm [thread:$0]  %s5799_s28, 16, %s13534_s6, [#allocation4]  }
 0x558   :  { %6549 = dma.done.wait [#allocation4], 16  }
 0x559   :  { %6550 = vsyncadd [#allocation4], 4294967280 }
 0x55a   :  { %5805 = vsyncpa [#allocation4], 1 }
 0x55b   :  { %5806 = vsyncpa [#allocation5], 1 }

</bundles_post_ra>
